<compile_context>
chip_gen: v7x
topology: tpu7x:2x2x1
jax: 0.10.0
libtpu: 0.0.40
codegen_flags: <defaults>
</compile_context>

<pallas_src>
import jax
import jax.numpy as jnp
from jax.experimental import pallas as pl
from jax.experimental.pallas import tpu as pltpu


# --------------------------- shared tail math ---------------------------------

def _apply_tail(h, tail_refs):
    """hidden[1:] + output Linear + log_softmax on VMEM-resident activations.

    tail_refs is a flat tuple (w_ref, b_ref, ...); weights are bf16, biases f32.
    The output layer is lane-padded to a 128 multiple; padded bias columns carry
    -1e30 so exp() == 0 and the normalization over the real classes is unchanged.
    Returns f32 [B, n_pad] log-probabilities.
    """
    n_tail = len(tail_refs) // 2
    out = None
    for i in range(n_tail):
        w_ref, b_ref = tail_refs[2 * i], tail_refs[2 * i + 1]
        # bf16 x bf16 on the MXU (v5e-friendly), f32 accumulation.
        z = jnp.dot(h.astype(w_ref.dtype), w_ref[...],
                    preferred_element_type=jnp.float32) + b_ref[...]
        if i < n_tail - 1:
            h = jnp.maximum(z, 0.0)      # ReLU (dropout p=0.03 == eval identity)
        else:
            m = jnp.max(z, axis=1, keepdims=True)
            s = z - m
            lse = jnp.log(jnp.sum(jnp.exp(s), axis=1, keepdims=True))
            out = s - lse
    return out


# --------------------------- kernels -------------------------------------------

def _fused_kernel(*refs):
    """Single-call path: K-tiled layer 1 + full tail fused into k==last epilogue.

    Ref order: x, w1(int8), scale1, b1, [w,b pairs for hidden[1:]+output], o, acc.
    """
    x_ref, w1_ref, s1_ref, b1_ref = refs[:4]
    tail = refs[4:-2]
    o_ref, acc_ref = refs[-2], refs[-1]

    k = pl.program_id(0)

    @pl.when(k == 0)
    def _():
        acc_ref[...] = jnp.zeros_like(acc_ref)

    # Weight-only dequant: int8 tile -> bf16 (scale applied once in epilogue),
    # bf16 x bf16 on the MXU with f32 accumulation.
    acc_ref[...] += jnp.dot(x_ref[...], w1_ref[...].astype(jnp.bfloat16),
                            preferred_element_type=jnp.float32)

    @pl.when(k == pl.num_programs(0) - 1)
    def _():
        # Fold per-column dequant scale + bias + ReLU here (once).
        h = jnp.maximum(acc_ref[...] * s1_ref[...] + b1_ref[...], 0.0)
        o_ref[...] = _apply_tail(h, tail).astype(o_ref.dtype)


def _layer1_kernel(x_ref, w1_ref, s1_ref, b1_ref, h_ref, acc_ref):
    """Dual-TensorCore path: layer 1 only; N split over leading 'parallel' axis."""
    k = pl.program_id(1)

    @pl.when(k == 0)
    def _():
        acc_ref[...] = jnp.zeros_like(acc_ref)

    acc_ref[...] += jnp.dot(x_ref[...], w1_ref[...].astype(jnp.bfloat16),
                            preferred_element_type=jnp.float32)

    @pl.when(k == pl.num_programs(1) - 1)
    def _():
        h_ref[...] = jnp.maximum(acc_ref[...] * s1_ref[...] + b1_ref[...], 0.0)


def _tail_kernel(*refs):
    """Dual-TensorCore path: hidden[1:] + output + log_softmax on [B, N1]."""
    h_ref = refs[0]
    tail = refs[1:-1]
    o_ref = refs[-1]
    o_ref[...] = _apply_tail(h_ref[...], tail).astype(o_ref.dtype)


# --------------------------- wrapper helpers -----------------------------------

def _pick_tk(K, max_tk=12544):
    """Largest 128-multiple divisor of K that is <= max_tk (25088 -> 12544)."""
    if K <= max_tk or K % 128 != 0:
        return K
    for steps in range(2, K // 128 + 1):
        if K % steps == 0:
            tk = K // steps
            if tk % 128 == 0 and tk <= max_tk:
                return tk
    return K


def _num_tensorcores():
    """2 on chips that shard 'parallel' grid axes across two TensorCores (v7x)."""
    try:
        kind = jax.devices()[0].device_kind.lower()
    except Exception:
        return 1
    return 2 if ("v7" in kind or "7x" in kind) else 1


def _pad_output_layer(w_out, b_out):
    n_classes = w_out.shape[1]
    n_pad = ((n_classes + 127) // 128) * 128
    if n_pad != n_classes:
        w_out = jnp.pad(w_out, ((0, 0), (0, n_pad - n_classes)))
        b_out = jnp.pad(b_out, ((0, 0), (0, n_pad - n_classes)),
                        constant_values=-1e30)
    return w_out, b_out, n_classes, n_pad


# --------------------------- forward --------------------------------------------

def flower_classifier_forward(x, params, *, split_layer1=None, max_tk=12544):
    """Forward pass matching FlowerClassifier.forward (dropout = eval identity).

    x should be supplied in bf16 (the kernel is HBM-bound; an f32 x stream is
    ~1/3 of total bytes).  split_layer1=None auto-selects the dual-TensorCore
    path on v7x-class chips.
    """
    if x.dtype != jnp.bfloat16:
        # Fallback only: callers should emit bf16 from the feature extractor.
        x = x.astype(jnp.bfloat16)

    B, K = x.shape
    w1_q, s1, b1 = params["hidden"][0]
    N1 = w1_q.shape[1]

    # Trailing (weight, bias) pairs: hidden[1:] then the (lane-padded) output.
    tail_wb = [tuple(p) for p in params["hidden"][1:]] + [tuple(params["output"])]
    w_out, b_out, n_classes, n_pad = _pad_output_layer(*tail_wb[-1])
    tail_wb[-1] = (w_out, b_out)

    tk = _pick_tk(K, max_tk)
    assert K % tk == 0 and tk % 128 == 0

    if split_layer1 is None:
        split_layer1 = (_num_tensorcores() >= 2) and (N1 % 256 == 0)

    tail_args = []
    tail_specs = []
    for (w, b) in tail_wb:                               # tiny, whole-array resident
        tail_args.extend([w, b])
        tail_specs.append(pl.BlockSpec(w.shape, lambda *_: (0, 0)))
        tail_specs.append(pl.BlockSpec(b.shape, lambda *_: (0, 0)))

    # Advisory cost estimate (mem-bound custom call): lets XLA schedule the
    # producer of x / consumers of the logits around it sensibly.
    flops = 2 * B * K * N1
    bytes_accessed = (x.size * x.dtype.itemsize + int(w1_q.size)
                      + s1.size * 4 + b1.size * 4 + B * n_pad * 4)
    for (w, b) in tail_wb:
        flops += 2 * B * w.shape[0] * w.shape[1]
        bytes_accessed += w.size * w.dtype.itemsize + b.size * b.dtype.itemsize
    transcendentals = B * (n_pad + 1)

    vmem_limit = 40 * 1024 * 1024   # > v5e's 16 MiB default; fits v7x's 64 MiB

    if not split_layer1:
        # ---- single fused pallas_call (v5e / v6e) -------------------------------
        in_specs = [
            pl.BlockSpec((B, tk), lambda k: (0, k)),      # x: K-tiled, bf16
            pl.BlockSpec((tk, N1), lambda k: (k, 0)),     # W1: K-tiled int8 stream
            pl.BlockSpec((1, N1), lambda k: (0, 0)),      # per-column dequant scale
            pl.BlockSpec((1, N1), lambda k: (0, 0)),      # b1
        ] + tail_specs
        out_padded = pl.pallas_call(
            _fused_kernel,
            out_shape=jax.ShapeDtypeStruct((B, n_pad), jnp.float32),
            grid_spec=pltpu.PrefetchScalarGridSpec(
                num_scalar_prefetch=0,
                grid=(K // tk,),
                in_specs=in_specs,
                out_specs=pl.BlockSpec((B, n_pad), lambda k: (0, 0)),
                scratch_shapes=[pltpu.VMEM((B, N1), jnp.float32)],
            ),
            compiler_params=pltpu.CompilerParams(
                dimension_semantics=("arbitrary",),        # single reduction axis
                vmem_limit_bytes=vmem_limit,
            ),
            cost_estimate=pl.CostEstimate(
                flops=flops, transcendentals=transcendentals,
                bytes_accessed=bytes_accessed),
        )(x, w1_q, s1, b1, *tail_args)
        return out_padded[:, :n_classes]

    # ---- dual-TensorCore path (v7x): split layer-1 N over a parallel axis -------
    assert N1 % 256 == 0, "N-split path needs N1 to be a multiple of 256"
    tn1 = N1 // 2
    h = pl.pallas_call(
        _layer1_kernel,
        out_shape=jax.ShapeDtypeStruct((B, N1), jnp.float32),
        grid_spec=pltpu.PrefetchScalarGridSpec(
            num_scalar_prefetch=0,
            grid=(2, K // tk),                             # (N-half, K-tile)
            in_specs=[
                pl.BlockSpec((B, tk), lambda n, k: (0, k)),
                pl.BlockSpec((tk, tn1), lambda n, k: (k, n)),  # each core: half of W1
                pl.BlockSpec((1, tn1), lambda n, k: (0, n)),
                pl.BlockSpec((1, tn1), lambda n, k: (0, n)),
            ],
            out_specs=pl.BlockSpec((B, tn1), lambda n, k: (0, n)),
            scratch_shapes=[pltpu.VMEM((B, tn1), jnp.float32)],
        ),
        compiler_params=pltpu.CompilerParams(
            dimension_semantics=("parallel", "arbitrary"),
            vmem_limit_bytes=vmem_limit,
        ),
        cost_estimate=pl.CostEstimate(
            flops=2 * B * K * N1, transcendentals=0,
            bytes_accessed=x.size * x.dtype.itemsize + int(w1_q.size) + B * N1 * 4),
    )(x, w1_q, s1, b1)

    out_padded = pl.pallas_call(
        _tail_kernel,
        out_shape=jax.ShapeDtypeStruct((B, n_pad), jnp.float32),
        grid_spec=pltpu.PrefetchScalarGridSpec(
            num_scalar_prefetch=0,
            grid=(1,),
            in_specs=[pl.BlockSpec((B, N1), lambda i: (0, 0))] + tail_specs,
            out_specs=pl.BlockSpec((B, n_pad), lambda i: (0, 0)),
        ),
        compiler_params=pltpu.CompilerParams(
            dimension_semantics=("arbitrary",)),
    )(h, *tail_args)
    return out_padded[:, :n_classes]


# --------------------------- parameter init ------------------------------------

def init_params(key, hidden_layers_size, in_features=25088, out_features=102):
    """PyTorch-Linear-style U(-1/sqrt(fan_in), 1/sqrt(fan_in)) init.

    Layer 1 is stored weight-only quantized: int8 weight + per-output-column
    f32 scale (the network is HBM-bound on streaming this weight).  The tiny
    remaining weights are stored in bf16; all biases stay f32.
    """
    sizes = [in_features] + list(hidden_layers_size)
    hidden = []
    for i in range(len(hidden_layers_size)):
        key, kw, kb = jax.random.split(key, 3)
        bound = 1.0 / float(sizes[i]) ** 0.5
        w = jax.random.uniform(kw, (sizes[i], sizes[i + 1]), jnp.float32,
                               -bound, bound)
        b = jax.random.uniform(kb, (1, sizes[i + 1]), jnp.float32, -bound, bound)
        if i == 0:
            scale = jnp.maximum(
                jnp.max(jnp.abs(w), axis=0, keepdims=True) / 127.0, 1e-8)
            w_q = jnp.clip(jnp.round(w / scale), -127, 127).astype(jnp.int8)
            hidden.append((w_q, scale.astype(jnp.float32), b))
        else:
            hidden.append((w.astype(jnp.bfloat16), b))
    key, kw, kb = jax.random.split(key, 3)
    bound = 1.0 / float(hidden_layers_size[-1]) ** 0.5
    w = jax.random.uniform(kw, (hidden_layers_size[-1], out_features),
                           jnp.float32, -bound, bound)
    b = jax.random.uniform(kb, (1, out_features), jnp.float32, -bound, bound)
    return {"hidden": hidden, "output": (w.astype(jnp.bfloat16), b)}


def _reference_forward(x, params):
    """Pure-JAX reference using the SAME stored (quantized) params."""
    w1_q, s1, b1 = params["hidden"][0]
    acc = jnp.dot(x.astype(jnp.bfloat16), w1_q.astype(jnp.bfloat16),
                  preferred_element_type=jnp.float32)
    h = jnp.maximum(acc * s1 + b1, 0.0)
    for (w, b) in params["hidden"][1:]:
        h = jnp.maximum(
            jnp.dot(h.astype(w.dtype), w, preferred_element_type=jnp.float32) + b,
            0.0)
    w_o, b_o = params["output"]
    z = jnp.dot(h.astype(w_o.dtype), w_o, preferred_element_type=jnp.float32) + b_o
    return jax.nn.log_softmax(z, axis=1)


# --------------------------- main ------------------------------------------------

if __name__ == "__main__":
    key = jax.random.PRNGKey(0)
    key, kx, kp = jax.random.split(key, 3)

    B = 128                               # larger batch amortizes the W1 stream
    hidden_layers_size = [256, 128]
    # x emitted in bf16 at the source (no f32 stream / wrapper-side astype).
    x = jax.random.normal(kx, (B, 25088), dtype=jnp.bfloat16)

    params = init_params(kp, hidden_layers_size)
    ref = _reference_forward(x, params)

    # Fused single-call path (default on single-TensorCore chips: v5e / v6e).
    out_fused = jax.block_until_ready(
        flower_classifier_forward(x, params, split_layer1=False))
    # Dual-TensorCore N-split path (auto-selected on v7x); verified on any chip.
    out_split = jax.block_until_ready(
        flower_classifier_forward(x, params, split_layer1=True))
    # Auto-selected path (what a caller would use).
    out_auto = jax.block_until_ready(flower_classifier_forward(x, params))

    for out in (out_fused, out_split, out_auto):
        assert out.shape == (B, 102)
        assert jnp.allclose(out, ref, atol=2e-3, rtol=2e-3), \
            "mismatch vs JAX reference"

    print("KERNEL_OK")
</pallas_src>

<mosaic_0001>
module attributes {stable_mosaic.version = 11 : i64} {
  func.func @_fused_kernel(%arg0: i32, %arg1: memref<128x12544xbf16, #tpu.memory_space<vmem>>, %arg2: memref<12544x256xi8, #tpu.memory_space<vmem>>, %arg3: memref<1x256xf32, #tpu.memory_space<vmem>>, %arg4: memref<1x256xf32, #tpu.memory_space<vmem>>, %arg5: memref<256x128xbf16, #tpu.memory_space<vmem>>, %arg6: memref<1x128xf32, #tpu.memory_space<vmem>>, %arg7: memref<128x128xbf16, #tpu.memory_space<vmem>>, %arg8: memref<1x128xf32, #tpu.memory_space<vmem>>, %arg9: memref<128x128xf32, #tpu.memory_space<vmem>>, %arg10: memref<128x256xf32, #tpu.memory_space<vmem>>) attributes {dimension_semantics = [#tpu.dimension_semantics<arbitrary>], iteration_bounds = array<i64: 2>, scalar_prefetch = 0 : i64, scratch_operands = 1 : i64, tpu.core_type = #tpu.core_type<tc>, window_params = [{transform_indices = @transform_0, window_bounds = array<i64: 128, 12544>}, {transform_indices = @transform_1, window_bounds = array<i64: 12544, 256>}, {pipeline_mode = #tpu.pipeline_mode<synchronous>, transform_indices = @transform_2, window_bounds = array<i64: 1, 256>}, {pipeline_mode = #tpu.pipeline_mode<synchronous>, transform_indices = @transform_3, window_bounds = array<i64: 1, 256>}, {pipeline_mode = #tpu.pipeline_mode<synchronous>, transform_indices = @transform_4, window_bounds = array<i64: 256, 128>}, {pipeline_mode = #tpu.pipeline_mode<synchronous>, transform_indices = @transform_5, window_bounds = array<i64: 1, 128>}, {pipeline_mode = #tpu.pipeline_mode<synchronous>, transform_indices = @transform_6, window_bounds = array<i64: 128, 128>}, {pipeline_mode = #tpu.pipeline_mode<synchronous>, transform_indices = @transform_7, window_bounds = array<i64: 1, 128>}, {pipeline_mode = #tpu.pipeline_mode<synchronous>, transform_indices = @transform_8, window_bounds = array<i64: 128, 128>}]} {
    %c0_i32 = arith.constant 0 : i32
    %0 = arith.cmpi eq, %arg0, %c0_i32 : i32
    %1 = arith.extui %0 : i1 to i32
    %c0_i32_0 = arith.constant 0 : i32
    %2 = arith.cmpi ne, %1, %c0_i32_0 : i32
    scf.if %2 {
      %cst_9 = arith.constant 0.000000e+00 : f32
      %13 = vector.broadcast %cst_9 : f32 to vector<128x256xf32>
      %c0_10 = arith.constant 0 : index
      %c0_11 = arith.constant 0 : index
      %14 = vector.load %arg10[%c0_10, %c0_11] : memref<128x256xf32, #tpu.memory_space<vmem>>, vector<128x256xf32>
      tpu.vector_store %arg10[%c0_10, %c0_11], %13 {strides = array<i32>} : memref<128x256xf32, #tpu.memory_space<vmem>>, vector<128x256xf32>,
    } else {
    }
    %c0 = arith.constant 0 : index
    %c0_1 = arith.constant 0 : index
    %3 = vector.load %arg10[%c0, %c0_1] : memref<128x256xf32, #tpu.memory_space<vmem>>, vector<128x256xf32>
    %c0_2 = arith.constant 0 : index
    %c0_3 = arith.constant 0 : index
    %4 = vector.load %arg1[%c0_2, %c0_3] : memref<128x12544xbf16, #tpu.memory_space<vmem>>, vector<128x12544xbf16>
    %c0_4 = arith.constant 0 : index
    %c0_5 = arith.constant 0 : index
    %5 = vector.load %arg2[%c0_4, %c0_5] : memref<12544x256xi8, #tpu.memory_space<vmem>>, vector<12544x256xi8>
    %6 = arith.sitofp %5 : vector<12544x256xi8> to vector<12544x256xbf16>
    %cst = arith.constant dense<0.000000e+00> : vector<128x256xf32>
    %7 = tpu.matmul %4, %6, %cst {dimension_numbers = #tpu.dot_dimension_numbers<[1], [0], [0], [1], [0, 0, 1, 1], [], []>} : vector<128x12544xbf16>, vector<12544x256xbf16>, vector<128x256xf32> -> vector<128x256xf32>
    %8 = arith.addf %3, %7 : vector<128x256xf32>
    %c0_6 = arith.constant 0 : index
    %c0_7 = arith.constant 0 : index
    %9 = vector.load %arg10[%c0_6, %c0_7] : memref<128x256xf32, #tpu.memory_space<vmem>>, vector<128x256xf32>
    tpu.vector_store %arg10[%c0_6, %c0_7], %8 {strides = array<i32>} : memref<128x256xf32, #tpu.memory_space<vmem>>, vector<128x256xf32>,
    %c1_i32 = arith.constant 1 : i32
    %10 = arith.cmpi eq, %arg0, %c1_i32 : i32
    %11 = arith.extui %10 : i1 to i32
    %c0_i32_8 = arith.constant 0 : i32
    %12 = arith.cmpi ne, %11, %c0_i32_8 : i32
    scf.if %12 {
      %c0_9 = arith.constant 0 : index
      %c0_10 = arith.constant 0 : index
      %13 = vector.load %arg10[%c0_9, %c0_10] : memref<128x256xf32, #tpu.memory_space<vmem>>, vector<128x256xf32>
      %c0_11 = arith.constant 0 : index
      %c0_12 = arith.constant 0 : index
      %14 = vector.load %arg3[%c0_11, %c0_12] : memref<1x256xf32, #tpu.memory_space<vmem>>, vector<1x256xf32>
      %15 = vector.broadcast %14 : vector<1x256xf32> to vector<128x256xf32>
      %16 = arith.mulf %13, %15 : vector<128x256xf32>
      %c0_13 = arith.constant 0 : index
      %c0_14 = arith.constant 0 : index
      %17 = vector.load %arg4[%c0_13, %c0_14] : memref<1x256xf32, #tpu.memory_space<vmem>>, vector<1x256xf32>
      %18 = vector.broadcast %17 : vector<1x256xf32> to vector<128x256xf32>
      %19 = arith.addf %16, %18 : vector<128x256xf32>
      %cst_15 = arith.constant 0.000000e+00 : f32
      %20 = vector.broadcast %cst_15 : f32 to vector<128x256xf32>
      %21 = arith.maximumf %19, %20 : vector<128x256xf32>
      %22 = arith.truncf %21 : vector<128x256xf32> to vector<128x256xbf16>
      %c0_16 = arith.constant 0 : index
      %c0_17 = arith.constant 0 : index
      %23 = vector.load %arg5[%c0_16, %c0_17] : memref<256x128xbf16, #tpu.memory_space<vmem>>, vector<256x128xbf16>
      %cst_18 = arith.constant dense<0.000000e+00> : vector<128x128xf32>
      %24 = tpu.matmul %22, %23, %cst_18 {dimension_numbers = #tpu.dot_dimension_numbers<[1], [0], [0], [1], [0, 0, 1, 1], [], []>} : vector<128x256xbf16>, vector<256x128xbf16>, vector<128x128xf32> -> vector<128x128xf32>
      %c0_19 = arith.constant 0 : index
      %c0_20 = arith.constant 0 : index
      %25 = vector.load %arg6[%c0_19, %c0_20] : memref<1x128xf32, #tpu.memory_space<vmem>>, vector<1x128xf32>
      %26 = vector.broadcast %25 : vector<1x128xf32> to vector<128x128xf32>
      %27 = arith.addf %24, %26 : vector<128x128xf32>
      %cst_21 = arith.constant 0.000000e+00 : f32
      %28 = vector.broadcast %cst_21 : f32 to vector<128x128xf32>
      %29 = arith.maximumf %27, %28 : vector<128x128xf32>
      %30 = arith.truncf %29 : vector<128x128xf32> to vector<128x128xbf16>
      %c0_22 = arith.constant 0 : index
      %c0_23 = arith.constant 0 : index
      %31 = vector.load %arg7[%c0_22, %c0_23] : memref<128x128xbf16, #tpu.memory_space<vmem>>, vector<128x128xbf16>
      %cst_24 = arith.constant dense<0.000000e+00> : vector<128x128xf32>
      %32 = tpu.matmul %30, %31, %cst_24 {dimension_numbers = #tpu.dot_dimension_numbers<[1], [0], [0], [1], [0, 0, 1, 1], [], []>} : vector<128x128xbf16>, vector<128x128xbf16>, vector<128x128xf32> -> vector<128x128xf32>
      %c0_25 = arith.constant 0 : index
      %c0_26 = arith.constant 0 : index
      %33 = vector.load %arg8[%c0_25, %c0_26] : memref<1x128xf32, #tpu.memory_space<vmem>>, vector<1x128xf32>
      %34 = vector.broadcast %33 : vector<1x128xf32> to vector<128x128xf32>
      %35 = arith.addf %32, %34 : vector<128x128xf32>
      %cst_27 = arith.constant dense<0xFF800000> : vector<128xf32>
      %36 = vector.multi_reduction <maximumf>, %35, %cst_27 [1] : vector<128x128xf32> to vector<128xf32>
      %37 = vector.shape_cast %36 : vector<128xf32> to vector<128x1xf32>
      %38 = vector.broadcast %37 : vector<128x1xf32> to vector<128x128xf32>
      %39 = arith.subf %35, %38 : vector<128x128xf32>
      %40 = math.exp %39 : vector<128x128xf32>
      %cst_28 = arith.constant dense<0.000000e+00> : vector<128xf32>
      %41 = vector.multi_reduction <add>, %40, %cst_28 [1] : vector<128x128xf32> to vector<128xf32>
      %42 = vector.shape_cast %41 : vector<128xf32> to vector<128x1xf32>
      %43 = math.log %42 : vector<128x1xf32>
      %44 = vector.broadcast %43 : vector<128x1xf32> to vector<128x128xf32>
      %45 = arith.subf %39, %44 : vector<128x128xf32>
      %c0_29 = arith.constant 0 : index
      %c0_30 = arith.constant 0 : index
      %46 = vector.load %arg9[%c0_29, %c0_30] : memref<128x128xf32, #tpu.memory_space<vmem>>, vector<128x128xf32>
      tpu.vector_store %arg9[%c0_29, %c0_30], %45 {strides = array<i32>} : memref<128x128xf32, #tpu.memory_space<vmem>>, vector<128x128xf32>,
    } else {
    }
    return
  }
  func.func @transform_0(%arg0: i32) -> (i32, i32) {
    %c0_i32 = arith.constant 0 : i32
    %c0_i32_0 = arith.constant 0 : i32
    return %c0_i32, %arg0 : i32, i32
  }
  func.func @transform_1(%arg0: i32) -> (i32, i32) {
    %c0_i32 = arith.constant 0 : i32
    %c0_i32_0 = arith.constant 0 : i32
    return %arg0, %c0_i32 : i32, i32
  }
  func.func @transform_2(%arg0: i32) -> (i32, i32) {
    %c0_i32 = arith.constant 0 : i32
    %c0_i32_0 = arith.constant 0 : i32
    %c0_i32_1 = arith.constant 0 : i32
    return %c0_i32, %c0_i32_0 : i32, i32
  }
  func.func @transform_3(%arg0: i32) -> (i32, i32) {
    %c0_i32 = arith.constant 0 : i32
    %c0_i32_0 = arith.constant 0 : i32
    %c0_i32_1 = arith.constant 0 : i32
    return %c0_i32, %c0_i32_0 : i32, i32
  }
  func.func @transform_4(%arg0: i32) -> (i32, i32) {
    %c0_i32 = arith.constant 0 : i32
    %c0_i32_0 = arith.constant 0 : i32
    %c0_i32_1 = arith.constant 0 : i32
    return %c0_i32, %c0_i32_0 : i32, i32
  }
  func.func @transform_5(%arg0: i32) -> (i32, i32) {
    %c0_i32 = arith.constant 0 : i32
    %c0_i32_0 = arith.constant 0 : i32
    %c0_i32_1 = arith.constant 0 : i32
    return %c0_i32, %c0_i32_0 : i32, i32
  }
  func.func @transform_6(%arg0: i32) -> (i32, i32) {
    %c0_i32 = arith.constant 0 : i32
    %c0_i32_0 = arith.constant 0 : i32
    %c0_i32_1 = arith.constant 0 : i32
    return %c0_i32, %c0_i32_0 : i32, i32
  }
  func.func @transform_7(%arg0: i32) -> (i32, i32) {
    %c0_i32 = arith.constant 0 : i32
    %c0_i32_0 = arith.constant 0 : i32
    %c0_i32_1 = arith.constant 0 : i32
    return %c0_i32, %c0_i32_0 : i32, i32
  }
  func.func @transform_8(%arg0: i32) -> (i32, i32) {
    %c0_i32 = arith.constant 0 : i32
    %c0_i32_0 = arith.constant 0 : i32
    %c0_i32_1 = arith.constant 0 : i32
    return %c0_i32, %c0_i32_0 : i32, i32
  }
}

</mosaic_0001>

<bundles_post_ra>
// kernel: tpu_custom_call.1
= control target key start
LH: loop header
LB: loop body
LE: loop exit
PB: predicated region body
PF: predicated region fallthrough
CT: control target
= control target key end

     0   :  { %s20558_s0 = inlined_call_operand.hbm [shape: bf16[128,25088], index: 0, kind: input, shape index: {}]   ;;  %s20559_s1 = inlined_call_operand.hbm [shape: s8[25088,256], index: 1, kind: input, shape index: {}]   ;;  %s20560_s2 = inlined_call_operand.hbm [shape: f32[1,256], index: 2, kind: input, shape index: {}]   ;;  %s20561_s3 = inlined_call_operand.hbm [shape: f32[1,256], index: 3, kind: input, shape index: {}]   ;;  %s20562_s4 = inlined_call_operand.hbm [shape: bf16[256,128], index: 4, kind: input, shape index: {}]   ;;  %s20563_s5 = inlined_call_operand.hbm [shape: f32[1,128], index: 5, kind: input, shape index: {}]   ;;  %s20564_s6 = inlined_call_operand.hbm [shape: bf16[128,128], index: 6, kind: input, shape index: {}]   ;;  %s20565_s7 = inlined_call_operand.hbm [shape: f32[1,128], index: 7, kind: input, shape index: {}]   ;;  %s20566_s8 = inlined_call_operand.hbm [shape: f32[128,128], index: 8, kind: output, shape index: {}]  }
   0x1   :  { %20569 = sst [smem:[#allocation25_spill]] %s20558_s0 }
   0x2   :  { %20570 = sst [smem:[#allocation26_spill]] %s20560_s2 }
   0x3   :  { %20571 = sst [smem:[#allocation27_spill]] %s20561_s3 }
   0x4   :  { %13 = vsyncpa [#allocation4], 0 }
   0x5   :  { %15 = vsyncpa [#allocation4 + $0x1], 0 }
   0x6   :  { %16 = vsyncpa [#allocation7], 0 }
   0x7   :  { %18 = vsyncpa [#allocation7 + $0x1], 0 }
   0x8   :  { %19 = vsyncpa [#allocation10], 0 }
   0x9   :  { %20 = vsyncpa [#allocation13], 0 }
   0xa   :  { %21 = vsyncpa [#allocation16], 0 }
   0xb   :  { %22 = vsyncpa [#allocation5], 0  ;;  %s18357_s27 = smov 0   ;;  %s18359_s28 = smov 0  }
   0xc   :  { %s18361_s29 = smov 0   ;;  %s18363_s30 = smov 0  }
   0xd LB: > { %s18293_s9 = smov [#allocation8]   ;;  %s18378_s11 = sadd.s32 4294967295, %s18291_s30   ;;  %s18291_s30 = sphi %s18363_s30, %s20595_s30   ;;  %s18287_s29 = sphi %s18361_s29, %s20594_s29   ;;  %s18283_s28 = sphi %s18359_s28, %s20593_s28   ;;  %s18279_s27 = sphi %s18357_s27, %s20592_s27  }
   0xe   : > { %s245_s10 = sshll.u32 %s18293_s9, 4  ;;  %p14072_p0 = scmp.ge.s32.totalorder %s18291_s30, 1  ;;  %s18384_s10 = int_to_ptr.vmem [resolvable:$true] %s245_s10 }
   0xf   : > { %p20567_p1 = scmp.eq.s32.totalorder %s18378_s11, 0  ;;  %p232_p2 = scmp.lt.s32.totalorder %s18291_s30, 3 }
  0x10   : > { %s18294_s13 = smov [#allocation9]   ;;  %s18295_s15 = smov [#allocation12]  }
  0x11   : > { %p18386_p4 = pnand %p14072_p0, %p232_p2  ;;  %s256_s14 = sshll.u32 %s18294_s13, 4  ;;  %s18392_s14 = int_to_ptr.vmem [resolvable:$true] %s256_s14 }
  0x12   : > { %s280_s16 = sshll.u32 %s18295_s15, 4  ;;  %s18296_s18 = smov [#allocation11]   ;;  %s18400_s16 = int_to_ptr.vmem [resolvable:$true] %s280_s16 }
  0x13   : > { %s20572_s12 = scalar_select %p18386_p4, 1, 0 }
  0x14   : > { %p16625_p5 = pneg %p18386_p4  ;;  %s18402_s19 = sshll.u32 %s18296_s18, 4  ;;  %s267_s19 = int_to_ptr.vmem [resolvable:$true] %s18402_s19 }
  0x15   : > { %s20574_s2 = sld [smem:[#allocation26_spill]] }
  0x16   : > { %p18396_p6 = pnand %p16625_p5, %p20567_p1 }
  0x18   : > { %p18412_p8 = pneg %p18396_p6 }
  0x1b   : > { %s17979_s22 = scalar_lea.hbm %s20574_s2, 32 }
  0x1c   : > { %p17980_p7 = scmp.ne.s32.totalorder %s20574_s2, %s17979_s22  ;;  %p17986_p11 = scmp.lt.u32.totalorder %s17979_s22, %s20574_s2 }
  0x1e   : > { %p17982_p9 = pnand %p18412_p8, %p17980_p7 }
  0x20   : > { %p17983_p10 = pneg %p17982_p9 }
  0x22   : > { %p17988_p12 = pnand %p17986_p11, %p17983_p10 }
  0x24   : > { %17991 = shalt.err (!%p17988_p12)
}
  0x25   : > { %s17992_s13 = scalar_lea.vmem %s18384_s10, 32  ;;  %p18000_p5 = scmp.lt.s32.totalorder %s18384_s10, %s18384_s10 }
  0x26   : > { %p17993_p13 = scmp.ne.s32.totalorder %s18384_s10, %s17992_s13  ;;  %p18001_p3 = scmp.lt.s32.totalorder %s17992_s13, %s17992_s13 }
  0x28   : > { %p17995_p0 = pnand %p17993_p13, %p18412_p8  ;;  %p18002_p7 = por %p18001_p3, %p18000_p5 }
  0x2a   : > { %p17996_p2 = pneg %p17995_p0 }
  0x2c   : > { %p18003_p9 = pnand %p18002_p7, %p17996_p2 }
  0x2e   : > { %18006 = shalt.err (!%p18003_p9)
}
  0x2f   : > { %16628 = dma.hbm_to_vmem [thread:$0]  (!%p18396_p6), %s20574_s2, 32, %s18384_s10, [#allocation7]  }
  0x30   : > { %s20576_s3 = sld [smem:[#allocation27_spill]] }
  0x36   : > { %s18007_s22 = scalar_lea.hbm %s20576_s3, 32 }
  0x37   : > { %p18008_p10 = scmp.ne.s32.totalorder %s20576_s3, %s18007_s22  ;;  %p18014_p12 = scmp.lt.u32.totalorder %s18007_s22, %s20576_s3 }
  0x39   : > { %p18010_p3 = pnand %p18008_p10, %p18412_p8 }
  0x3b   : > { %p18011_p11 = pneg %p18010_p3 }
  0x3d   : > { %p18016_p13 = pnand %p18014_p12, %p18011_p11 }
  0x3f   : > { %18019 = shalt.err (!%p18016_p13)
}
  0x40   : > { %s18020_s10 = scalar_lea.vmem %s18392_s14, 32  ;;  %p18028_p7 = scmp.lt.s32.totalorder %s18392_s14, %s18392_s14 }
  0x41   : > { %p18021_p0 = scmp.ne.s32.totalorder %s18392_s14, %s18020_s10  ;;  %p18029_p9 = scmp.lt.s32.totalorder %s18020_s10, %s18020_s10 }
  0x43   : > { %p18023_p2 = pnand %p18021_p0, %p18412_p8  ;;  %p18030_p10 = por %p18029_p9, %p18028_p7 }
  0x45   : > { %p18024_p5 = pneg %p18023_p2 }
  0x47   : > { %p18031_p3 = pnand %p18030_p10, %p18024_p5 }
  0x49   : > { %18034 = shalt.err (!%p18031_p3)
}
  0x4a   : > { %16631 = dma.hbm_to_vmem [thread:$0]  (!%p18396_p6), %s20576_s3, 32, %s18392_s14, [#allocation10]  }
  0x4b   : > { %s18035_s21 = scalar_lea.hbm %s20563_s5, 16 }
  0x4c   : > { %p18036_p11 = scmp.ne.s32.totalorder %s20563_s5, %s18035_s21  ;;  %p18042_p0 = scmp.lt.u32.totalorder %s18035_s21, %s20563_s5 }
  0x4e   : > { %p18038_p12 = pnand %p18036_p11, %p18412_p8 }
  0x50   : > { %p18039_p13 = pneg %p18038_p12 }
  0x52   : > { %p18044_p2 = pnand %p18042_p0, %p18039_p13 }
  0x54   : > { %18047 = shalt.err (!%p18044_p2)
}
  0x55   : > { %s18048_s14 = scalar_lea.vmem %s18400_s16, 16  ;;  %s18055_s9 = scalar_lea.vmem %s18400_s16, 32 }
  0x56   : > { %p18049_p5 = scmp.ne.s32.totalorder %s18400_s16, %s18048_s14  ;;  %p18056_p10 = scmp.lt.s32.totalorder %s18400_s16, %s18400_s16 }
  0x57   : > { %p18057_p3 = scmp.lt.s32.totalorder %s18055_s9, %s18048_s14 }
  0x58   : > { %p18051_p7 = pnand %p18049_p5, %p18412_p8 }
  0x59   : > { %p18058_p11 = por %p18057_p3, %p18056_p10 }
  0x5a   : > { %p18052_p9 = pneg %p18051_p7 }
  0x5c   : > { %p18059_p12 = pnand %p18058_p11, %p18052_p9 }
  0x5e   : > { %18062 = shalt.err (!%p18059_p12)
}
  0x5f   : > { %16637 = dma.hbm_to_vmem [thread:$0]  (!%p18396_p6), %s20563_s5, 16, %s18400_s16, [#allocation13]  }
  0x60   : > { %s18063_s20 = scalar_lea.hbm %s20562_s4, 2048 }
  0x61   : > { %p18064_p13 = scmp.ne.s32.totalorder %s20562_s4, %s18063_s20  ;;  %p18070_p5 = scmp.lt.u32.totalorder %s18063_s20, %s20562_s4 }
  0x63   : > { %p18066_p0 = pnand %p18064_p13, %p18412_p8 }
  0x65   : > { %p18067_p2 = pneg %p18066_p0 }
  0x67   : > { %p18072_p7 = pnand %p18070_p5, %p18067_p2 }
  0x69   : > { %18075 = shalt.err (!%p18072_p7)
}
  0x6a   : > { %s18076_s26 = scalar_lea.vmem %s267_s19, 2048  ;;  %p18084_p11 = scmp.lt.s32.totalorder %s267_s19, %s267_s19 }
  0x6b   : > { %p18077_p9 = scmp.ne.s32.totalorder %s267_s19, %s18076_s26  ;;  %p18085_p12 = scmp.lt.s32.totalorder %s18076_s26, %s18076_s26 }
  0x6d   : > { %p18079_p10 = pnand %p18077_p9, %p18412_p8  ;;  %p18086_p1 = por %p18085_p12, %p18084_p11 }
  0x6f   : > { %p18080_p3 = pneg %p18079_p10 }
  0x71   : > { %p18087_p4 = pnand %p18086_p1, %p18080_p3 }
  0x73   : > { %18090 = shalt.err (!%p18087_p4)
}
  0x74   : > { %s18297_s16 = smov 64   ;;  %s18298_s14 = smov 4  }
  0x75   : > { %16634 = dma.hbm_to_vmem [thread:$0]  (!%p18396_p6), %s20562_s4, 2048, %s267_s19, [#allocation10], %s18297_s16, %s18297_s16, %s18298_s14  }
  0x76   : > { %s18299_s13 = smov [#allocation14]   ;;  %s18300_s18 = smov [#allocation15]  }
  0x77   : > { %s290_s15 = sshll.u32 %s18299_s13, 4  ;;  %s304_s20 = sshll.u32 %s18300_s18, 4  ;;  %s291_s15 = int_to_ptr.vmem [resolvable:$true] %s290_s15  ;;  %s18499_s20 = int_to_ptr.vmem [resolvable:$true] %s304_s20 }
  0x78   : > { %s18091_s23 = scalar_lea.hbm %s20564_s6, 1024 }
  0x79   : > { %p18092_p1 = scmp.ne.s32.totalorder %s20564_s6, %s18091_s23  ;;  %p18098_p0 = scmp.lt.u32.totalorder %s18091_s23, %s20564_s6 }
  0x7b   : > { %p18094_p4 = pnand %p18092_p1, %p18412_p8 }
  0x7d   : > { %p18095_p13 = pneg %p18094_p4 }
  0x7f   : > { %p18100_p2 = pnand %p18098_p0, %p18095_p13 }
  0x81   : > { %18103 = shalt.err (!%p18100_p2)
}
  0x82   : > { %s18104_s10 = scalar_lea.vmem %s291_s15, 1024  ;;  %p18112_p10 = scmp.lt.s32.totalorder %s291_s15, %s291_s15 }
  0x83   : > { %p18105_p5 = scmp.ne.s32.totalorder %s291_s15, %s18104_s10  ;;  %p18113_p3 = scmp.lt.s32.totalorder %s18104_s10, %s18104_s10 }
  0x85   : > { %p18107_p7 = pnand %p18105_p5, %p18412_p8  ;;  %p18114_p11 = por %p18113_p3, %p18112_p10 }
  0x87   : > { %p18108_p9 = pneg %p18107_p7 }
  0x89   : > { %p18115_p12 = pnand %p18114_p11, %p18108_p9 }
  0x8b   : > { %18118 = shalt.err (!%p18115_p12)
}
  0x8c   : > { %16640 = dma.hbm_to_vmem [thread:$0]  (!%p18396_p6), %s20564_s6, 1024, %s291_s15, [#allocation13], %s18297_s16, %s18297_s16, %s18298_s14  }
  0x8d   : > { %s18119_s23 = scalar_lea.hbm %s20565_s7, 16 }
  0x8e   : > { %p18120_p1 = scmp.ne.s32.totalorder %s20565_s7, %s18119_s23  ;;  %p18126_p0 = scmp.lt.u32.totalorder %s18119_s23, %s20565_s7 }
  0x90   : > { %p18122_p4 = pnand %p18120_p1, %p18412_p8 }
  0x92   : > { %p18123_p13 = pneg %p18122_p4 }
  0x94   : > { %p18128_p2 = pnand %p18126_p0, %p18123_p13 }
  0x96   : > { %18131 = shalt.err (!%p18128_p2)
}
  0x97   : > { %s18132_s16 = scalar_lea.vmem %s18499_s20, 16  ;;  %s18139_s14 = scalar_lea.vmem %s18499_s20, 32 }
  0x98   : > { %p18133_p5 = scmp.ne.s32.totalorder %s18499_s20, %s18132_s16  ;;  %p18140_p10 = scmp.lt.s32.totalorder %s18499_s20, %s18499_s20 }
  0x99   : > { %p18141_p3 = scmp.lt.s32.totalorder %s18139_s14, %s18132_s16 }
  0x9a   : > { %p18135_p7 = pnand %p18133_p5, %p18412_p8 }
  0x9b   : > { %p18142_p11 = por %p18141_p3, %p18140_p10 }
  0x9c   : > { %p18136_p9 = pneg %p18135_p7 }
  0x9e   : > { %p18143_p12 = pnand %p18142_p11, %p18136_p9 }
  0xa0   : > { %18146 = shalt.err (!%p18143_p12)
}
  0xa1   : > { %16643 = dma.hbm_to_vmem [thread:$0]  (!%p18396_p6), %s20565_s7, 16, %s18499_s20, [#allocation16]  }
  0xa2   : > { %s18544_s25 = sadd.s32 1, %s18291_s30   ;;  %s35_s17 = sadd.s32 1, %s18287_s29 }
  0xa3   : > { %s32_s13 = ssub.s32 %s18291_s30, %s18544_s25  ;;  %p42_p8 = scmp.ne.s32.totalorder %s18287_s29, %s18283_s28 }
  0xa4   : > { %p33_p1 = scmp.eq.s32.totalorder %s32_s13, 0  ;;  %p43_p4 = scmp.eq.s32.totalorder %s18291_s30, 0 }
  0xa5   : > { %p48_p13 = scmp.ne.s32.totalorder %s18283_s28, %s18279_s27  ;;  %p16657_p0 = scmp.lt.s32.totalorder %s18291_s30, 2 }
  0xa6   : > { %s18556_s18 = scalar_select %p33_p1, %s18287_s29, %s35_s17  }
  0xa7   : > { %p44_p2 = por %p43_p4, %p42_p8  ;;  %p20577_p5 = scmp.eq.s32.totalorder %s18378_s11, 0 }
  0xa8   : > { %s315_s20 = sand.u32 1, %s18287_s29   ;;  %s14906_s22 = smul.u32 6272, %s18291_s30 }
  0xa9   : > { %p18560_p7 = por %p20577_p5, %p48_p13  ;;  %s18566_s23 = smul.u32 6272, %s315_s20 }
  0xaa   : > { %s20579_s0 = sld [smem:[#allocation25_spill]]  ;;  %p18573_p6 = pnand %p16657_p0, %p44_p2 }
  0xab   : > { %s319_s19 = scalar_lea.vmem [#allocation3], %s18566_s23  ;;  %s18581_s15 = scalar_lea.sflag [#allocation4], %s315_s20 }
  0xac   : > { %s326_s16 = sshll.u32 %s319_s19, 4  ;;  %p18149_p10 = pneg %p18573_p6  ;;  %s18578_s16 = int_to_ptr.vmem [resolvable:$true] %s326_s16 }
  0xb0   : > { %s18571_s9 = scalar_lea.hbm %s20579_s0, %s14906_s22  ;;  %s18152_s22 = scalar_lea.hbm %s20579_s0, 200704 }
  0xb1   : > { %s18147_s10 = scalar_lea.hbm %s18571_s9, 100352  ;;  %p18153_p12 = scmp.lt.u32.totalorder %s18571_s9, %s20579_s0 }
  0xb2   : > { %p18148_p9 = scmp.ne.s32.totalorder %s18571_s9, %s18147_s10  ;;  %p18154_p8 = scmp.lt.u32.totalorder %s18152_s22, %s18147_s10 }
  0xb3   : > { %p18156_p4 = scmp.lt.u32.totalorder %s18147_s10, %s18571_s9 }
  0xb4   : > { %p18150_p3 = pnand %p18149_p10, %p18148_p9  ;;  %p18155_p1 = por %p18154_p8, %p18153_p12 }
  0xb6   : > { %p18151_p11 = pneg %p18150_p3  ;;  %p18157_p13 = por %p18156_p4, %p18155_p1 }
  0xb8   : > { %p18158_p0 = pnand %p18157_p13, %p18151_p11 }
  0xba   : > { %18161 = shalt.err (!%p18158_p0)
}
  0xbb   : > { %s18162_s20 = scalar_lea.vmem %s18578_s16, 100352  ;;  %s18301_s19 = smov [#allocation3]  }
  0xbc   : > { %p18163_p2 = scmp.ne.s32.totalorder %s18578_s16, %s18162_s20  ;;  %s18167_s17 = sshll.u32 %s18301_s19, 4  ;;  %s18168_s17 = int_to_ptr.vmem [resolvable:$false] %s18167_s17 }
  0xbd   : > { %s18169_s13 = scalar_lea.vmem %s18168_s17, 200704  ;;  %p18170_p3 = scmp.lt.s32.totalorder %s18578_s16, %s18168_s17 }
  0xbe   : > { %p18165_p5 = pnand %p18163_p2, %p18149_p10  ;;  %p18171_p12 = scmp.lt.s32.totalorder %s18169_s13, %s18162_s20 }
  0xc0   : > { %p18166_p9 = pneg %p18165_p5  ;;  %p18172_p8 = por %p18171_p12, %p18170_p3 }
  0xc2   : > { %p18173_p1 = pnand %p18172_p8, %p18166_p9 }
  0xc4   : > { %18176 = shalt.err (!%p18173_p1)
}
  0xc5   : > { %s18302_s10 = smov 12544   ;;  %s18303_s22 = smov 6272  }
  0xc6   : > { %s18304_s24 = smov 392   ;;  %s14909_s26 = smul.u32 100352, %s18291_s30 }
  0xc7   : > { %16647 = dma.hbm_to_vmem [thread:$0]  (!%p18573_p6), %s18571_s9, 100352, %s18578_s16, %s18581_s15, %s18302_s10, %s18303_s22, %s18304_s24  }
  0xc8   : > { %s340_s19 = scalar_lea.vmem [#allocation6], %s18566_s23  ;;  %s18616_s14 = scalar_lea.hbm %s20559_s1, %s14909_s26 }
  0xc9   : > { %s348_s17 = sshll.u32 %s340_s19, 4  ;;  %s20581_s0 = sand.u32 1, %s18291_s30   ;;  %s18611_s17 = int_to_ptr.vmem [resolvable:$true] %s348_s17 }
  0xca   : > { %s18620_s2 = scalar_lea.sflag [#allocation7], %s20581_s0  ;;  %s18177_s3 = scalar_lea.hbm %s18616_s14, 100352 }
  0xcb   : > { %p18178_p11 = scmp.ne.s32.totalorder %s18616_s14, %s18177_s3  ;;  %s18182_s16 = scalar_lea.hbm %s20559_s1, 200704 }
  0xcc   : > { %p18183_p0 = scmp.lt.u32.totalorder %s18616_s14, %s20559_s1  ;;  %p18184_p2 = scmp.lt.u32.totalorder %s18182_s16, %s18177_s3 }
  0xcd   : > { %p18180_p4 = pnand %p18178_p11, %p18149_p10  ;;  %p18186_p9 = scmp.lt.u32.totalorder %s18177_s3, %s18616_s14 }
  0xce   : > { %p18185_p5 = por %p18184_p2, %p18183_p0 }
  0xcf   : > { %p18181_p13 = pneg %p18180_p4 }
  0xd0   : > { %p18187_p3 = por %p18186_p9, %p18185_p5 }
  0xd2   : > { %p18188_p12 = pnand %p18187_p3, %p18181_p13 }
  0xd4   : > { %18191 = shalt.err (!%p18188_p12)
}
  0xd5   : > { %s18192_s0 = scalar_lea.vmem %s18611_s17, 100352  ;;  %s18305_s30 = smov [#allocation6]  }
  0xd6   : > { %p18193_p8 = scmp.ne.s32.totalorder %s18611_s17, %s18192_s0  ;;  %s18197_s22 = sshll.u32 %s18305_s30, 4  ;;  %s18198_s22 = int_to_ptr.vmem [resolvable:$false] %s18197_s22 }
  0xd7   : > { %s18199_s24 = scalar_lea.vmem %s18198_s22, 200704  ;;  %p18200_p4 = scmp.lt.s32.totalorder %s18611_s17, %s18198_s22 }
  0xd8   : > { %p18195_p1 = pnand %p18193_p8, %p18149_p10  ;;  %p18201_p0 = scmp.lt.s32.totalorder %s18199_s24, %s18192_s0 }
  0xda   : > { %p18196_p11 = pneg %p18195_p1  ;;  %p18202_p2 = por %p18201_p0, %p18200_p4 }
  0xdc   : > { %p18203_p5 = pnand %p18202_p2, %p18196_p11 }
  0xde   : > { %18206 = shalt.err (!%p18203_p5)
}
  0xdf   : > { %s18306_s3 = smov 256   ;;  %s18307_s26 = smov 16  }
  0xe0   : > { %16650 = dma.hbm_to_vmem [thread:$0]  (!%p18573_p6), %s18616_s14, 100352, %s18611_s17, %s18620_s2, %s18306_s3, %s18306_s3, %s18307_s26  }
  0xe1   : > { %p20582_p10 = scmp.ne.s32.totalorder %s20572_s12, 0 }
  0xe2   : > { %s362_s19 = sand.u32 (!%p20582_p10), 1, %s18283_s28  }
  0xe3   : > { %360 = sbr.rel (%p20582_p10) target bundleno = 2984 (0xba8), region = 52  ;;  %s363_s13 = scalar_lea.sflag (!%p20582_p10), [#allocation4], %s362_s19 }
  0xe4   : > { %s16592_s20 = smul.u32 (!%p20582_p10), 6272, %s362_s19 }
  0xe6   : > { %s18649_s23 = scalar_lea.vmem (!%p20582_p10), [#allocation3], %s16592_s20 }
  0xea   : > { %18250 = dma.done.wait (%p18560_p7), %s363_s13, 100352  }
  0xeb   : > { %18252 = vsyncadd (%p18560_p7), %s363_s13, 4294866944  ;;  %s371_s9 = sand.u32 1, %s18378_s11   ;;  %s18656_s2 = scalar_lea.vmem [#allocation6], %s16592_s20 }
  0xec   : > { %s372_s27 = scalar_lea.sflag [#allocation7], %s371_s9 }
  0xed   : > { %18254 = dma.done.wait (%p18560_p7), %s372_s27, 100352  }
  0xee   : > { %18256 = vsyncadd (%p18560_p7), %s372_s27, 4294866944  ;;  %p20583_p6 = scmp.eq.s32.totalorder %s18378_s11, 0 }
  0xf0   : > { %18258 = dma.done.wait (%p20583_p6), [#allocation7], 32   ;;  %p20584_p13 = pmov %p20583_p6 }
  0xf1   : > { %p20585_p9 = pmov %p20583_p6 }
  0xf2   : > { %18260 = vsyncadd (%p20584_p13), [#allocation7], 4294967264 }
  0xf3   : > { %18262 = dma.done.wait (%p20585_p9), [#allocation10], 2080   ;;  %p20586_p3 = pmov %p20583_p6 }
  0xf5   : > { %18264 = vsyncadd (%p20586_p3), [#allocation10], 4294965216  ;;  %p20587_p12 = pmov %p20586_p3 }
  0xf6   : > { %p20588_p8 = pmov %p20586_p3 }
  0xf7   : > { %18266 = dma.done.wait (%p20587_p12), [#allocation13], 1040  }
  0xf8   : > { %18268 = vsyncadd (%p20588_p8), [#allocation13], 4294966256  ;;  %p20589_p7 = pmov %p20586_p3 }
  0xf9   : > { %p20590_p1 = pmov %p20586_p3 }
  0xfa   : > { %18270 = dma.done.wait (%p20589_p7), [#allocation16], 16  }
  0xfb   : > { %18272 = vsyncadd (%p20590_p1), [#allocation16], 4294967280  ;;  %p20591_p11 = scmp.ne.s32.totalorder %s18378_s11, 0 }
  0xfc   : > { %v18308_v0 = vmov (!%p20591_p11), 0.0  }
  0xfd   : > { %438 = sbr.rel (%p20591_p11) target bundleno = 269 (0x10d), region = 88  ;;  %439 = vst [vmem:[#allocation2] sm:$0xff] (!%p20591_p11), %v18308_v0  ;;  %440 = vst [vmem:[#allocation2 + $0x8] sm:$0xff] (!%p20591_p11), %v18308_v0 }
  0xfe   : > { %441 = vst [vmem:[#allocation2 + $0x10] sm:$0xff] (!%p20591_p11), %v18308_v0  ;;  %442 = vst [vmem:[#allocation2 + $0x18] sm:$0xff] (!%p20591_p11), %v18308_v0 }
  0xff   : > { %443 = vst [vmem:[#allocation2 + $0x20] sm:$0xff] (!%p20591_p11), %v18308_v0  ;;  %444 = vst [vmem:[#allocation2 + $0x28] sm:$0xff] (!%p20591_p11), %v18308_v0 }
 0x100   : > { %445 = vst [vmem:[#allocation2 + $0x30] sm:$0xff] (!%p20591_p11), %v18308_v0  ;;  %446 = vst [vmem:[#allocation2 + $0x38] sm:$0xff] (!%p20591_p11), %v18308_v0 }
 0x101   : > { %447 = vst [vmem:[#allocation2 + $0x40] sm:$0xff] (!%p20591_p11), %v18308_v0  ;;  %448 = vst [vmem:[#allocation2 + $0x48] sm:$0xff] (!%p20591_p11), %v18308_v0 }
 0x102   : > { %449 = vst [vmem:[#allocation2 + $0x50] sm:$0xff] (!%p20591_p11), %v18308_v0  ;;  %450 = vst [vmem:[#allocation2 + $0x58] sm:$0xff] (!%p20591_p11), %v18308_v0 }
 0x103   : > { %451 = vst [vmem:[#allocation2 + $0x60] sm:$0xff] (!%p20591_p11), %v18308_v0  ;;  %452 = vst [vmem:[#allocation2 + $0x68] sm:$0xff] (!%p20591_p11), %v18308_v0 }
 0x104   : > { %453 = vst [vmem:[#allocation2 + $0x70] sm:$0xff] %v18308_v0  ;;  %454 = vst [vmem:[#allocation2 + $0x78] sm:$0xff] %v18308_v0 }
 0x105   : > { %455 = vst [vmem:[#allocation2 + $0x80] sm:$0xff] %v18308_v0  ;;  %456 = vst [vmem:[#allocation2 + $0x88] sm:$0xff] %v18308_v0 }
 0x106   : > { %457 = vst [vmem:[#allocation2 + $0x90] sm:$0xff] %v18308_v0  ;;  %458 = vst [vmem:[#allocation2 + $0x98] sm:$0xff] %v18308_v0 }
 0x107   : > { %459 = vst [vmem:[#allocation2 + $0xa0] sm:$0xff] %v18308_v0  ;;  %460 = vst [vmem:[#allocation2 + $0xa8] sm:$0xff] %v18308_v0 }
 0x108   : > { %461 = vst [vmem:[#allocation2 + $0xb0] sm:$0xff] %v18308_v0  ;;  %462 = vst [vmem:[#allocation2 + $0xb8] sm:$0xff] %v18308_v0 }
 0x109   : > { %463 = vst [vmem:[#allocation2 + $0xc0] sm:$0xff] %v18308_v0  ;;  %464 = vst [vmem:[#allocation2 + $0xc8] sm:$0xff] %v18308_v0 }
 0x10a   : > { %465 = vst [vmem:[#allocation2 + $0xd0] sm:$0xff] %v18308_v0  ;;  %466 = vst [vmem:[#allocation2 + $0xd8] sm:$0xff] %v18308_v0 }
 0x10b   : > { %467 = vst [vmem:[#allocation2 + $0xe0] sm:$0xff] %v18308_v0  ;;  %468 = vst [vmem:[#allocation2 + $0xe8] sm:$0xff] %v18308_v0 }
 0x10c   : > { %469 = vst [vmem:[#allocation2 + $0xf0] sm:$0xff] %v18308_v0  ;;  %470 = vst [vmem:[#allocation2 + $0xf8] sm:$0xff] %v18308_v0 }
 0x10d PF: > { %v1288_v1 = vld [vmem:[%s18656_s2 + $0x8] sm:$0xff]  ;;  %v1287_v3 = vld [vmem:[%s18656_s2] sm:$0xff]  ;;  %v1290_v11 = vld [vmem:[%s18656_s2 + $0x18] sm:$0xff]  ;;  %p14875_p4 = scmp.ne.s32.totalorder %s18378_s11, 1 }
 0x10e   : > { %v1672_v2 = vld [vmem:[%s18656_s2 + $0xc08] sm:$0xff]  ;;  %v2072_v4 = vunpack.c.l.s8.bf16 %v1288_v1  ;;  %v2074_v5 = vunpack.c.h.s8.bf16 %v1288_v1  ;;  %v1671_v8 = vld [vmem:[%s18656_s2 + $0xc00] sm:$0xff]  ;;  %v2071_v9 = vunpack.c.l.s8.bf16 %v1287_v3  ;;  %v1674_v12 = vld [vmem:[%s18656_s2 + $0xc18] sm:$0xff]  ;;  %v2073_v13 = vunpack.c.h.s8.bf16 %v1287_v3 }
 0x10f   : > { %v2840_v6 = vunpack.c.l.s8.bf16 %v1672_v2  ;;  %v2842_v7 = vunpack.c.h.s8.bf16 %v1672_v2  ;;  %v2839_v10 = vunpack.c.l.s8.bf16 %v1671_v8  ;;  %v2841_v14 = vunpack.c.h.s8.bf16 %v1671_v8  ;;  %v1289_v17 = vld [vmem:[%s18656_s2 + $0x10] sm:$0xff]  ;;  %v1292_v23 = vld [vmem:[%s18656_s2 + $0x28] sm:$0xff]  ;;  %v1291_v30 = vld [vmem:[%s18656_s2 + $0x20] sm:$0xff] }
 0x110   : > { %7559 = vmatprep.subr.bf16.mxu1 %v2072_v4  ;;  %v2076_v15 = vunpack.c.l.s8.bf16 %v1290_v11  ;;  %v2844_v16 = vunpack.c.l.s8.bf16 %v1674_v12  ;;  %v1673_v18 = vld [vmem:[%s18656_s2 + $0xc10] sm:$0xff]  ;;  %v2075_v19 = vunpack.c.l.s8.bf16 %v1289_v17  ;;  %v2078_v21 = vunpack.c.h.s8.bf16 %v1290_v11  ;;  %v1676_v24 = vld [vmem:[%s18656_s2 + $0xc28] sm:$0xff]  ;;  %v1675_v31 = vld [vmem:[%s18656_s2 + $0xc20] sm:$0xff] }
 0x111   : > { %10271 = vmatprep.subr.bf16.mxu0 %v2840_v6  ;;  %7560 = vmatpush1.bf16.msra.mxu1 %v2071_v9  ;;  %v2843_v20 = vunpack.c.l.s8.bf16 %v1673_v18  ;;  %v2846_v22 = vunpack.c.h.s8.bf16 %v1674_v12  ;;  %v16717_v25 = vld [vmem:[%s18649_s23 + $0x4] ss:$392 sps:$4 sm:$0xff]   ;;  %v2077_v26 = vunpack.c.h.s8.bf16 %v1289_v17  ;;  %v2845_v27 = vunpack.c.h.s8.bf16 %v1673_v18  ;;  %v1294_v37 = vld [vmem:[%s18656_s2 + $0x38] sm:$0xff]  ;;  %v1293_v43 = vld [vmem:[%s18656_s2 + $0x30] sm:$0xff] }
 0x112   : > { %10272 = vmatpush1.bf16.msra.mxu0 %v2839_v10  ;;  %7561 = vmatprep.subr.bf16.mxu1 %v2074_v5  ;;  %v2080_v28 = vunpack.c.l.s8.bf16 %v1292_v23  ;;  %v2848_v29 = vunpack.c.l.s8.bf16 %v1676_v24  ;;  %v16720_v32 = vld [vmem:[%s18649_s23 + $0xc4] ss:$392 sps:$4 sm:$0xff]   ;;  %v2079_v33 = vunpack.c.l.s8.bf16 %v1291_v30  ;;  %v2847_v34 = vunpack.c.l.s8.bf16 %v1675_v31  ;;  %v1678_v38 = vld [vmem:[%s18656_s2 + $0xc38] sm:$0xff]  ;;  %v1677_v44 = vld [vmem:[%s18656_s2 + $0xc30] sm:$0xff] }
 0x113   : > { %10273 = vmatprep.subr.bf16.mxu0 %v2842_v7  ;;  %7591 = vmatprep.mubr.bf16.mxu1 %v16717_v25  ;;  %v2082_v35 = vunpack.c.h.s8.bf16 %v1292_v23  ;;  %v2850_v36 = vunpack.c.h.s8.bf16 %v1676_v24  ;;  %v2081_v39 = vunpack.c.h.s8.bf16 %v1291_v30  ;;  %v2849_v40 = vunpack.c.h.s8.bf16 %v1675_v31  ;;  %v1296_v49 = vld [vmem:[%s18656_s2 + $0x48] sm:$0xff]  ;;  %v1295_v55 = vld [vmem:[%s18656_s2 + $0x40] sm:$0xff]  ;;  %v1298_v61 = vld [vmem:[%s18656_s2 + $0x58] sm:$0xff] }
 0x114   : > { %10303 = vmatprep.mubr.bf16.mxu0 %v16720_v32  ;;  %v2084_v41 = vunpack.c.l.s8.bf16 %v1294_v37  ;;  %v2852_v42 = vunpack.c.l.s8.bf16 %v1678_v38  ;;  %v2083_v45 = vunpack.c.l.s8.bf16 %v1293_v43  ;;  %v2851_v46 = vunpack.c.l.s8.bf16 %v1677_v44  ;;  %v1680_v50 = vld [vmem:[%s18656_s2 + $0xc48] sm:$0xff]  ;;  %v1679_v56 = vld [vmem:[%s18656_s2 + $0xc40] sm:$0xff]  ;;  %v1682_v62 = vld [vmem:[%s18656_s2 + $0xc58] sm:$0xff] }
 0x115   : > { %7562 = vmatpush1.bf16.msra.mxu1 %v2073_v13  ;;  %v2086_v47 = vunpack.c.h.s8.bf16 %v1294_v37  ;;  %v2854_v48 = vunpack.c.h.s8.bf16 %v1678_v38  ;;  %v2085_v51 = vunpack.c.h.s8.bf16 %v1293_v43  ;;  %v2853_v52 = vunpack.c.h.s8.bf16 %v1677_v44  ;;  %v1297_v3 = vld [vmem:[%s18656_s2 + $0x50] sm:$0xff]  ;;  %v1300_v9 = vld [vmem:[%s18656_s2 + $0x68] sm:$0xff] }
 0x116   : > { %10274 = vmatpush1.bf16.msra.mxu0 %v2841_v14  ;;  %7563 = vmatprep.subr.bf16.mxu1 %v2076_v15  ;;  %v2088_v53 = vunpack.c.l.s8.bf16 %v1296_v49  ;;  %v2856_v54 = vunpack.c.l.s8.bf16 %v1680_v50  ;;  %v2087_v57 = vunpack.c.l.s8.bf16 %v1295_v55  ;;  %v2855_v58 = vunpack.c.l.s8.bf16 %v1679_v56  ;;  %v1681_v4 = vld [vmem:[%s18656_s2 + $0xc50] sm:$0xff]  ;;  %v1684_v10 = vld [vmem:[%s18656_s2 + $0xc68] sm:$0xff]  ;;  %v1299_v15 = vld [vmem:[%s18656_s2 + $0x60] sm:$0xff] }
 0x117   : > { %10275 = vmatprep.subr.bf16.mxu0 %v2844_v16  ;;  %v2090_v59 = vunpack.c.h.s8.bf16 %v1296_v49  ;;  %v2858_v60 = vunpack.c.h.s8.bf16 %v1680_v50  ;;  %v2089_v63 = vunpack.c.h.s8.bf16 %v1295_v55  ;;  %v2857_v0 = vunpack.c.h.s8.bf16 %v1679_v56  ;;  %v1683_v16 = vld [vmem:[%s18656_s2 + $0xc60] sm:$0xff]  ;;  %v1306_v49 = vld [vmem:[%s18656_s2 + $0x98] sm:$0xff]  ;;  %v1305_v55 = vld [vmem:[%s18656_s2 + $0x90] sm:$0xff] }
 0x118   : > { %v2092_v1 = vunpack.c.l.s8.bf16 %v1298_v61  ;;  %v2860_v2 = vunpack.c.l.s8.bf16 %v1682_v62  ;;  %v2091_v5 = vunpack.c.l.s8.bf16 %v1297_v3  ;;  %v2859_v6 = vunpack.c.l.s8.bf16 %v1681_v4  ;;  %v1690_v50 = vld [vmem:[%s18656_s2 + $0xc98] sm:$0xff]  ;;  %v1689_v56 = vld [vmem:[%s18656_s2 + $0xc90] sm:$0xff] }
 0x119   : > { %7564 = vmatpush1.bf16.msra.mxu1 %v2075_v19  ;;  %v2094_v7 = vunpack.c.h.s8.bf16 %v1298_v61  ;;  %v2862_v8 = vunpack.c.h.s8.bf16 %v1682_v62  ;;  %v2093_v11 = vunpack.c.h.s8.bf16 %v1297_v3  ;;  %v2861_v12 = vunpack.c.h.s8.bf16 %v1681_v4 }
 0x11a   : > { %10276 = vmatpush1.bf16.msra.mxu0 %v2843_v20  ;;  %7565 = vmatprep.subr.bf16.mxu1 %v2078_v21  ;;  %v2096_v13 = vunpack.c.l.s8.bf16 %v1300_v9  ;;  %v2864_v14 = vunpack.c.l.s8.bf16 %v1684_v10  ;;  %v2095_v17 = vunpack.c.l.s8.bf16 %v1299_v15  ;;  %v2863_v18 = vunpack.c.l.s8.bf16 %v1683_v16  ;;  %v1302_v21 = vld [vmem:[%s18656_s2 + $0x78] sm:$0xff] }
 0x11b   : > { %10277 = vmatprep.subr.bf16.mxu0 %v2846_v22  ;;  %v2098_v19 = vunpack.c.h.s8.bf16 %v1300_v9  ;;  %v2866_v20 = vunpack.c.h.s8.bf16 %v1684_v10  ;;  %v1686_v22 = vld [vmem:[%s18656_s2 + $0xc78] sm:$0xff]  ;;  %v2097_v23 = vunpack.c.h.s8.bf16 %v1299_v15  ;;  %v2865_v24 = vunpack.c.h.s8.bf16 %v1683_v16  ;;  %v16731_v9 = vld [vmem:[%s18649_s23 + $0x620] ss:$392 sps:$4 sm:$0xff]  }
 0x11c   : > { %v2100_v25 = vunpack.c.l.s8.bf16 %v1302_v21  ;;  %v2102_v31 = vunpack.c.h.s8.bf16 %v1302_v21  ;;  %v2870_v32 = vunpack.c.h.s8.bf16 %v1686_v22  ;;  %v2110_v61 = vunpack.c.h.s8.bf16 %v1306_v49  ;;  %v16732_v10 = vld [vmem:[%s18649_s23 + $0x6e0] ss:$392 sps:$4 sm:$0xff]   ;;  %v16733_v15 = vld [vmem:[%s18649_s23 + $0x934] ss:$392 sps:$4 sm:$0xff]  }
 0x11d   : > { %7566 = vmatpush1.bf16.msra.mxu1 %v2077_v26  ;;  %v2868_v26 = vunpack.c.l.s8.bf16 %v1686_v22  ;;  %v2878_v62 = vunpack.c.h.s8.bf16 %v1690_v50  ;;  %v2109_v3 = vunpack.c.h.s8.bf16 %v1305_v55  ;;  %v2877_v4 = vunpack.c.h.s8.bf16 %v1689_v56  ;;  %v16735_v16 = vld [vmem:[%s18649_s23 + $0x9f4] ss:$392 sps:$4 sm:$0xff]  }
 0x11e   : > { %10278 = vmatpush1.bf16.msra.mxu0 %v2845_v27  ;;  %7567 = vmatprep.subr.bf16.mxu1 %v2080_v28  ;;  %v1301_v27 = vld [vmem:[%s18656_s2 + $0x70] sm:$0xff] }
 0x11f   : > { %10279 = vmatprep.subr.bf16.mxu0 %v2848_v29  ;;  %v1685_v28 = vld [vmem:[%s18656_s2 + $0xc70] sm:$0xff]  ;;  %v2099_v29 = vunpack.c.l.s8.bf16 %v1301_v27 }
 0x120   : > { %v2867_v30 = vunpack.c.l.s8.bf16 %v1685_v28 }
 0x121   : > { %7568 = vmatpush1.bf16.msra.mxu1 %v2079_v33  ;;  %v1304_v33 = vld [vmem:[%s18656_s2 + $0x88] sm:$0xff] }
 0x122   : > { %10280 = vmatpush1.bf16.msra.mxu0 %v2847_v34  ;;  %7569 = vmatprep.subr.bf16.mxu1 %v2082_v35  ;;  %v1688_v34 = vld [vmem:[%s18656_s2 + $0xc88] sm:$0xff]  ;;  %v2101_v35 = vunpack.c.h.s8.bf16 %v1301_v27  ;;  %v2104_v37 = vunpack.c.l.s8.bf16 %v1304_v33 }
 0x123   : > { %10281 = vmatprep.subr.bf16.mxu0 %v2850_v36  ;;  %v2869_v36 = vunpack.c.h.s8.bf16 %v1685_v28  ;;  %v2872_v38 = vunpack.c.l.s8.bf16 %v1688_v34 }
 0x125   : > { %7570 = vmatpush1.bf16.msra.mxu1 %v2081_v39  ;;  %v1303_v39 = vld [vmem:[%s18656_s2 + $0x80] sm:$0xff] }
 0x126   : > { %10282 = vmatpush1.bf16.msra.mxu0 %v2849_v40  ;;  %7571 = vmatprep.subr.bf16.mxu1 %v2084_v41  ;;  %v1687_v40 = vld [vmem:[%s18656_s2 + $0xc80] sm:$0xff]  ;;  %v2103_v43 = vunpack.c.l.s8.bf16 %v1303_v39 }
 0x127   : > { %10283 = vmatprep.subr.bf16.mxu0 %v2852_v42  ;;  %v16715_v41 = vld [vmem:[%s18649_s23] ss:$392 sps:$4 sm:$0xff]   ;;  %v2871_v44 = vunpack.c.l.s8.bf16 %v1687_v40 }
 0x128   : > { %v16718_v42 = vld [vmem:[%s18649_s23 + $0xc0] ss:$392 sps:$4 sm:$0xff]  }
 0x129   : > { %7572 = vmatpush1.bf16.msra.mxu1 %v2083_v45  ;;  %v2106_v45 = vunpack.c.h.s8.bf16 %v1304_v33  ;;  %v1312_v33 = vld [vmem:[%s18656_s2 + $0xc8] sm:$0xff] }
 0x12a   : > { %10284 = vmatpush1.bf16.msra.mxu0 %v2851_v46  ;;  %7573 = vmatprep.subr.bf16.mxu1 %v2086_v47  ;;  %v2874_v46 = vunpack.c.h.s8.bf16 %v1688_v34  ;;  %v16721_v47 = vld [vmem:[%s18649_s23 + $0x314] ss:$392 sps:$4 sm:$0xff]   ;;  %v1696_v34 = vld [vmem:[%s18656_s2 + $0xcc8] sm:$0xff] }
 0x12b   : > { %10285 = vmatprep.subr.bf16.mxu0 %v2854_v48  ;;  %v16723_v48 = vld [vmem:[%s18649_s23 + $0x3d4] ss:$392 sps:$4 sm:$0xff]  }
 0x12d   : > { %7574 = vmatpush1.bf16.msra.mxu1 %v2085_v51  ;;  %v2105_v51 = vunpack.c.h.s8.bf16 %v1303_v39  ;;  %v16743_v39 = vld [vmem:[%s18649_s23 + $0xc40] ss:$392 sps:$4 sm:$0xff]  }
 0x12e   : > { %10286 = vmatpush1.bf16.msra.mxu0 %v2853_v52  ;;  %7575 = vmatprep.subr.bf16.mxu1 %v2088_v53  ;;  %v2873_v52 = vunpack.c.h.s8.bf16 %v1687_v40  ;;  %v2108_v53 = vunpack.c.l.s8.bf16 %v1306_v49  ;;  %v2120_v40 = vunpack.c.l.s8.bf16 %v1312_v33  ;;  %v1314_v49 = vld [vmem:[%s18656_s2 + $0xd8] sm:$0xff] }
 0x12f   : > { %10287 = vmatprep.subr.bf16.mxu0 %v2856_v54  ;;  %v2876_v54 = vunpack.c.l.s8.bf16 %v1690_v50  ;;  %v1698_v50 = vld [vmem:[%s18656_s2 + $0xcd8] sm:$0xff] }
 0x131   : > { %7576 = vmatpush1.bf16.msra.mxu1 %v2087_v57  ;;  %v16725_v57 = vld [vmem:[%s18649_s23 + $0x310] ss:$392 sps:$4 sm:$0xff]  }
 0x132   : > { %10288 = vmatpush1.bf16.msra.mxu0 %v2855_v58  ;;  %7577 = vmatprep.subr.bf16.mxu1 %v2090_v59  ;;  %v16726_v58 = vld [vmem:[%s18649_s23 + $0x3d0] ss:$392 sps:$4 sm:$0xff]   ;;  %v2107_v59 = vunpack.c.l.s8.bf16 %v1305_v55 }
 0x133   : > { %10289 = vmatprep.subr.bf16.mxu0 %v2858_v60  ;;  %v2875_v60 = vunpack.c.l.s8.bf16 %v1689_v56  ;;  %v16749_v55 = vld [vmem:[%s18649_s23 + $0xf50] ss:$392 sps:$4 sm:$0xff]   ;;  %v2124_v56 = vunpack.c.l.s8.bf16 %v1314_v49 }
 0x135   : > { %7578 = vmatpush1.bf16.msra.mxu1 %v2089_v63  ;;  %v16727_v63 = vld [vmem:[%s18649_s23 + $0x624] ss:$392 sps:$4 sm:$0xff]  }
 0x136   : > { %10290 = vmatpush1.bf16.msra.mxu0 %v2857_v0  ;;  %7579 = vmatprep.subr.bf16.mxu1 %v2092_v1  ;;  %v16729_v0 = vld [vmem:[%s18649_s23 + $0x6e4] ss:$392 sps:$4 sm:$0xff]  }
 0x137   : > { %10291 = vmatprep.subr.bf16.mxu0 %v2860_v2  ;;  %v1308_v1 = vld [vmem:[%s18656_s2 + $0xa8] sm:$0xff] }
 0x138   : > { %v1692_v2 = vld [vmem:[%s18656_s2 + $0xca8] sm:$0xff] }
 0x139   : > { %7580 = vmatpush1.bf16.msra.mxu1 %v2091_v5  ;;  %v2112_v5 = vunpack.c.l.s8.bf16 %v1308_v1 }
 0x13a   : > { %10292 = vmatpush1.bf16.msra.mxu0 %v2859_v6  ;;  %7581 = vmatprep.subr.bf16.mxu1 %v2094_v7  ;;  %v2880_v6 = vunpack.c.l.s8.bf16 %v1692_v2  ;;  %v1307_v7 = vld [vmem:[%s18656_s2 + $0xa0] sm:$0xff] }
 0x13b   : > { %10293 = vmatprep.subr.bf16.mxu0 %v2862_v8  ;;  %v1691_v8 = vld [vmem:[%s18656_s2 + $0xca0] sm:$0xff] }
 0x13d   : > { %7582 = vmatpush1.bf16.msra.mxu1 %v2093_v11  ;;  %v2111_v11 = vunpack.c.l.s8.bf16 %v1307_v7 }
 0x13e   : > { %10294 = vmatpush1.bf16.msra.mxu0 %v2861_v12  ;;  %7583 = vmatprep.subr.bf16.mxu1 %v2096_v13  ;;  %v2879_v12 = vunpack.c.l.s8.bf16 %v1691_v8  ;;  %v2114_v13 = vunpack.c.h.s8.bf16 %v1308_v1  ;;  %v1316_v1 = vld [vmem:[%s18656_s2 + $0xe8] sm:$0xff] }
 0x13f   : > { %10295 = vmatprep.subr.bf16.mxu0 %v2864_v14  ;;  %v2882_v14 = vunpack.c.h.s8.bf16 %v1692_v2  ;;  %v1700_v2 = vld [vmem:[%s18656_s2 + $0xce8] sm:$0xff] }
 0x141   : > { %7584 = vmatpush1.bf16.msra.mxu1 %v2095_v17  ;;  %v1310_v17 = vld [vmem:[%s18656_s2 + $0xb8] sm:$0xff] }
 0x142   : > { %10296 = vmatpush1.bf16.msra.mxu0 %v2863_v18  ;;  %7585 = vmatprep.subr.bf16.mxu1 %v2098_v19  ;;  %v1694_v18 = vld [vmem:[%s18656_s2 + $0xcb8] sm:$0xff]  ;;  %v2113_v19 = vunpack.c.h.s8.bf16 %v1307_v7  ;;  %v2116_v21 = vunpack.c.l.s8.bf16 %v1310_v17  ;;  %v16755_v7 = vld [vmem:[%s18649_s23 + $0x1260] ss:$392 sps:$4 sm:$0xff]  }
 0x143   : > { %10297 = vmatprep.subr.bf16.mxu0 %v2866_v20  ;;  %v2881_v20 = vunpack.c.h.s8.bf16 %v1691_v8  ;;  %v2884_v22 = vunpack.c.l.s8.bf16 %v1694_v18  ;;  %v2128_v8 = vunpack.c.l.s8.bf16 %v1316_v1 }
 0x145   : > { %7586 = vmatpush1.bf16.msra.mxu1 %v2097_v23  ;;  %v1309_v23 = vld [vmem:[%s18656_s2 + $0xb0] sm:$0xff] }
 0x146   : > { %10298 = vmatpush1.bf16.msra.mxu0 %v2865_v24  ;;  %7587 = vmatprep.subr.bf16.mxu1 %v2100_v25  ;;  %v1693_v24 = vld [vmem:[%s18656_s2 + $0xcb0] sm:$0xff]  ;;  %v2115_v27 = vunpack.c.l.s8.bf16 %v1309_v23 }
 0x147   : > { %10299 = vmatprep.subr.bf16.mxu0 %v2868_v26  ;;  %v16737_v25 = vld [vmem:[%s18649_s23 + $0x930] ss:$392 sps:$4 sm:$0xff]   ;;  %v2883_v28 = vunpack.c.l.s8.bf16 %v1693_v24 }
 0x148   : > { %v16738_v26 = vld [vmem:[%s18649_s23 + $0x9f0] ss:$392 sps:$4 sm:$0xff]  }
 0x149   : > { %7588 = vmatpush1.bf16.msra.mxu1 %v2099_v29  ;;  %v2118_v29 = vunpack.c.h.s8.bf16 %v1310_v17  ;;  %v1318_v17 = vld [vmem:[%s18656_s2 + $0xf8] sm:$0xff] }
 0x14a   : > { %10300 = vmatpush1.bf16.msra.mxu0 %v2867_v30  ;;  %7589 = vmatprep.subr.bf16.mxu1 %v2102_v31  ;;  %v2886_v30 = vunpack.c.h.s8.bf16 %v1694_v18  ;;  %v16739_v31 = vld [vmem:[%s18649_s23 + $0xc44] ss:$392 sps:$4 sm:$0xff]   ;;  %v1702_v18 = vld [vmem:[%s18656_s2 + $0xcf8] sm:$0xff] }
 0x14b   : > { %10301 = vmatprep.subr.bf16.mxu0 %v2870_v32  ;;  %v16741_v32 = vld [vmem:[%s18649_s23 + $0xd04] ss:$392 sps:$4 sm:$0xff]  }
 0x14d   : > { %7590 = vmatpush1.bf16.msra.mxu1 %v2101_v35  ;;  %v1311_v35 = vld [vmem:[%s18656_s2 + $0xc0] sm:$0xff] }
 0x14e   : > { %10302 = vmatpush1.bf16.msra.mxu0 %v2869_v36  ;;  %7672 = vmatprep.subr.bf16.mxu1 %v2104_v37  ;;  %v1695_v36 = vld [vmem:[%s18656_s2 + $0xcc0] sm:$0xff]  ;;  %v2117_v37 = vunpack.c.h.s8.bf16 %v1309_v23  ;;  %v16761_v23 = vld [vmem:[%s18649_s23 + $0x1570] ss:$392 sps:$4 sm:$0xff]  }
 0x14f   : > { %10384 = vmatprep.subr.bf16.mxu0 %v2872_v38  ;;  %v2885_v38 = vunpack.c.h.s8.bf16 %v1693_v24  ;;  %v2132_v24 = vunpack.c.l.s8.bf16 %v1318_v17 }
 0x150   : > { %7592 = vmatmul.mubr.bf16.vlgmr.msra.gmra.mrb[0].mxu1 %v16715_v41  ;;  %v16744_v41 = vld [vmem:[%s18649_s23 + $0xd00] ss:$392 sps:$4 sm:$0xff]  }
 0x151   : > { %10304 = vmatmul.mubr.bf16.vlgmr.msra.gmra.mrb[0].mxu0 %v16718_v42  ;;  %7673 = vmatpush1.bf16.msra.mxu1 %v2103_v43  ;;  %v2888_v42 = vunpack.c.l.s8.bf16 %v1696_v34  ;;  %v2119_v43 = vunpack.c.l.s8.bf16 %v1311_v35 }
 0x152   : > { %10385 = vmatpush1.bf16.msra.mxu0 %v2871_v44  ;;  %7674 = vmatprep.subr.bf16.mxu1 %v2106_v45  ;;  %v2887_v44 = vunpack.c.l.s8.bf16 %v1695_v36  ;;  %v2122_v45 = vunpack.c.h.s8.bf16 %v1312_v33  ;;  %v1320_v33 = vld [vmem:[%s18656_s2 + $0x108] sm:$0xff] }
 0x153   : > { %10386 = vmatprep.subr.bf16.mxu0 %v2874_v46  ;;  %7601 = vmatprep.mubr.bf16.mxu1 %v16721_v47  ;;  %v2890_v46 = vunpack.c.h.s8.bf16 %v1696_v34  ;;  %v16745_v47 = vld [vmem:[%s18649_s23 + $0xf54] ss:$392 sps:$4 sm:$0xff]   ;;  %v1704_v34 = vld [vmem:[%s18656_s2 + $0xd08] sm:$0xff] }
 0x154   : > { %10313 = vmatprep.mubr.bf16.mxu0 %v16723_v48  ;;  %v16747_v48 = vld [vmem:[%s18649_s23 + $0x1014] ss:$392 sps:$4 sm:$0xff]  }
 0x155   : > { %7675 = vmatpush1.bf16.msra.mxu1 %v2105_v51  ;;  %v1313_v51 = vld [vmem:[%s18656_s2 + $0xd0] sm:$0xff] }
 0x156   : > { %10387 = vmatpush1.bf16.msra.mxu0 %v2873_v52  ;;  %7676 = vmatprep.subr.bf16.mxu1 %v2108_v53  ;;  %v1697_v52 = vld [vmem:[%s18656_s2 + $0xcd0] sm:$0xff]  ;;  %v2121_v53 = vunpack.c.h.s8.bf16 %v1311_v35  ;;  %v1319_v35 = vld [vmem:[%s18656_s2 + $0x100] sm:$0xff] }
 0x157   : > { %10388 = vmatprep.subr.bf16.mxu0 %v2876_v54  ;;  %v2889_v54 = vunpack.c.h.s8.bf16 %v1695_v36  ;;  %v1703_v36 = vld [vmem:[%s18656_s2 + $0xd00] sm:$0xff] }
 0x158   : > { %7602 = vmatmul.mubr.bf16.gmra.mrb[4].mxu1 %v16725_v57  ;;  %v16750_v57 = vld [vmem:[%s18649_s23 + $0x1010] ss:$392 sps:$4 sm:$0xff]  }
 0x159   : > { %10314 = vmatmul.mubr.bf16.gmra.mrb[4].mxu0 %v16726_v58  ;;  %7677 = vmatpush1.bf16.msra.mxu1 %v2107_v59  ;;  %v2892_v58 = vunpack.c.l.s8.bf16 %v1698_v50  ;;  %v2123_v59 = vunpack.c.l.s8.bf16 %v1313_v51 }
 0x15a   : > { %10389 = vmatpush1.bf16.msra.mxu0 %v2875_v60  ;;  %7678 = vmatprep.subr.bf16.mxu1 %v2110_v61  ;;  %v2891_v60 = vunpack.c.l.s8.bf16 %v1697_v52  ;;  %v2126_v61 = vunpack.c.h.s8.bf16 %v1314_v49  ;;  %v1322_v49 = vld [vmem:[%s18656_s2 + $0x118] sm:$0xff] }
 0x15b   : > { %10390 = vmatprep.subr.bf16.mxu0 %v2878_v62  ;;  %7611 = vmatprep.mubr.bf16.mxu1 %v16727_v63  ;;  %v2894_v62 = vunpack.c.h.s8.bf16 %v1698_v50  ;;  %v16751_v63 = vld [vmem:[%s18649_s23 + $0x1264] ss:$392 sps:$4 sm:$0xff]   ;;  %v1706_v50 = vld [vmem:[%s18656_s2 + $0xd18] sm:$0xff] }
 0x15c   : > { %10323 = vmatprep.mubr.bf16.mxu0 %v16729_v0  ;;  %v16753_v0 = vld [vmem:[%s18649_s23 + $0x1324] ss:$392 sps:$4 sm:$0xff]  }
 0x15d   : > { %7679 = vmatpush1.bf16.msra.mxu1 %v2109_v3  ;;  %v1315_v3 = vld [vmem:[%s18656_s2 + $0xe0] sm:$0xff] }
 0x15e   : > { %10391 = vmatpush1.bf16.msra.mxu0 %v2877_v4  ;;  %7680 = vmatprep.subr.bf16.mxu1 %v2112_v5  ;;  %v1699_v4 = vld [vmem:[%s18656_s2 + $0xce0] sm:$0xff]  ;;  %v2125_v5 = vunpack.c.h.s8.bf16 %v1313_v51  ;;  %v1321_v51 = vld [vmem:[%s18656_s2 + $0x110] sm:$0xff] }
 0x15f   : > { %10392 = vmatprep.subr.bf16.mxu0 %v2880_v6  ;;  %v2893_v6 = vunpack.c.h.s8.bf16 %v1697_v52  ;;  %v1705_v52 = vld [vmem:[%s18656_s2 + $0xd10] sm:$0xff] }
 0x160   : > { %7612 = vmatmul.mubr.bf16.gmra.mrb[8].mxu1 %v16731_v9  ;;  %v16756_v9 = vld [vmem:[%s18649_s23 + $0x1320] ss:$392 sps:$4 sm:$0xff]  }
 0x161   : > { %10324 = vmatmul.mubr.bf16.gmra.mrb[8].mxu0 %v16732_v10  ;;  %7681 = vmatpush1.bf16.msra.mxu1 %v2111_v11  ;;  %v2896_v10 = vunpack.c.l.s8.bf16 %v1700_v2  ;;  %v2127_v11 = vunpack.c.l.s8.bf16 %v1315_v3 }
 0x162   : > { %10393 = vmatpush1.bf16.msra.mxu0 %v2879_v12  ;;  %7682 = vmatprep.subr.bf16.mxu1 %v2114_v13  ;;  %v2895_v12 = vunpack.c.l.s8.bf16 %v1699_v4  ;;  %v2130_v13 = vunpack.c.h.s8.bf16 %v1316_v1  ;;  %v1324_v1 = vld [vmem:[%s18656_s2 + $0x128] sm:$0xff] }
 0x163   : > { %10394 = vmatprep.subr.bf16.mxu0 %v2882_v14  ;;  %7621 = vmatprep.mubr.bf16.mxu1 %v16733_v15  ;;  %v2898_v14 = vunpack.c.h.s8.bf16 %v1700_v2  ;;  %v16757_v15 = vld [vmem:[%s18649_s23 + $0x1574] ss:$392 sps:$4 sm:$0xff]   ;;  %v1708_v2 = vld [vmem:[%s18656_s2 + $0xd28] sm:$0xff] }
 0x164   : > { %10333 = vmatprep.mubr.bf16.mxu0 %v16735_v16  ;;  %v16759_v16 = vld [vmem:[%s18649_s23 + $0x1634] ss:$392 sps:$4 sm:$0xff]  }
 0x165   : > { %7683 = vmatpush1.bf16.msra.mxu1 %v2113_v19  ;;  %v1317_v19 = vld [vmem:[%s18656_s2 + $0xf0] sm:$0xff] }
 0x166   : > { %10395 = vmatpush1.bf16.msra.mxu0 %v2881_v20  ;;  %7684 = vmatprep.subr.bf16.mxu1 %v2116_v21  ;;  %v1701_v20 = vld [vmem:[%s18656_s2 + $0xcf0] sm:$0xff]  ;;  %v2129_v21 = vunpack.c.h.s8.bf16 %v1315_v3  ;;  %v1323_v3 = vld [vmem:[%s18656_s2 + $0x120] sm:$0xff] }
 0x167   : > { %10396 = vmatprep.subr.bf16.mxu0 %v2884_v22  ;;  %v2897_v22 = vunpack.c.h.s8.bf16 %v1699_v4  ;;  %v1707_v4 = vld [vmem:[%s18656_s2 + $0xd20] sm:$0xff] }
 0x168   : > { %7622 = vmatmul.mubr.bf16.gmra.mrb[12].mxu1 %v16737_v25  ;;  %v16762_v25 = vld [vmem:[%s18649_s23 + $0x1630] ss:$392 sps:$4 sm:$0xff]  }
 0x169   : > { %10334 = vmatmul.mubr.bf16.gmra.mrb[12].mxu0 %v16738_v26  ;;  %7685 = vmatpush1.bf16.msra.mxu1 %v2115_v27  ;;  %v2900_v26 = vunpack.c.l.s8.bf16 %v1702_v18  ;;  %v2131_v27 = vunpack.c.l.s8.bf16 %v1317_v19 }
 0x16a   : > { %10397 = vmatpush1.bf16.msra.mxu0 %v2883_v28  ;;  %7686 = vmatprep.subr.bf16.mxu1 %v2118_v29  ;;  %v2899_v28 = vunpack.c.l.s8.bf16 %v1701_v20  ;;  %v2134_v29 = vunpack.c.h.s8.bf16 %v1318_v17  ;;  %v1326_v17 = vld [vmem:[%s18656_s2 + $0x138] sm:$0xff] }
 0x16b   : > { %10398 = vmatprep.subr.bf16.mxu0 %v2886_v30  ;;  %7631 = vmatprep.mubr.bf16.mxu1 %v16739_v31  ;;  %v2902_v30 = vunpack.c.h.s8.bf16 %v1702_v18  ;;  %v16765_v31 = vld [vmem:[%s18649_s23 + $0xc] ss:$392 sps:$4 sm:$0xff]   ;;  %v1710_v18 = vld [vmem:[%s18656_s2 + $0xd38] sm:$0xff] }
 0x16c   : > { %10343 = vmatprep.mubr.bf16.mxu0 %v16741_v32  ;;  %v16768_v32 = vld [vmem:[%s18649_s23 + $0xcc] ss:$392 sps:$4 sm:$0xff]  }
 0x16d   : > { %7687 = vmatpush1.bf16.msra.mxu1 %v2117_v37  ;;  %v2133_v37 = vunpack.c.h.s8.bf16 %v1317_v19  ;;  %v1325_v19 = vld [vmem:[%s18656_s2 + $0x130] sm:$0xff] }
 0x16e   : > { %10399 = vmatpush1.bf16.msra.mxu0 %v2885_v38  ;;  %7688 = vmatprep.subr.bf16.mxu1 %v2120_v40  ;;  %v2901_v38 = vunpack.c.h.s8.bf16 %v1701_v20  ;;  %v16766_v40 = vld [vmem:[%s18649_s23 + $0xc8] ss:$392 sps:$4 sm:$0xff]  }
 0x16f   : > { %10400 = vmatprep.subr.bf16.mxu0 %v2888_v42  ;;  %v2904_v42 = vunpack.c.l.s8.bf16 %v1704_v34  ;;  %v1709_v20 = vld [vmem:[%s18656_s2 + $0xd30] sm:$0xff] }
 0x170   : > { %7632 = vmatmul.mubr.bf16.gmra.mrb[16].mxu1 %v16743_v39  ;;  %v16763_v39 = vld [vmem:[%s18649_s23 + $0x8] ss:$392 sps:$4 sm:$0xff]  }
 0x171   : > { %10344 = vmatmul.mubr.bf16.gmra.mrb[16].mxu0 %v16744_v41  ;;  %7689 = vmatpush1.bf16.msra.mxu1 %v2119_v43  ;;  %v2136_v41 = vunpack.c.l.s8.bf16 %v1320_v33  ;;  %v2135_v43 = vunpack.c.l.s8.bf16 %v1319_v35 }
 0x172   : > { %10401 = vmatpush1.bf16.msra.mxu0 %v2887_v44  ;;  %7690 = vmatprep.subr.bf16.mxu1 %v2122_v45  ;;  %v2903_v44 = vunpack.c.l.s8.bf16 %v1703_v36  ;;  %v2138_v45 = vunpack.c.h.s8.bf16 %v1320_v33  ;;  %v1328_v33 = vld [vmem:[%s18656_s2 + $0x148] sm:$0xff] }
 0x173   : > { %10402 = vmatprep.subr.bf16.mxu0 %v2890_v46  ;;  %7641 = vmatprep.mubr.bf16.mxu1 %v16745_v47  ;;  %v2906_v46 = vunpack.c.h.s8.bf16 %v1704_v34  ;;  %v16769_v47 = vld [vmem:[%s18649_s23 + $0x31c] ss:$392 sps:$4 sm:$0xff]   ;;  %v1712_v34 = vld [vmem:[%s18656_s2 + $0xd48] sm:$0xff] }
 0x174   : > { %10353 = vmatprep.mubr.bf16.mxu0 %v16747_v48  ;;  %v16771_v48 = vld [vmem:[%s18649_s23 + $0x3dc] ss:$392 sps:$4 sm:$0xff]  }
 0x175   : > { %7691 = vmatpush1.bf16.msra.mxu1 %v2121_v53  ;;  %v2137_v53 = vunpack.c.h.s8.bf16 %v1319_v35  ;;  %v1327_v35 = vld [vmem:[%s18656_s2 + $0x140] sm:$0xff] }
 0x176   : > { %10403 = vmatpush1.bf16.msra.mxu0 %v2889_v54  ;;  %7692 = vmatprep.subr.bf16.mxu1 %v2124_v56  ;;  %v2905_v54 = vunpack.c.h.s8.bf16 %v1703_v36  ;;  %v2140_v56 = vunpack.c.l.s8.bf16 %v1322_v49  ;;  %v1711_v36 = vld [vmem:[%s18656_s2 + $0xd40] sm:$0xff] }
 0x177   : > { %10404 = vmatprep.subr.bf16.mxu0 %v2892_v58  ;;  %v2908_v58 = vunpack.c.l.s8.bf16 %v1706_v50 }
 0x178   : > { %7642 = vmatmul.mubr.bf16.gmra.mrb[20].mxu1 %v16749_v55  ;;  %v16773_v55 = vld [vmem:[%s18649_s23 + $0x318] ss:$392 sps:$4 sm:$0xff]  }
 0x179   : > { %10354 = vmatmul.mubr.bf16.gmra.mrb[20].mxu0 %v16750_v57  ;;  %7693 = vmatpush1.bf16.msra.mxu1 %v2123_v59  ;;  %v16774_v57 = vld [vmem:[%s18649_s23 + $0x3d8] ss:$392 sps:$4 sm:$0xff]   ;;  %v2139_v59 = vunpack.c.l.s8.bf16 %v1321_v51 }
 0x17a   : > { %10405 = vmatpush1.bf16.msra.mxu0 %v2891_v60  ;;  %7694 = vmatprep.subr.bf16.mxu1 %v2126_v61  ;;  %v2907_v60 = vunpack.c.l.s8.bf16 %v1705_v52  ;;  %v2142_v61 = vunpack.c.h.s8.bf16 %v1322_v49  ;;  %v1330_v49 = vld [vmem:[%s18656_s2 + $0x158] sm:$0xff] }
 0x17b   : > { %10406 = vmatprep.subr.bf16.mxu0 %v2894_v62  ;;  %7651 = vmatprep.mubr.bf16.mxu1 %v16751_v63  ;;  %v2910_v62 = vunpack.c.h.s8.bf16 %v1706_v50  ;;  %v16775_v63 = vld [vmem:[%s18649_s23 + $0x62c] ss:$392 sps:$4 sm:$0xff]   ;;  %v1714_v50 = vld [vmem:[%s18656_s2 + $0xd58] sm:$0xff] }
 0x17c   : > { %10363 = vmatprep.mubr.bf16.mxu0 %v16753_v0  ;;  %v16777_v0 = vld [vmem:[%s18649_s23 + $0x6ec] ss:$392 sps:$4 sm:$0xff]  }
 0x17d   : > { %7695 = vmatpush1.bf16.msra.mxu1 %v2125_v5  ;;  %v2141_v5 = vunpack.c.h.s8.bf16 %v1321_v51  ;;  %v1329_v51 = vld [vmem:[%s18656_s2 + $0x150] sm:$0xff] }
 0x17e   : > { %10407 = vmatpush1.bf16.msra.mxu0 %v2893_v6  ;;  %7696 = vmatprep.subr.bf16.mxu1 %v2128_v8  ;;  %v2909_v6 = vunpack.c.h.s8.bf16 %v1705_v52  ;;  %v2144_v8 = vunpack.c.l.s8.bf16 %v1324_v1  ;;  %v1713_v52 = vld [vmem:[%s18656_s2 + $0xd50] sm:$0xff] }
 0x17f   : > { %10408 = vmatprep.subr.bf16.mxu0 %v2896_v10  ;;  %v2912_v10 = vunpack.c.l.s8.bf16 %v1708_v2 }
 0x180   : > { %7652 = vmatmul.mubr.bf16.gmra.mrb[24].mxu1 %v16755_v7  ;;  %v16779_v7 = vld [vmem:[%s18649_s23 + $0x628] ss:$392 sps:$4 sm:$0xff]  }
 0x181   : > { %10364 = vmatmul.mubr.bf16.gmra.mrb[24].mxu0 %v16756_v9  ;;  %7697 = vmatpush1.bf16.msra.mxu1 %v2127_v11  ;;  %v16780_v9 = vld [vmem:[%s18649_s23 + $0x6e8] ss:$392 sps:$4 sm:$0xff]   ;;  %v2143_v11 = vunpack.c.l.s8.bf16 %v1323_v3 }
 0x182   : > { %10409 = vmatpush1.bf16.msra.mxu0 %v2895_v12  ;;  %7698 = vmatprep.subr.bf16.mxu1 %v2130_v13  ;;  %v2911_v12 = vunpack.c.l.s8.bf16 %v1707_v4  ;;  %v2146_v13 = vunpack.c.h.s8.bf16 %v1324_v1  ;;  %v1332_v1 = vld [vmem:[%s18656_s2 + $0x168] sm:$0xff] }
 0x183   : > { %10410 = vmatprep.subr.bf16.mxu0 %v2898_v14  ;;  %7661 = vmatprep.mubr.bf16.mxu1 %v16757_v15  ;;  %v2914_v14 = vunpack.c.h.s8.bf16 %v1708_v2  ;;  %v16781_v15 = vld [vmem:[%s18649_s23 + $0x93c] ss:$392 sps:$4 sm:$0xff]   ;;  %v1716_v2 = vld [vmem:[%s18656_s2 + $0xd68] sm:$0xff] }
 0x184   : > { %10373 = vmatprep.mubr.bf16.mxu0 %v16759_v16  ;;  %v16783_v16 = vld [vmem:[%s18649_s23 + $0x9fc] ss:$392 sps:$4 sm:$0xff]  }
 0x185   : > { %7699 = vmatpush1.bf16.msra.mxu1 %v2129_v21  ;;  %v2145_v21 = vunpack.c.h.s8.bf16 %v1323_v3  ;;  %v1331_v3 = vld [vmem:[%s18656_s2 + $0x160] sm:$0xff] }
 0x186   : > { %10411 = vmatpush1.bf16.msra.mxu0 %v2897_v22  ;;  %7700 = vmatprep.subr.bf16.mxu1 %v2132_v24  ;;  %v2913_v22 = vunpack.c.h.s8.bf16 %v1707_v4  ;;  %v2148_v24 = vunpack.c.l.s8.bf16 %v1326_v17  ;;  %v1715_v4 = vld [vmem:[%s18656_s2 + $0xd60] sm:$0xff] }
 0x187   : > { %10412 = vmatprep.subr.bf16.mxu0 %v2900_v26  ;;  %v2916_v26 = vunpack.c.l.s8.bf16 %v1710_v18 }
 0x188   : > { %7662 = vmatmul.mubr.bf16.gmra.mrb[28].mxu1 %v16761_v23  ;;  %v16785_v23 = vld [vmem:[%s18649_s23 + $0x938] ss:$392 sps:$4 sm:$0xff]  }
 0x189   : > { %10374 = vmatmul.mubr.bf16.gmra.mrb[28].mxu0 %v16762_v25  ;;  %7701 = vmatpush1.bf16.msra.mxu1 %v2131_v27  ;;  %v16786_v25 = vld [vmem:[%s18649_s23 + $0x9f8] ss:$392 sps:$4 sm:$0xff]   ;;  %v2147_v27 = vunpack.c.l.s8.bf16 %v1325_v19 }
 0x18a   : > { %10413 = vmatpush1.bf16.msra.mxu0 %v2899_v28  ;;  %7702 = vmatprep.subr.bf16.mxu1 %v2134_v29  ;;  %v2915_v28 = vunpack.c.l.s8.bf16 %v1709_v20  ;;  %v2150_v29 = vunpack.c.h.s8.bf16 %v1326_v17  ;;  %v1334_v17 = vld [vmem:[%s18656_s2 + $0x178] sm:$0xff] }
 0x18b   : > { %10414 = vmatprep.subr.bf16.mxu0 %v2902_v30  ;;  %7704 = vmatprep.mubr.bf16.mxu1 %v16765_v31  ;;  %v2918_v30 = vunpack.c.h.s8.bf16 %v1710_v18  ;;  %v16787_v31 = vld [vmem:[%s18649_s23 + $0xc4c] ss:$392 sps:$4 sm:$0xff]   ;;  %v1718_v18 = vld [vmem:[%s18656_s2 + $0xd78] sm:$0xff] }
 0x18c   : > { %10416 = vmatprep.mubr.bf16.mxu0 %v16768_v32  ;;  %v16789_v32 = vld [vmem:[%s18649_s23 + $0xd0c] ss:$392 sps:$4 sm:$0xff]  }
 0x18d   : > { %7703 = vmatpush1.bf16.msra.mxu1 %v2133_v37  ;;  %v2149_v37 = vunpack.c.h.s8.bf16 %v1325_v19  ;;  %v1333_v19 = vld [vmem:[%s18656_s2 + $0x170] sm:$0xff] }
 0x18e   : > { %10415 = vmatpush1.bf16.msra.mxu0 %v2901_v38  ;;  %7785 = vmatprep.subr.bf16.mxu1 %v2136_v41  ;;  %v2917_v38 = vunpack.c.h.s8.bf16 %v1709_v20  ;;  %v16792_v41 = vld [vmem:[%s18649_s23 + $0xd08] ss:$392 sps:$4 sm:$0xff]  }
 0x18f   : > { %10497 = vmatprep.subr.bf16.mxu0 %v2904_v42  ;;  %v2920_v42 = vunpack.c.l.s8.bf16 %v1712_v34  ;;  %v1717_v20 = vld [vmem:[%s18656_s2 + $0xd70] sm:$0xff] }
 0x190   : > { %7705 = vmatmul.mubr.bf16.vlgmr.msra.gmra.mrb[0].mxu1 %v16763_v39  ;;  %v16791_v39 = vld [vmem:[%s18649_s23 + $0xc48] ss:$392 sps:$4 sm:$0xff]  }
 0x191   : > { %10417 = vmatmul.mubr.bf16.vlgmr.msra.gmra.mrb[0].mxu0 %v16766_v40  ;;  %7786 = vmatpush1.bf16.msra.mxu1 %v2135_v43  ;;  %v2152_v40 = vunpack.c.l.s8.bf16 %v1328_v33  ;;  %v2151_v43 = vunpack.c.l.s8.bf16 %v1327_v35 }
 0x192   : > { %10498 = vmatpush1.bf16.msra.mxu0 %v2903_v44  ;;  %7787 = vmatprep.subr.bf16.mxu1 %v2138_v45  ;;  %v2919_v44 = vunpack.c.l.s8.bf16 %v1711_v36  ;;  %v2154_v45 = vunpack.c.h.s8.bf16 %v1328_v33  ;;  %v1336_v33 = vld [vmem:[%s18656_s2 + $0x188] sm:$0xff] }
 0x193   : > { %10499 = vmatprep.subr.bf16.mxu0 %v2906_v46  ;;  %7714 = vmatprep.mubr.bf16.mxu1 %v16769_v47  ;;  %v2922_v46 = vunpack.c.h.s8.bf16 %v1712_v34  ;;  %v16793_v47 = vld [vmem:[%s18649_s23 + $0xf5c] ss:$392 sps:$4 sm:$0xff]   ;;  %v1720_v34 = vld [vmem:[%s18656_s2 + $0xd88] sm:$0xff] }
 0x194   : > { %10426 = vmatprep.mubr.bf16.mxu0 %v16771_v48  ;;  %v16795_v48 = vld [vmem:[%s18649_s23 + $0x101c] ss:$392 sps:$4 sm:$0xff]  }
 0x195   : > { %7788 = vmatpush1.bf16.msra.mxu1 %v2137_v53  ;;  %v2153_v53 = vunpack.c.h.s8.bf16 %v1327_v35  ;;  %v1335_v35 = vld [vmem:[%s18656_s2 + $0x180] sm:$0xff] }
 0x196   : > { %10500 = vmatpush1.bf16.msra.mxu0 %v2905_v54  ;;  %7789 = vmatprep.subr.bf16.mxu1 %v2140_v56  ;;  %v2921_v54 = vunpack.c.h.s8.bf16 %v1711_v36  ;;  %v2156_v56 = vunpack.c.l.s8.bf16 %v1330_v49  ;;  %v1719_v36 = vld [vmem:[%s18656_s2 + $0xd80] sm:$0xff] }
 0x197   : > { %10501 = vmatprep.subr.bf16.mxu0 %v2908_v58  ;;  %v2924_v58 = vunpack.c.l.s8.bf16 %v1714_v50 }
 0x198   : > { %7715 = vmatmul.mubr.bf16.gmra.mrb[4].mxu1 %v16773_v55  ;;  %v16797_v55 = vld [vmem:[%s18649_s23 + $0xf58] ss:$392 sps:$4 sm:$0xff]  }
 0x199   : > { %10427 = vmatmul.mubr.bf16.gmra.mrb[4].mxu0 %v16774_v57  ;;  %7790 = vmatpush1.bf16.msra.mxu1 %v2139_v59  ;;  %v16798_v57 = vld [vmem:[%s18649_s23 + $0x1018] ss:$392 sps:$4 sm:$0xff]   ;;  %v2155_v59 = vunpack.c.l.s8.bf16 %v1329_v51 }
 0x19a   : > { %10502 = vmatpush1.bf16.msra.mxu0 %v2907_v60  ;;  %7791 = vmatprep.subr.bf16.mxu1 %v2142_v61  ;;  %v2923_v60 = vunpack.c.l.s8.bf16 %v1713_v52  ;;  %v2158_v61 = vunpack.c.h.s8.bf16 %v1330_v49  ;;  %v1338_v49 = vld [vmem:[%s18656_s2 + $0x198] sm:$0xff] }
 0x19b   : > { %10503 = vmatprep.subr.bf16.mxu0 %v2910_v62  ;;  %7724 = vmatprep.mubr.bf16.mxu1 %v16775_v63  ;;  %v2926_v62 = vunpack.c.h.s8.bf16 %v1714_v50  ;;  %v16799_v63 = vld [vmem:[%s18649_s23 + $0x126c] ss:$392 sps:$4 sm:$0xff]   ;;  %v1722_v50 = vld [vmem:[%s18656_s2 + $0xd98] sm:$0xff] }
 0x19c   : > { %10436 = vmatprep.mubr.bf16.mxu0 %v16777_v0  ;;  %v16801_v0 = vld [vmem:[%s18649_s23 + $0x132c] ss:$392 sps:$4 sm:$0xff]  }
 0x19d   : > { %7792 = vmatpush1.bf16.msra.mxu1 %v2141_v5  ;;  %v2157_v5 = vunpack.c.h.s8.bf16 %v1329_v51  ;;  %v1337_v51 = vld [vmem:[%s18656_s2 + $0x190] sm:$0xff] }
 0x19e   : > { %10504 = vmatpush1.bf16.msra.mxu0 %v2909_v6  ;;  %7793 = vmatprep.subr.bf16.mxu1 %v2144_v8  ;;  %v2925_v6 = vunpack.c.h.s8.bf16 %v1713_v52  ;;  %v2160_v8 = vunpack.c.l.s8.bf16 %v1332_v1  ;;  %v1721_v52 = vld [vmem:[%s18656_s2 + $0xd90] sm:$0xff] }
 0x19f   : > { %10505 = vmatprep.subr.bf16.mxu0 %v2912_v10  ;;  %v2928_v10 = vunpack.c.l.s8.bf16 %v1716_v2 }
 0x1a0   : > { %7725 = vmatmul.mubr.bf16.gmra.mrb[8].mxu1 %v16779_v7  ;;  %v16803_v7 = vld [vmem:[%s18649_s23 + $0x1268] ss:$392 sps:$4 sm:$0xff]  }
 0x1a1   : > { %10437 = vmatmul.mubr.bf16.gmra.mrb[8].mxu0 %v16780_v9  ;;  %7794 = vmatpush1.bf16.msra.mxu1 %v2143_v11  ;;  %v16804_v9 = vld [vmem:[%s18649_s23 + $0x1328] ss:$392 sps:$4 sm:$0xff]   ;;  %v2159_v11 = vunpack.c.l.s8.bf16 %v1331_v3 }
 0x1a2   : > { %10506 = vmatpush1.bf16.msra.mxu0 %v2911_v12  ;;  %7795 = vmatprep.subr.bf16.mxu1 %v2146_v13  ;;  %v2927_v12 = vunpack.c.l.s8.bf16 %v1715_v4  ;;  %v2162_v13 = vunpack.c.h.s8.bf16 %v1332_v1  ;;  %v1340_v1 = vld [vmem:[%s18656_s2 + $0x1a8] sm:$0xff] }
 0x1a3   : > { %10507 = vmatprep.subr.bf16.mxu0 %v2914_v14  ;;  %7734 = vmatprep.mubr.bf16.mxu1 %v16781_v15  ;;  %v2930_v14 = vunpack.c.h.s8.bf16 %v1716_v2  ;;  %v16805_v15 = vld [vmem:[%s18649_s23 + $0x157c] ss:$392 sps:$4 sm:$0xff]   ;;  %v1724_v2 = vld [vmem:[%s18656_s2 + $0xda8] sm:$0xff] }
 0x1a4   : > { %10446 = vmatprep.mubr.bf16.mxu0 %v16783_v16  ;;  %v16807_v16 = vld [vmem:[%s18649_s23 + $0x163c] ss:$392 sps:$4 sm:$0xff]  }
 0x1a5   : > { %7796 = vmatpush1.bf16.msra.mxu1 %v2145_v21  ;;  %v2161_v21 = vunpack.c.h.s8.bf16 %v1331_v3  ;;  %v1339_v3 = vld [vmem:[%s18656_s2 + $0x1a0] sm:$0xff] }
 0x1a6   : > { %10508 = vmatpush1.bf16.msra.mxu0 %v2913_v22  ;;  %7797 = vmatprep.subr.bf16.mxu1 %v2148_v24  ;;  %v2929_v22 = vunpack.c.h.s8.bf16 %v1715_v4  ;;  %v2164_v24 = vunpack.c.l.s8.bf16 %v1334_v17  ;;  %v1723_v4 = vld [vmem:[%s18656_s2 + $0xda0] sm:$0xff] }
 0x1a7   : > { %10509 = vmatprep.subr.bf16.mxu0 %v2916_v26  ;;  %v2932_v26 = vunpack.c.l.s8.bf16 %v1718_v18 }
 0x1a8   : > { %7735 = vmatmul.mubr.bf16.gmra.mrb[12].mxu1 %v16785_v23  ;;  %v16809_v23 = vld [vmem:[%s18649_s23 + $0x1578] ss:$392 sps:$4 sm:$0xff]  }
 0x1a9   : > { %10447 = vmatmul.mubr.bf16.gmra.mrb[12].mxu0 %v16786_v25  ;;  %7798 = vmatpush1.bf16.msra.mxu1 %v2147_v27  ;;  %v16810_v25 = vld [vmem:[%s18649_s23 + $0x1638] ss:$392 sps:$4 sm:$0xff]   ;;  %v2163_v27 = vunpack.c.l.s8.bf16 %v1333_v19 }
 0x1aa   : > { %10510 = vmatpush1.bf16.msra.mxu0 %v2915_v28  ;;  %7799 = vmatprep.subr.bf16.mxu1 %v2150_v29  ;;  %v2931_v28 = vunpack.c.l.s8.bf16 %v1717_v20  ;;  %v2166_v29 = vunpack.c.h.s8.bf16 %v1334_v17  ;;  %v1342_v17 = vld [vmem:[%s18656_s2 + $0x1b8] sm:$0xff] }
 0x1ab   : > { %10511 = vmatprep.subr.bf16.mxu0 %v2918_v30  ;;  %7744 = vmatprep.mubr.bf16.mxu1 %v16787_v31  ;;  %v2934_v30 = vunpack.c.h.s8.bf16 %v1718_v18  ;;  %v16813_v31 = vld [vmem:[%s18649_s23 + $0x14] ss:$392 sps:$4 sm:$0xff]  }
 0x1ac   : > { %10456 = vmatprep.mubr.bf16.mxu0 %v16789_v32  ;;  %v16816_v32 = vld [vmem:[%s18649_s23 + $0xd4] ss:$392 sps:$4 sm:$0xff]  }
 0x1ad   : > { %7800 = vmatpush1.bf16.msra.mxu1 %v2149_v37  ;;  %v2165_v37 = vunpack.c.h.s8.bf16 %v1333_v19  ;;  %v1726_v18 = vld [vmem:[%s18656_s2 + $0xdb8] sm:$0xff]  ;;  %v1341_v19 = vld [vmem:[%s18656_s2 + $0x1b0] sm:$0xff] }
 0x1ae   : > { %10512 = vmatpush1.bf16.msra.mxu0 %v2917_v38  ;;  %7801 = vmatprep.subr.bf16.mxu1 %v2152_v40  ;;  %v2933_v38 = vunpack.c.h.s8.bf16 %v1717_v20  ;;  %v16814_v40 = vld [vmem:[%s18649_s23 + $0xd0] ss:$392 sps:$4 sm:$0xff]  }
 0x1af   : > { %10513 = vmatprep.subr.bf16.mxu0 %v2920_v42  ;;  %v2936_v42 = vunpack.c.l.s8.bf16 %v1720_v34  ;;  %v1725_v20 = vld [vmem:[%s18656_s2 + $0xdb0] sm:$0xff] }
 0x1b0   : > { %7745 = vmatmul.mubr.bf16.gmra.mrb[16].mxu1 %v16791_v39  ;;  %v16811_v39 = vld [vmem:[%s18649_s23 + $0x10] ss:$392 sps:$4 sm:$0xff]  }
 0x1b1   : > { %10457 = vmatmul.mubr.bf16.gmra.mrb[16].mxu0 %v16792_v41  ;;  %7802 = vmatpush1.bf16.msra.mxu1 %v2151_v43  ;;  %v2168_v41 = vunpack.c.l.s8.bf16 %v1336_v33  ;;  %v2167_v43 = vunpack.c.l.s8.bf16 %v1335_v35 }
 0x1b2   : > { %10514 = vmatpush1.bf16.msra.mxu0 %v2919_v44  ;;  %7803 = vmatprep.subr.bf16.mxu1 %v2154_v45  ;;  %v2935_v44 = vunpack.c.l.s8.bf16 %v1719_v36  ;;  %v2170_v45 = vunpack.c.h.s8.bf16 %v1336_v33  ;;  %v1344_v33 = vld [vmem:[%s18656_s2 + $0x1c8] sm:$0xff] }
 0x1b3   : > { %10515 = vmatprep.subr.bf16.mxu0 %v2922_v46  ;;  %7754 = vmatprep.mubr.bf16.mxu1 %v16793_v47  ;;  %v2938_v46 = vunpack.c.h.s8.bf16 %v1720_v34  ;;  %v16817_v47 = vld [vmem:[%s18649_s23 + $0x324] ss:$392 sps:$4 sm:$0xff]  }
 0x1b4   : > { %10466 = vmatprep.mubr.bf16.mxu0 %v16795_v48  ;;  %v16819_v48 = vld [vmem:[%s18649_s23 + $0x3e4] ss:$392 sps:$4 sm:$0xff]  }
 0x1b5   : > { %7804 = vmatpush1.bf16.msra.mxu1 %v2153_v53  ;;  %v2169_v53 = vunpack.c.h.s8.bf16 %v1335_v35  ;;  %v1728_v34 = vld [vmem:[%s18656_s2 + $0xdc8] sm:$0xff]  ;;  %v1343_v35 = vld [vmem:[%s18656_s2 + $0x1c0] sm:$0xff] }
 0x1b6   : > { %10516 = vmatpush1.bf16.msra.mxu0 %v2921_v54  ;;  %7805 = vmatprep.subr.bf16.mxu1 %v2156_v56  ;;  %v2937_v54 = vunpack.c.h.s8.bf16 %v1719_v36  ;;  %v2172_v56 = vunpack.c.l.s8.bf16 %v1338_v49  ;;  %v1727_v36 = vld [vmem:[%s18656_s2 + $0xdc0] sm:$0xff] }
 0x1b7   : > { %10517 = vmatprep.subr.bf16.mxu0 %v2924_v58  ;;  %v2940_v58 = vunpack.c.l.s8.bf16 %v1722_v50 }
 0x1b8   : > { %7755 = vmatmul.mubr.bf16.gmra.mrb[20].mxu1 %v16797_v55  ;;  %v16821_v55 = vld [vmem:[%s18649_s23 + $0x320] ss:$392 sps:$4 sm:$0xff]  }
 0x1b9   : > { %10467 = vmatmul.mubr.bf16.gmra.mrb[20].mxu0 %v16798_v57  ;;  %7806 = vmatpush1.bf16.msra.mxu1 %v2155_v59  ;;  %v16822_v57 = vld [vmem:[%s18649_s23 + $0x3e0] ss:$392 sps:$4 sm:$0xff]   ;;  %v2171_v59 = vunpack.c.l.s8.bf16 %v1337_v51 }
 0x1ba   : > { %10518 = vmatpush1.bf16.msra.mxu0 %v2923_v60  ;;  %7807 = vmatprep.subr.bf16.mxu1 %v2158_v61  ;;  %v2939_v60 = vunpack.c.l.s8.bf16 %v1721_v52  ;;  %v2174_v61 = vunpack.c.h.s8.bf16 %v1338_v49  ;;  %v1346_v49 = vld [vmem:[%s18656_s2 + $0x1d8] sm:$0xff] }
 0x1bb   : > { %10519 = vmatprep.subr.bf16.mxu0 %v2926_v62  ;;  %7764 = vmatprep.mubr.bf16.mxu1 %v16799_v63  ;;  %v2942_v62 = vunpack.c.h.s8.bf16 %v1722_v50  ;;  %v16823_v63 = vld [vmem:[%s18649_s23 + $0x634] ss:$392 sps:$4 sm:$0xff]  }
 0x1bc   : > { %10476 = vmatprep.mubr.bf16.mxu0 %v16801_v0  ;;  %v16825_v0 = vld [vmem:[%s18649_s23 + $0x6f4] ss:$392 sps:$4 sm:$0xff]  }
 0x1bd   : > { %7808 = vmatpush1.bf16.msra.mxu1 %v2157_v5  ;;  %v2173_v5 = vunpack.c.h.s8.bf16 %v1337_v51  ;;  %v1730_v50 = vld [vmem:[%s18656_s2 + $0xdd8] sm:$0xff]  ;;  %v1345_v51 = vld [vmem:[%s18656_s2 + $0x1d0] sm:$0xff] }
 0x1be   : > { %10520 = vmatpush1.bf16.msra.mxu0 %v2925_v6  ;;  %7809 = vmatprep.subr.bf16.mxu1 %v2160_v8  ;;  %v2941_v6 = vunpack.c.h.s8.bf16 %v1721_v52  ;;  %v2176_v8 = vunpack.c.l.s8.bf16 %v1340_v1  ;;  %v1729_v52 = vld [vmem:[%s18656_s2 + $0xdd0] sm:$0xff] }
 0x1bf   : > { %10521 = vmatprep.subr.bf16.mxu0 %v2928_v10  ;;  %v2944_v10 = vunpack.c.l.s8.bf16 %v1724_v2 }
 0x1c0   : > { %7765 = vmatmul.mubr.bf16.gmra.mrb[24].mxu1 %v16803_v7  ;;  %v16827_v7 = vld [vmem:[%s18649_s23 + $0x630] ss:$392 sps:$4 sm:$0xff]  }
 0x1c1   : > { %10477 = vmatmul.mubr.bf16.gmra.mrb[24].mxu0 %v16804_v9  ;;  %7810 = vmatpush1.bf16.msra.mxu1 %v2159_v11  ;;  %v16828_v9 = vld [vmem:[%s18649_s23 + $0x6f0] ss:$392 sps:$4 sm:$0xff]   ;;  %v2175_v11 = vunpack.c.l.s8.bf16 %v1339_v3 }
 0x1c2   : > { %10522 = vmatpush1.bf16.msra.mxu0 %v2927_v12  ;;  %7811 = vmatprep.subr.bf16.mxu1 %v2162_v13  ;;  %v2943_v12 = vunpack.c.l.s8.bf16 %v1723_v4  ;;  %v2178_v13 = vunpack.c.h.s8.bf16 %v1340_v1  ;;  %v1348_v1 = vld [vmem:[%s18656_s2 + $0x1e8] sm:$0xff] }
 0x1c3   : > { %10523 = vmatprep.subr.bf16.mxu0 %v2930_v14  ;;  %7774 = vmatprep.mubr.bf16.mxu1 %v16805_v15  ;;  %v2946_v14 = vunpack.c.h.s8.bf16 %v1724_v2  ;;  %v16829_v15 = vld [vmem:[%s18649_s23 + $0x944] ss:$392 sps:$4 sm:$0xff]  }
 0x1c4   : > { %10486 = vmatprep.mubr.bf16.mxu0 %v16807_v16  ;;  %v16831_v16 = vld [vmem:[%s18649_s23 + $0xa04] ss:$392 sps:$4 sm:$0xff]  }
 0x1c5   : > { %7812 = vmatpush1.bf16.msra.mxu1 %v2161_v21  ;;  %v2177_v21 = vunpack.c.h.s8.bf16 %v1339_v3  ;;  %v1732_v2 = vld [vmem:[%s18656_s2 + $0xde8] sm:$0xff]  ;;  %v1347_v3 = vld [vmem:[%s18656_s2 + $0x1e0] sm:$0xff] }
 0x1c6   : > { %10524 = vmatpush1.bf16.msra.mxu0 %v2929_v22  ;;  %7813 = vmatprep.subr.bf16.mxu1 %v2164_v24  ;;  %v2945_v22 = vunpack.c.h.s8.bf16 %v1723_v4  ;;  %v2180_v24 = vunpack.c.l.s8.bf16 %v1342_v17  ;;  %v1731_v4 = vld [vmem:[%s18656_s2 + $0xde0] sm:$0xff] }
 0x1c7   : > { %10525 = vmatprep.subr.bf16.mxu0 %v2932_v26  ;;  %v2948_v26 = vunpack.c.l.s8.bf16 %v1726_v18 }
 0x1c8   : > { %7775 = vmatmul.mubr.bf16.gmra.mrb[28].mxu1 %v16809_v23  ;;  %v16833_v23 = vld [vmem:[%s18649_s23 + $0x940] ss:$392 sps:$4 sm:$0xff]  }
 0x1c9   : > { %10487 = vmatmul.mubr.bf16.gmra.mrb[28].mxu0 %v16810_v25  ;;  %7814 = vmatpush1.bf16.msra.mxu1 %v2163_v27  ;;  %v16834_v25 = vld [vmem:[%s18649_s23 + $0xa00] ss:$392 sps:$4 sm:$0xff]   ;;  %v2179_v27 = vunpack.c.l.s8.bf16 %v1341_v19 }
 0x1ca   : > { %10526 = vmatpush1.bf16.msra.mxu0 %v2931_v28  ;;  %7815 = vmatprep.subr.bf16.mxu1 %v2166_v29  ;;  %v2947_v28 = vunpack.c.l.s8.bf16 %v1725_v20  ;;  %v2182_v29 = vunpack.c.h.s8.bf16 %v1342_v17  ;;  %v1350_v17 = vld [vmem:[%s18656_s2 + $0x1f8] sm:$0xff] }
 0x1cb   : > { %10527 = vmatprep.subr.bf16.mxu0 %v2934_v30  ;;  %7817 = vmatprep.mubr.bf16.mxu1 %v16813_v31  ;;  %v2950_v30 = vunpack.c.h.s8.bf16 %v1726_v18  ;;  %v16835_v31 = vld [vmem:[%s18649_s23 + $0xc54] ss:$392 sps:$4 sm:$0xff]  }
 0x1cc   : > { %10529 = vmatprep.mubr.bf16.mxu0 %v16816_v32  ;;  %v16837_v32 = vld [vmem:[%s18649_s23 + $0xd14] ss:$392 sps:$4 sm:$0xff]  }
 0x1cd   : > { %7816 = vmatpush1.bf16.msra.mxu1 %v2165_v37  ;;  %v2181_v37 = vunpack.c.h.s8.bf16 %v1341_v19  ;;  %v1734_v18 = vld [vmem:[%s18656_s2 + $0xdf8] sm:$0xff]  ;;  %v1349_v19 = vld [vmem:[%s18656_s2 + $0x1f0] sm:$0xff] }
 0x1ce   : > { %10528 = vmatpush1.bf16.msra.mxu0 %v2933_v38  ;;  %7898 = vmatprep.subr.bf16.mxu1 %v2168_v41  ;;  %v2949_v38 = vunpack.c.h.s8.bf16 %v1725_v20  ;;  %v16840_v41 = vld [vmem:[%s18649_s23 + $0xd10] ss:$392 sps:$4 sm:$0xff]  }
 0x1cf   : > { %10610 = vmatprep.subr.bf16.mxu0 %v2936_v42  ;;  %v2952_v42 = vunpack.c.l.s8.bf16 %v1728_v34  ;;  %v1733_v20 = vld [vmem:[%s18656_s2 + $0xdf0] sm:$0xff] }
 0x1d0   : > { %7818 = vmatmul.mubr.bf16.vlgmr.msra.gmra.mrb[0].mxu1 %v16811_v39  ;;  %v16839_v39 = vld [vmem:[%s18649_s23 + $0xc50] ss:$392 sps:$4 sm:$0xff]  }
 0x1d1   : > { %10530 = vmatmul.mubr.bf16.vlgmr.msra.gmra.mrb[0].mxu0 %v16814_v40  ;;  %7899 = vmatpush1.bf16.msra.mxu1 %v2167_v43  ;;  %v2184_v40 = vunpack.c.l.s8.bf16 %v1344_v33  ;;  %v2183_v43 = vunpack.c.l.s8.bf16 %v1343_v35 }
 0x1d2   : > { %10611 = vmatpush1.bf16.msra.mxu0 %v2935_v44  ;;  %7900 = vmatprep.subr.bf16.mxu1 %v2170_v45  ;;  %v2951_v44 = vunpack.c.l.s8.bf16 %v1727_v36  ;;  %v2186_v45 = vunpack.c.h.s8.bf16 %v1344_v33  ;;  %v1352_v33 = vld [vmem:[%s18656_s2 + $0x208] sm:$0xff] }
 0x1d3   : > { %10612 = vmatprep.subr.bf16.mxu0 %v2938_v46  ;;  %7827 = vmatprep.mubr.bf16.mxu1 %v16817_v47  ;;  %v2954_v46 = vunpack.c.h.s8.bf16 %v1728_v34  ;;  %v16841_v47 = vld [vmem:[%s18649_s23 + $0xf64] ss:$392 sps:$4 sm:$0xff]  }
 0x1d4   : > { %10539 = vmatprep.mubr.bf16.mxu0 %v16819_v48  ;;  %v16843_v48 = vld [vmem:[%s18649_s23 + $0x1024] ss:$392 sps:$4 sm:$0xff]  }
 0x1d5   : > { %7901 = vmatpush1.bf16.msra.mxu1 %v2169_v53  ;;  %v2185_v53 = vunpack.c.h.s8.bf16 %v1343_v35  ;;  %v1736_v34 = vld [vmem:[%s18656_s2 + $0xe08] sm:$0xff]  ;;  %v1351_v35 = vld [vmem:[%s18656_s2 + $0x200] sm:$0xff] }
 0x1d6   : > { %10613 = vmatpush1.bf16.msra.mxu0 %v2937_v54  ;;  %7902 = vmatprep.subr.bf16.mxu1 %v2172_v56  ;;  %v2953_v54 = vunpack.c.h.s8.bf16 %v1727_v36  ;;  %v2188_v56 = vunpack.c.l.s8.bf16 %v1346_v49  ;;  %v1735_v36 = vld [vmem:[%s18656_s2 + $0xe00] sm:$0xff] }
 0x1d7   : > { %10614 = vmatprep.subr.bf16.mxu0 %v2940_v58  ;;  %v2956_v58 = vunpack.c.l.s8.bf16 %v1730_v50 }
 0x1d8   : > { %7828 = vmatmul.mubr.bf16.gmra.mrb[4].mxu1 %v16821_v55  ;;  %v16845_v55 = vld [vmem:[%s18649_s23 + $0xf60] ss:$392 sps:$4 sm:$0xff]  }
 0x1d9   : > { %10540 = vmatmul.mubr.bf16.gmra.mrb[4].mxu0 %v16822_v57  ;;  %7903 = vmatpush1.bf16.msra.mxu1 %v2171_v59  ;;  %v16846_v57 = vld [vmem:[%s18649_s23 + $0x1020] ss:$392 sps:$4 sm:$0xff]   ;;  %v2187_v59 = vunpack.c.l.s8.bf16 %v1345_v51 }
 0x1da   : > { %10615 = vmatpush1.bf16.msra.mxu0 %v2939_v60  ;;  %7904 = vmatprep.subr.bf16.mxu1 %v2174_v61  ;;  %v2955_v60 = vunpack.c.l.s8.bf16 %v1729_v52  ;;  %v2190_v61 = vunpack.c.h.s8.bf16 %v1346_v49  ;;  %v1354_v49 = vld [vmem:[%s18656_s2 + $0x218] sm:$0xff] }
 0x1db   : > { %10616 = vmatprep.subr.bf16.mxu0 %v2942_v62  ;;  %7837 = vmatprep.mubr.bf16.mxu1 %v16823_v63  ;;  %v2958_v62 = vunpack.c.h.s8.bf16 %v1730_v50  ;;  %v16847_v63 = vld [vmem:[%s18649_s23 + $0x1274] ss:$392 sps:$4 sm:$0xff]  }
 0x1dc   : > { %10549 = vmatprep.mubr.bf16.mxu0 %v16825_v0  ;;  %v16849_v0 = vld [vmem:[%s18649_s23 + $0x1334] ss:$392 sps:$4 sm:$0xff]  }
 0x1dd   : > { %7905 = vmatpush1.bf16.msra.mxu1 %v2173_v5  ;;  %v2189_v5 = vunpack.c.h.s8.bf16 %v1345_v51  ;;  %v1738_v50 = vld [vmem:[%s18656_s2 + $0xe18] sm:$0xff]  ;;  %v1353_v51 = vld [vmem:[%s18656_s2 + $0x210] sm:$0xff] }
 0x1de   : > { %10617 = vmatpush1.bf16.msra.mxu0 %v2941_v6  ;;  %7906 = vmatprep.subr.bf16.mxu1 %v2176_v8  ;;  %v2957_v6 = vunpack.c.h.s8.bf16 %v1729_v52  ;;  %v2192_v8 = vunpack.c.l.s8.bf16 %v1348_v1  ;;  %v1737_v52 = vld [vmem:[%s18656_s2 + $0xe10] sm:$0xff] }
 0x1df   : > { %10618 = vmatprep.subr.bf16.mxu0 %v2944_v10  ;;  %v2960_v10 = vunpack.c.l.s8.bf16 %v1732_v2 }
 0x1e0   : > { %7838 = vmatmul.mubr.bf16.gmra.mrb[8].mxu1 %v16827_v7  ;;  %v16851_v7 = vld [vmem:[%s18649_s23 + $0x1270] ss:$392 sps:$4 sm:$0xff]  }
 0x1e1   : > { %10550 = vmatmul.mubr.bf16.gmra.mrb[8].mxu0 %v16828_v9  ;;  %7907 = vmatpush1.bf16.msra.mxu1 %v2175_v11  ;;  %v16852_v9 = vld [vmem:[%s18649_s23 + $0x1330] ss:$392 sps:$4 sm:$0xff]   ;;  %v2191_v11 = vunpack.c.l.s8.bf16 %v1347_v3 }
 0x1e2   : > { %10619 = vmatpush1.bf16.msra.mxu0 %v2943_v12  ;;  %7908 = vmatprep.subr.bf16.mxu1 %v2178_v13  ;;  %v2959_v12 = vunpack.c.l.s8.bf16 %v1731_v4  ;;  %v2194_v13 = vunpack.c.h.s8.bf16 %v1348_v1  ;;  %v1356_v1 = vld [vmem:[%s18656_s2 + $0x228] sm:$0xff] }
 0x1e3   : > { %10620 = vmatprep.subr.bf16.mxu0 %v2946_v14  ;;  %7847 = vmatprep.mubr.bf16.mxu1 %v16829_v15  ;;  %v2962_v14 = vunpack.c.h.s8.bf16 %v1732_v2  ;;  %v16853_v15 = vld [vmem:[%s18649_s23 + $0x1584] ss:$392 sps:$4 sm:$0xff]  }
 0x1e4   : > { %10559 = vmatprep.mubr.bf16.mxu0 %v16831_v16  ;;  %v16855_v16 = vld [vmem:[%s18649_s23 + $0x1644] ss:$392 sps:$4 sm:$0xff]  }
 0x1e5   : > { %7909 = vmatpush1.bf16.msra.mxu1 %v2177_v21  ;;  %v2193_v21 = vunpack.c.h.s8.bf16 %v1347_v3  ;;  %v1740_v2 = vld [vmem:[%s18656_s2 + $0xe28] sm:$0xff]  ;;  %v1355_v3 = vld [vmem:[%s18656_s2 + $0x220] sm:$0xff] }
 0x1e6   : > { %10621 = vmatpush1.bf16.msra.mxu0 %v2945_v22  ;;  %7910 = vmatprep.subr.bf16.mxu1 %v2180_v24  ;;  %v2961_v22 = vunpack.c.h.s8.bf16 %v1731_v4  ;;  %v2196_v24 = vunpack.c.l.s8.bf16 %v1350_v17  ;;  %v1739_v4 = vld [vmem:[%s18656_s2 + $0xe20] sm:$0xff] }
 0x1e7   : > { %10622 = vmatprep.subr.bf16.mxu0 %v2948_v26  ;;  %v2964_v26 = vunpack.c.l.s8.bf16 %v1734_v18 }
 0x1e8   : > { %7848 = vmatmul.mubr.bf16.gmra.mrb[12].mxu1 %v16833_v23  ;;  %v16857_v23 = vld [vmem:[%s18649_s23 + $0x1580] ss:$392 sps:$4 sm:$0xff]  }
 0x1e9   : > { %10560 = vmatmul.mubr.bf16.gmra.mrb[12].mxu0 %v16834_v25  ;;  %7911 = vmatpush1.bf16.msra.mxu1 %v2179_v27  ;;  %v16858_v25 = vld [vmem:[%s18649_s23 + $0x1640] ss:$392 sps:$4 sm:$0xff]   ;;  %v2195_v27 = vunpack.c.l.s8.bf16 %v1349_v19 }
 0x1ea   : > { %10623 = vmatpush1.bf16.msra.mxu0 %v2947_v28  ;;  %7912 = vmatprep.subr.bf16.mxu1 %v2182_v29  ;;  %v2963_v28 = vunpack.c.l.s8.bf16 %v1733_v20  ;;  %v2198_v29 = vunpack.c.h.s8.bf16 %v1350_v17  ;;  %v1358_v17 = vld [vmem:[%s18656_s2 + $0x238] sm:$0xff] }
 0x1eb   : > { %10624 = vmatprep.subr.bf16.mxu0 %v2950_v30  ;;  %7857 = vmatprep.mubr.bf16.mxu1 %v16835_v31  ;;  %v2966_v30 = vunpack.c.h.s8.bf16 %v1734_v18  ;;  %v16861_v31 = vld [vmem:[%s18649_s23 + $0x1c] ss:$392 sps:$4 sm:$0xff]  }
 0x1ec   : > { %10569 = vmatprep.mubr.bf16.mxu0 %v16837_v32  ;;  %v16864_v32 = vld [vmem:[%s18649_s23 + $0xdc] ss:$392 sps:$4 sm:$0xff]  }
 0x1ed   : > { %7913 = vmatpush1.bf16.msra.mxu1 %v2181_v37  ;;  %v2197_v37 = vunpack.c.h.s8.bf16 %v1349_v19  ;;  %v1742_v18 = vld [vmem:[%s18656_s2 + $0xe38] sm:$0xff]  ;;  %v1357_v19 = vld [vmem:[%s18656_s2 + $0x230] sm:$0xff] }
 0x1ee   : > { %10625 = vmatpush1.bf16.msra.mxu0 %v2949_v38  ;;  %7914 = vmatprep.subr.bf16.mxu1 %v2184_v40  ;;  %v2965_v38 = vunpack.c.h.s8.bf16 %v1733_v20  ;;  %v16862_v40 = vld [vmem:[%s18649_s23 + $0xd8] ss:$392 sps:$4 sm:$0xff]   ;;  %v1741_v20 = vld [vmem:[%s18656_s2 + $0xe30] sm:$0xff] }
 0x1ef   : > { %10626 = vmatprep.subr.bf16.mxu0 %v2952_v42  ;;  %v2968_v42 = vunpack.c.l.s8.bf16 %v1736_v34 }
 0x1f0   : > { %7858 = vmatmul.mubr.bf16.gmra.mrb[16].mxu1 %v16839_v39  ;;  %v16859_v39 = vld [vmem:[%s18649_s23 + $0x18] ss:$392 sps:$4 sm:$0xff]  }
 0x1f1   : > { %10570 = vmatmul.mubr.bf16.gmra.mrb[16].mxu0 %v16840_v41  ;;  %7915 = vmatpush1.bf16.msra.mxu1 %v2183_v43  ;;  %v2200_v41 = vunpack.c.l.s8.bf16 %v1352_v33  ;;  %v2199_v43 = vunpack.c.l.s8.bf16 %v1351_v35 }
 0x1f2   : > { %10627 = vmatpush1.bf16.msra.mxu0 %v2951_v44  ;;  %7916 = vmatprep.subr.bf16.mxu1 %v2186_v45  ;;  %v2967_v44 = vunpack.c.l.s8.bf16 %v1735_v36  ;;  %v2202_v45 = vunpack.c.h.s8.bf16 %v1352_v33  ;;  %v1360_v33 = vld [vmem:[%s18656_s2 + $0x248] sm:$0xff] }
 0x1f3   : > { %10628 = vmatprep.subr.bf16.mxu0 %v2954_v46  ;;  %7867 = vmatprep.mubr.bf16.mxu1 %v16841_v47  ;;  %v2970_v46 = vunpack.c.h.s8.bf16 %v1736_v34  ;;  %v16865_v47 = vld [vmem:[%s18649_s23 + $0x32c] ss:$392 sps:$4 sm:$0xff]  }
 0x1f4   : > { %10579 = vmatprep.mubr.bf16.mxu0 %v16843_v48  ;;  %v16867_v48 = vld [vmem:[%s18649_s23 + $0x3ec] ss:$392 sps:$4 sm:$0xff]  }
 0x1f5   : > { %7917 = vmatpush1.bf16.msra.mxu1 %v2185_v53  ;;  %v2201_v53 = vunpack.c.h.s8.bf16 %v1351_v35  ;;  %v1744_v34 = vld [vmem:[%s18656_s2 + $0xe48] sm:$0xff]  ;;  %v1359_v35 = vld [vmem:[%s18656_s2 + $0x240] sm:$0xff] }
 0x1f6   : > { %10629 = vmatpush1.bf16.msra.mxu0 %v2953_v54  ;;  %7918 = vmatprep.subr.bf16.mxu1 %v2188_v56  ;;  %v2969_v54 = vunpack.c.h.s8.bf16 %v1735_v36  ;;  %v2204_v56 = vunpack.c.l.s8.bf16 %v1354_v49  ;;  %v1743_v36 = vld [vmem:[%s18656_s2 + $0xe40] sm:$0xff] }
 0x1f7   : > { %10630 = vmatprep.subr.bf16.mxu0 %v2956_v58  ;;  %v2972_v58 = vunpack.c.l.s8.bf16 %v1738_v50 }
 0x1f8   : > { %7868 = vmatmul.mubr.bf16.gmra.mrb[20].mxu1 %v16845_v55  ;;  %v16869_v55 = vld [vmem:[%s18649_s23 + $0x328] ss:$392 sps:$4 sm:$0xff]  }
 0x1f9   : > { %10580 = vmatmul.mubr.bf16.gmra.mrb[20].mxu0 %v16846_v57  ;;  %7919 = vmatpush1.bf16.msra.mxu1 %v2187_v59  ;;  %v16870_v57 = vld [vmem:[%s18649_s23 + $0x3e8] ss:$392 sps:$4 sm:$0xff]   ;;  %v2203_v59 = vunpack.c.l.s8.bf16 %v1353_v51 }
 0x1fa   : > { %10631 = vmatpush1.bf16.msra.mxu0 %v2955_v60  ;;  %7920 = vmatprep.subr.bf16.mxu1 %v2190_v61  ;;  %v2971_v60 = vunpack.c.l.s8.bf16 %v1737_v52  ;;  %v2206_v61 = vunpack.c.h.s8.bf16 %v1354_v49  ;;  %v1362_v49 = vld [vmem:[%s18656_s2 + $0x258] sm:$0xff] }
 0x1fb   : > { %10632 = vmatprep.subr.bf16.mxu0 %v2958_v62  ;;  %7877 = vmatprep.mubr.bf16.mxu1 %v16847_v63  ;;  %v2974_v62 = vunpack.c.h.s8.bf16 %v1738_v50  ;;  %v16871_v63 = vld [vmem:[%s18649_s23 + $0x63c] ss:$392 sps:$4 sm:$0xff]  }
 0x1fc   : > { %10589 = vmatprep.mubr.bf16.mxu0 %v16849_v0  ;;  %v16873_v0 = vld [vmem:[%s18649_s23 + $0x6fc] ss:$392 sps:$4 sm:$0xff]  }
 0x1fd   : > { %7921 = vmatpush1.bf16.msra.mxu1 %v2189_v5  ;;  %v2205_v5 = vunpack.c.h.s8.bf16 %v1353_v51  ;;  %v1746_v50 = vld [vmem:[%s18656_s2 + $0xe58] sm:$0xff]  ;;  %v1361_v51 = vld [vmem:[%s18656_s2 + $0x250] sm:$0xff] }
 0x1fe   : > { %10633 = vmatpush1.bf16.msra.mxu0 %v2957_v6  ;;  %7922 = vmatprep.subr.bf16.mxu1 %v2192_v8  ;;  %v2973_v6 = vunpack.c.h.s8.bf16 %v1737_v52  ;;  %v2208_v8 = vunpack.c.l.s8.bf16 %v1356_v1  ;;  %v1745_v52 = vld [vmem:[%s18656_s2 + $0xe50] sm:$0xff] }
 0x1ff   : > { %10634 = vmatprep.subr.bf16.mxu0 %v2960_v10  ;;  %v2976_v10 = vunpack.c.l.s8.bf16 %v1740_v2 }
 0x200   : > { %7878 = vmatmul.mubr.bf16.gmra.mrb[24].mxu1 %v16851_v7  ;;  %v16875_v7 = vld [vmem:[%s18649_s23 + $0x638] ss:$392 sps:$4 sm:$0xff]  }
 0x201   : > { %10590 = vmatmul.mubr.bf16.gmra.mrb[24].mxu0 %v16852_v9  ;;  %7923 = vmatpush1.bf16.msra.mxu1 %v2191_v11  ;;  %v16876_v9 = vld [vmem:[%s18649_s23 + $0x6f8] ss:$392 sps:$4 sm:$0xff]   ;;  %v2207_v11 = vunpack.c.l.s8.bf16 %v1355_v3 }
 0x202   : > { %10635 = vmatpush1.bf16.msra.mxu0 %v2959_v12  ;;  %7924 = vmatprep.subr.bf16.mxu1 %v2194_v13  ;;  %v2975_v12 = vunpack.c.l.s8.bf16 %v1739_v4  ;;  %v2210_v13 = vunpack.c.h.s8.bf16 %v1356_v1  ;;  %v1364_v1 = vld [vmem:[%s18656_s2 + $0x268] sm:$0xff] }
 0x203   : > { %10636 = vmatprep.subr.bf16.mxu0 %v2962_v14  ;;  %7887 = vmatprep.mubr.bf16.mxu1 %v16853_v15  ;;  %v2978_v14 = vunpack.c.h.s8.bf16 %v1740_v2  ;;  %v16877_v15 = vld [vmem:[%s18649_s23 + $0x94c] ss:$392 sps:$4 sm:$0xff]  }
 0x204   : > { %10599 = vmatprep.mubr.bf16.mxu0 %v16855_v16  ;;  %v16879_v16 = vld [vmem:[%s18649_s23 + $0xa0c] ss:$392 sps:$4 sm:$0xff]  }
 0x205   : > { %7925 = vmatpush1.bf16.msra.mxu1 %v2193_v21  ;;  %v2209_v21 = vunpack.c.h.s8.bf16 %v1355_v3  ;;  %v1748_v2 = vld [vmem:[%s18656_s2 + $0xe68] sm:$0xff]  ;;  %v1363_v3 = vld [vmem:[%s18656_s2 + $0x260] sm:$0xff] }
 0x206   : > { %10637 = vmatpush1.bf16.msra.mxu0 %v2961_v22  ;;  %7926 = vmatprep.subr.bf16.mxu1 %v2196_v24  ;;  %v2977_v22 = vunpack.c.h.s8.bf16 %v1739_v4  ;;  %v2212_v24 = vunpack.c.l.s8.bf16 %v1358_v17  ;;  %v1747_v4 = vld [vmem:[%s18656_s2 + $0xe60] sm:$0xff] }
 0x207   : > { %10638 = vmatprep.subr.bf16.mxu0 %v2964_v26  ;;  %v2980_v26 = vunpack.c.l.s8.bf16 %v1742_v18 }
 0x208   : > { %7888 = vmatmul.mubr.bf16.gmra.mrb[28].mxu1 %v16857_v23  ;;  %v16881_v23 = vld [vmem:[%s18649_s23 + $0x948] ss:$392 sps:$4 sm:$0xff]  }
 0x209   : > { %10600 = vmatmul.mubr.bf16.gmra.mrb[28].mxu0 %v16858_v25  ;;  %7927 = vmatpush1.bf16.msra.mxu1 %v2195_v27  ;;  %v16882_v25 = vld [vmem:[%s18649_s23 + $0xa08] ss:$392 sps:$4 sm:$0xff]   ;;  %v2211_v27 = vunpack.c.l.s8.bf16 %v1357_v19 }
 0x20a   : > { %10639 = vmatpush1.bf16.msra.mxu0 %v2963_v28  ;;  %7928 = vmatprep.subr.bf16.mxu1 %v2198_v29  ;;  %v2979_v28 = vunpack.c.l.s8.bf16 %v1741_v20  ;;  %v2214_v29 = vunpack.c.h.s8.bf16 %v1358_v17  ;;  %v1366_v17 = vld [vmem:[%s18656_s2 + $0x278] sm:$0xff] }
 0x20b   : > { %10640 = vmatprep.subr.bf16.mxu0 %v2966_v30  ;;  %7930 = vmatprep.mubr.bf16.mxu1 %v16861_v31  ;;  %v2982_v30 = vunpack.c.h.s8.bf16 %v1742_v18  ;;  %v16883_v31 = vld [vmem:[%s18649_s23 + $0xc5c] ss:$392 sps:$4 sm:$0xff]  }
 0x20c   : > { %10642 = vmatprep.mubr.bf16.mxu0 %v16864_v32  ;;  %v16885_v32 = vld [vmem:[%s18649_s23 + $0xd1c] ss:$392 sps:$4 sm:$0xff]  }
 0x20d   : > { %7929 = vmatpush1.bf16.msra.mxu1 %v2197_v37  ;;  %v2213_v37 = vunpack.c.h.s8.bf16 %v1357_v19  ;;  %v1750_v18 = vld [vmem:[%s18656_s2 + $0xe78] sm:$0xff]  ;;  %v1365_v19 = vld [vmem:[%s18656_s2 + $0x270] sm:$0xff] }
 0x20e   : > { %10641 = vmatpush1.bf16.msra.mxu0 %v2965_v38  ;;  %8011 = vmatprep.subr.bf16.mxu1 %v2200_v41  ;;  %v2981_v38 = vunpack.c.h.s8.bf16 %v1741_v20  ;;  %v16888_v41 = vld [vmem:[%s18649_s23 + $0xd18] ss:$392 sps:$4 sm:$0xff]   ;;  %v1749_v20 = vld [vmem:[%s18656_s2 + $0xe70] sm:$0xff] }
 0x20f   : > { %10723 = vmatprep.subr.bf16.mxu0 %v2968_v42  ;;  %v2984_v42 = vunpack.c.l.s8.bf16 %v1744_v34 }
 0x210   : > { %7931 = vmatmul.mubr.bf16.vlgmr.msra.gmra.mrb[0].mxu1 %v16859_v39  ;;  %v16887_v39 = vld [vmem:[%s18649_s23 + $0xc58] ss:$392 sps:$4 sm:$0xff]  }
 0x211   : > { %10643 = vmatmul.mubr.bf16.vlgmr.msra.gmra.mrb[0].mxu0 %v16862_v40  ;;  %8012 = vmatpush1.bf16.msra.mxu1 %v2199_v43  ;;  %v2216_v40 = vunpack.c.l.s8.bf16 %v1360_v33  ;;  %v2215_v43 = vunpack.c.l.s8.bf16 %v1359_v35 }
 0x212   : > { %10724 = vmatpush1.bf16.msra.mxu0 %v2967_v44  ;;  %8013 = vmatprep.subr.bf16.mxu1 %v2202_v45  ;;  %v2983_v44 = vunpack.c.l.s8.bf16 %v1743_v36  ;;  %v2218_v45 = vunpack.c.h.s8.bf16 %v1360_v33  ;;  %v1368_v33 = vld [vmem:[%s18656_s2 + $0x288] sm:$0xff] }
 0x213   : > { %10725 = vmatprep.subr.bf16.mxu0 %v2970_v46  ;;  %7940 = vmatprep.mubr.bf16.mxu1 %v16865_v47  ;;  %v2986_v46 = vunpack.c.h.s8.bf16 %v1744_v34  ;;  %v16889_v47 = vld [vmem:[%s18649_s23 + $0xf6c] ss:$392 sps:$4 sm:$0xff]  }
 0x214   : > { %10652 = vmatprep.mubr.bf16.mxu0 %v16867_v48  ;;  %v16891_v48 = vld [vmem:[%s18649_s23 + $0x102c] ss:$392 sps:$4 sm:$0xff]  }
 0x215   : > { %8014 = vmatpush1.bf16.msra.mxu1 %v2201_v53  ;;  %v2217_v53 = vunpack.c.h.s8.bf16 %v1359_v35  ;;  %v1752_v34 = vld [vmem:[%s18656_s2 + $0xe88] sm:$0xff]  ;;  %v1367_v35 = vld [vmem:[%s18656_s2 + $0x280] sm:$0xff] }
 0x216   : > { %10726 = vmatpush1.bf16.msra.mxu0 %v2969_v54  ;;  %8015 = vmatprep.subr.bf16.mxu1 %v2204_v56  ;;  %v2985_v54 = vunpack.c.h.s8.bf16 %v1743_v36  ;;  %v2220_v56 = vunpack.c.l.s8.bf16 %v1362_v49  ;;  %v1751_v36 = vld [vmem:[%s18656_s2 + $0xe80] sm:$0xff] }
 0x217   : > { %10727 = vmatprep.subr.bf16.mxu0 %v2972_v58  ;;  %v2988_v58 = vunpack.c.l.s8.bf16 %v1746_v50 }
 0x218   : > { %7941 = vmatmul.mubr.bf16.gmra.mrb[4].mxu1 %v16869_v55  ;;  %v16893_v55 = vld [vmem:[%s18649_s23 + $0xf68] ss:$392 sps:$4 sm:$0xff]  }
 0x219   : > { %10653 = vmatmul.mubr.bf16.gmra.mrb[4].mxu0 %v16870_v57  ;;  %8016 = vmatpush1.bf16.msra.mxu1 %v2203_v59  ;;  %v16894_v57 = vld [vmem:[%s18649_s23 + $0x1028] ss:$392 sps:$4 sm:$0xff]   ;;  %v2219_v59 = vunpack.c.l.s8.bf16 %v1361_v51 }
 0x21a   : > { %10728 = vmatpush1.bf16.msra.mxu0 %v2971_v60  ;;  %8017 = vmatprep.subr.bf16.mxu1 %v2206_v61  ;;  %v2987_v60 = vunpack.c.l.s8.bf16 %v1745_v52  ;;  %v2222_v61 = vunpack.c.h.s8.bf16 %v1362_v49  ;;  %v1370_v49 = vld [vmem:[%s18656_s2 + $0x298] sm:$0xff] }
 0x21b   : > { %10729 = vmatprep.subr.bf16.mxu0 %v2974_v62  ;;  %7950 = vmatprep.mubr.bf16.mxu1 %v16871_v63  ;;  %v2990_v62 = vunpack.c.h.s8.bf16 %v1746_v50  ;;  %v16895_v63 = vld [vmem:[%s18649_s23 + $0x127c] ss:$392 sps:$4 sm:$0xff]  }
 0x21c   : > { %10662 = vmatprep.mubr.bf16.mxu0 %v16873_v0  ;;  %v16897_v0 = vld [vmem:[%s18649_s23 + $0x133c] ss:$392 sps:$4 sm:$0xff]  }
 0x21d   : > { %8018 = vmatpush1.bf16.msra.mxu1 %v2205_v5  ;;  %v2221_v5 = vunpack.c.h.s8.bf16 %v1361_v51  ;;  %v1754_v50 = vld [vmem:[%s18656_s2 + $0xe98] sm:$0xff]  ;;  %v1369_v51 = vld [vmem:[%s18656_s2 + $0x290] sm:$0xff] }
 0x21e   : > { %10730 = vmatpush1.bf16.msra.mxu0 %v2973_v6  ;;  %8019 = vmatprep.subr.bf16.mxu1 %v2208_v8  ;;  %v2989_v6 = vunpack.c.h.s8.bf16 %v1745_v52  ;;  %v2224_v8 = vunpack.c.l.s8.bf16 %v1364_v1  ;;  %v1753_v52 = vld [vmem:[%s18656_s2 + $0xe90] sm:$0xff] }
 0x21f   : > { %10731 = vmatprep.subr.bf16.mxu0 %v2976_v10  ;;  %v2992_v10 = vunpack.c.l.s8.bf16 %v1748_v2 }
 0x220   : > { %7951 = vmatmul.mubr.bf16.gmra.mrb[8].mxu1 %v16875_v7  ;;  %v16899_v7 = vld [vmem:[%s18649_s23 + $0x1278] ss:$392 sps:$4 sm:$0xff]  }
 0x221   : > { %10663 = vmatmul.mubr.bf16.gmra.mrb[8].mxu0 %v16876_v9  ;;  %8020 = vmatpush1.bf16.msra.mxu1 %v2207_v11  ;;  %v16900_v9 = vld [vmem:[%s18649_s23 + $0x1338] ss:$392 sps:$4 sm:$0xff]   ;;  %v2223_v11 = vunpack.c.l.s8.bf16 %v1363_v3 }
 0x222   : > { %10732 = vmatpush1.bf16.msra.mxu0 %v2975_v12  ;;  %8021 = vmatprep.subr.bf16.mxu1 %v2210_v13  ;;  %v2991_v12 = vunpack.c.l.s8.bf16 %v1747_v4  ;;  %v2226_v13 = vunpack.c.h.s8.bf16 %v1364_v1  ;;  %v1372_v1 = vld [vmem:[%s18656_s2 + $0x2a8] sm:$0xff] }
 0x223   : > { %10733 = vmatprep.subr.bf16.mxu0 %v2978_v14  ;;  %7960 = vmatprep.mubr.bf16.mxu1 %v16877_v15  ;;  %v2994_v14 = vunpack.c.h.s8.bf16 %v1748_v2  ;;  %v16901_v15 = vld [vmem:[%s18649_s23 + $0x158c] ss:$392 sps:$4 sm:$0xff]  }
 0x224   : > { %10672 = vmatprep.mubr.bf16.mxu0 %v16879_v16  ;;  %v16903_v16 = vld [vmem:[%s18649_s23 + $0x164c] ss:$392 sps:$4 sm:$0xff]  }
 0x225   : > { %8022 = vmatpush1.bf16.msra.mxu1 %v2209_v21  ;;  %v2225_v21 = vunpack.c.h.s8.bf16 %v1363_v3  ;;  %v1756_v2 = vld [vmem:[%s18656_s2 + $0xea8] sm:$0xff]  ;;  %v1371_v3 = vld [vmem:[%s18656_s2 + $0x2a0] sm:$0xff] }
 0x226   : > { %10734 = vmatpush1.bf16.msra.mxu0 %v2977_v22  ;;  %8023 = vmatprep.subr.bf16.mxu1 %v2212_v24  ;;  %v2993_v22 = vunpack.c.h.s8.bf16 %v1747_v4  ;;  %v2228_v24 = vunpack.c.l.s8.bf16 %v1366_v17  ;;  %v1755_v4 = vld [vmem:[%s18656_s2 + $0xea0] sm:$0xff] }
 0x227   : > { %10735 = vmatprep.subr.bf16.mxu0 %v2980_v26  ;;  %v2996_v26 = vunpack.c.l.s8.bf16 %v1750_v18 }
 0x228   : > { %7961 = vmatmul.mubr.bf16.gmra.mrb[12].mxu1 %v16881_v23  ;;  %v16905_v23 = vld [vmem:[%s18649_s23 + $0x1588] ss:$392 sps:$4 sm:$0xff]  }
 0x229   : > { %10673 = vmatmul.mubr.bf16.gmra.mrb[12].mxu0 %v16882_v25  ;;  %8024 = vmatpush1.bf16.msra.mxu1 %v2211_v27  ;;  %v16906_v25 = vld [vmem:[%s18649_s23 + $0x1648] ss:$392 sps:$4 sm:$0xff]   ;;  %v2227_v27 = vunpack.c.l.s8.bf16 %v1365_v19 }
 0x22a   : > { %10736 = vmatpush1.bf16.msra.mxu0 %v2979_v28  ;;  %8025 = vmatprep.subr.bf16.mxu1 %v2214_v29  ;;  %v2995_v28 = vunpack.c.l.s8.bf16 %v1749_v20  ;;  %v2230_v29 = vunpack.c.h.s8.bf16 %v1366_v17  ;;  %v1374_v17 = vld [vmem:[%s18656_s2 + $0x2b8] sm:$0xff] }
 0x22b   : > { %10737 = vmatprep.subr.bf16.mxu0 %v2982_v30  ;;  %7970 = vmatprep.mubr.bf16.mxu1 %v16883_v31  ;;  %v2998_v30 = vunpack.c.h.s8.bf16 %v1750_v18  ;;  %v16909_v31 = vld [vmem:[%s18649_s23 + $0x24] ss:$392 sps:$4 sm:$0xff]   ;;  %v1758_v18 = vld [vmem:[%s18656_s2 + $0xeb8] sm:$0xff] }
 0x22c   : > { %10682 = vmatprep.mubr.bf16.mxu0 %v16885_v32  ;;  %v16912_v32 = vld [vmem:[%s18649_s23 + $0xe4] ss:$392 sps:$4 sm:$0xff]  }
 0x22d   : > { %8026 = vmatpush1.bf16.msra.mxu1 %v2213_v37  ;;  %v2229_v37 = vunpack.c.h.s8.bf16 %v1365_v19  ;;  %v1373_v19 = vld [vmem:[%s18656_s2 + $0x2b0] sm:$0xff] }
 0x22e   : > { %10738 = vmatpush1.bf16.msra.mxu0 %v2981_v38  ;;  %8027 = vmatprep.subr.bf16.mxu1 %v2216_v40  ;;  %v2997_v38 = vunpack.c.h.s8.bf16 %v1749_v20  ;;  %v16910_v40 = vld [vmem:[%s18649_s23 + $0xe0] ss:$392 sps:$4 sm:$0xff]   ;;  %v1757_v20 = vld [vmem:[%s18656_s2 + $0xeb0] sm:$0xff] }
 0x22f   : > { %10739 = vmatprep.subr.bf16.mxu0 %v2984_v42  ;;  %v3000_v42 = vunpack.c.l.s8.bf16 %v1752_v34 }
 0x230   : > { %7971 = vmatmul.mubr.bf16.gmra.mrb[16].mxu1 %v16887_v39  ;;  %v16907_v39 = vld [vmem:[%s18649_s23 + $0x20] ss:$392 sps:$4 sm:$0xff]  }
 0x231   : > { %10683 = vmatmul.mubr.bf16.gmra.mrb[16].mxu0 %v16888_v41  ;;  %8028 = vmatpush1.bf16.msra.mxu1 %v2215_v43  ;;  %v2232_v41 = vunpack.c.l.s8.bf16 %v1368_v33  ;;  %v2231_v43 = vunpack.c.l.s8.bf16 %v1367_v35 }
 0x232   : > { %10740 = vmatpush1.bf16.msra.mxu0 %v2983_v44  ;;  %8029 = vmatprep.subr.bf16.mxu1 %v2218_v45  ;;  %v2999_v44 = vunpack.c.l.s8.bf16 %v1751_v36  ;;  %v2234_v45 = vunpack.c.h.s8.bf16 %v1368_v33  ;;  %v1376_v33 = vld [vmem:[%s18656_s2 + $0x2c8] sm:$0xff] }
 0x233   : > { %10741 = vmatprep.subr.bf16.mxu0 %v2986_v46  ;;  %7980 = vmatprep.mubr.bf16.mxu1 %v16889_v47  ;;  %v3002_v46 = vunpack.c.h.s8.bf16 %v1752_v34  ;;  %v16913_v47 = vld [vmem:[%s18649_s23 + $0x334] ss:$392 sps:$4 sm:$0xff]   ;;  %v1760_v34 = vld [vmem:[%s18656_s2 + $0xec8] sm:$0xff] }
 0x234   : > { %10692 = vmatprep.mubr.bf16.mxu0 %v16891_v48  ;;  %v16915_v48 = vld [vmem:[%s18649_s23 + $0x3f4] ss:$392 sps:$4 sm:$0xff]  }
 0x235   : > { %8030 = vmatpush1.bf16.msra.mxu1 %v2217_v53  ;;  %v2233_v53 = vunpack.c.h.s8.bf16 %v1367_v35  ;;  %v1375_v35 = vld [vmem:[%s18656_s2 + $0x2c0] sm:$0xff] }
 0x236   : > { %10742 = vmatpush1.bf16.msra.mxu0 %v2985_v54  ;;  %8031 = vmatprep.subr.bf16.mxu1 %v2220_v56  ;;  %v3001_v54 = vunpack.c.h.s8.bf16 %v1751_v36  ;;  %v2236_v56 = vunpack.c.l.s8.bf16 %v1370_v49  ;;  %v1759_v36 = vld [vmem:[%s18656_s2 + $0xec0] sm:$0xff] }
 0x237   : > { %10743 = vmatprep.subr.bf16.mxu0 %v2988_v58  ;;  %v3004_v58 = vunpack.c.l.s8.bf16 %v1754_v50 }
 0x238   : > { %7981 = vmatmul.mubr.bf16.gmra.mrb[20].mxu1 %v16893_v55  ;;  %v16917_v55 = vld [vmem:[%s18649_s23 + $0x330] ss:$392 sps:$4 sm:$0xff]  }
 0x239   : > { %10693 = vmatmul.mubr.bf16.gmra.mrb[20].mxu0 %v16894_v57  ;;  %8032 = vmatpush1.bf16.msra.mxu1 %v2219_v59  ;;  %v16918_v57 = vld [vmem:[%s18649_s23 + $0x3f0] ss:$392 sps:$4 sm:$0xff]   ;;  %v2235_v59 = vunpack.c.l.s8.bf16 %v1369_v51 }
 0x23a   : > { %10744 = vmatpush1.bf16.msra.mxu0 %v2987_v60  ;;  %8033 = vmatprep.subr.bf16.mxu1 %v2222_v61  ;;  %v3003_v60 = vunpack.c.l.s8.bf16 %v1753_v52  ;;  %v2238_v61 = vunpack.c.h.s8.bf16 %v1370_v49  ;;  %v1378_v49 = vld [vmem:[%s18656_s2 + $0x2d8] sm:$0xff] }
 0x23b   : > { %10745 = vmatprep.subr.bf16.mxu0 %v2990_v62  ;;  %7990 = vmatprep.mubr.bf16.mxu1 %v16895_v63  ;;  %v3006_v62 = vunpack.c.h.s8.bf16 %v1754_v50  ;;  %v16919_v63 = vld [vmem:[%s18649_s23 + $0x644] ss:$392 sps:$4 sm:$0xff]   ;;  %v1762_v50 = vld [vmem:[%s18656_s2 + $0xed8] sm:$0xff] }
 0x23c   : > { %10702 = vmatprep.mubr.bf16.mxu0 %v16897_v0  ;;  %v16921_v0 = vld [vmem:[%s18649_s23 + $0x704] ss:$392 sps:$4 sm:$0xff]  }
 0x23d   : > { %8034 = vmatpush1.bf16.msra.mxu1 %v2221_v5  ;;  %v2237_v5 = vunpack.c.h.s8.bf16 %v1369_v51  ;;  %v1377_v51 = vld [vmem:[%s18656_s2 + $0x2d0] sm:$0xff] }
 0x23e   : > { %10746 = vmatpush1.bf16.msra.mxu0 %v2989_v6  ;;  %8035 = vmatprep.subr.bf16.mxu1 %v2224_v8  ;;  %v3005_v6 = vunpack.c.h.s8.bf16 %v1753_v52  ;;  %v2240_v8 = vunpack.c.l.s8.bf16 %v1372_v1  ;;  %v1761_v52 = vld [vmem:[%s18656_s2 + $0xed0] sm:$0xff] }
 0x23f   : > { %10747 = vmatprep.subr.bf16.mxu0 %v2992_v10  ;;  %v3008_v10 = vunpack.c.l.s8.bf16 %v1756_v2 }
 0x240   : > { %7991 = vmatmul.mubr.bf16.gmra.mrb[24].mxu1 %v16899_v7  ;;  %v16923_v7 = vld [vmem:[%s18649_s23 + $0x640] ss:$392 sps:$4 sm:$0xff]  }
 0x241   : > { %10703 = vmatmul.mubr.bf16.gmra.mrb[24].mxu0 %v16900_v9  ;;  %8036 = vmatpush1.bf16.msra.mxu1 %v2223_v11  ;;  %v16924_v9 = vld [vmem:[%s18649_s23 + $0x700] ss:$392 sps:$4 sm:$0xff]   ;;  %v2239_v11 = vunpack.c.l.s8.bf16 %v1371_v3 }
 0x242   : > { %10748 = vmatpush1.bf16.msra.mxu0 %v2991_v12  ;;  %8037 = vmatprep.subr.bf16.mxu1 %v2226_v13  ;;  %v3007_v12 = vunpack.c.l.s8.bf16 %v1755_v4  ;;  %v2242_v13 = vunpack.c.h.s8.bf16 %v1372_v1  ;;  %v1380_v1 = vld [vmem:[%s18656_s2 + $0x2e8] sm:$0xff] }
 0x243   : > { %10749 = vmatprep.subr.bf16.mxu0 %v2994_v14  ;;  %8000 = vmatprep.mubr.bf16.mxu1 %v16901_v15  ;;  %v3010_v14 = vunpack.c.h.s8.bf16 %v1756_v2  ;;  %v16925_v15 = vld [vmem:[%s18649_s23 + $0x954] ss:$392 sps:$4 sm:$0xff]   ;;  %v1764_v2 = vld [vmem:[%s18656_s2 + $0xee8] sm:$0xff] }
 0x244   : > { %10712 = vmatprep.mubr.bf16.mxu0 %v16903_v16  ;;  %v16927_v16 = vld [vmem:[%s18649_s23 + $0xa14] ss:$392 sps:$4 sm:$0xff]  }
 0x245   : > { %8038 = vmatpush1.bf16.msra.mxu1 %v2225_v21  ;;  %v2241_v21 = vunpack.c.h.s8.bf16 %v1371_v3  ;;  %v1379_v3 = vld [vmem:[%s18656_s2 + $0x2e0] sm:$0xff] }
 0x246   : > { %10750 = vmatpush1.bf16.msra.mxu0 %v2993_v22  ;;  %8039 = vmatprep.subr.bf16.mxu1 %v2228_v24  ;;  %v3009_v22 = vunpack.c.h.s8.bf16 %v1755_v4  ;;  %v2244_v24 = vunpack.c.l.s8.bf16 %v1374_v17  ;;  %v1763_v4 = vld [vmem:[%s18656_s2 + $0xee0] sm:$0xff] }
 0x247   : > { %10751 = vmatprep.subr.bf16.mxu0 %v2996_v26  ;;  %v3012_v26 = vunpack.c.l.s8.bf16 %v1758_v18 }
 0x248   : > { %8001 = vmatmul.mubr.bf16.gmra.mrb[28].mxu1 %v16905_v23  ;;  %v16929_v23 = vld [vmem:[%s18649_s23 + $0x950] ss:$392 sps:$4 sm:$0xff]  }
 0x249   : > { %10713 = vmatmul.mubr.bf16.gmra.mrb[28].mxu0 %v16906_v25  ;;  %8040 = vmatpush1.bf16.msra.mxu1 %v2227_v27  ;;  %v16930_v25 = vld [vmem:[%s18649_s23 + $0xa10] ss:$392 sps:$4 sm:$0xff]   ;;  %v2243_v27 = vunpack.c.l.s8.bf16 %v1373_v19 }
 0x24a   : > { %10752 = vmatpush1.bf16.msra.mxu0 %v2995_v28  ;;  %8041 = vmatprep.subr.bf16.mxu1 %v2230_v29  ;;  %v3011_v28 = vunpack.c.l.s8.bf16 %v1757_v20  ;;  %v2246_v29 = vunpack.c.h.s8.bf16 %v1374_v17  ;;  %v1382_v17 = vld [vmem:[%s18656_s2 + $0x2f8] sm:$0xff] }
 0x24b   : > { %10753 = vmatprep.subr.bf16.mxu0 %v2998_v30  ;;  %8043 = vmatprep.mubr.bf16.mxu1 %v16909_v31  ;;  %v3014_v30 = vunpack.c.h.s8.bf16 %v1758_v18  ;;  %v16931_v31 = vld [vmem:[%s18649_s23 + $0xc64] ss:$392 sps:$4 sm:$0xff]   ;;  %v1766_v18 = vld [vmem:[%s18656_s2 + $0xef8] sm:$0xff] }
 0x24c   : > { %10755 = vmatprep.mubr.bf16.mxu0 %v16912_v32  ;;  %v16933_v32 = vld [vmem:[%s18649_s23 + $0xd24] ss:$392 sps:$4 sm:$0xff]  }
 0x24d   : > { %8042 = vmatpush1.bf16.msra.mxu1 %v2229_v37  ;;  %v2245_v37 = vunpack.c.h.s8.bf16 %v1373_v19  ;;  %v1381_v19 = vld [vmem:[%s18656_s2 + $0x2f0] sm:$0xff] }
 0x24e   : > { %10754 = vmatpush1.bf16.msra.mxu0 %v2997_v38  ;;  %8124 = vmatprep.subr.bf16.mxu1 %v2232_v41  ;;  %v3013_v38 = vunpack.c.h.s8.bf16 %v1757_v20  ;;  %v16936_v41 = vld [vmem:[%s18649_s23 + $0xd20] ss:$392 sps:$4 sm:$0xff]   ;;  %v1765_v20 = vld [vmem:[%s18656_s2 + $0xef0] sm:$0xff] }
 0x24f   : > { %10836 = vmatprep.subr.bf16.mxu0 %v3000_v42  ;;  %v3016_v42 = vunpack.c.l.s8.bf16 %v1760_v34 }
 0x250   : > { %8044 = vmatmul.mubr.bf16.vlgmr.msra.gmra.mrb[0].mxu1 %v16907_v39  ;;  %v16935_v39 = vld [vmem:[%s18649_s23 + $0xc60] ss:$392 sps:$4 sm:$0xff]  }
 0x251   : > { %10756 = vmatmul.mubr.bf16.vlgmr.msra.gmra.mrb[0].mxu0 %v16910_v40  ;;  %8125 = vmatpush1.bf16.msra.mxu1 %v2231_v43  ;;  %v2248_v40 = vunpack.c.l.s8.bf16 %v1376_v33  ;;  %v2247_v43 = vunpack.c.l.s8.bf16 %v1375_v35 }
 0x252   : > { %10837 = vmatpush1.bf16.msra.mxu0 %v2999_v44  ;;  %8126 = vmatprep.subr.bf16.mxu1 %v2234_v45  ;;  %v3015_v44 = vunpack.c.l.s8.bf16 %v1759_v36  ;;  %v2250_v45 = vunpack.c.h.s8.bf16 %v1376_v33  ;;  %v1384_v33 = vld [vmem:[%s18656_s2 + $0x308] sm:$0xff] }
 0x253   : > { %10838 = vmatprep.subr.bf16.mxu0 %v3002_v46  ;;  %8053 = vmatprep.mubr.bf16.mxu1 %v16913_v47  ;;  %v3018_v46 = vunpack.c.h.s8.bf16 %v1760_v34  ;;  %v16937_v47 = vld [vmem:[%s18649_s23 + $0xf74] ss:$392 sps:$4 sm:$0xff]   ;;  %v1768_v34 = vld [vmem:[%s18656_s2 + $0xf08] sm:$0xff] }
 0x254   : > { %10765 = vmatprep.mubr.bf16.mxu0 %v16915_v48  ;;  %v16939_v48 = vld [vmem:[%s18649_s23 + $0x1034] ss:$392 sps:$4 sm:$0xff]  }
 0x255   : > { %8127 = vmatpush1.bf16.msra.mxu1 %v2233_v53  ;;  %v2249_v53 = vunpack.c.h.s8.bf16 %v1375_v35  ;;  %v1383_v35 = vld [vmem:[%s18656_s2 + $0x300] sm:$0xff] }
 0x256   : > { %10839 = vmatpush1.bf16.msra.mxu0 %v3001_v54  ;;  %8128 = vmatprep.subr.bf16.mxu1 %v2236_v56  ;;  %v3017_v54 = vunpack.c.h.s8.bf16 %v1759_v36  ;;  %v2252_v56 = vunpack.c.l.s8.bf16 %v1378_v49  ;;  %v1767_v36 = vld [vmem:[%s18656_s2 + $0xf00] sm:$0xff] }
 0x257   : > { %10840 = vmatprep.subr.bf16.mxu0 %v3004_v58  ;;  %v3020_v58 = vunpack.c.l.s8.bf16 %v1762_v50 }
 0x258   : > { %8054 = vmatmul.mubr.bf16.gmra.mrb[4].mxu1 %v16917_v55  ;;  %v16941_v55 = vld [vmem:[%s18649_s23 + $0xf70] ss:$392 sps:$4 sm:$0xff]  }
 0x259   : > { %10766 = vmatmul.mubr.bf16.gmra.mrb[4].mxu0 %v16918_v57  ;;  %8129 = vmatpush1.bf16.msra.mxu1 %v2235_v59  ;;  %v16942_v57 = vld [vmem:[%s18649_s23 + $0x1030] ss:$392 sps:$4 sm:$0xff]   ;;  %v2251_v59 = vunpack.c.l.s8.bf16 %v1377_v51 }
 0x25a   : > { %10841 = vmatpush1.bf16.msra.mxu0 %v3003_v60  ;;  %8130 = vmatprep.subr.bf16.mxu1 %v2238_v61  ;;  %v3019_v60 = vunpack.c.l.s8.bf16 %v1761_v52  ;;  %v2254_v61 = vunpack.c.h.s8.bf16 %v1378_v49  ;;  %v1386_v49 = vld [vmem:[%s18656_s2 + $0x318] sm:$0xff] }
 0x25b   : > { %10842 = vmatprep.subr.bf16.mxu0 %v3006_v62  ;;  %8063 = vmatprep.mubr.bf16.mxu1 %v16919_v63  ;;  %v3022_v62 = vunpack.c.h.s8.bf16 %v1762_v50  ;;  %v16943_v63 = vld [vmem:[%s18649_s23 + $0x1284] ss:$392 sps:$4 sm:$0xff]   ;;  %v1770_v50 = vld [vmem:[%s18656_s2 + $0xf18] sm:$0xff] }
 0x25c   : > { %10775 = vmatprep.mubr.bf16.mxu0 %v16921_v0  ;;  %v16945_v0 = vld [vmem:[%s18649_s23 + $0x1344] ss:$392 sps:$4 sm:$0xff]  }
 0x25d   : > { %8131 = vmatpush1.bf16.msra.mxu1 %v2237_v5  ;;  %v2253_v5 = vunpack.c.h.s8.bf16 %v1377_v51  ;;  %v1385_v51 = vld [vmem:[%s18656_s2 + $0x310] sm:$0xff] }
 0x25e   : > { %10843 = vmatpush1.bf16.msra.mxu0 %v3005_v6  ;;  %8132 = vmatprep.subr.bf16.mxu1 %v2240_v8  ;;  %v3021_v6 = vunpack.c.h.s8.bf16 %v1761_v52  ;;  %v2256_v8 = vunpack.c.l.s8.bf16 %v1380_v1  ;;  %v1769_v52 = vld [vmem:[%s18656_s2 + $0xf10] sm:$0xff] }
 0x25f   : > { %10844 = vmatprep.subr.bf16.mxu0 %v3008_v10  ;;  %v3024_v10 = vunpack.c.l.s8.bf16 %v1764_v2 }
 0x260   : > { %8064 = vmatmul.mubr.bf16.gmra.mrb[8].mxu1 %v16923_v7  ;;  %v16947_v7 = vld [vmem:[%s18649_s23 + $0x1280] ss:$392 sps:$4 sm:$0xff]  }
 0x261   : > { %10776 = vmatmul.mubr.bf16.gmra.mrb[8].mxu0 %v16924_v9  ;;  %8133 = vmatpush1.bf16.msra.mxu1 %v2239_v11  ;;  %v16948_v9 = vld [vmem:[%s18649_s23 + $0x1340] ss:$392 sps:$4 sm:$0xff]   ;;  %v2255_v11 = vunpack.c.l.s8.bf16 %v1379_v3 }
 0x262   : > { %10845 = vmatpush1.bf16.msra.mxu0 %v3007_v12  ;;  %8134 = vmatprep.subr.bf16.mxu1 %v2242_v13  ;;  %v3023_v12 = vunpack.c.l.s8.bf16 %v1763_v4  ;;  %v2258_v13 = vunpack.c.h.s8.bf16 %v1380_v1  ;;  %v1388_v1 = vld [vmem:[%s18656_s2 + $0x328] sm:$0xff] }
 0x263   : > { %10846 = vmatprep.subr.bf16.mxu0 %v3010_v14  ;;  %8073 = vmatprep.mubr.bf16.mxu1 %v16925_v15  ;;  %v3026_v14 = vunpack.c.h.s8.bf16 %v1764_v2  ;;  %v16949_v15 = vld [vmem:[%s18649_s23 + $0x1594] ss:$392 sps:$4 sm:$0xff]   ;;  %v1772_v2 = vld [vmem:[%s18656_s2 + $0xf28] sm:$0xff] }
 0x264   : > { %10785 = vmatprep.mubr.bf16.mxu0 %v16927_v16  ;;  %v16951_v16 = vld [vmem:[%s18649_s23 + $0x1654] ss:$392 sps:$4 sm:$0xff]  }
 0x265   : > { %8135 = vmatpush1.bf16.msra.mxu1 %v2241_v21  ;;  %v2257_v21 = vunpack.c.h.s8.bf16 %v1379_v3  ;;  %v1387_v3 = vld [vmem:[%s18656_s2 + $0x320] sm:$0xff] }
 0x266   : > { %10847 = vmatpush1.bf16.msra.mxu0 %v3009_v22  ;;  %8136 = vmatprep.subr.bf16.mxu1 %v2244_v24  ;;  %v3025_v22 = vunpack.c.h.s8.bf16 %v1763_v4  ;;  %v2260_v24 = vunpack.c.l.s8.bf16 %v1382_v17  ;;  %v1771_v4 = vld [vmem:[%s18656_s2 + $0xf20] sm:$0xff] }
 0x267   : > { %10848 = vmatprep.subr.bf16.mxu0 %v3012_v26  ;;  %v3028_v26 = vunpack.c.l.s8.bf16 %v1766_v18 }
 0x268   : > { %8074 = vmatmul.mubr.bf16.gmra.mrb[12].mxu1 %v16929_v23  ;;  %v16953_v23 = vld [vmem:[%s18649_s23 + $0x1590] ss:$392 sps:$4 sm:$0xff]  }
 0x269   : > { %10786 = vmatmul.mubr.bf16.gmra.mrb[12].mxu0 %v16930_v25  ;;  %8137 = vmatpush1.bf16.msra.mxu1 %v2243_v27  ;;  %v16954_v25 = vld [vmem:[%s18649_s23 + $0x1650] ss:$392 sps:$4 sm:$0xff]   ;;  %v2259_v27 = vunpack.c.l.s8.bf16 %v1381_v19 }
 0x26a   : > { %10849 = vmatpush1.bf16.msra.mxu0 %v3011_v28  ;;  %8138 = vmatprep.subr.bf16.mxu1 %v2246_v29  ;;  %v3027_v28 = vunpack.c.l.s8.bf16 %v1765_v20  ;;  %v2262_v29 = vunpack.c.h.s8.bf16 %v1382_v17  ;;  %v1390_v17 = vld [vmem:[%s18656_s2 + $0x338] sm:$0xff] }
 0x26b   : > { %10850 = vmatprep.subr.bf16.mxu0 %v3014_v30  ;;  %8083 = vmatprep.mubr.bf16.mxu1 %v16931_v31  ;;  %v3030_v30 = vunpack.c.h.s8.bf16 %v1766_v18  ;;  %v16957_v31 = vld [vmem:[%s18649_s23 + $0x2c] ss:$392 sps:$4 sm:$0xff]   ;;  %v1774_v18 = vld [vmem:[%s18656_s2 + $0xf38] sm:$0xff] }
 0x26c   : > { %10795 = vmatprep.mubr.bf16.mxu0 %v16933_v32  ;;  %v16960_v32 = vld [vmem:[%s18649_s23 + $0xec] ss:$392 sps:$4 sm:$0xff]  }
 0x26d   : > { %8139 = vmatpush1.bf16.msra.mxu1 %v2245_v37  ;;  %v2261_v37 = vunpack.c.h.s8.bf16 %v1381_v19  ;;  %v1389_v19 = vld [vmem:[%s18656_s2 + $0x330] sm:$0xff] }
 0x26e   : > { %10851 = vmatpush1.bf16.msra.mxu0 %v3013_v38  ;;  %8140 = vmatprep.subr.bf16.mxu1 %v2248_v40  ;;  %v3029_v38 = vunpack.c.h.s8.bf16 %v1765_v20  ;;  %v16958_v40 = vld [vmem:[%s18649_s23 + $0xe8] ss:$392 sps:$4 sm:$0xff]  }
 0x26f   : > { %10852 = vmatprep.subr.bf16.mxu0 %v3016_v42  ;;  %v3032_v42 = vunpack.c.l.s8.bf16 %v1768_v34  ;;  %v1773_v20 = vld [vmem:[%s18656_s2 + $0xf30] sm:$0xff] }
 0x270   : > { %8084 = vmatmul.mubr.bf16.gmra.mrb[16].mxu1 %v16935_v39  ;;  %v16955_v39 = vld [vmem:[%s18649_s23 + $0x28] ss:$392 sps:$4 sm:$0xff]  }
 0x271   : > { %10796 = vmatmul.mubr.bf16.gmra.mrb[16].mxu0 %v16936_v41  ;;  %8141 = vmatpush1.bf16.msra.mxu1 %v2247_v43  ;;  %v2264_v41 = vunpack.c.l.s8.bf16 %v1384_v33  ;;  %v2263_v43 = vunpack.c.l.s8.bf16 %v1383_v35 }
 0x272   : > { %10853 = vmatpush1.bf16.msra.mxu0 %v3015_v44  ;;  %8142 = vmatprep.subr.bf16.mxu1 %v2250_v45  ;;  %v3031_v44 = vunpack.c.l.s8.bf16 %v1767_v36  ;;  %v2266_v45 = vunpack.c.h.s8.bf16 %v1384_v33  ;;  %v1392_v33 = vld [vmem:[%s18656_s2 + $0x348] sm:$0xff] }
 0x273   : > { %10854 = vmatprep.subr.bf16.mxu0 %v3018_v46  ;;  %8093 = vmatprep.mubr.bf16.mxu1 %v16937_v47  ;;  %v3034_v46 = vunpack.c.h.s8.bf16 %v1768_v34  ;;  %v16961_v47 = vld [vmem:[%s18649_s23 + $0x33c] ss:$392 sps:$4 sm:$0xff]   ;;  %v1776_v34 = vld [vmem:[%s18656_s2 + $0xf48] sm:$0xff] }
 0x274   : > { %10805 = vmatprep.mubr.bf16.mxu0 %v16939_v48  ;;  %v16963_v48 = vld [vmem:[%s18649_s23 + $0x3fc] ss:$392 sps:$4 sm:$0xff]  }
 0x275   : > { %8143 = vmatpush1.bf16.msra.mxu1 %v2249_v53  ;;  %v2265_v53 = vunpack.c.h.s8.bf16 %v1383_v35  ;;  %v1391_v35 = vld [vmem:[%s18656_s2 + $0x340] sm:$0xff] }
 0x276   : > { %10855 = vmatpush1.bf16.msra.mxu0 %v3017_v54  ;;  %8144 = vmatprep.subr.bf16.mxu1 %v2252_v56  ;;  %v3033_v54 = vunpack.c.h.s8.bf16 %v1767_v36  ;;  %v2268_v56 = vunpack.c.l.s8.bf16 %v1386_v49  ;;  %v1775_v36 = vld [vmem:[%s18656_s2 + $0xf40] sm:$0xff] }
 0x277   : > { %10856 = vmatprep.subr.bf16.mxu0 %v3020_v58  ;;  %v3036_v58 = vunpack.c.l.s8.bf16 %v1770_v50 }
 0x278   : > { %8094 = vmatmul.mubr.bf16.gmra.mrb[20].mxu1 %v16941_v55  ;;  %v16965_v55 = vld [vmem:[%s18649_s23 + $0x338] ss:$392 sps:$4 sm:$0xff]  }
 0x279   : > { %10806 = vmatmul.mubr.bf16.gmra.mrb[20].mxu0 %v16942_v57  ;;  %8145 = vmatpush1.bf16.msra.mxu1 %v2251_v59  ;;  %v16966_v57 = vld [vmem:[%s18649_s23 + $0x3f8] ss:$392 sps:$4 sm:$0xff]   ;;  %v2267_v59 = vunpack.c.l.s8.bf16 %v1385_v51 }
 0x27a   : > { %10857 = vmatpush1.bf16.msra.mxu0 %v3019_v60  ;;  %8146 = vmatprep.subr.bf16.mxu1 %v2254_v61  ;;  %v3035_v60 = vunpack.c.l.s8.bf16 %v1769_v52  ;;  %v2270_v61 = vunpack.c.h.s8.bf16 %v1386_v49  ;;  %v1394_v49 = vld [vmem:[%s18656_s2 + $0x358] sm:$0xff] }
 0x27b   : > { %10858 = vmatprep.subr.bf16.mxu0 %v3022_v62  ;;  %8103 = vmatprep.mubr.bf16.mxu1 %v16943_v63  ;;  %v3038_v62 = vunpack.c.h.s8.bf16 %v1770_v50  ;;  %v16967_v63 = vld [vmem:[%s18649_s23 + $0x64c] ss:$392 sps:$4 sm:$0xff]   ;;  %v1778_v50 = vld [vmem:[%s18656_s2 + $0xf58] sm:$0xff] }
 0x27c   : > { %10815 = vmatprep.mubr.bf16.mxu0 %v16945_v0  ;;  %v16969_v0 = vld [vmem:[%s18649_s23 + $0x70c] ss:$392 sps:$4 sm:$0xff]  }
 0x27d   : > { %8147 = vmatpush1.bf16.msra.mxu1 %v2253_v5  ;;  %v2269_v5 = vunpack.c.h.s8.bf16 %v1385_v51  ;;  %v1393_v51 = vld [vmem:[%s18656_s2 + $0x350] sm:$0xff] }
 0x27e   : > { %10859 = vmatpush1.bf16.msra.mxu0 %v3021_v6  ;;  %8148 = vmatprep.subr.bf16.mxu1 %v2256_v8  ;;  %v3037_v6 = vunpack.c.h.s8.bf16 %v1769_v52  ;;  %v2272_v8 = vunpack.c.l.s8.bf16 %v1388_v1  ;;  %v1777_v52 = vld [vmem:[%s18656_s2 + $0xf50] sm:$0xff] }
 0x27f   : > { %10860 = vmatprep.subr.bf16.mxu0 %v3024_v10  ;;  %v3040_v10 = vunpack.c.l.s8.bf16 %v1772_v2 }
 0x280   : > { %8104 = vmatmul.mubr.bf16.gmra.mrb[24].mxu1 %v16947_v7  ;;  %v16971_v7 = vld [vmem:[%s18649_s23 + $0x648] ss:$392 sps:$4 sm:$0xff]  }
 0x281   : > { %10816 = vmatmul.mubr.bf16.gmra.mrb[24].mxu0 %v16948_v9  ;;  %8149 = vmatpush1.bf16.msra.mxu1 %v2255_v11  ;;  %v16972_v9 = vld [vmem:[%s18649_s23 + $0x708] ss:$392 sps:$4 sm:$0xff]   ;;  %v2271_v11 = vunpack.c.l.s8.bf16 %v1387_v3 }
 0x282   : > { %10861 = vmatpush1.bf16.msra.mxu0 %v3023_v12  ;;  %8150 = vmatprep.subr.bf16.mxu1 %v2258_v13  ;;  %v3039_v12 = vunpack.c.l.s8.bf16 %v1771_v4  ;;  %v2274_v13 = vunpack.c.h.s8.bf16 %v1388_v1  ;;  %v1396_v1 = vld [vmem:[%s18656_s2 + $0x368] sm:$0xff] }
 0x283   : > { %10862 = vmatprep.subr.bf16.mxu0 %v3026_v14  ;;  %8113 = vmatprep.mubr.bf16.mxu1 %v16949_v15  ;;  %v3042_v14 = vunpack.c.h.s8.bf16 %v1772_v2  ;;  %v16973_v15 = vld [vmem:[%s18649_s23 + $0x95c] ss:$392 sps:$4 sm:$0xff]   ;;  %v1780_v2 = vld [vmem:[%s18656_s2 + $0xf68] sm:$0xff] }
 0x284   : > { %10825 = vmatprep.mubr.bf16.mxu0 %v16951_v16  ;;  %v16975_v16 = vld [vmem:[%s18649_s23 + $0xa1c] ss:$392 sps:$4 sm:$0xff]  }
 0x285   : > { %8151 = vmatpush1.bf16.msra.mxu1 %v2257_v21  ;;  %v2273_v21 = vunpack.c.h.s8.bf16 %v1387_v3  ;;  %v1395_v3 = vld [vmem:[%s18656_s2 + $0x360] sm:$0xff] }
 0x286   : > { %10863 = vmatpush1.bf16.msra.mxu0 %v3025_v22  ;;  %8152 = vmatprep.subr.bf16.mxu1 %v2260_v24  ;;  %v3041_v22 = vunpack.c.h.s8.bf16 %v1771_v4  ;;  %v2276_v24 = vunpack.c.l.s8.bf16 %v1390_v17  ;;  %v1779_v4 = vld [vmem:[%s18656_s2 + $0xf60] sm:$0xff] }
 0x287   : > { %10864 = vmatprep.subr.bf16.mxu0 %v3028_v26  ;;  %v3044_v26 = vunpack.c.l.s8.bf16 %v1774_v18 }
 0x288   : > { %8114 = vmatmul.mubr.bf16.gmra.mrb[28].mxu1 %v16953_v23  ;;  %v16977_v23 = vld [vmem:[%s18649_s23 + $0x958] ss:$392 sps:$4 sm:$0xff]  }
 0x289   : > { %10826 = vmatmul.mubr.bf16.gmra.mrb[28].mxu0 %v16954_v25  ;;  %8153 = vmatpush1.bf16.msra.mxu1 %v2259_v27  ;;  %v16978_v25 = vld [vmem:[%s18649_s23 + $0xa18] ss:$392 sps:$4 sm:$0xff]   ;;  %v2275_v27 = vunpack.c.l.s8.bf16 %v1389_v19 }
 0x28a   : > { %10865 = vmatpush1.bf16.msra.mxu0 %v3027_v28  ;;  %8154 = vmatprep.subr.bf16.mxu1 %v2262_v29  ;;  %v3043_v28 = vunpack.c.l.s8.bf16 %v1773_v20  ;;  %v2278_v29 = vunpack.c.h.s8.bf16 %v1390_v17  ;;  %v1398_v17 = vld [vmem:[%s18656_s2 + $0x378] sm:$0xff] }
 0x28b   : > { %10866 = vmatprep.subr.bf16.mxu0 %v3030_v30  ;;  %8156 = vmatprep.mubr.bf16.mxu1 %v16957_v31  ;;  %v3046_v30 = vunpack.c.h.s8.bf16 %v1774_v18  ;;  %v16979_v31 = vld [vmem:[%s18649_s23 + $0xc6c] ss:$392 sps:$4 sm:$0xff]   ;;  %v1782_v18 = vld [vmem:[%s18656_s2 + $0xf78] sm:$0xff] }
 0x28c   : > { %10868 = vmatprep.mubr.bf16.mxu0 %v16960_v32  ;;  %v16981_v32 = vld [vmem:[%s18649_s23 + $0xd2c] ss:$392 sps:$4 sm:$0xff]  }
 0x28d   : > { %8155 = vmatpush1.bf16.msra.mxu1 %v2261_v37  ;;  %v2277_v37 = vunpack.c.h.s8.bf16 %v1389_v19  ;;  %v1397_v19 = vld [vmem:[%s18656_s2 + $0x370] sm:$0xff] }
 0x28e   : > { %10867 = vmatpush1.bf16.msra.mxu0 %v3029_v38  ;;  %8237 = vmatprep.subr.bf16.mxu1 %v2264_v41  ;;  %v3045_v38 = vunpack.c.h.s8.bf16 %v1773_v20  ;;  %v16984_v41 = vld [vmem:[%s18649_s23 + $0xd28] ss:$392 sps:$4 sm:$0xff]  }
 0x28f   : > { %10949 = vmatprep.subr.bf16.mxu0 %v3032_v42  ;;  %v3048_v42 = vunpack.c.l.s8.bf16 %v1776_v34  ;;  %v1781_v20 = vld [vmem:[%s18656_s2 + $0xf70] sm:$0xff] }
 0x290   : > { %8157 = vmatmul.mubr.bf16.vlgmr.msra.gmra.mrb[0].mxu1 %v16955_v39  ;;  %v16983_v39 = vld [vmem:[%s18649_s23 + $0xc68] ss:$392 sps:$4 sm:$0xff]  }
 0x291   : > { %10869 = vmatmul.mubr.bf16.vlgmr.msra.gmra.mrb[0].mxu0 %v16958_v40  ;;  %8238 = vmatpush1.bf16.msra.mxu1 %v2263_v43  ;;  %v2280_v40 = vunpack.c.l.s8.bf16 %v1392_v33  ;;  %v2279_v43 = vunpack.c.l.s8.bf16 %v1391_v35 }
 0x292   : > { %10950 = vmatpush1.bf16.msra.mxu0 %v3031_v44  ;;  %8239 = vmatprep.subr.bf16.mxu1 %v2266_v45  ;;  %v3047_v44 = vunpack.c.l.s8.bf16 %v1775_v36  ;;  %v2282_v45 = vunpack.c.h.s8.bf16 %v1392_v33  ;;  %v1400_v33 = vld [vmem:[%s18656_s2 + $0x388] sm:$0xff] }
 0x293   : > { %10951 = vmatprep.subr.bf16.mxu0 %v3034_v46  ;;  %8166 = vmatprep.mubr.bf16.mxu1 %v16961_v47  ;;  %v3050_v46 = vunpack.c.h.s8.bf16 %v1776_v34  ;;  %v16985_v47 = vld [vmem:[%s18649_s23 + $0xf7c] ss:$392 sps:$4 sm:$0xff]   ;;  %v1784_v34 = vld [vmem:[%s18656_s2 + $0xf88] sm:$0xff] }
 0x294   : > { %10878 = vmatprep.mubr.bf16.mxu0 %v16963_v48  ;;  %v16987_v48 = vld [vmem:[%s18649_s23 + $0x103c] ss:$392 sps:$4 sm:$0xff]  }
 0x295   : > { %8240 = vmatpush1.bf16.msra.mxu1 %v2265_v53  ;;  %v2281_v53 = vunpack.c.h.s8.bf16 %v1391_v35  ;;  %v2293_v35 = vunpack.c.h.s8.bf16 %v1397_v19 }
 0x296   : > { %10952 = vmatpush1.bf16.msra.mxu0 %v3033_v54  ;;  %8241 = vmatprep.subr.bf16.mxu1 %v2268_v56  ;;  %v3049_v54 = vunpack.c.h.s8.bf16 %v1775_v36  ;;  %v2284_v56 = vunpack.c.l.s8.bf16 %v1394_v49  ;;  %v3061_v36 = vunpack.c.h.s8.bf16 %v1781_v20 }
 0x297   : > { %10953 = vmatprep.subr.bf16.mxu0 %v3036_v58  ;;  %v3052_v58 = vunpack.c.l.s8.bf16 %v1778_v50 }
 0x298   : > { %8167 = vmatmul.mubr.bf16.gmra.mrb[4].mxu1 %v16965_v55  ;;  %v16989_v55 = vld [vmem:[%s18649_s23 + $0xf78] ss:$392 sps:$4 sm:$0xff]  }
 0x299   : > { %10879 = vmatmul.mubr.bf16.gmra.mrb[4].mxu0 %v16966_v57  ;;  %8242 = vmatpush1.bf16.msra.mxu1 %v2267_v59  ;;  %v16990_v57 = vld [vmem:[%s18649_s23 + $0x1038] ss:$392 sps:$4 sm:$0xff]   ;;  %v2283_v59 = vunpack.c.l.s8.bf16 %v1393_v51 }
 0x29a   : > { %10954 = vmatpush1.bf16.msra.mxu0 %v3035_v60  ;;  %8243 = vmatprep.subr.bf16.mxu1 %v2270_v61  ;;  %v3051_v60 = vunpack.c.l.s8.bf16 %v1777_v52  ;;  %v2286_v61 = vunpack.c.h.s8.bf16 %v1394_v49  ;;  %v1402_v49 = vld [vmem:[%s18656_s2 + $0x398] sm:$0xff] }
 0x29b   : > { %10955 = vmatprep.subr.bf16.mxu0 %v3038_v62  ;;  %8176 = vmatprep.mubr.bf16.mxu1 %v16967_v63  ;;  %v3054_v62 = vunpack.c.h.s8.bf16 %v1778_v50  ;;  %v16991_v63 = vld [vmem:[%s18649_s23 + $0x128c] ss:$392 sps:$4 sm:$0xff]   ;;  %v1786_v50 = vld [vmem:[%s18656_s2 + $0xf98] sm:$0xff] }
 0x29c   : > { %10888 = vmatprep.mubr.bf16.mxu0 %v16969_v0  ;;  %v16993_v0 = vld [vmem:[%s18649_s23 + $0x134c] ss:$392 sps:$4 sm:$0xff]  }
 0x29d   : > { %8244 = vmatpush1.bf16.msra.mxu1 %v2269_v5  ;;  %v2285_v5 = vunpack.c.h.s8.bf16 %v1393_v51 }
 0x29e   : > { %10956 = vmatpush1.bf16.msra.mxu0 %v3037_v6  ;;  %8245 = vmatprep.subr.bf16.mxu1 %v2272_v8  ;;  %v3053_v6 = vunpack.c.h.s8.bf16 %v1777_v52  ;;  %v2288_v8 = vunpack.c.l.s8.bf16 %v1396_v1 }
 0x29f   : > { %10957 = vmatprep.subr.bf16.mxu0 %v3040_v10  ;;  %v3056_v10 = vunpack.c.l.s8.bf16 %v1780_v2 }
 0x2a0   : > { %8177 = vmatmul.mubr.bf16.gmra.mrb[8].mxu1 %v16971_v7  ;;  %v16995_v7 = vld [vmem:[%s18649_s23 + $0x1288] ss:$392 sps:$4 sm:$0xff]  }
 0x2a1   : > { %10889 = vmatmul.mubr.bf16.gmra.mrb[8].mxu0 %v16972_v9  ;;  %8246 = vmatpush1.bf16.msra.mxu1 %v2271_v11  ;;  %v16996_v9 = vld [vmem:[%s18649_s23 + $0x1348] ss:$392 sps:$4 sm:$0xff]   ;;  %v2287_v11 = vunpack.c.l.s8.bf16 %v1395_v3 }
 0x2a2   : > { %10958 = vmatpush1.bf16.msra.mxu0 %v3039_v12  ;;  %8247 = vmatprep.subr.bf16.mxu1 %v2274_v13  ;;  %v3055_v12 = vunpack.c.l.s8.bf16 %v1779_v4  ;;  %v2290_v13 = vunpack.c.h.s8.bf16 %v1396_v1  ;;  %v1404_v1 = vld [vmem:[%s18656_s2 + $0x3a8] sm:$0xff] }
 0x2a3   : > { %10959 = vmatprep.subr.bf16.mxu0 %v3042_v14  ;;  %8186 = vmatprep.mubr.bf16.mxu1 %v16973_v15  ;;  %v3058_v14 = vunpack.c.h.s8.bf16 %v1780_v2  ;;  %v16997_v15 = vld [vmem:[%s18649_s23 + $0x159c] ss:$392 sps:$4 sm:$0xff]   ;;  %v1788_v2 = vld [vmem:[%s18656_s2 + $0xfa8] sm:$0xff] }
 0x2a4   : > { %10898 = vmatprep.mubr.bf16.mxu0 %v16975_v16  ;;  %v16999_v16 = vld [vmem:[%s18649_s23 + $0x165c] ss:$392 sps:$4 sm:$0xff]  }
 0x2a5   : > { %8248 = vmatpush1.bf16.msra.mxu1 %v2273_v21  ;;  %v2289_v21 = vunpack.c.h.s8.bf16 %v1395_v3 }
 0x2a6   : > { %10960 = vmatpush1.bf16.msra.mxu0 %v3041_v22  ;;  %8249 = vmatprep.subr.bf16.mxu1 %v2276_v24  ;;  %v3057_v22 = vunpack.c.h.s8.bf16 %v1779_v4  ;;  %v2292_v24 = vunpack.c.l.s8.bf16 %v1398_v17 }
 0x2a7   : > { %10961 = vmatprep.subr.bf16.mxu0 %v3044_v26  ;;  %v3060_v26 = vunpack.c.l.s8.bf16 %v1782_v18 }
 0x2a8   : > { %8187 = vmatmul.mubr.bf16.gmra.mrb[12].mxu1 %v16977_v23  ;;  %v17001_v23 = vld [vmem:[%s18649_s23 + $0x1598] ss:$392 sps:$4 sm:$0xff]  }
 0x2a9   : > { %10899 = vmatmul.mubr.bf16.gmra.mrb[12].mxu0 %v16978_v25  ;;  %8250 = vmatpush1.bf16.msra.mxu1 %v2275_v27  ;;  %v17002_v25 = vld [vmem:[%s18649_s23 + $0x1658] ss:$392 sps:$4 sm:$0xff]   ;;  %v2291_v27 = vunpack.c.l.s8.bf16 %v1397_v19 }
 0x2aa   : > { %10962 = vmatpush1.bf16.msra.mxu0 %v3043_v28  ;;  %8251 = vmatprep.subr.bf16.mxu1 %v2278_v29  ;;  %v3059_v28 = vunpack.c.l.s8.bf16 %v1781_v20  ;;  %v2294_v29 = vunpack.c.h.s8.bf16 %v1398_v17  ;;  %v1406_v17 = vld [vmem:[%s18656_s2 + $0x3b8] sm:$0xff] }
 0x2ab   : > { %10963 = vmatprep.subr.bf16.mxu0 %v3046_v30  ;;  %8196 = vmatprep.mubr.bf16.mxu1 %v16979_v31  ;;  %v3062_v30 = vunpack.c.h.s8.bf16 %v1782_v18  ;;  %v17005_v31 = vld [vmem:[%s18649_s23 + $0x34] ss:$392 sps:$4 sm:$0xff]  }
 0x2ac   : > { %10908 = vmatprep.mubr.bf16.mxu0 %v16981_v32  ;;  %v17008_v32 = vld [vmem:[%s18649_s23 + $0xf4] ss:$392 sps:$4 sm:$0xff]  }
 0x2ad   : > { %8252 = vmatpush1.bf16.msra.mxu1 %v2277_v37  ;;  %v2296_v37 = vunpack.c.l.s8.bf16 %v1400_v33  ;;  %v1790_v18 = vld [vmem:[%s18656_s2 + $0xfb8] sm:$0xff] }
 0x2ae   : > { %10964 = vmatpush1.bf16.msra.mxu0 %v3045_v38  ;;  %8253 = vmatprep.subr.bf16.mxu1 %v2280_v40  ;;  %v3064_v38 = vunpack.c.l.s8.bf16 %v1784_v34  ;;  %v1783_v40 = vld [vmem:[%s18656_s2 + $0xf80] sm:$0xff] }
 0x2af   : > { %10965 = vmatprep.subr.bf16.mxu0 %v3048_v42  ;;  %v17006_v42 = vld [vmem:[%s18649_s23 + $0xf0] ss:$392 sps:$4 sm:$0xff]   ;;  %v3065_v52 = vunpack.c.h.s8.bf16 %v1783_v40 }
 0x2b0   : > { %8197 = vmatmul.mubr.bf16.gmra.mrb[16].mxu1 %v16983_v39  ;;  %v1399_v39 = vld [vmem:[%s18656_s2 + $0x380] sm:$0xff] }
 0x2b1   : > { %10909 = vmatmul.mubr.bf16.gmra.mrb[16].mxu0 %v16984_v41  ;;  %8254 = vmatpush1.bf16.msra.mxu1 %v2279_v43  ;;  %v17003_v41 = vld [vmem:[%s18649_s23 + $0x30] ss:$392 sps:$4 sm:$0xff]   ;;  %v2295_v43 = vunpack.c.l.s8.bf16 %v1399_v39  ;;  %v2297_v51 = vunpack.c.h.s8.bf16 %v1399_v39  ;;  %v1407_v39 = vld [vmem:[%s18656_s2 + $0x3c0] sm:$0xff] }
 0x2b2   : > { %10966 = vmatpush1.bf16.msra.mxu0 %v3047_v44  ;;  %8255 = vmatprep.subr.bf16.mxu1 %v2282_v45  ;;  %v3063_v44 = vunpack.c.l.s8.bf16 %v1783_v40  ;;  %v2298_v45 = vunpack.c.h.s8.bf16 %v1400_v33  ;;  %v1408_v33 = vld [vmem:[%s18656_s2 + $0x3c8] sm:$0xff]  ;;  %v1791_v40 = vld [vmem:[%s18656_s2 + $0xfc0] sm:$0xff] }
 0x2b3   : > { %10967 = vmatprep.subr.bf16.mxu0 %v3050_v46  ;;  %8206 = vmatprep.mubr.bf16.mxu1 %v16985_v47  ;;  %v3066_v46 = vunpack.c.h.s8.bf16 %v1784_v34  ;;  %v17009_v47 = vld [vmem:[%s18649_s23 + $0x344] ss:$392 sps:$4 sm:$0xff]  }
 0x2b4   : > { %10918 = vmatprep.mubr.bf16.mxu0 %v16987_v48  ;;  %v17011_v48 = vld [vmem:[%s18649_s23 + $0x404] ss:$392 sps:$4 sm:$0xff]  }
 0x2b5   : > { %8256 = vmatpush1.bf16.msra.mxu1 %v2281_v53  ;;  %v2300_v53 = vunpack.c.l.s8.bf16 %v1402_v49  ;;  %v1792_v34 = vld [vmem:[%s18656_s2 + $0xfc8] sm:$0xff] }
 0x2b6   : > { %10968 = vmatpush1.bf16.msra.mxu0 %v3049_v54  ;;  %8257 = vmatprep.subr.bf16.mxu1 %v2284_v56  ;;  %v3068_v54 = vunpack.c.l.s8.bf16 %v1786_v50  ;;  %v1785_v56 = vld [vmem:[%s18656_s2 + $0xf90] sm:$0xff] }
 0x2b7   : > { %10969 = vmatprep.subr.bf16.mxu0 %v3052_v58  ;;  %v17014_v58 = vld [vmem:[%s18649_s23 + $0x400] ss:$392 sps:$4 sm:$0xff]   ;;  %v3069_v4 = vunpack.c.h.s8.bf16 %v1785_v56 }
 0x2b8   : > { %8207 = vmatmul.mubr.bf16.gmra.mrb[20].mxu1 %v16989_v55  ;;  %v1401_v55 = vld [vmem:[%s18656_s2 + $0x390] sm:$0xff] }
 0x2b9   : > { %10919 = vmatmul.mubr.bf16.gmra.mrb[20].mxu0 %v16990_v57  ;;  %8258 = vmatpush1.bf16.msra.mxu1 %v2283_v59  ;;  %v17013_v57 = vld [vmem:[%s18649_s23 + $0x340] ss:$392 sps:$4 sm:$0xff]   ;;  %v2299_v59 = vunpack.c.l.s8.bf16 %v1401_v55  ;;  %v2301_v3 = vunpack.c.h.s8.bf16 %v1401_v55  ;;  %v1409_v55 = vld [vmem:[%s18656_s2 + $0x3d0] sm:$0xff] }
 0x2ba   : > { %10970 = vmatpush1.bf16.msra.mxu0 %v3051_v60  ;;  %8259 = vmatprep.subr.bf16.mxu1 %v2286_v61  ;;  %v3067_v60 = vunpack.c.l.s8.bf16 %v1785_v56  ;;  %v2302_v61 = vunpack.c.h.s8.bf16 %v1402_v49  ;;  %v1410_v49 = vld [vmem:[%s18656_s2 + $0x3d8] sm:$0xff]  ;;  %v1793_v56 = vld [vmem:[%s18656_s2 + $0xfd0] sm:$0xff] }
 0x2bb   : > { %10971 = vmatprep.subr.bf16.mxu0 %v3054_v62  ;;  %8216 = vmatprep.mubr.bf16.mxu1 %v16991_v63  ;;  %v3070_v62 = vunpack.c.h.s8.bf16 %v1786_v50  ;;  %v17015_v63 = vld [vmem:[%s18649_s23 + $0x654] ss:$392 sps:$4 sm:$0xff]  }
 0x2bc   : > { %10928 = vmatprep.mubr.bf16.mxu0 %v16993_v0  ;;  %v17017_v0 = vld [vmem:[%s18649_s23 + $0x714] ss:$392 sps:$4 sm:$0xff]  }
 0x2bd   : > { %8260 = vmatpush1.bf16.msra.mxu1 %v2285_v5  ;;  %v2304_v5 = vunpack.c.l.s8.bf16 %v1404_v1  ;;  %v1794_v50 = vld [vmem:[%s18656_s2 + $0xfd8] sm:$0xff] }
 0x2be   : > { %10972 = vmatpush1.bf16.msra.mxu0 %v3053_v6  ;;  %8261 = vmatprep.subr.bf16.mxu1 %v2288_v8  ;;  %v3072_v6 = vunpack.c.l.s8.bf16 %v1788_v2  ;;  %v1787_v8 = vld [vmem:[%s18656_s2 + $0xfa0] sm:$0xff] }
 0x2bf   : > { %10973 = vmatprep.subr.bf16.mxu0 %v3056_v10  ;;  %v17020_v10 = vld [vmem:[%s18649_s23 + $0x710] ss:$392 sps:$4 sm:$0xff]   ;;  %v3073_v20 = vunpack.c.h.s8.bf16 %v1787_v8 }
 0x2c0   : > { %8217 = vmatmul.mubr.bf16.gmra.mrb[24].mxu1 %v16995_v7  ;;  %v1403_v7 = vld [vmem:[%s18656_s2 + $0x3a0] sm:$0xff] }
 0x2c1   : > { %10929 = vmatmul.mubr.bf16.gmra.mrb[24].mxu0 %v16996_v9  ;;  %8262 = vmatpush1.bf16.msra.mxu1 %v2287_v11  ;;  %v17019_v9 = vld [vmem:[%s18649_s23 + $0x650] ss:$392 sps:$4 sm:$0xff]   ;;  %v2303_v11 = vunpack.c.l.s8.bf16 %v1403_v7  ;;  %v2305_v19 = vunpack.c.h.s8.bf16 %v1403_v7  ;;  %v1411_v7 = vld [vmem:[%s18656_s2 + $0x3e0] sm:$0xff] }
 0x2c2   : > { %10974 = vmatpush1.bf16.msra.mxu0 %v3055_v12  ;;  %8263 = vmatprep.subr.bf16.mxu1 %v2290_v13  ;;  %v3071_v12 = vunpack.c.l.s8.bf16 %v1787_v8  ;;  %v2306_v13 = vunpack.c.h.s8.bf16 %v1404_v1  ;;  %v1412_v1 = vld [vmem:[%s18656_s2 + $0x3e8] sm:$0xff]  ;;  %v1795_v8 = vld [vmem:[%s18656_s2 + $0xfe0] sm:$0xff] }
 0x2c3   : > { %10975 = vmatprep.subr.bf16.mxu0 %v3058_v14  ;;  %8226 = vmatprep.mubr.bf16.mxu1 %v16997_v15  ;;  %v3074_v14 = vunpack.c.h.s8.bf16 %v1788_v2  ;;  %v17021_v15 = vld [vmem:[%s18649_s23 + $0x964] ss:$392 sps:$4 sm:$0xff]  }
 0x2c4   : > { %10938 = vmatprep.mubr.bf16.mxu0 %v16999_v16  ;;  %v17023_v16 = vld [vmem:[%s18649_s23 + $0xa24] ss:$392 sps:$4 sm:$0xff]  }
 0x2c5   : > { %8264 = vmatpush1.bf16.msra.mxu1 %v2289_v21  ;;  %v2308_v21 = vunpack.c.l.s8.bf16 %v1406_v17  ;;  %v1796_v2 = vld [vmem:[%s18656_s2 + $0xfe8] sm:$0xff] }
 0x2c6   : > { %10976 = vmatpush1.bf16.msra.mxu0 %v3057_v22  ;;  %8265 = vmatprep.subr.bf16.mxu1 %v2292_v24  ;;  %v3076_v22 = vunpack.c.l.s8.bf16 %v1790_v18  ;;  %v1789_v24 = vld [vmem:[%s18656_s2 + $0xfb0] sm:$0xff] }
 0x2c7   : > { %10977 = vmatprep.subr.bf16.mxu0 %v3060_v26  ;;  %v17026_v26 = vld [vmem:[%s18649_s23 + $0xa20] ss:$392 sps:$4 sm:$0xff]  }
 0x2c8   : > { %8227 = vmatmul.mubr.bf16.gmra.mrb[28].mxu1 %v17001_v23  ;;  %v1405_v23 = vld [vmem:[%s18656_s2 + $0x3b0] sm:$0xff] }
 0x2c9   : > { %10939 = vmatmul.mubr.bf16.gmra.mrb[28].mxu0 %v17002_v25  ;;  %8266 = vmatpush1.bf16.msra.mxu1 %v2291_v27  ;;  %v17025_v25 = vld [vmem:[%s18649_s23 + $0x960] ss:$392 sps:$4 sm:$0xff]   ;;  %v2307_v27 = vunpack.c.l.s8.bf16 %v1405_v23 }
 0x2ca   : > { %10978 = vmatpush1.bf16.msra.mxu0 %v3059_v28  ;;  %8267 = vmatprep.subr.bf16.mxu1 %v2294_v29  ;;  %v3075_v28 = vunpack.c.l.s8.bf16 %v1789_v24  ;;  %v2310_v29 = vunpack.c.h.s8.bf16 %v1406_v17  ;;  %v1414_v17 = vld [vmem:[%s18656_s2 + $0x3f8] sm:$0xff] }
 0x2cb   : > { %10979 = vmatprep.subr.bf16.mxu0 %v3062_v30  ;;  %8269 = vmatprep.mubr.bf16.mxu1 %v17005_v31  ;;  %v3078_v30 = vunpack.c.h.s8.bf16 %v1790_v18  ;;  %v17027_v31 = vld [vmem:[%s18649_s23 + $0xc74] ss:$392 sps:$4 sm:$0xff]  }
 0x2cc   : > { %10981 = vmatprep.mubr.bf16.mxu0 %v17008_v32  ;;  %v17029_v32 = vld [vmem:[%s18649_s23 + $0xd34] ss:$392 sps:$4 sm:$0xff]  }
 0x2cd   : > { %8268 = vmatpush1.bf16.msra.mxu1 %v2293_v35  ;;  %v2309_v35 = vunpack.c.h.s8.bf16 %v1405_v23  ;;  %v1798_v18 = vld [vmem:[%s18656_s2 + $0xff8] sm:$0xff]  ;;  %v1413_v23 = vld [vmem:[%s18656_s2 + $0x3f0] sm:$0xff] }
 0x2ce   : > { %10980 = vmatpush1.bf16.msra.mxu0 %v3061_v36  ;;  %8350 = vmatprep.subr.bf16.mxu1 %v2296_v37  ;;  %v3077_v36 = vunpack.c.h.s8.bf16 %v1789_v24  ;;  %v2312_v37 = vunpack.c.l.s8.bf16 %v1408_v33  ;;  %v1797_v24 = vld [vmem:[%s18656_s2 + $0xff0] sm:$0xff] }
 0x2cf   : > { %11062 = vmatprep.subr.bf16.mxu0 %v3064_v38  ;;  %v3080_v38 = vunpack.c.l.s8.bf16 %v1792_v34 }
 0x2d0   : > { %8270 = vmatmul.mubr.bf16.vlgmr.msra.gmra.mrb[0].mxu1 %v17003_v41  ;;  %v17031_v41 = vld [vmem:[%s18649_s23 + $0xc70] ss:$392 sps:$4 sm:$0xff]  }
 0x2d1   : > { %10982 = vmatmul.mubr.bf16.vlgmr.msra.gmra.mrb[0].mxu0 %v17006_v42  ;;  %8351 = vmatpush1.bf16.msra.mxu1 %v2295_v43  ;;  %v17032_v42 = vld [vmem:[%s18649_s23 + $0xd30] ss:$392 sps:$4 sm:$0xff]   ;;  %v2311_v43 = vunpack.c.l.s8.bf16 %v1407_v39 }
 0x2d2   : > { %11063 = vmatpush1.bf16.msra.mxu0 %v3063_v44  ;;  %8352 = vmatprep.subr.bf16.mxu1 %v2298_v45  ;;  %v3079_v44 = vunpack.c.l.s8.bf16 %v1791_v40  ;;  %v2314_v45 = vunpack.c.h.s8.bf16 %v1408_v33  ;;  %v1416_v33 = vld [vmem:[%s18656_s2 + $0x408] sm:$0xff] }
 0x2d3   : > { %11064 = vmatprep.subr.bf16.mxu0 %v3066_v46  ;;  %8279 = vmatprep.mubr.bf16.mxu1 %v17009_v47  ;;  %v3082_v46 = vunpack.c.h.s8.bf16 %v1792_v34  ;;  %v17033_v47 = vld [vmem:[%s18649_s23 + $0xf84] ss:$392 sps:$4 sm:$0xff]  }
 0x2d4   : > { %10991 = vmatprep.mubr.bf16.mxu0 %v17011_v48  ;;  %v17035_v48 = vld [vmem:[%s18649_s23 + $0x1044] ss:$392 sps:$4 sm:$0xff]  }
 0x2d5   : > { %8353 = vmatpush1.bf16.msra.mxu1 %v2297_v51  ;;  %v2313_v51 = vunpack.c.h.s8.bf16 %v1407_v39  ;;  %v1800_v34 = vld [vmem:[%s18656_s2 + $0x1008] sm:$0xff]  ;;  %v1415_v39 = vld [vmem:[%s18656_s2 + $0x400] sm:$0xff] }
 0x2d6   : > { %11065 = vmatpush1.bf16.msra.mxu0 %v3065_v52  ;;  %8354 = vmatprep.subr.bf16.mxu1 %v2300_v53  ;;  %v3081_v52 = vunpack.c.h.s8.bf16 %v1791_v40  ;;  %v2316_v53 = vunpack.c.l.s8.bf16 %v1410_v49  ;;  %v1799_v40 = vld [vmem:[%s18656_s2 + $0x1000] sm:$0xff] }
 0x2d7   : > { %11066 = vmatprep.subr.bf16.mxu0 %v3068_v54  ;;  %v3084_v54 = vunpack.c.l.s8.bf16 %v1794_v50 }
 0x2d8   : > { %8280 = vmatmul.mubr.bf16.gmra.mrb[4].mxu1 %v17013_v57  ;;  %v17037_v57 = vld [vmem:[%s18649_s23 + $0xf80] ss:$392 sps:$4 sm:$0xff]  }
 0x2d9   : > { %10992 = vmatmul.mubr.bf16.gmra.mrb[4].mxu0 %v17014_v58  ;;  %8355 = vmatpush1.bf16.msra.mxu1 %v2299_v59  ;;  %v17038_v58 = vld [vmem:[%s18649_s23 + $0x1040] ss:$392 sps:$4 sm:$0xff]   ;;  %v2315_v59 = vunpack.c.l.s8.bf16 %v1409_v55 }
 0x2da   : > { %11067 = vmatpush1.bf16.msra.mxu0 %v3067_v60  ;;  %8356 = vmatprep.subr.bf16.mxu1 %v2302_v61  ;;  %v3083_v60 = vunpack.c.l.s8.bf16 %v1793_v56  ;;  %v2318_v61 = vunpack.c.h.s8.bf16 %v1410_v49  ;;  %v1418_v49 = vld [vmem:[%s18656_s2 + $0x418] sm:$0xff] }
 0x2db   : > { %11068 = vmatprep.subr.bf16.mxu0 %v3070_v62  ;;  %8289 = vmatprep.mubr.bf16.mxu1 %v17015_v63  ;;  %v3086_v62 = vunpack.c.h.s8.bf16 %v1794_v50  ;;  %v17039_v63 = vld [vmem:[%s18649_s23 + $0x1294] ss:$392 sps:$4 sm:$0xff]  }
 0x2dc   : > { %11001 = vmatprep.mubr.bf16.mxu0 %v17017_v0  ;;  %v17041_v0 = vld [vmem:[%s18649_s23 + $0x1354] ss:$392 sps:$4 sm:$0xff]  }
 0x2dd   : > { %8357 = vmatpush1.bf16.msra.mxu1 %v2301_v3  ;;  %v2317_v3 = vunpack.c.h.s8.bf16 %v1409_v55  ;;  %v1802_v50 = vld [vmem:[%s18656_s2 + $0x1018] sm:$0xff]  ;;  %v1417_v55 = vld [vmem:[%s18656_s2 + $0x410] sm:$0xff] }
 0x2de   : > { %11069 = vmatpush1.bf16.msra.mxu0 %v3069_v4  ;;  %8358 = vmatprep.subr.bf16.mxu1 %v2304_v5  ;;  %v3085_v4 = vunpack.c.h.s8.bf16 %v1793_v56  ;;  %v2320_v5 = vunpack.c.l.s8.bf16 %v1412_v1  ;;  %v1801_v56 = vld [vmem:[%s18656_s2 + $0x1010] sm:$0xff] }
 0x2df   : > { %11070 = vmatprep.subr.bf16.mxu0 %v3072_v6  ;;  %v3088_v6 = vunpack.c.l.s8.bf16 %v1796_v2 }
 0x2e0   : > { %8290 = vmatmul.mubr.bf16.gmra.mrb[8].mxu1 %v17019_v9  ;;  %v17043_v9 = vld [vmem:[%s18649_s23 + $0x1290] ss:$392 sps:$4 sm:$0xff]  }
 0x2e1   : > { %11002 = vmatmul.mubr.bf16.gmra.mrb[8].mxu0 %v17020_v10  ;;  %8359 = vmatpush1.bf16.msra.mxu1 %v2303_v11  ;;  %v17044_v10 = vld [vmem:[%s18649_s23 + $0x1350] ss:$392 sps:$4 sm:$0xff]   ;;  %v2319_v11 = vunpack.c.l.s8.bf16 %v1411_v7 }
 0x2e2   : > { %11071 = vmatpush1.bf16.msra.mxu0 %v3071_v12  ;;  %8360 = vmatprep.subr.bf16.mxu1 %v2306_v13  ;;  %v3087_v12 = vunpack.c.l.s8.bf16 %v1795_v8  ;;  %v2322_v13 = vunpack.c.h.s8.bf16 %v1412_v1  ;;  %v1420_v1 = vld [vmem:[%s18656_s2 + $0x428] sm:$0xff] }
 0x2e3   : > { %11072 = vmatprep.subr.bf16.mxu0 %v3074_v14  ;;  %8299 = vmatprep.mubr.bf16.mxu1 %v17021_v15  ;;  %v3090_v14 = vunpack.c.h.s8.bf16 %v1796_v2  ;;  %v17045_v15 = vld [vmem:[%s18649_s23 + $0x15a4] ss:$392 sps:$4 sm:$0xff]  }
 0x2e4   : > { %11011 = vmatprep.mubr.bf16.mxu0 %v17023_v16  ;;  %v17047_v16 = vld [vmem:[%s18649_s23 + $0x1664] ss:$392 sps:$4 sm:$0xff]  }
 0x2e5   : > { %8361 = vmatpush1.bf16.msra.mxu1 %v2305_v19  ;;  %v2321_v19 = vunpack.c.h.s8.bf16 %v1411_v7  ;;  %v1804_v2 = vld [vmem:[%s18656_s2 + $0x1028] sm:$0xff]  ;;  %v1419_v7 = vld [vmem:[%s18656_s2 + $0x420] sm:$0xff] }
 0x2e6   : > { %11073 = vmatpush1.bf16.msra.mxu0 %v3073_v20  ;;  %8362 = vmatprep.subr.bf16.mxu1 %v2308_v21  ;;  %v3089_v20 = vunpack.c.h.s8.bf16 %v1795_v8  ;;  %v2324_v21 = vunpack.c.l.s8.bf16 %v1414_v17  ;;  %v1803_v8 = vld [vmem:[%s18656_s2 + $0x1020] sm:$0xff] }
 0x2e7   : > { %11074 = vmatprep.subr.bf16.mxu0 %v3076_v22  ;;  %v3092_v22 = vunpack.c.l.s8.bf16 %v1798_v18 }
 0x2e8   : > { %8300 = vmatmul.mubr.bf16.gmra.mrb[12].mxu1 %v17025_v25  ;;  %v17049_v25 = vld [vmem:[%s18649_s23 + $0x15a0] ss:$392 sps:$4 sm:$0xff]  }
 0x2e9   : > { %11012 = vmatmul.mubr.bf16.gmra.mrb[12].mxu0 %v17026_v26  ;;  %8363 = vmatpush1.bf16.msra.mxu1 %v2307_v27  ;;  %v17050_v26 = vld [vmem:[%s18649_s23 + $0x1660] ss:$392 sps:$4 sm:$0xff]   ;;  %v2323_v27 = vunpack.c.l.s8.bf16 %v1413_v23 }
 0x2ea   : > { %11075 = vmatpush1.bf16.msra.mxu0 %v3075_v28  ;;  %8364 = vmatprep.subr.bf16.mxu1 %v2310_v29  ;;  %v3091_v28 = vunpack.c.l.s8.bf16 %v1797_v24  ;;  %v2326_v29 = vunpack.c.h.s8.bf16 %v1414_v17  ;;  %v1422_v17 = vld [vmem:[%s18656_s2 + $0x438] sm:$0xff] }
 0x2eb   : > { %11076 = vmatprep.subr.bf16.mxu0 %v3078_v30  ;;  %8309 = vmatprep.mubr.bf16.mxu1 %v17027_v31  ;;  %v3094_v30 = vunpack.c.h.s8.bf16 %v1798_v18  ;;  %v17053_v31 = vld [vmem:[%s18649_s23 + $0x3c] ss:$392 sps:$4 sm:$0xff]  }
 0x2ec   : > { %11021 = vmatprep.mubr.bf16.mxu0 %v17029_v32  ;;  %v17056_v32 = vld [vmem:[%s18649_s23 + $0xfc] ss:$392 sps:$4 sm:$0xff]  }
 0x2ed   : > { %8365 = vmatpush1.bf16.msra.mxu1 %v2309_v35  ;;  %v2325_v35 = vunpack.c.h.s8.bf16 %v1413_v23  ;;  %v1806_v18 = vld [vmem:[%s18656_s2 + $0x1038] sm:$0xff]  ;;  %v1421_v23 = vld [vmem:[%s18656_s2 + $0x430] sm:$0xff] }
 0x2ee   : > { %11077 = vmatpush1.bf16.msra.mxu0 %v3077_v36  ;;  %8366 = vmatprep.subr.bf16.mxu1 %v2312_v37  ;;  %v3093_v36 = vunpack.c.h.s8.bf16 %v1797_v24  ;;  %v2328_v37 = vunpack.c.l.s8.bf16 %v1416_v33  ;;  %v1805_v24 = vld [vmem:[%s18656_s2 + $0x1030] sm:$0xff] }
 0x2ef   : > { %11078 = vmatprep.subr.bf16.mxu0 %v3080_v38  ;;  %v3096_v38 = vunpack.c.l.s8.bf16 %v1800_v34 }
 0x2f0   : > { %8310 = vmatmul.mubr.bf16.gmra.mrb[16].mxu1 %v17031_v41  ;;  %v17051_v41 = vld [vmem:[%s18649_s23 + $0x38] ss:$392 sps:$4 sm:$0xff]  }
 0x2f1   : > { %11022 = vmatmul.mubr.bf16.gmra.mrb[16].mxu0 %v17032_v42  ;;  %8367 = vmatpush1.bf16.msra.mxu1 %v2311_v43  ;;  %v17054_v42 = vld [vmem:[%s18649_s23 + $0xf8] ss:$392 sps:$4 sm:$0xff]   ;;  %v2327_v43 = vunpack.c.l.s8.bf16 %v1415_v39 }
 0x2f2   : > { %11079 = vmatpush1.bf16.msra.mxu0 %v3079_v44  ;;  %8368 = vmatprep.subr.bf16.mxu1 %v2314_v45  ;;  %v3095_v44 = vunpack.c.l.s8.bf16 %v1799_v40  ;;  %v2330_v45 = vunpack.c.h.s8.bf16 %v1416_v33  ;;  %v1424_v33 = vld [vmem:[%s18656_s2 + $0x448] sm:$0xff] }
 0x2f3   : > { %11080 = vmatprep.subr.bf16.mxu0 %v3082_v46  ;;  %8319 = vmatprep.mubr.bf16.mxu1 %v17033_v47  ;;  %v3098_v46 = vunpack.c.h.s8.bf16 %v1800_v34  ;;  %v17057_v47 = vld [vmem:[%s18649_s23 + $0x34c] ss:$392 sps:$4 sm:$0xff]  }
 0x2f4   : > { %11031 = vmatprep.mubr.bf16.mxu0 %v17035_v48  ;;  %v17059_v48 = vld [vmem:[%s18649_s23 + $0x40c] ss:$392 sps:$4 sm:$0xff]  }
 0x2f5   : > { %8369 = vmatpush1.bf16.msra.mxu1 %v2313_v51  ;;  %v2329_v51 = vunpack.c.h.s8.bf16 %v1415_v39  ;;  %v1808_v34 = vld [vmem:[%s18656_s2 + $0x1048] sm:$0xff]  ;;  %v1423_v39 = vld [vmem:[%s18656_s2 + $0x440] sm:$0xff] }
 0x2f6   : > { %11081 = vmatpush1.bf16.msra.mxu0 %v3081_v52  ;;  %8370 = vmatprep.subr.bf16.mxu1 %v2316_v53  ;;  %v3097_v52 = vunpack.c.h.s8.bf16 %v1799_v40  ;;  %v2332_v53 = vunpack.c.l.s8.bf16 %v1418_v49  ;;  %v1807_v40 = vld [vmem:[%s18656_s2 + $0x1040] sm:$0xff] }
 0x2f7   : > { %11082 = vmatprep.subr.bf16.mxu0 %v3084_v54  ;;  %v3100_v54 = vunpack.c.l.s8.bf16 %v1802_v50 }
 0x2f8   : > { %8320 = vmatmul.mubr.bf16.gmra.mrb[20].mxu1 %v17037_v57  ;;  %v17061_v57 = vld [vmem:[%s18649_s23 + $0x348] ss:$392 sps:$4 sm:$0xff]  }
 0x2f9   : > { %11032 = vmatmul.mubr.bf16.gmra.mrb[20].mxu0 %v17038_v58  ;;  %8371 = vmatpush1.bf16.msra.mxu1 %v2315_v59  ;;  %v17062_v58 = vld [vmem:[%s18649_s23 + $0x408] ss:$392 sps:$4 sm:$0xff]   ;;  %v2331_v59 = vunpack.c.l.s8.bf16 %v1417_v55 }
 0x2fa   : > { %11083 = vmatpush1.bf16.msra.mxu0 %v3083_v60  ;;  %8372 = vmatprep.subr.bf16.mxu1 %v2318_v61  ;;  %v3099_v60 = vunpack.c.l.s8.bf16 %v1801_v56  ;;  %v2334_v61 = vunpack.c.h.s8.bf16 %v1418_v49  ;;  %v1426_v49 = vld [vmem:[%s18656_s2 + $0x458] sm:$0xff] }
 0x2fb   : > { %11084 = vmatprep.subr.bf16.mxu0 %v3086_v62  ;;  %8329 = vmatprep.mubr.bf16.mxu1 %v17039_v63  ;;  %v3102_v62 = vunpack.c.h.s8.bf16 %v1802_v50  ;;  %v17063_v63 = vld [vmem:[%s18649_s23 + $0x65c] ss:$392 sps:$4 sm:$0xff]  }
 0x2fc   : > { %11041 = vmatprep.mubr.bf16.mxu0 %v17041_v0  ;;  %v17065_v0 = vld [vmem:[%s18649_s23 + $0x71c] ss:$392 sps:$4 sm:$0xff]  }
 0x2fd   : > { %8373 = vmatpush1.bf16.msra.mxu1 %v2317_v3  ;;  %v2333_v3 = vunpack.c.h.s8.bf16 %v1417_v55  ;;  %v1810_v50 = vld [vmem:[%s18656_s2 + $0x1058] sm:$0xff]  ;;  %v1425_v55 = vld [vmem:[%s18656_s2 + $0x450] sm:$0xff] }
 0x2fe   : > { %11085 = vmatpush1.bf16.msra.mxu0 %v3085_v4  ;;  %8374 = vmatprep.subr.bf16.mxu1 %v2320_v5  ;;  %v3101_v4 = vunpack.c.h.s8.bf16 %v1801_v56  ;;  %v2336_v5 = vunpack.c.l.s8.bf16 %v1420_v1  ;;  %v1809_v56 = vld [vmem:[%s18656_s2 + $0x1050] sm:$0xff] }
 0x2ff   : > { %11086 = vmatprep.subr.bf16.mxu0 %v3088_v6  ;;  %v3104_v6 = vunpack.c.l.s8.bf16 %v1804_v2 }
 0x300   : > { %8330 = vmatmul.mubr.bf16.gmra.mrb[24].mxu1 %v17043_v9  ;;  %v17067_v9 = vld [vmem:[%s18649_s23 + $0x658] ss:$392 sps:$4 sm:$0xff]  }
 0x301   : > { %11042 = vmatmul.mubr.bf16.gmra.mrb[24].mxu0 %v17044_v10  ;;  %8375 = vmatpush1.bf16.msra.mxu1 %v2319_v11  ;;  %v17068_v10 = vld [vmem:[%s18649_s23 + $0x718] ss:$392 sps:$4 sm:$0xff]   ;;  %v2335_v11 = vunpack.c.l.s8.bf16 %v1419_v7 }
 0x302   : > { %11087 = vmatpush1.bf16.msra.mxu0 %v3087_v12  ;;  %8376 = vmatprep.subr.bf16.mxu1 %v2322_v13  ;;  %v3103_v12 = vunpack.c.l.s8.bf16 %v1803_v8  ;;  %v2338_v13 = vunpack.c.h.s8.bf16 %v1420_v1  ;;  %v1428_v1 = vld [vmem:[%s18656_s2 + $0x468] sm:$0xff] }
 0x303   : > { %11088 = vmatprep.subr.bf16.mxu0 %v3090_v14  ;;  %8339 = vmatprep.mubr.bf16.mxu1 %v17045_v15  ;;  %v3106_v14 = vunpack.c.h.s8.bf16 %v1804_v2  ;;  %v17069_v15 = vld [vmem:[%s18649_s23 + $0x96c] ss:$392 sps:$4 sm:$0xff]  }
 0x304   : > { %11051 = vmatprep.mubr.bf16.mxu0 %v17047_v16  ;;  %v17071_v16 = vld [vmem:[%s18649_s23 + $0xa2c] ss:$392 sps:$4 sm:$0xff]  }
 0x305   : > { %8377 = vmatpush1.bf16.msra.mxu1 %v2321_v19  ;;  %v2337_v19 = vunpack.c.h.s8.bf16 %v1419_v7  ;;  %v1812_v2 = vld [vmem:[%s18656_s2 + $0x1068] sm:$0xff]  ;;  %v1427_v7 = vld [vmem:[%s18656_s2 + $0x460] sm:$0xff] }
 0x306   : > { %11089 = vmatpush1.bf16.msra.mxu0 %v3089_v20  ;;  %8378 = vmatprep.subr.bf16.mxu1 %v2324_v21  ;;  %v3105_v20 = vunpack.c.h.s8.bf16 %v1803_v8  ;;  %v2340_v21 = vunpack.c.l.s8.bf16 %v1422_v17  ;;  %v1811_v8 = vld [vmem:[%s18656_s2 + $0x1060] sm:$0xff] }
 0x307   : > { %11090 = vmatprep.subr.bf16.mxu0 %v3092_v22  ;;  %v3108_v22 = vunpack.c.l.s8.bf16 %v1806_v18 }
 0x308   : > { %8340 = vmatmul.mubr.bf16.gmra.mrb[28].mxu1 %v17049_v25  ;;  %v17073_v25 = vld [vmem:[%s18649_s23 + $0x968] ss:$392 sps:$4 sm:$0xff]  }
 0x309   : > { %11052 = vmatmul.mubr.bf16.gmra.mrb[28].mxu0 %v17050_v26  ;;  %8379 = vmatpush1.bf16.msra.mxu1 %v2323_v27  ;;  %v17074_v26 = vld [vmem:[%s18649_s23 + $0xa28] ss:$392 sps:$4 sm:$0xff]   ;;  %v2339_v27 = vunpack.c.l.s8.bf16 %v1421_v23 }
 0x30a   : > { %11091 = vmatpush1.bf16.msra.mxu0 %v3091_v28  ;;  %8380 = vmatprep.subr.bf16.mxu1 %v2326_v29  ;;  %v3107_v28 = vunpack.c.l.s8.bf16 %v1805_v24  ;;  %v2342_v29 = vunpack.c.h.s8.bf16 %v1422_v17  ;;  %v1430_v17 = vld [vmem:[%s18656_s2 + $0x478] sm:$0xff] }
 0x30b   : > { %11092 = vmatprep.subr.bf16.mxu0 %v3094_v30  ;;  %8382 = vmatprep.mubr.bf16.mxu1 %v17053_v31  ;;  %v3110_v30 = vunpack.c.h.s8.bf16 %v1806_v18  ;;  %v17075_v31 = vld [vmem:[%s18649_s23 + $0xc7c] ss:$392 sps:$4 sm:$0xff]  }
 0x30c   : > { %11094 = vmatprep.mubr.bf16.mxu0 %v17056_v32  ;;  %v17077_v32 = vld [vmem:[%s18649_s23 + $0xd3c] ss:$392 sps:$4 sm:$0xff]  }
 0x30d   : > { %8381 = vmatpush1.bf16.msra.mxu1 %v2325_v35  ;;  %v2341_v35 = vunpack.c.h.s8.bf16 %v1421_v23  ;;  %v1814_v18 = vld [vmem:[%s18656_s2 + $0x1078] sm:$0xff]  ;;  %v1429_v23 = vld [vmem:[%s18656_s2 + $0x470] sm:$0xff] }
 0x30e   : > { %11093 = vmatpush1.bf16.msra.mxu0 %v3093_v36  ;;  %8463 = vmatprep.subr.bf16.mxu1 %v2328_v37  ;;  %v3109_v36 = vunpack.c.h.s8.bf16 %v1805_v24  ;;  %v2344_v37 = vunpack.c.l.s8.bf16 %v1424_v33  ;;  %v1813_v24 = vld [vmem:[%s18656_s2 + $0x1070] sm:$0xff] }
 0x30f   : > { %11175 = vmatprep.subr.bf16.mxu0 %v3096_v38  ;;  %v3112_v38 = vunpack.c.l.s8.bf16 %v1808_v34 }
 0x310   : > { %8383 = vmatmul.mubr.bf16.vlgmr.msra.gmra.mrb[0].mxu1 %v17051_v41  ;;  %v17079_v41 = vld [vmem:[%s18649_s23 + $0xc78] ss:$392 sps:$4 sm:$0xff]  }
 0x311   : > { %11095 = vmatmul.mubr.bf16.vlgmr.msra.gmra.mrb[0].mxu0 %v17054_v42  ;;  %8464 = vmatpush1.bf16.msra.mxu1 %v2327_v43  ;;  %v17080_v42 = vld [vmem:[%s18649_s23 + $0xd38] ss:$392 sps:$4 sm:$0xff]   ;;  %v2343_v43 = vunpack.c.l.s8.bf16 %v1423_v39 }
 0x312   : > { %11176 = vmatpush1.bf16.msra.mxu0 %v3095_v44  ;;  %8465 = vmatprep.subr.bf16.mxu1 %v2330_v45  ;;  %v3111_v44 = vunpack.c.l.s8.bf16 %v1807_v40  ;;  %v2346_v45 = vunpack.c.h.s8.bf16 %v1424_v33  ;;  %v1432_v33 = vld [vmem:[%s18656_s2 + $0x488] sm:$0xff] }
 0x313   : > { %11177 = vmatprep.subr.bf16.mxu0 %v3098_v46  ;;  %8392 = vmatprep.mubr.bf16.mxu1 %v17057_v47  ;;  %v3114_v46 = vunpack.c.h.s8.bf16 %v1808_v34  ;;  %v17081_v47 = vld [vmem:[%s18649_s23 + $0xf8c] ss:$392 sps:$4 sm:$0xff]  }
 0x314   : > { %11104 = vmatprep.mubr.bf16.mxu0 %v17059_v48  ;;  %v17083_v48 = vld [vmem:[%s18649_s23 + $0x104c] ss:$392 sps:$4 sm:$0xff]  }
 0x315   : > { %8466 = vmatpush1.bf16.msra.mxu1 %v2329_v51  ;;  %v2345_v51 = vunpack.c.h.s8.bf16 %v1423_v39  ;;  %v1816_v34 = vld [vmem:[%s18656_s2 + $0x1088] sm:$0xff]  ;;  %v1431_v39 = vld [vmem:[%s18656_s2 + $0x480] sm:$0xff] }
 0x316   : > { %11178 = vmatpush1.bf16.msra.mxu0 %v3097_v52  ;;  %8467 = vmatprep.subr.bf16.mxu1 %v2332_v53  ;;  %v3113_v52 = vunpack.c.h.s8.bf16 %v1807_v40  ;;  %v2348_v53 = vunpack.c.l.s8.bf16 %v1426_v49  ;;  %v1815_v40 = vld [vmem:[%s18656_s2 + $0x1080] sm:$0xff] }
 0x317   : > { %11179 = vmatprep.subr.bf16.mxu0 %v3100_v54  ;;  %v3116_v54 = vunpack.c.l.s8.bf16 %v1810_v50 }
 0x318   : > { %8393 = vmatmul.mubr.bf16.gmra.mrb[4].mxu1 %v17061_v57  ;;  %v17085_v57 = vld [vmem:[%s18649_s23 + $0xf88] ss:$392 sps:$4 sm:$0xff]  }
 0x319   : > { %11105 = vmatmul.mubr.bf16.gmra.mrb[4].mxu0 %v17062_v58  ;;  %8468 = vmatpush1.bf16.msra.mxu1 %v2331_v59  ;;  %v17086_v58 = vld [vmem:[%s18649_s23 + $0x1048] ss:$392 sps:$4 sm:$0xff]   ;;  %v2347_v59 = vunpack.c.l.s8.bf16 %v1425_v55 }
 0x31a   : > { %11180 = vmatpush1.bf16.msra.mxu0 %v3099_v60  ;;  %8469 = vmatprep.subr.bf16.mxu1 %v2334_v61  ;;  %v3115_v60 = vunpack.c.l.s8.bf16 %v1809_v56  ;;  %v2350_v61 = vunpack.c.h.s8.bf16 %v1426_v49  ;;  %v1434_v49 = vld [vmem:[%s18656_s2 + $0x498] sm:$0xff] }
 0x31b   : > { %11181 = vmatprep.subr.bf16.mxu0 %v3102_v62  ;;  %8402 = vmatprep.mubr.bf16.mxu1 %v17063_v63  ;;  %v3118_v62 = vunpack.c.h.s8.bf16 %v1810_v50  ;;  %v17087_v63 = vld [vmem:[%s18649_s23 + $0x129c] ss:$392 sps:$4 sm:$0xff]  }
 0x31c   : > { %11114 = vmatprep.mubr.bf16.mxu0 %v17065_v0  ;;  %v17089_v0 = vld [vmem:[%s18649_s23 + $0x135c] ss:$392 sps:$4 sm:$0xff]  }
 0x31d   : > { %8470 = vmatpush1.bf16.msra.mxu1 %v2333_v3  ;;  %v2349_v3 = vunpack.c.h.s8.bf16 %v1425_v55  ;;  %v1818_v50 = vld [vmem:[%s18656_s2 + $0x1098] sm:$0xff]  ;;  %v1433_v55 = vld [vmem:[%s18656_s2 + $0x490] sm:$0xff] }
 0x31e   : > { %11182 = vmatpush1.bf16.msra.mxu0 %v3101_v4  ;;  %8471 = vmatprep.subr.bf16.mxu1 %v2336_v5  ;;  %v3117_v4 = vunpack.c.h.s8.bf16 %v1809_v56  ;;  %v2352_v5 = vunpack.c.l.s8.bf16 %v1428_v1  ;;  %v1817_v56 = vld [vmem:[%s18656_s2 + $0x1090] sm:$0xff] }
 0x31f   : > { %11183 = vmatprep.subr.bf16.mxu0 %v3104_v6  ;;  %v3120_v6 = vunpack.c.l.s8.bf16 %v1812_v2 }
 0x320   : > { %8403 = vmatmul.mubr.bf16.gmra.mrb[8].mxu1 %v17067_v9  ;;  %v17091_v9 = vld [vmem:[%s18649_s23 + $0x1298] ss:$392 sps:$4 sm:$0xff]  }
 0x321   : > { %11115 = vmatmul.mubr.bf16.gmra.mrb[8].mxu0 %v17068_v10  ;;  %8472 = vmatpush1.bf16.msra.mxu1 %v2335_v11  ;;  %v17092_v10 = vld [vmem:[%s18649_s23 + $0x1358] ss:$392 sps:$4 sm:$0xff]   ;;  %v2351_v11 = vunpack.c.l.s8.bf16 %v1427_v7 }
 0x322   : > { %11184 = vmatpush1.bf16.msra.mxu0 %v3103_v12  ;;  %8473 = vmatprep.subr.bf16.mxu1 %v2338_v13  ;;  %v3119_v12 = vunpack.c.l.s8.bf16 %v1811_v8  ;;  %v2354_v13 = vunpack.c.h.s8.bf16 %v1428_v1  ;;  %v1436_v1 = vld [vmem:[%s18656_s2 + $0x4a8] sm:$0xff] }
 0x323   : > { %11185 = vmatprep.subr.bf16.mxu0 %v3106_v14  ;;  %8412 = vmatprep.mubr.bf16.mxu1 %v17069_v15  ;;  %v3122_v14 = vunpack.c.h.s8.bf16 %v1812_v2  ;;  %v17093_v15 = vld [vmem:[%s18649_s23 + $0x15ac] ss:$392 sps:$4 sm:$0xff]  }
 0x324   : > { %11124 = vmatprep.mubr.bf16.mxu0 %v17071_v16  ;;  %v17095_v16 = vld [vmem:[%s18649_s23 + $0x166c] ss:$392 sps:$4 sm:$0xff]  }
 0x325   : > { %8474 = vmatpush1.bf16.msra.mxu1 %v2337_v19  ;;  %v2353_v19 = vunpack.c.h.s8.bf16 %v1427_v7  ;;  %v1820_v2 = vld [vmem:[%s18656_s2 + $0x10a8] sm:$0xff]  ;;  %v1435_v7 = vld [vmem:[%s18656_s2 + $0x4a0] sm:$0xff] }
 0x326   : > { %11186 = vmatpush1.bf16.msra.mxu0 %v3105_v20  ;;  %8475 = vmatprep.subr.bf16.mxu1 %v2340_v21  ;;  %v3121_v20 = vunpack.c.h.s8.bf16 %v1811_v8  ;;  %v2356_v21 = vunpack.c.l.s8.bf16 %v1430_v17  ;;  %v1819_v8 = vld [vmem:[%s18656_s2 + $0x10a0] sm:$0xff] }
 0x327   : > { %11187 = vmatprep.subr.bf16.mxu0 %v3108_v22  ;;  %v3124_v22 = vunpack.c.l.s8.bf16 %v1814_v18 }
 0x328   : > { %8413 = vmatmul.mubr.bf16.gmra.mrb[12].mxu1 %v17073_v25  ;;  %v17097_v25 = vld [vmem:[%s18649_s23 + $0x15a8] ss:$392 sps:$4 sm:$0xff]  }
 0x329   : > { %11125 = vmatmul.mubr.bf16.gmra.mrb[12].mxu0 %v17074_v26  ;;  %8476 = vmatpush1.bf16.msra.mxu1 %v2339_v27  ;;  %v17098_v26 = vld [vmem:[%s18649_s23 + $0x1668] ss:$392 sps:$4 sm:$0xff]   ;;  %v2355_v27 = vunpack.c.l.s8.bf16 %v1429_v23 }
 0x32a   : > { %11188 = vmatpush1.bf16.msra.mxu0 %v3107_v28  ;;  %8477 = vmatprep.subr.bf16.mxu1 %v2342_v29  ;;  %v3123_v28 = vunpack.c.l.s8.bf16 %v1813_v24  ;;  %v2358_v29 = vunpack.c.h.s8.bf16 %v1430_v17  ;;  %v1438_v17 = vld [vmem:[%s18656_s2 + $0x4b8] sm:$0xff] }
 0x32b   : > { %11189 = vmatprep.subr.bf16.mxu0 %v3110_v30  ;;  %8422 = vmatprep.mubr.bf16.mxu1 %v17075_v31  ;;  %v3126_v30 = vunpack.c.h.s8.bf16 %v1814_v18  ;;  %v17101_v31 = vld [vmem:[%s18649_s23 + $0x44] ss:$392 sps:$4 sm:$0xff]   ;;  %v1822_v18 = vld [vmem:[%s18656_s2 + $0x10b8] sm:$0xff] }
 0x32c   : > { %11134 = vmatprep.mubr.bf16.mxu0 %v17077_v32  ;;  %v17104_v32 = vld [vmem:[%s18649_s23 + $0x104] ss:$392 sps:$4 sm:$0xff]  }
 0x32d   : > { %8478 = vmatpush1.bf16.msra.mxu1 %v2341_v35  ;;  %v2357_v35 = vunpack.c.h.s8.bf16 %v1429_v23  ;;  %v1437_v23 = vld [vmem:[%s18656_s2 + $0x4b0] sm:$0xff] }
 0x32e   : > { %11190 = vmatpush1.bf16.msra.mxu0 %v3109_v36  ;;  %8479 = vmatprep.subr.bf16.mxu1 %v2344_v37  ;;  %v3125_v36 = vunpack.c.h.s8.bf16 %v1813_v24  ;;  %v2360_v37 = vunpack.c.l.s8.bf16 %v1432_v33  ;;  %v1821_v24 = vld [vmem:[%s18656_s2 + $0x10b0] sm:$0xff] }
 0x32f   : > { %11191 = vmatprep.subr.bf16.mxu0 %v3112_v38  ;;  %v3128_v38 = vunpack.c.l.s8.bf16 %v1816_v34 }
 0x330   : > { %8423 = vmatmul.mubr.bf16.gmra.mrb[16].mxu1 %v17079_v41  ;;  %v17099_v41 = vld [vmem:[%s18649_s23 + $0x40] ss:$392 sps:$4 sm:$0xff]  }
 0x331   : > { %11135 = vmatmul.mubr.bf16.gmra.mrb[16].mxu0 %v17080_v42  ;;  %8480 = vmatpush1.bf16.msra.mxu1 %v2343_v43  ;;  %v17102_v42 = vld [vmem:[%s18649_s23 + $0x100] ss:$392 sps:$4 sm:$0xff]   ;;  %v2359_v43 = vunpack.c.l.s8.bf16 %v1431_v39 }
 0x332   : > { %11192 = vmatpush1.bf16.msra.mxu0 %v3111_v44  ;;  %8481 = vmatprep.subr.bf16.mxu1 %v2346_v45  ;;  %v3127_v44 = vunpack.c.l.s8.bf16 %v1815_v40  ;;  %v2362_v45 = vunpack.c.h.s8.bf16 %v1432_v33  ;;  %v1440_v33 = vld [vmem:[%s18656_s2 + $0x4c8] sm:$0xff] }
 0x333   : > { %11193 = vmatprep.subr.bf16.mxu0 %v3114_v46  ;;  %8432 = vmatprep.mubr.bf16.mxu1 %v17081_v47  ;;  %v3130_v46 = vunpack.c.h.s8.bf16 %v1816_v34  ;;  %v17105_v47 = vld [vmem:[%s18649_s23 + $0x354] ss:$392 sps:$4 sm:$0xff]   ;;  %v1824_v34 = vld [vmem:[%s18656_s2 + $0x10c8] sm:$0xff] }
 0x334   : > { %11144 = vmatprep.mubr.bf16.mxu0 %v17083_v48  ;;  %v17107_v48 = vld [vmem:[%s18649_s23 + $0x414] ss:$392 sps:$4 sm:$0xff]  }
 0x335   : > { %8482 = vmatpush1.bf16.msra.mxu1 %v2345_v51  ;;  %v2361_v51 = vunpack.c.h.s8.bf16 %v1431_v39  ;;  %v1439_v39 = vld [vmem:[%s18656_s2 + $0x4c0] sm:$0xff] }
 0x336   : > { %11194 = vmatpush1.bf16.msra.mxu0 %v3113_v52  ;;  %8483 = vmatprep.subr.bf16.mxu1 %v2348_v53  ;;  %v3129_v52 = vunpack.c.h.s8.bf16 %v1815_v40  ;;  %v2364_v53 = vunpack.c.l.s8.bf16 %v1434_v49  ;;  %v1823_v40 = vld [vmem:[%s18656_s2 + $0x10c0] sm:$0xff] }
 0x337   : > { %11195 = vmatprep.subr.bf16.mxu0 %v3116_v54  ;;  %v3132_v54 = vunpack.c.l.s8.bf16 %v1818_v50 }
 0x338   : > { %8433 = vmatmul.mubr.bf16.gmra.mrb[20].mxu1 %v17085_v57  ;;  %v17109_v57 = vld [vmem:[%s18649_s23 + $0x350] ss:$392 sps:$4 sm:$0xff]  }
 0x339   : > { %11145 = vmatmul.mubr.bf16.gmra.mrb[20].mxu0 %v17086_v58  ;;  %8484 = vmatpush1.bf16.msra.mxu1 %v2347_v59  ;;  %v17110_v58 = vld [vmem:[%s18649_s23 + $0x410] ss:$392 sps:$4 sm:$0xff]   ;;  %v2363_v59 = vunpack.c.l.s8.bf16 %v1433_v55 }
 0x33a   : > { %11196 = vmatpush1.bf16.msra.mxu0 %v3115_v60  ;;  %8485 = vmatprep.subr.bf16.mxu1 %v2350_v61  ;;  %v3131_v60 = vunpack.c.l.s8.bf16 %v1817_v56  ;;  %v2366_v61 = vunpack.c.h.s8.bf16 %v1434_v49  ;;  %v1442_v49 = vld [vmem:[%s18656_s2 + $0x4d8] sm:$0xff] }
 0x33b   : > { %11197 = vmatprep.subr.bf16.mxu0 %v3118_v62  ;;  %8442 = vmatprep.mubr.bf16.mxu1 %v17087_v63  ;;  %v3134_v62 = vunpack.c.h.s8.bf16 %v1818_v50  ;;  %v17111_v63 = vld [vmem:[%s18649_s23 + $0x664] ss:$392 sps:$4 sm:$0xff]   ;;  %v1826_v50 = vld [vmem:[%s18656_s2 + $0x10d8] sm:$0xff] }
 0x33c   : > { %11154 = vmatprep.mubr.bf16.mxu0 %v17089_v0  ;;  %v17113_v0 = vld [vmem:[%s18649_s23 + $0x724] ss:$392 sps:$4 sm:$0xff]  }
 0x33d   : > { %8486 = vmatpush1.bf16.msra.mxu1 %v2349_v3  ;;  %v2365_v3 = vunpack.c.h.s8.bf16 %v1433_v55  ;;  %v1441_v55 = vld [vmem:[%s18656_s2 + $0x4d0] sm:$0xff] }
 0x33e   : > { %11198 = vmatpush1.bf16.msra.mxu0 %v3117_v4  ;;  %8487 = vmatprep.subr.bf16.mxu1 %v2352_v5  ;;  %v3133_v4 = vunpack.c.h.s8.bf16 %v1817_v56  ;;  %v2368_v5 = vunpack.c.l.s8.bf16 %v1436_v1  ;;  %v1825_v56 = vld [vmem:[%s18656_s2 + $0x10d0] sm:$0xff] }
 0x33f   : > { %11199 = vmatprep.subr.bf16.mxu0 %v3120_v6  ;;  %v3136_v6 = vunpack.c.l.s8.bf16 %v1820_v2 }
 0x340   : > { %8443 = vmatmul.mubr.bf16.gmra.mrb[24].mxu1 %v17091_v9  ;;  %v17115_v9 = vld [vmem:[%s18649_s23 + $0x660] ss:$392 sps:$4 sm:$0xff]  }
 0x341   : > { %11155 = vmatmul.mubr.bf16.gmra.mrb[24].mxu0 %v17092_v10  ;;  %8488 = vmatpush1.bf16.msra.mxu1 %v2351_v11  ;;  %v17116_v10 = vld [vmem:[%s18649_s23 + $0x720] ss:$392 sps:$4 sm:$0xff]   ;;  %v2367_v11 = vunpack.c.l.s8.bf16 %v1435_v7 }
 0x342   : > { %11200 = vmatpush1.bf16.msra.mxu0 %v3119_v12  ;;  %8489 = vmatprep.subr.bf16.mxu1 %v2354_v13  ;;  %v3135_v12 = vunpack.c.l.s8.bf16 %v1819_v8  ;;  %v2370_v13 = vunpack.c.h.s8.bf16 %v1436_v1  ;;  %v1444_v1 = vld [vmem:[%s18656_s2 + $0x4e8] sm:$0xff] }
 0x343   : > { %11201 = vmatprep.subr.bf16.mxu0 %v3122_v14  ;;  %8452 = vmatprep.mubr.bf16.mxu1 %v17093_v15  ;;  %v3138_v14 = vunpack.c.h.s8.bf16 %v1820_v2  ;;  %v17117_v15 = vld [vmem:[%s18649_s23 + $0x974] ss:$392 sps:$4 sm:$0xff]   ;;  %v1828_v2 = vld [vmem:[%s18656_s2 + $0x10e8] sm:$0xff] }
 0x344   : > { %11164 = vmatprep.mubr.bf16.mxu0 %v17095_v16  ;;  %v17119_v16 = vld [vmem:[%s18649_s23 + $0xa34] ss:$392 sps:$4 sm:$0xff]  }
 0x345   : > { %8490 = vmatpush1.bf16.msra.mxu1 %v2353_v19  ;;  %v2369_v19 = vunpack.c.h.s8.bf16 %v1435_v7  ;;  %v1443_v7 = vld [vmem:[%s18656_s2 + $0x4e0] sm:$0xff] }
 0x346   : > { %11202 = vmatpush1.bf16.msra.mxu0 %v3121_v20  ;;  %8491 = vmatprep.subr.bf16.mxu1 %v2356_v21  ;;  %v3137_v20 = vunpack.c.h.s8.bf16 %v1819_v8  ;;  %v2372_v21 = vunpack.c.l.s8.bf16 %v1438_v17  ;;  %v1827_v8 = vld [vmem:[%s18656_s2 + $0x10e0] sm:$0xff] }
 0x347   : > { %11203 = vmatprep.subr.bf16.mxu0 %v3124_v22  ;;  %v3140_v22 = vunpack.c.l.s8.bf16 %v1822_v18 }
 0x348   : > { %8453 = vmatmul.mubr.bf16.gmra.mrb[28].mxu1 %v17097_v25  ;;  %v17121_v25 = vld [vmem:[%s18649_s23 + $0x970] ss:$392 sps:$4 sm:$0xff]  }
 0x349   : > { %11165 = vmatmul.mubr.bf16.gmra.mrb[28].mxu0 %v17098_v26  ;;  %8492 = vmatpush1.bf16.msra.mxu1 %v2355_v27  ;;  %v17122_v26 = vld [vmem:[%s18649_s23 + $0xa30] ss:$392 sps:$4 sm:$0xff]   ;;  %v2371_v27 = vunpack.c.l.s8.bf16 %v1437_v23 }
 0x34a   : > { %11204 = vmatpush1.bf16.msra.mxu0 %v3123_v28  ;;  %8493 = vmatprep.subr.bf16.mxu1 %v2358_v29  ;;  %v3139_v28 = vunpack.c.l.s8.bf16 %v1821_v24  ;;  %v2374_v29 = vunpack.c.h.s8.bf16 %v1438_v17  ;;  %v1446_v17 = vld [vmem:[%s18656_s2 + $0x4f8] sm:$0xff] }
 0x34b   : > { %11205 = vmatprep.subr.bf16.mxu0 %v3126_v30  ;;  %8495 = vmatprep.mubr.bf16.mxu1 %v17101_v31  ;;  %v3142_v30 = vunpack.c.h.s8.bf16 %v1822_v18  ;;  %v17123_v31 = vld [vmem:[%s18649_s23 + $0xc84] ss:$392 sps:$4 sm:$0xff]   ;;  %v1830_v18 = vld [vmem:[%s18656_s2 + $0x10f8] sm:$0xff] }
 0x34c   : > { %11207 = vmatprep.mubr.bf16.mxu0 %v17104_v32  ;;  %v17125_v32 = vld [vmem:[%s18649_s23 + $0xd44] ss:$392 sps:$4 sm:$0xff]  }
 0x34d   : > { %8494 = vmatpush1.bf16.msra.mxu1 %v2357_v35  ;;  %v2373_v35 = vunpack.c.h.s8.bf16 %v1437_v23  ;;  %v1445_v23 = vld [vmem:[%s18656_s2 + $0x4f0] sm:$0xff] }
 0x34e   : > { %11206 = vmatpush1.bf16.msra.mxu0 %v3125_v36  ;;  %8576 = vmatprep.subr.bf16.mxu1 %v2360_v37  ;;  %v3141_v36 = vunpack.c.h.s8.bf16 %v1821_v24  ;;  %v2376_v37 = vunpack.c.l.s8.bf16 %v1440_v33  ;;  %v1829_v24 = vld [vmem:[%s18656_s2 + $0x10f0] sm:$0xff] }
 0x34f   : > { %11288 = vmatprep.subr.bf16.mxu0 %v3128_v38  ;;  %v3144_v38 = vunpack.c.l.s8.bf16 %v1824_v34 }
 0x350   : > { %8496 = vmatmul.mubr.bf16.vlgmr.msra.gmra.mrb[0].mxu1 %v17099_v41  ;;  %v17127_v41 = vld [vmem:[%s18649_s23 + $0xc80] ss:$392 sps:$4 sm:$0xff]  }
 0x351   : > { %11208 = vmatmul.mubr.bf16.vlgmr.msra.gmra.mrb[0].mxu0 %v17102_v42  ;;  %8577 = vmatpush1.bf16.msra.mxu1 %v2359_v43  ;;  %v17128_v42 = vld [vmem:[%s18649_s23 + $0xd40] ss:$392 sps:$4 sm:$0xff]   ;;  %v2375_v43 = vunpack.c.l.s8.bf16 %v1439_v39 }
 0x352   : > { %11289 = vmatpush1.bf16.msra.mxu0 %v3127_v44  ;;  %8578 = vmatprep.subr.bf16.mxu1 %v2362_v45  ;;  %v3143_v44 = vunpack.c.l.s8.bf16 %v1823_v40  ;;  %v2378_v45 = vunpack.c.h.s8.bf16 %v1440_v33  ;;  %v1448_v33 = vld [vmem:[%s18656_s2 + $0x508] sm:$0xff] }
 0x353   : > { %11290 = vmatprep.subr.bf16.mxu0 %v3130_v46  ;;  %8505 = vmatprep.mubr.bf16.mxu1 %v17105_v47  ;;  %v3146_v46 = vunpack.c.h.s8.bf16 %v1824_v34  ;;  %v17129_v47 = vld [vmem:[%s18649_s23 + $0xf94] ss:$392 sps:$4 sm:$0xff]   ;;  %v1832_v34 = vld [vmem:[%s18656_s2 + $0x1108] sm:$0xff] }
 0x354   : > { %11217 = vmatprep.mubr.bf16.mxu0 %v17107_v48  ;;  %v17131_v48 = vld [vmem:[%s18649_s23 + $0x1054] ss:$392 sps:$4 sm:$0xff]  }
 0x355   : > { %8579 = vmatpush1.bf16.msra.mxu1 %v2361_v51  ;;  %v2377_v51 = vunpack.c.h.s8.bf16 %v1439_v39  ;;  %v1447_v39 = vld [vmem:[%s18656_s2 + $0x500] sm:$0xff] }
 0x356   : > { %11291 = vmatpush1.bf16.msra.mxu0 %v3129_v52  ;;  %8580 = vmatprep.subr.bf16.mxu1 %v2364_v53  ;;  %v3145_v52 = vunpack.c.h.s8.bf16 %v1823_v40  ;;  %v2380_v53 = vunpack.c.l.s8.bf16 %v1442_v49  ;;  %v1831_v40 = vld [vmem:[%s18656_s2 + $0x1100] sm:$0xff] }
 0x357   : > { %11292 = vmatprep.subr.bf16.mxu0 %v3132_v54  ;;  %v3148_v54 = vunpack.c.l.s8.bf16 %v1826_v50 }
 0x358   : > { %8506 = vmatmul.mubr.bf16.gmra.mrb[4].mxu1 %v17109_v57  ;;  %v17133_v57 = vld [vmem:[%s18649_s23 + $0xf90] ss:$392 sps:$4 sm:$0xff]  }
 0x359   : > { %11218 = vmatmul.mubr.bf16.gmra.mrb[4].mxu0 %v17110_v58  ;;  %8581 = vmatpush1.bf16.msra.mxu1 %v2363_v59  ;;  %v17134_v58 = vld [vmem:[%s18649_s23 + $0x1050] ss:$392 sps:$4 sm:$0xff]   ;;  %v2379_v59 = vunpack.c.l.s8.bf16 %v1441_v55 }
 0x35a   : > { %11293 = vmatpush1.bf16.msra.mxu0 %v3131_v60  ;;  %8582 = vmatprep.subr.bf16.mxu1 %v2366_v61  ;;  %v3147_v60 = vunpack.c.l.s8.bf16 %v1825_v56  ;;  %v2382_v61 = vunpack.c.h.s8.bf16 %v1442_v49  ;;  %v1450_v49 = vld [vmem:[%s18656_s2 + $0x518] sm:$0xff] }
 0x35b   : > { %11294 = vmatprep.subr.bf16.mxu0 %v3134_v62  ;;  %8515 = vmatprep.mubr.bf16.mxu1 %v17111_v63  ;;  %v3150_v62 = vunpack.c.h.s8.bf16 %v1826_v50  ;;  %v17135_v63 = vld [vmem:[%s18649_s23 + $0x12a4] ss:$392 sps:$4 sm:$0xff]   ;;  %v1834_v50 = vld [vmem:[%s18656_s2 + $0x1118] sm:$0xff] }
 0x35c   : > { %11227 = vmatprep.mubr.bf16.mxu0 %v17113_v0  ;;  %v17137_v0 = vld [vmem:[%s18649_s23 + $0x1364] ss:$392 sps:$4 sm:$0xff]  }
 0x35d   : > { %8583 = vmatpush1.bf16.msra.mxu1 %v2365_v3  ;;  %v2381_v3 = vunpack.c.h.s8.bf16 %v1441_v55  ;;  %v1449_v55 = vld [vmem:[%s18656_s2 + $0x510] sm:$0xff] }
 0x35e   : > { %11295 = vmatpush1.bf16.msra.mxu0 %v3133_v4  ;;  %8584 = vmatprep.subr.bf16.mxu1 %v2368_v5  ;;  %v3149_v4 = vunpack.c.h.s8.bf16 %v1825_v56  ;;  %v2384_v5 = vunpack.c.l.s8.bf16 %v1444_v1  ;;  %v1833_v56 = vld [vmem:[%s18656_s2 + $0x1110] sm:$0xff] }
 0x35f   : > { %11296 = vmatprep.subr.bf16.mxu0 %v3136_v6  ;;  %v3152_v6 = vunpack.c.l.s8.bf16 %v1828_v2 }
 0x360   : > { %8516 = vmatmul.mubr.bf16.gmra.mrb[8].mxu1 %v17115_v9  ;;  %v17139_v9 = vld [vmem:[%s18649_s23 + $0x12a0] ss:$392 sps:$4 sm:$0xff]  }
 0x361   : > { %11228 = vmatmul.mubr.bf16.gmra.mrb[8].mxu0 %v17116_v10  ;;  %8585 = vmatpush1.bf16.msra.mxu1 %v2367_v11  ;;  %v17140_v10 = vld [vmem:[%s18649_s23 + $0x1360] ss:$392 sps:$4 sm:$0xff]   ;;  %v2383_v11 = vunpack.c.l.s8.bf16 %v1443_v7 }
 0x362   : > { %11297 = vmatpush1.bf16.msra.mxu0 %v3135_v12  ;;  %8586 = vmatprep.subr.bf16.mxu1 %v2370_v13  ;;  %v3151_v12 = vunpack.c.l.s8.bf16 %v1827_v8  ;;  %v2386_v13 = vunpack.c.h.s8.bf16 %v1444_v1  ;;  %v1452_v1 = vld [vmem:[%s18656_s2 + $0x528] sm:$0xff] }
 0x363   : > { %11298 = vmatprep.subr.bf16.mxu0 %v3138_v14  ;;  %8525 = vmatprep.mubr.bf16.mxu1 %v17117_v15  ;;  %v3154_v14 = vunpack.c.h.s8.bf16 %v1828_v2  ;;  %v17141_v15 = vld [vmem:[%s18649_s23 + $0x15b4] ss:$392 sps:$4 sm:$0xff]   ;;  %v1836_v2 = vld [vmem:[%s18656_s2 + $0x1128] sm:$0xff] }
 0x364   : > { %11237 = vmatprep.mubr.bf16.mxu0 %v17119_v16  ;;  %v17143_v16 = vld [vmem:[%s18649_s23 + $0x1674] ss:$392 sps:$4 sm:$0xff]  }
 0x365   : > { %8587 = vmatpush1.bf16.msra.mxu1 %v2369_v19  ;;  %v2385_v19 = vunpack.c.h.s8.bf16 %v1443_v7  ;;  %v1451_v7 = vld [vmem:[%s18656_s2 + $0x520] sm:$0xff] }
 0x366   : > { %11299 = vmatpush1.bf16.msra.mxu0 %v3137_v20  ;;  %8588 = vmatprep.subr.bf16.mxu1 %v2372_v21  ;;  %v3153_v20 = vunpack.c.h.s8.bf16 %v1827_v8  ;;  %v2388_v21 = vunpack.c.l.s8.bf16 %v1446_v17  ;;  %v1835_v8 = vld [vmem:[%s18656_s2 + $0x1120] sm:$0xff] }
 0x367   : > { %11300 = vmatprep.subr.bf16.mxu0 %v3140_v22  ;;  %v3156_v22 = vunpack.c.l.s8.bf16 %v1830_v18 }
 0x368   : > { %8526 = vmatmul.mubr.bf16.gmra.mrb[12].mxu1 %v17121_v25  ;;  %v17145_v25 = vld [vmem:[%s18649_s23 + $0x15b0] ss:$392 sps:$4 sm:$0xff]  }
 0x369   : > { %11238 = vmatmul.mubr.bf16.gmra.mrb[12].mxu0 %v17122_v26  ;;  %8589 = vmatpush1.bf16.msra.mxu1 %v2371_v27  ;;  %v17146_v26 = vld [vmem:[%s18649_s23 + $0x1670] ss:$392 sps:$4 sm:$0xff]   ;;  %v2387_v27 = vunpack.c.l.s8.bf16 %v1445_v23 }
 0x36a   : > { %11301 = vmatpush1.bf16.msra.mxu0 %v3139_v28  ;;  %8590 = vmatprep.subr.bf16.mxu1 %v2374_v29  ;;  %v3155_v28 = vunpack.c.l.s8.bf16 %v1829_v24  ;;  %v2390_v29 = vunpack.c.h.s8.bf16 %v1446_v17  ;;  %v1454_v17 = vld [vmem:[%s18656_s2 + $0x538] sm:$0xff] }
 0x36b   : > { %11302 = vmatprep.subr.bf16.mxu0 %v3142_v30  ;;  %8535 = vmatprep.mubr.bf16.mxu1 %v17123_v31  ;;  %v3158_v30 = vunpack.c.h.s8.bf16 %v1830_v18  ;;  %v17149_v31 = vld [vmem:[%s18649_s23 + $0x4c] ss:$392 sps:$4 sm:$0xff]   ;;  %v1838_v18 = vld [vmem:[%s18656_s2 + $0x1138] sm:$0xff] }
 0x36c   : > { %11247 = vmatprep.mubr.bf16.mxu0 %v17125_v32  ;;  %v17152_v32 = vld [vmem:[%s18649_s23 + $0x10c] ss:$392 sps:$4 sm:$0xff]  }
 0x36d   : > { %8591 = vmatpush1.bf16.msra.mxu1 %v2373_v35  ;;  %v2389_v35 = vunpack.c.h.s8.bf16 %v1445_v23  ;;  %v1453_v23 = vld [vmem:[%s18656_s2 + $0x530] sm:$0xff] }
 0x36e   : > { %11303 = vmatpush1.bf16.msra.mxu0 %v3141_v36  ;;  %8592 = vmatprep.subr.bf16.mxu1 %v2376_v37  ;;  %v3157_v36 = vunpack.c.h.s8.bf16 %v1829_v24  ;;  %v2392_v37 = vunpack.c.l.s8.bf16 %v1448_v33  ;;  %v1837_v24 = vld [vmem:[%s18656_s2 + $0x1130] sm:$0xff] }
 0x36f   : > { %11304 = vmatprep.subr.bf16.mxu0 %v3144_v38  ;;  %v3160_v38 = vunpack.c.l.s8.bf16 %v1832_v34 }
 0x370   : > { %8536 = vmatmul.mubr.bf16.gmra.mrb[16].mxu1 %v17127_v41  ;;  %v17147_v41 = vld [vmem:[%s18649_s23 + $0x48] ss:$392 sps:$4 sm:$0xff]  }
 0x371   : > { %11248 = vmatmul.mubr.bf16.gmra.mrb[16].mxu0 %v17128_v42  ;;  %8593 = vmatpush1.bf16.msra.mxu1 %v2375_v43  ;;  %v17150_v42 = vld [vmem:[%s18649_s23 + $0x108] ss:$392 sps:$4 sm:$0xff]   ;;  %v2391_v43 = vunpack.c.l.s8.bf16 %v1447_v39 }
 0x372   : > { %11305 = vmatpush1.bf16.msra.mxu0 %v3143_v44  ;;  %8594 = vmatprep.subr.bf16.mxu1 %v2378_v45  ;;  %v3159_v44 = vunpack.c.l.s8.bf16 %v1831_v40  ;;  %v2394_v45 = vunpack.c.h.s8.bf16 %v1448_v33  ;;  %v1456_v33 = vld [vmem:[%s18656_s2 + $0x548] sm:$0xff] }
 0x373   : > { %11306 = vmatprep.subr.bf16.mxu0 %v3146_v46  ;;  %8545 = vmatprep.mubr.bf16.mxu1 %v17129_v47  ;;  %v3162_v46 = vunpack.c.h.s8.bf16 %v1832_v34  ;;  %v17153_v47 = vld [vmem:[%s18649_s23 + $0x35c] ss:$392 sps:$4 sm:$0xff]   ;;  %v1840_v34 = vld [vmem:[%s18656_s2 + $0x1148] sm:$0xff] }
 0x374   : > { %11257 = vmatprep.mubr.bf16.mxu0 %v17131_v48  ;;  %v17155_v48 = vld [vmem:[%s18649_s23 + $0x41c] ss:$392 sps:$4 sm:$0xff]  }
 0x375   : > { %8595 = vmatpush1.bf16.msra.mxu1 %v2377_v51  ;;  %v2393_v51 = vunpack.c.h.s8.bf16 %v1447_v39  ;;  %v1455_v39 = vld [vmem:[%s18656_s2 + $0x540] sm:$0xff] }
 0x376   : > { %11307 = vmatpush1.bf16.msra.mxu0 %v3145_v52  ;;  %8596 = vmatprep.subr.bf16.mxu1 %v2380_v53  ;;  %v3161_v52 = vunpack.c.h.s8.bf16 %v1831_v40  ;;  %v2396_v53 = vunpack.c.l.s8.bf16 %v1450_v49  ;;  %v1839_v40 = vld [vmem:[%s18656_s2 + $0x1140] sm:$0xff] }
 0x377   : > { %11308 = vmatprep.subr.bf16.mxu0 %v3148_v54  ;;  %v3164_v54 = vunpack.c.l.s8.bf16 %v1834_v50 }
 0x378   : > { %8546 = vmatmul.mubr.bf16.gmra.mrb[20].mxu1 %v17133_v57  ;;  %v17157_v57 = vld [vmem:[%s18649_s23 + $0x358] ss:$392 sps:$4 sm:$0xff]  }
 0x379   : > { %11258 = vmatmul.mubr.bf16.gmra.mrb[20].mxu0 %v17134_v58  ;;  %8597 = vmatpush1.bf16.msra.mxu1 %v2379_v59  ;;  %v17158_v58 = vld [vmem:[%s18649_s23 + $0x418] ss:$392 sps:$4 sm:$0xff]   ;;  %v2395_v59 = vunpack.c.l.s8.bf16 %v1449_v55 }
 0x37a   : > { %11309 = vmatpush1.bf16.msra.mxu0 %v3147_v60  ;;  %8598 = vmatprep.subr.bf16.mxu1 %v2382_v61  ;;  %v3163_v60 = vunpack.c.l.s8.bf16 %v1833_v56  ;;  %v2398_v61 = vunpack.c.h.s8.bf16 %v1450_v49  ;;  %v1458_v49 = vld [vmem:[%s18656_s2 + $0x558] sm:$0xff] }
 0x37b   : > { %11310 = vmatprep.subr.bf16.mxu0 %v3150_v62  ;;  %8555 = vmatprep.mubr.bf16.mxu1 %v17135_v63  ;;  %v3166_v62 = vunpack.c.h.s8.bf16 %v1834_v50  ;;  %v17159_v63 = vld [vmem:[%s18649_s23 + $0x66c] ss:$392 sps:$4 sm:$0xff]   ;;  %v1842_v50 = vld [vmem:[%s18656_s2 + $0x1158] sm:$0xff] }
 0x37c   : > { %11267 = vmatprep.mubr.bf16.mxu0 %v17137_v0  ;;  %v17161_v0 = vld [vmem:[%s18649_s23 + $0x72c] ss:$392 sps:$4 sm:$0xff]  }
 0x37d   : > { %8599 = vmatpush1.bf16.msra.mxu1 %v2381_v3  ;;  %v2397_v3 = vunpack.c.h.s8.bf16 %v1449_v55  ;;  %v1457_v55 = vld [vmem:[%s18656_s2 + $0x550] sm:$0xff] }
 0x37e   : > { %11311 = vmatpush1.bf16.msra.mxu0 %v3149_v4  ;;  %8600 = vmatprep.subr.bf16.mxu1 %v2384_v5  ;;  %v3165_v4 = vunpack.c.h.s8.bf16 %v1833_v56  ;;  %v2400_v5 = vunpack.c.l.s8.bf16 %v1452_v1  ;;  %v1841_v56 = vld [vmem:[%s18656_s2 + $0x1150] sm:$0xff] }
 0x37f   : > { %11312 = vmatprep.subr.bf16.mxu0 %v3152_v6  ;;  %v3168_v6 = vunpack.c.l.s8.bf16 %v1836_v2 }
 0x380   : > { %8556 = vmatmul.mubr.bf16.gmra.mrb[24].mxu1 %v17139_v9  ;;  %v17163_v9 = vld [vmem:[%s18649_s23 + $0x668] ss:$392 sps:$4 sm:$0xff]  }
 0x381   : > { %11268 = vmatmul.mubr.bf16.gmra.mrb[24].mxu0 %v17140_v10  ;;  %8601 = vmatpush1.bf16.msra.mxu1 %v2383_v11  ;;  %v17164_v10 = vld [vmem:[%s18649_s23 + $0x728] ss:$392 sps:$4 sm:$0xff]   ;;  %v2399_v11 = vunpack.c.l.s8.bf16 %v1451_v7 }
 0x382   : > { %11313 = vmatpush1.bf16.msra.mxu0 %v3151_v12  ;;  %8602 = vmatprep.subr.bf16.mxu1 %v2386_v13  ;;  %v3167_v12 = vunpack.c.l.s8.bf16 %v1835_v8  ;;  %v2402_v13 = vunpack.c.h.s8.bf16 %v1452_v1  ;;  %v1460_v1 = vld [vmem:[%s18656_s2 + $0x568] sm:$0xff] }
 0x383   : > { %11314 = vmatprep.subr.bf16.mxu0 %v3154_v14  ;;  %8565 = vmatprep.mubr.bf16.mxu1 %v17141_v15  ;;  %v3170_v14 = vunpack.c.h.s8.bf16 %v1836_v2  ;;  %v17165_v15 = vld [vmem:[%s18649_s23 + $0x97c] ss:$392 sps:$4 sm:$0xff]   ;;  %v1844_v2 = vld [vmem:[%s18656_s2 + $0x1168] sm:$0xff] }
 0x384   : > { %11277 = vmatprep.mubr.bf16.mxu0 %v17143_v16  ;;  %v17167_v16 = vld [vmem:[%s18649_s23 + $0xa3c] ss:$392 sps:$4 sm:$0xff]  }
 0x385   : > { %8603 = vmatpush1.bf16.msra.mxu1 %v2385_v19  ;;  %v2401_v19 = vunpack.c.h.s8.bf16 %v1451_v7  ;;  %v1459_v7 = vld [vmem:[%s18656_s2 + $0x560] sm:$0xff] }
 0x386   : > { %11315 = vmatpush1.bf16.msra.mxu0 %v3153_v20  ;;  %8604 = vmatprep.subr.bf16.mxu1 %v2388_v21  ;;  %v3169_v20 = vunpack.c.h.s8.bf16 %v1835_v8  ;;  %v2404_v21 = vunpack.c.l.s8.bf16 %v1454_v17  ;;  %v1843_v8 = vld [vmem:[%s18656_s2 + $0x1160] sm:$0xff] }
 0x387   : > { %11316 = vmatprep.subr.bf16.mxu0 %v3156_v22  ;;  %v3172_v22 = vunpack.c.l.s8.bf16 %v1838_v18 }
 0x388   : > { %8566 = vmatmul.mubr.bf16.gmra.mrb[28].mxu1 %v17145_v25  ;;  %v17169_v25 = vld [vmem:[%s18649_s23 + $0x978] ss:$392 sps:$4 sm:$0xff]  }
 0x389   : > { %11278 = vmatmul.mubr.bf16.gmra.mrb[28].mxu0 %v17146_v26  ;;  %8605 = vmatpush1.bf16.msra.mxu1 %v2387_v27  ;;  %v17170_v26 = vld [vmem:[%s18649_s23 + $0xa38] ss:$392 sps:$4 sm:$0xff]   ;;  %v2403_v27 = vunpack.c.l.s8.bf16 %v1453_v23 }
 0x38a   : > { %11317 = vmatpush1.bf16.msra.mxu0 %v3155_v28  ;;  %8606 = vmatprep.subr.bf16.mxu1 %v2390_v29  ;;  %v3171_v28 = vunpack.c.l.s8.bf16 %v1837_v24  ;;  %v2406_v29 = vunpack.c.h.s8.bf16 %v1454_v17  ;;  %v1462_v17 = vld [vmem:[%s18656_s2 + $0x578] sm:$0xff] }
 0x38b   : > { %11318 = vmatprep.subr.bf16.mxu0 %v3158_v30  ;;  %8608 = vmatprep.mubr.bf16.mxu1 %v17149_v31  ;;  %v3174_v30 = vunpack.c.h.s8.bf16 %v1838_v18  ;;  %v17171_v31 = vld [vmem:[%s18649_s23 + $0xc8c] ss:$392 sps:$4 sm:$0xff]   ;;  %v1846_v18 = vld [vmem:[%s18656_s2 + $0x1178] sm:$0xff] }
 0x38c   : > { %11320 = vmatprep.mubr.bf16.mxu0 %v17152_v32  ;;  %v17173_v32 = vld [vmem:[%s18649_s23 + $0xd4c] ss:$392 sps:$4 sm:$0xff]  }
 0x38d   : > { %8607 = vmatpush1.bf16.msra.mxu1 %v2389_v35  ;;  %v2405_v35 = vunpack.c.h.s8.bf16 %v1453_v23  ;;  %v1461_v23 = vld [vmem:[%s18656_s2 + $0x570] sm:$0xff] }
 0x38e   : > { %11319 = vmatpush1.bf16.msra.mxu0 %v3157_v36  ;;  %8689 = vmatprep.subr.bf16.mxu1 %v2392_v37  ;;  %v3173_v36 = vunpack.c.h.s8.bf16 %v1837_v24  ;;  %v2408_v37 = vunpack.c.l.s8.bf16 %v1456_v33  ;;  %v1845_v24 = vld [vmem:[%s18656_s2 + $0x1170] sm:$0xff] }
 0x38f   : > { %11401 = vmatprep.subr.bf16.mxu0 %v3160_v38  ;;  %v3176_v38 = vunpack.c.l.s8.bf16 %v1840_v34 }
 0x390   : > { %8609 = vmatmul.mubr.bf16.vlgmr.msra.gmra.mrb[0].mxu1 %v17147_v41  ;;  %v17175_v41 = vld [vmem:[%s18649_s23 + $0xc88] ss:$392 sps:$4 sm:$0xff]  }
 0x391   : > { %11321 = vmatmul.mubr.bf16.vlgmr.msra.gmra.mrb[0].mxu0 %v17150_v42  ;;  %8690 = vmatpush1.bf16.msra.mxu1 %v2391_v43  ;;  %v17176_v42 = vld [vmem:[%s18649_s23 + $0xd48] ss:$392 sps:$4 sm:$0xff]   ;;  %v2407_v43 = vunpack.c.l.s8.bf16 %v1455_v39 }
 0x392   : > { %11402 = vmatpush1.bf16.msra.mxu0 %v3159_v44  ;;  %8691 = vmatprep.subr.bf16.mxu1 %v2394_v45  ;;  %v3175_v44 = vunpack.c.l.s8.bf16 %v1839_v40  ;;  %v2410_v45 = vunpack.c.h.s8.bf16 %v1456_v33  ;;  %v1464_v33 = vld [vmem:[%s18656_s2 + $0x588] sm:$0xff] }
 0x393   : > { %11403 = vmatprep.subr.bf16.mxu0 %v3162_v46  ;;  %8618 = vmatprep.mubr.bf16.mxu1 %v17153_v47  ;;  %v3178_v46 = vunpack.c.h.s8.bf16 %v1840_v34  ;;  %v17177_v47 = vld [vmem:[%s18649_s23 + $0xf9c] ss:$392 sps:$4 sm:$0xff]   ;;  %v1848_v34 = vld [vmem:[%s18656_s2 + $0x1188] sm:$0xff] }
 0x394   : > { %11330 = vmatprep.mubr.bf16.mxu0 %v17155_v48  ;;  %v17179_v48 = vld [vmem:[%s18649_s23 + $0x105c] ss:$392 sps:$4 sm:$0xff]  }
 0x395   : > { %8692 = vmatpush1.bf16.msra.mxu1 %v2393_v51  ;;  %v2409_v51 = vunpack.c.h.s8.bf16 %v1455_v39  ;;  %v1463_v39 = vld [vmem:[%s18656_s2 + $0x580] sm:$0xff] }
 0x396   : > { %11404 = vmatpush1.bf16.msra.mxu0 %v3161_v52  ;;  %8693 = vmatprep.subr.bf16.mxu1 %v2396_v53  ;;  %v3177_v52 = vunpack.c.h.s8.bf16 %v1839_v40  ;;  %v2412_v53 = vunpack.c.l.s8.bf16 %v1458_v49  ;;  %v1847_v40 = vld [vmem:[%s18656_s2 + $0x1180] sm:$0xff] }
 0x397   : > { %11405 = vmatprep.subr.bf16.mxu0 %v3164_v54  ;;  %v3180_v54 = vunpack.c.l.s8.bf16 %v1842_v50 }
 0x398   : > { %8619 = vmatmul.mubr.bf16.gmra.mrb[4].mxu1 %v17157_v57  ;;  %v17181_v57 = vld [vmem:[%s18649_s23 + $0xf98] ss:$392 sps:$4 sm:$0xff]  }
 0x399   : > { %11331 = vmatmul.mubr.bf16.gmra.mrb[4].mxu0 %v17158_v58  ;;  %8694 = vmatpush1.bf16.msra.mxu1 %v2395_v59  ;;  %v17182_v58 = vld [vmem:[%s18649_s23 + $0x1058] ss:$392 sps:$4 sm:$0xff]   ;;  %v2411_v59 = vunpack.c.l.s8.bf16 %v1457_v55 }
 0x39a   : > { %11406 = vmatpush1.bf16.msra.mxu0 %v3163_v60  ;;  %8695 = vmatprep.subr.bf16.mxu1 %v2398_v61  ;;  %v3179_v60 = vunpack.c.l.s8.bf16 %v1841_v56  ;;  %v2414_v61 = vunpack.c.h.s8.bf16 %v1458_v49  ;;  %v1466_v49 = vld [vmem:[%s18656_s2 + $0x598] sm:$0xff] }
 0x39b   : > { %11407 = vmatprep.subr.bf16.mxu0 %v3166_v62  ;;  %8628 = vmatprep.mubr.bf16.mxu1 %v17159_v63  ;;  %v3182_v62 = vunpack.c.h.s8.bf16 %v1842_v50  ;;  %v17183_v63 = vld [vmem:[%s18649_s23 + $0x12ac] ss:$392 sps:$4 sm:$0xff]   ;;  %v1850_v50 = vld [vmem:[%s18656_s2 + $0x1198] sm:$0xff] }
 0x39c   : > { %11340 = vmatprep.mubr.bf16.mxu0 %v17161_v0  ;;  %v17185_v0 = vld [vmem:[%s18649_s23 + $0x136c] ss:$392 sps:$4 sm:$0xff]  }
 0x39d   : > { %8696 = vmatpush1.bf16.msra.mxu1 %v2397_v3  ;;  %v2413_v3 = vunpack.c.h.s8.bf16 %v1457_v55  ;;  %v1465_v55 = vld [vmem:[%s18656_s2 + $0x590] sm:$0xff] }
 0x39e   : > { %11408 = vmatpush1.bf16.msra.mxu0 %v3165_v4  ;;  %8697 = vmatprep.subr.bf16.mxu1 %v2400_v5  ;;  %v3181_v4 = vunpack.c.h.s8.bf16 %v1841_v56  ;;  %v2416_v5 = vunpack.c.l.s8.bf16 %v1460_v1  ;;  %v1849_v56 = vld [vmem:[%s18656_s2 + $0x1190] sm:$0xff] }
 0x39f   : > { %11409 = vmatprep.subr.bf16.mxu0 %v3168_v6  ;;  %v3184_v6 = vunpack.c.l.s8.bf16 %v1844_v2 }
 0x3a0   : > { %8629 = vmatmul.mubr.bf16.gmra.mrb[8].mxu1 %v17163_v9  ;;  %v17187_v9 = vld [vmem:[%s18649_s23 + $0x12a8] ss:$392 sps:$4 sm:$0xff]  }
 0x3a1   : > { %11341 = vmatmul.mubr.bf16.gmra.mrb[8].mxu0 %v17164_v10  ;;  %8698 = vmatpush1.bf16.msra.mxu1 %v2399_v11  ;;  %v17188_v10 = vld [vmem:[%s18649_s23 + $0x1368] ss:$392 sps:$4 sm:$0xff]   ;;  %v2415_v11 = vunpack.c.l.s8.bf16 %v1459_v7 }
 0x3a2   : > { %11410 = vmatpush1.bf16.msra.mxu0 %v3167_v12  ;;  %8699 = vmatprep.subr.bf16.mxu1 %v2402_v13  ;;  %v3183_v12 = vunpack.c.l.s8.bf16 %v1843_v8  ;;  %v2418_v13 = vunpack.c.h.s8.bf16 %v1460_v1  ;;  %v1468_v1 = vld [vmem:[%s18656_s2 + $0x5a8] sm:$0xff] }
 0x3a3   : > { %11411 = vmatprep.subr.bf16.mxu0 %v3170_v14  ;;  %8638 = vmatprep.mubr.bf16.mxu1 %v17165_v15  ;;  %v3186_v14 = vunpack.c.h.s8.bf16 %v1844_v2  ;;  %v17189_v15 = vld [vmem:[%s18649_s23 + $0x15bc] ss:$392 sps:$4 sm:$0xff]   ;;  %v1852_v2 = vld [vmem:[%s18656_s2 + $0x11a8] sm:$0xff] }
 0x3a4   : > { %11350 = vmatprep.mubr.bf16.mxu0 %v17167_v16  ;;  %v17191_v16 = vld [vmem:[%s18649_s23 + $0x167c] ss:$392 sps:$4 sm:$0xff]  }
 0x3a5   : > { %8700 = vmatpush1.bf16.msra.mxu1 %v2401_v19  ;;  %v2417_v19 = vunpack.c.h.s8.bf16 %v1459_v7  ;;  %v1467_v7 = vld [vmem:[%s18656_s2 + $0x5a0] sm:$0xff] }
 0x3a6   : > { %11412 = vmatpush1.bf16.msra.mxu0 %v3169_v20  ;;  %8701 = vmatprep.subr.bf16.mxu1 %v2404_v21  ;;  %v3185_v20 = vunpack.c.h.s8.bf16 %v1843_v8  ;;  %v2420_v21 = vunpack.c.l.s8.bf16 %v1462_v17  ;;  %v1851_v8 = vld [vmem:[%s18656_s2 + $0x11a0] sm:$0xff] }
 0x3a7   : > { %11413 = vmatprep.subr.bf16.mxu0 %v3172_v22  ;;  %v3188_v22 = vunpack.c.l.s8.bf16 %v1846_v18 }
 0x3a8   : > { %8639 = vmatmul.mubr.bf16.gmra.mrb[12].mxu1 %v17169_v25  ;;  %v17193_v25 = vld [vmem:[%s18649_s23 + $0x15b8] ss:$392 sps:$4 sm:$0xff]  }
 0x3a9   : > { %11351 = vmatmul.mubr.bf16.gmra.mrb[12].mxu0 %v17170_v26  ;;  %8702 = vmatpush1.bf16.msra.mxu1 %v2403_v27  ;;  %v17194_v26 = vld [vmem:[%s18649_s23 + $0x1678] ss:$392 sps:$4 sm:$0xff]   ;;  %v2419_v27 = vunpack.c.l.s8.bf16 %v1461_v23 }
 0x3aa   : > { %11414 = vmatpush1.bf16.msra.mxu0 %v3171_v28  ;;  %8703 = vmatprep.subr.bf16.mxu1 %v2406_v29  ;;  %v3187_v28 = vunpack.c.l.s8.bf16 %v1845_v24  ;;  %v2422_v29 = vunpack.c.h.s8.bf16 %v1462_v17  ;;  %v1470_v17 = vld [vmem:[%s18656_s2 + $0x5b8] sm:$0xff] }
 0x3ab   : > { %11415 = vmatprep.subr.bf16.mxu0 %v3174_v30  ;;  %8648 = vmatprep.mubr.bf16.mxu1 %v17171_v31  ;;  %v3190_v30 = vunpack.c.h.s8.bf16 %v1846_v18  ;;  %v17197_v31 = vld [vmem:[%s18649_s23 + $0x54] ss:$392 sps:$4 sm:$0xff]  }
 0x3ac   : > { %11360 = vmatprep.mubr.bf16.mxu0 %v17173_v32  ;;  %v17200_v32 = vld [vmem:[%s18649_s23 + $0x114] ss:$392 sps:$4 sm:$0xff]  }
 0x3ad   : > { %8704 = vmatpush1.bf16.msra.mxu1 %v2405_v35  ;;  %v2421_v35 = vunpack.c.h.s8.bf16 %v1461_v23  ;;  %v1854_v18 = vld [vmem:[%s18656_s2 + $0x11b8] sm:$0xff]  ;;  %v1469_v23 = vld [vmem:[%s18656_s2 + $0x5b0] sm:$0xff] }
 0x3ae   : > { %11416 = vmatpush1.bf16.msra.mxu0 %v3173_v36  ;;  %8705 = vmatprep.subr.bf16.mxu1 %v2408_v37  ;;  %v3189_v36 = vunpack.c.h.s8.bf16 %v1845_v24  ;;  %v2424_v37 = vunpack.c.l.s8.bf16 %v1464_v33  ;;  %v1853_v24 = vld [vmem:[%s18656_s2 + $0x11b0] sm:$0xff] }
 0x3af   : > { %11417 = vmatprep.subr.bf16.mxu0 %v3176_v38  ;;  %v3192_v38 = vunpack.c.l.s8.bf16 %v1848_v34 }
 0x3b0   : > { %8649 = vmatmul.mubr.bf16.gmra.mrb[16].mxu1 %v17175_v41  ;;  %v17195_v41 = vld [vmem:[%s18649_s23 + $0x50] ss:$392 sps:$4 sm:$0xff]  }
 0x3b1   : > { %11361 = vmatmul.mubr.bf16.gmra.mrb[16].mxu0 %v17176_v42  ;;  %8706 = vmatpush1.bf16.msra.mxu1 %v2407_v43  ;;  %v17198_v42 = vld [vmem:[%s18649_s23 + $0x110] ss:$392 sps:$4 sm:$0xff]   ;;  %v2423_v43 = vunpack.c.l.s8.bf16 %v1463_v39 }
 0x3b2   : > { %11418 = vmatpush1.bf16.msra.mxu0 %v3175_v44  ;;  %8707 = vmatprep.subr.bf16.mxu1 %v2410_v45  ;;  %v3191_v44 = vunpack.c.l.s8.bf16 %v1847_v40  ;;  %v2426_v45 = vunpack.c.h.s8.bf16 %v1464_v33  ;;  %v1472_v33 = vld [vmem:[%s18656_s2 + $0x5c8] sm:$0xff] }
 0x3b3   : > { %11419 = vmatprep.subr.bf16.mxu0 %v3178_v46  ;;  %8658 = vmatprep.mubr.bf16.mxu1 %v17177_v47  ;;  %v3194_v46 = vunpack.c.h.s8.bf16 %v1848_v34  ;;  %v17201_v47 = vld [vmem:[%s18649_s23 + $0x364] ss:$392 sps:$4 sm:$0xff]  }
 0x3b4   : > { %11370 = vmatprep.mubr.bf16.mxu0 %v17179_v48  ;;  %v17203_v48 = vld [vmem:[%s18649_s23 + $0x424] ss:$392 sps:$4 sm:$0xff]  }
 0x3b5   : > { %8708 = vmatpush1.bf16.msra.mxu1 %v2409_v51  ;;  %v2425_v51 = vunpack.c.h.s8.bf16 %v1463_v39  ;;  %v1856_v34 = vld [vmem:[%s18656_s2 + $0x11c8] sm:$0xff]  ;;  %v1471_v39 = vld [vmem:[%s18656_s2 + $0x5c0] sm:$0xff] }
 0x3b6   : > { %11420 = vmatpush1.bf16.msra.mxu0 %v3177_v52  ;;  %8709 = vmatprep.subr.bf16.mxu1 %v2412_v53  ;;  %v3193_v52 = vunpack.c.h.s8.bf16 %v1847_v40  ;;  %v2428_v53 = vunpack.c.l.s8.bf16 %v1466_v49  ;;  %v1855_v40 = vld [vmem:[%s18656_s2 + $0x11c0] sm:$0xff] }
 0x3b7   : > { %11421 = vmatprep.subr.bf16.mxu0 %v3180_v54  ;;  %v3196_v54 = vunpack.c.l.s8.bf16 %v1850_v50 }
 0x3b8   : > { %8659 = vmatmul.mubr.bf16.gmra.mrb[20].mxu1 %v17181_v57  ;;  %v17205_v57 = vld [vmem:[%s18649_s23 + $0x360] ss:$392 sps:$4 sm:$0xff]  }
 0x3b9   : > { %11371 = vmatmul.mubr.bf16.gmra.mrb[20].mxu0 %v17182_v58  ;;  %8710 = vmatpush1.bf16.msra.mxu1 %v2411_v59  ;;  %v17206_v58 = vld [vmem:[%s18649_s23 + $0x420] ss:$392 sps:$4 sm:$0xff]   ;;  %v2427_v59 = vunpack.c.l.s8.bf16 %v1465_v55 }
 0x3ba   : > { %11422 = vmatpush1.bf16.msra.mxu0 %v3179_v60  ;;  %8711 = vmatprep.subr.bf16.mxu1 %v2414_v61  ;;  %v3195_v60 = vunpack.c.l.s8.bf16 %v1849_v56  ;;  %v2430_v61 = vunpack.c.h.s8.bf16 %v1466_v49  ;;  %v1474_v49 = vld [vmem:[%s18656_s2 + $0x5d8] sm:$0xff] }
 0x3bb   : > { %11423 = vmatprep.subr.bf16.mxu0 %v3182_v62  ;;  %8668 = vmatprep.mubr.bf16.mxu1 %v17183_v63  ;;  %v3198_v62 = vunpack.c.h.s8.bf16 %v1850_v50  ;;  %v17207_v63 = vld [vmem:[%s18649_s23 + $0x674] ss:$392 sps:$4 sm:$0xff]  }
 0x3bc   : > { %11380 = vmatprep.mubr.bf16.mxu0 %v17185_v0  ;;  %v17209_v0 = vld [vmem:[%s18649_s23 + $0x734] ss:$392 sps:$4 sm:$0xff]  }
 0x3bd   : > { %8712 = vmatpush1.bf16.msra.mxu1 %v2413_v3  ;;  %v2429_v3 = vunpack.c.h.s8.bf16 %v1465_v55  ;;  %v1858_v50 = vld [vmem:[%s18656_s2 + $0x11d8] sm:$0xff]  ;;  %v1473_v55 = vld [vmem:[%s18656_s2 + $0x5d0] sm:$0xff] }
 0x3be   : > { %11424 = vmatpush1.bf16.msra.mxu0 %v3181_v4  ;;  %8713 = vmatprep.subr.bf16.mxu1 %v2416_v5  ;;  %v3197_v4 = vunpack.c.h.s8.bf16 %v1849_v56  ;;  %v2432_v5 = vunpack.c.l.s8.bf16 %v1468_v1  ;;  %v1857_v56 = vld [vmem:[%s18656_s2 + $0x11d0] sm:$0xff] }
 0x3bf   : > { %11425 = vmatprep.subr.bf16.mxu0 %v3184_v6  ;;  %v3200_v6 = vunpack.c.l.s8.bf16 %v1852_v2 }
 0x3c0   : > { %8669 = vmatmul.mubr.bf16.gmra.mrb[24].mxu1 %v17187_v9  ;;  %v17211_v9 = vld [vmem:[%s18649_s23 + $0x670] ss:$392 sps:$4 sm:$0xff]  }
 0x3c1   : > { %11381 = vmatmul.mubr.bf16.gmra.mrb[24].mxu0 %v17188_v10  ;;  %8714 = vmatpush1.bf16.msra.mxu1 %v2415_v11  ;;  %v17212_v10 = vld [vmem:[%s18649_s23 + $0x730] ss:$392 sps:$4 sm:$0xff]   ;;  %v2431_v11 = vunpack.c.l.s8.bf16 %v1467_v7 }
 0x3c2   : > { %11426 = vmatpush1.bf16.msra.mxu0 %v3183_v12  ;;  %8715 = vmatprep.subr.bf16.mxu1 %v2418_v13  ;;  %v3199_v12 = vunpack.c.l.s8.bf16 %v1851_v8  ;;  %v2434_v13 = vunpack.c.h.s8.bf16 %v1468_v1  ;;  %v1476_v1 = vld [vmem:[%s18656_s2 + $0x5e8] sm:$0xff] }
 0x3c3   : > { %11427 = vmatprep.subr.bf16.mxu0 %v3186_v14  ;;  %8678 = vmatprep.mubr.bf16.mxu1 %v17189_v15  ;;  %v3202_v14 = vunpack.c.h.s8.bf16 %v1852_v2  ;;  %v17213_v15 = vld [vmem:[%s18649_s23 + $0x984] ss:$392 sps:$4 sm:$0xff]  }
 0x3c4   : > { %11390 = vmatprep.mubr.bf16.mxu0 %v17191_v16  ;;  %v17215_v16 = vld [vmem:[%s18649_s23 + $0xa44] ss:$392 sps:$4 sm:$0xff]  }
 0x3c5   : > { %8716 = vmatpush1.bf16.msra.mxu1 %v2417_v19  ;;  %v2433_v19 = vunpack.c.h.s8.bf16 %v1467_v7  ;;  %v1860_v2 = vld [vmem:[%s18656_s2 + $0x11e8] sm:$0xff]  ;;  %v1475_v7 = vld [vmem:[%s18656_s2 + $0x5e0] sm:$0xff] }
 0x3c6   : > { %11428 = vmatpush1.bf16.msra.mxu0 %v3185_v20  ;;  %8717 = vmatprep.subr.bf16.mxu1 %v2420_v21  ;;  %v3201_v20 = vunpack.c.h.s8.bf16 %v1851_v8  ;;  %v2436_v21 = vunpack.c.l.s8.bf16 %v1470_v17  ;;  %v1859_v8 = vld [vmem:[%s18656_s2 + $0x11e0] sm:$0xff] }
 0x3c7   : > { %11429 = vmatprep.subr.bf16.mxu0 %v3188_v22  ;;  %v3204_v22 = vunpack.c.l.s8.bf16 %v1854_v18 }
 0x3c8   : > { %8679 = vmatmul.mubr.bf16.gmra.mrb[28].mxu1 %v17193_v25  ;;  %v17217_v25 = vld [vmem:[%s18649_s23 + $0x980] ss:$392 sps:$4 sm:$0xff]  }
 0x3c9   : > { %11391 = vmatmul.mubr.bf16.gmra.mrb[28].mxu0 %v17194_v26  ;;  %8718 = vmatpush1.bf16.msra.mxu1 %v2419_v27  ;;  %v17218_v26 = vld [vmem:[%s18649_s23 + $0xa40] ss:$392 sps:$4 sm:$0xff]   ;;  %v2435_v27 = vunpack.c.l.s8.bf16 %v1469_v23 }
 0x3ca   : > { %11430 = vmatpush1.bf16.msra.mxu0 %v3187_v28  ;;  %8719 = vmatprep.subr.bf16.mxu1 %v2422_v29  ;;  %v3203_v28 = vunpack.c.l.s8.bf16 %v1853_v24  ;;  %v2438_v29 = vunpack.c.h.s8.bf16 %v1470_v17  ;;  %v1478_v17 = vld [vmem:[%s18656_s2 + $0x5f8] sm:$0xff] }
 0x3cb   : > { %11431 = vmatprep.subr.bf16.mxu0 %v3190_v30  ;;  %8721 = vmatprep.mubr.bf16.mxu1 %v17197_v31  ;;  %v3206_v30 = vunpack.c.h.s8.bf16 %v1854_v18  ;;  %v17219_v31 = vld [vmem:[%s18649_s23 + $0xc94] ss:$392 sps:$4 sm:$0xff]  }
 0x3cc   : > { %11433 = vmatprep.mubr.bf16.mxu0 %v17200_v32  ;;  %v17221_v32 = vld [vmem:[%s18649_s23 + $0xd54] ss:$392 sps:$4 sm:$0xff]  }
 0x3cd   : > { %8720 = vmatpush1.bf16.msra.mxu1 %v2421_v35  ;;  %v2437_v35 = vunpack.c.h.s8.bf16 %v1469_v23  ;;  %v1862_v18 = vld [vmem:[%s18656_s2 + $0x11f8] sm:$0xff]  ;;  %v1477_v23 = vld [vmem:[%s18656_s2 + $0x5f0] sm:$0xff] }
 0x3ce   : > { %11432 = vmatpush1.bf16.msra.mxu0 %v3189_v36  ;;  %8802 = vmatprep.subr.bf16.mxu1 %v2424_v37  ;;  %v3205_v36 = vunpack.c.h.s8.bf16 %v1853_v24  ;;  %v2440_v37 = vunpack.c.l.s8.bf16 %v1472_v33  ;;  %v1861_v24 = vld [vmem:[%s18656_s2 + $0x11f0] sm:$0xff] }
 0x3cf   : > { %11514 = vmatprep.subr.bf16.mxu0 %v3192_v38  ;;  %v3208_v38 = vunpack.c.l.s8.bf16 %v1856_v34 }
 0x3d0   : > { %8722 = vmatmul.mubr.bf16.vlgmr.msra.gmra.mrb[0].mxu1 %v17195_v41  ;;  %v17223_v41 = vld [vmem:[%s18649_s23 + $0xc90] ss:$392 sps:$4 sm:$0xff]  }
 0x3d1   : > { %11434 = vmatmul.mubr.bf16.vlgmr.msra.gmra.mrb[0].mxu0 %v17198_v42  ;;  %8803 = vmatpush1.bf16.msra.mxu1 %v2423_v43  ;;  %v17224_v42 = vld [vmem:[%s18649_s23 + $0xd50] ss:$392 sps:$4 sm:$0xff]   ;;  %v2439_v43 = vunpack.c.l.s8.bf16 %v1471_v39 }
 0x3d2   : > { %11515 = vmatpush1.bf16.msra.mxu0 %v3191_v44  ;;  %8804 = vmatprep.subr.bf16.mxu1 %v2426_v45  ;;  %v3207_v44 = vunpack.c.l.s8.bf16 %v1855_v40  ;;  %v2442_v45 = vunpack.c.h.s8.bf16 %v1472_v33  ;;  %v1480_v33 = vld [vmem:[%s18656_s2 + $0x608] sm:$0xff] }
 0x3d3   : > { %11516 = vmatprep.subr.bf16.mxu0 %v3194_v46  ;;  %8731 = vmatprep.mubr.bf16.mxu1 %v17201_v47  ;;  %v3210_v46 = vunpack.c.h.s8.bf16 %v1856_v34  ;;  %v17225_v47 = vld [vmem:[%s18649_s23 + $0xfa4] ss:$392 sps:$4 sm:$0xff]  }
 0x3d4   : > { %11443 = vmatprep.mubr.bf16.mxu0 %v17203_v48  ;;  %v17227_v48 = vld [vmem:[%s18649_s23 + $0x1064] ss:$392 sps:$4 sm:$0xff]  }
 0x3d5   : > { %8805 = vmatpush1.bf16.msra.mxu1 %v2425_v51  ;;  %v2441_v51 = vunpack.c.h.s8.bf16 %v1471_v39  ;;  %v1864_v34 = vld [vmem:[%s18656_s2 + $0x1208] sm:$0xff]  ;;  %v1479_v39 = vld [vmem:[%s18656_s2 + $0x600] sm:$0xff] }
 0x3d6   : > { %11517 = vmatpush1.bf16.msra.mxu0 %v3193_v52  ;;  %8806 = vmatprep.subr.bf16.mxu1 %v2428_v53  ;;  %v3209_v52 = vunpack.c.h.s8.bf16 %v1855_v40  ;;  %v2444_v53 = vunpack.c.l.s8.bf16 %v1474_v49  ;;  %v1863_v40 = vld [vmem:[%s18656_s2 + $0x1200] sm:$0xff] }
 0x3d7   : > { %11518 = vmatprep.subr.bf16.mxu0 %v3196_v54  ;;  %v3212_v54 = vunpack.c.l.s8.bf16 %v1858_v50 }
 0x3d8   : > { %8732 = vmatmul.mubr.bf16.gmra.mrb[4].mxu1 %v17205_v57  ;;  %v17229_v57 = vld [vmem:[%s18649_s23 + $0xfa0] ss:$392 sps:$4 sm:$0xff]  }
 0x3d9   : > { %11444 = vmatmul.mubr.bf16.gmra.mrb[4].mxu0 %v17206_v58  ;;  %8807 = vmatpush1.bf16.msra.mxu1 %v2427_v59  ;;  %v17230_v58 = vld [vmem:[%s18649_s23 + $0x1060] ss:$392 sps:$4 sm:$0xff]   ;;  %v2443_v59 = vunpack.c.l.s8.bf16 %v1473_v55 }
 0x3da   : > { %11519 = vmatpush1.bf16.msra.mxu0 %v3195_v60  ;;  %8808 = vmatprep.subr.bf16.mxu1 %v2430_v61  ;;  %v3211_v60 = vunpack.c.l.s8.bf16 %v1857_v56  ;;  %v2446_v61 = vunpack.c.h.s8.bf16 %v1474_v49  ;;  %v1482_v49 = vld [vmem:[%s18656_s2 + $0x618] sm:$0xff] }
 0x3db   : > { %11520 = vmatprep.subr.bf16.mxu0 %v3198_v62  ;;  %8741 = vmatprep.mubr.bf16.mxu1 %v17207_v63  ;;  %v3214_v62 = vunpack.c.h.s8.bf16 %v1858_v50  ;;  %v17231_v63 = vld [vmem:[%s18649_s23 + $0x12b4] ss:$392 sps:$4 sm:$0xff]  }
 0x3dc   : > { %11453 = vmatprep.mubr.bf16.mxu0 %v17209_v0  ;;  %v17233_v0 = vld [vmem:[%s18649_s23 + $0x1374] ss:$392 sps:$4 sm:$0xff]  }
 0x3dd   : > { %8809 = vmatpush1.bf16.msra.mxu1 %v2429_v3  ;;  %v2445_v3 = vunpack.c.h.s8.bf16 %v1473_v55  ;;  %v1866_v50 = vld [vmem:[%s18656_s2 + $0x1218] sm:$0xff]  ;;  %v1481_v55 = vld [vmem:[%s18656_s2 + $0x610] sm:$0xff] }
 0x3de   : > { %11521 = vmatpush1.bf16.msra.mxu0 %v3197_v4  ;;  %8810 = vmatprep.subr.bf16.mxu1 %v2432_v5  ;;  %v3213_v4 = vunpack.c.h.s8.bf16 %v1857_v56  ;;  %v2448_v5 = vunpack.c.l.s8.bf16 %v1476_v1  ;;  %v1865_v56 = vld [vmem:[%s18656_s2 + $0x1210] sm:$0xff] }
 0x3df   : > { %11522 = vmatprep.subr.bf16.mxu0 %v3200_v6  ;;  %v3216_v6 = vunpack.c.l.s8.bf16 %v1860_v2 }
 0x3e0   : > { %8742 = vmatmul.mubr.bf16.gmra.mrb[8].mxu1 %v17211_v9  ;;  %v17235_v9 = vld [vmem:[%s18649_s23 + $0x12b0] ss:$392 sps:$4 sm:$0xff]  }
 0x3e1   : > { %11454 = vmatmul.mubr.bf16.gmra.mrb[8].mxu0 %v17212_v10  ;;  %8811 = vmatpush1.bf16.msra.mxu1 %v2431_v11  ;;  %v17236_v10 = vld [vmem:[%s18649_s23 + $0x1370] ss:$392 sps:$4 sm:$0xff]   ;;  %v2447_v11 = vunpack.c.l.s8.bf16 %v1475_v7 }
 0x3e2   : > { %11523 = vmatpush1.bf16.msra.mxu0 %v3199_v12  ;;  %8812 = vmatprep.subr.bf16.mxu1 %v2434_v13  ;;  %v3215_v12 = vunpack.c.l.s8.bf16 %v1859_v8  ;;  %v2450_v13 = vunpack.c.h.s8.bf16 %v1476_v1  ;;  %v1484_v1 = vld [vmem:[%s18656_s2 + $0x628] sm:$0xff] }
 0x3e3   : > { %11524 = vmatprep.subr.bf16.mxu0 %v3202_v14  ;;  %8751 = vmatprep.mubr.bf16.mxu1 %v17213_v15  ;;  %v3218_v14 = vunpack.c.h.s8.bf16 %v1860_v2  ;;  %v17237_v15 = vld [vmem:[%s18649_s23 + $0x15c4] ss:$392 sps:$4 sm:$0xff]  }
 0x3e4   : > { %11463 = vmatprep.mubr.bf16.mxu0 %v17215_v16  ;;  %v17239_v16 = vld [vmem:[%s18649_s23 + $0x1684] ss:$392 sps:$4 sm:$0xff]  }
 0x3e5   : > { %8813 = vmatpush1.bf16.msra.mxu1 %v2433_v19  ;;  %v2449_v19 = vunpack.c.h.s8.bf16 %v1475_v7  ;;  %v1868_v2 = vld [vmem:[%s18656_s2 + $0x1228] sm:$0xff]  ;;  %v1483_v7 = vld [vmem:[%s18656_s2 + $0x620] sm:$0xff] }
 0x3e6   : > { %11525 = vmatpush1.bf16.msra.mxu0 %v3201_v20  ;;  %8814 = vmatprep.subr.bf16.mxu1 %v2436_v21  ;;  %v3217_v20 = vunpack.c.h.s8.bf16 %v1859_v8  ;;  %v2452_v21 = vunpack.c.l.s8.bf16 %v1478_v17  ;;  %v1867_v8 = vld [vmem:[%s18656_s2 + $0x1220] sm:$0xff] }
 0x3e7   : > { %11526 = vmatprep.subr.bf16.mxu0 %v3204_v22  ;;  %v3220_v22 = vunpack.c.l.s8.bf16 %v1862_v18 }
 0x3e8   : > { %8752 = vmatmul.mubr.bf16.gmra.mrb[12].mxu1 %v17217_v25  ;;  %v17241_v25 = vld [vmem:[%s18649_s23 + $0x15c0] ss:$392 sps:$4 sm:$0xff]  }
 0x3e9   : > { %11464 = vmatmul.mubr.bf16.gmra.mrb[12].mxu0 %v17218_v26  ;;  %8815 = vmatpush1.bf16.msra.mxu1 %v2435_v27  ;;  %v17242_v26 = vld [vmem:[%s18649_s23 + $0x1680] ss:$392 sps:$4 sm:$0xff]   ;;  %v2451_v27 = vunpack.c.l.s8.bf16 %v1477_v23 }
 0x3ea   : > { %11527 = vmatpush1.bf16.msra.mxu0 %v3203_v28  ;;  %8816 = vmatprep.subr.bf16.mxu1 %v2438_v29  ;;  %v3219_v28 = vunpack.c.l.s8.bf16 %v1861_v24  ;;  %v2454_v29 = vunpack.c.h.s8.bf16 %v1478_v17  ;;  %v1486_v17 = vld [vmem:[%s18656_s2 + $0x638] sm:$0xff] }
 0x3eb   : > { %11528 = vmatprep.subr.bf16.mxu0 %v3206_v30  ;;  %8761 = vmatprep.mubr.bf16.mxu1 %v17219_v31  ;;  %v3222_v30 = vunpack.c.h.s8.bf16 %v1862_v18  ;;  %v17245_v31 = vld [vmem:[%s18649_s23 + $0x5c] ss:$392 sps:$4 sm:$0xff]  }
 0x3ec   : > { %11473 = vmatprep.mubr.bf16.mxu0 %v17221_v32  ;;  %v17248_v32 = vld [vmem:[%s18649_s23 + $0x11c] ss:$392 sps:$4 sm:$0xff]  }
 0x3ed   : > { %8817 = vmatpush1.bf16.msra.mxu1 %v2437_v35  ;;  %v2453_v35 = vunpack.c.h.s8.bf16 %v1477_v23  ;;  %v1870_v18 = vld [vmem:[%s18656_s2 + $0x1238] sm:$0xff]  ;;  %v1485_v23 = vld [vmem:[%s18656_s2 + $0x630] sm:$0xff] }
 0x3ee   : > { %11529 = vmatpush1.bf16.msra.mxu0 %v3205_v36  ;;  %8818 = vmatprep.subr.bf16.mxu1 %v2440_v37  ;;  %v3221_v36 = vunpack.c.h.s8.bf16 %v1861_v24  ;;  %v2456_v37 = vunpack.c.l.s8.bf16 %v1480_v33  ;;  %v1869_v24 = vld [vmem:[%s18656_s2 + $0x1230] sm:$0xff] }
 0x3ef   : > { %11530 = vmatprep.subr.bf16.mxu0 %v3208_v38  ;;  %v3224_v38 = vunpack.c.l.s8.bf16 %v1864_v34 }
 0x3f0   : > { %8762 = vmatmul.mubr.bf16.gmra.mrb[16].mxu1 %v17223_v41  ;;  %v17243_v41 = vld [vmem:[%s18649_s23 + $0x58] ss:$392 sps:$4 sm:$0xff]  }
 0x3f1   : > { %11474 = vmatmul.mubr.bf16.gmra.mrb[16].mxu0 %v17224_v42  ;;  %8819 = vmatpush1.bf16.msra.mxu1 %v2439_v43  ;;  %v17246_v42 = vld [vmem:[%s18649_s23 + $0x118] ss:$392 sps:$4 sm:$0xff]   ;;  %v2455_v43 = vunpack.c.l.s8.bf16 %v1479_v39 }
 0x3f2   : > { %11531 = vmatpush1.bf16.msra.mxu0 %v3207_v44  ;;  %8820 = vmatprep.subr.bf16.mxu1 %v2442_v45  ;;  %v3223_v44 = vunpack.c.l.s8.bf16 %v1863_v40  ;;  %v2458_v45 = vunpack.c.h.s8.bf16 %v1480_v33  ;;  %v1488_v33 = vld [vmem:[%s18656_s2 + $0x648] sm:$0xff] }
 0x3f3   : > { %11532 = vmatprep.subr.bf16.mxu0 %v3210_v46  ;;  %8771 = vmatprep.mubr.bf16.mxu1 %v17225_v47  ;;  %v3226_v46 = vunpack.c.h.s8.bf16 %v1864_v34  ;;  %v17249_v47 = vld [vmem:[%s18649_s23 + $0x36c] ss:$392 sps:$4 sm:$0xff]  }
 0x3f4   : > { %11483 = vmatprep.mubr.bf16.mxu0 %v17227_v48  ;;  %v17251_v48 = vld [vmem:[%s18649_s23 + $0x42c] ss:$392 sps:$4 sm:$0xff]  }
 0x3f5   : > { %8821 = vmatpush1.bf16.msra.mxu1 %v2441_v51  ;;  %v2457_v51 = vunpack.c.h.s8.bf16 %v1479_v39  ;;  %v1872_v34 = vld [vmem:[%s18656_s2 + $0x1248] sm:$0xff]  ;;  %v1487_v39 = vld [vmem:[%s18656_s2 + $0x640] sm:$0xff] }
 0x3f6   : > { %11533 = vmatpush1.bf16.msra.mxu0 %v3209_v52  ;;  %8822 = vmatprep.subr.bf16.mxu1 %v2444_v53  ;;  %v3225_v52 = vunpack.c.h.s8.bf16 %v1863_v40  ;;  %v2460_v53 = vunpack.c.l.s8.bf16 %v1482_v49  ;;  %v1871_v40 = vld [vmem:[%s18656_s2 + $0x1240] sm:$0xff] }
 0x3f7   : > { %11534 = vmatprep.subr.bf16.mxu0 %v3212_v54  ;;  %v3228_v54 = vunpack.c.l.s8.bf16 %v1866_v50 }
 0x3f8   : > { %8772 = vmatmul.mubr.bf16.gmra.mrb[20].mxu1 %v17229_v57  ;;  %v17253_v57 = vld [vmem:[%s18649_s23 + $0x368] ss:$392 sps:$4 sm:$0xff]  }
 0x3f9   : > { %11484 = vmatmul.mubr.bf16.gmra.mrb[20].mxu0 %v17230_v58  ;;  %8823 = vmatpush1.bf16.msra.mxu1 %v2443_v59  ;;  %v17254_v58 = vld [vmem:[%s18649_s23 + $0x428] ss:$392 sps:$4 sm:$0xff]   ;;  %v2459_v59 = vunpack.c.l.s8.bf16 %v1481_v55 }
 0x3fa   : > { %11535 = vmatpush1.bf16.msra.mxu0 %v3211_v60  ;;  %8824 = vmatprep.subr.bf16.mxu1 %v2446_v61  ;;  %v3227_v60 = vunpack.c.l.s8.bf16 %v1865_v56  ;;  %v2462_v61 = vunpack.c.h.s8.bf16 %v1482_v49  ;;  %v1490_v49 = vld [vmem:[%s18656_s2 + $0x658] sm:$0xff] }
 0x3fb   : > { %11536 = vmatprep.subr.bf16.mxu0 %v3214_v62  ;;  %8781 = vmatprep.mubr.bf16.mxu1 %v17231_v63  ;;  %v3230_v62 = vunpack.c.h.s8.bf16 %v1866_v50  ;;  %v17255_v63 = vld [vmem:[%s18649_s23 + $0x67c] ss:$392 sps:$4 sm:$0xff]  }
 0x3fc   : > { %11493 = vmatprep.mubr.bf16.mxu0 %v17233_v0  ;;  %v17257_v0 = vld [vmem:[%s18649_s23 + $0x73c] ss:$392 sps:$4 sm:$0xff]  }
 0x3fd   : > { %8825 = vmatpush1.bf16.msra.mxu1 %v2445_v3  ;;  %v2461_v3 = vunpack.c.h.s8.bf16 %v1481_v55  ;;  %v1874_v50 = vld [vmem:[%s18656_s2 + $0x1258] sm:$0xff]  ;;  %v1489_v55 = vld [vmem:[%s18656_s2 + $0x650] sm:$0xff] }
 0x3fe   : > { %11537 = vmatpush1.bf16.msra.mxu0 %v3213_v4  ;;  %8826 = vmatprep.subr.bf16.mxu1 %v2448_v5  ;;  %v3229_v4 = vunpack.c.h.s8.bf16 %v1865_v56  ;;  %v2464_v5 = vunpack.c.l.s8.bf16 %v1484_v1  ;;  %v1873_v56 = vld [vmem:[%s18656_s2 + $0x1250] sm:$0xff] }
 0x3ff   : > { %11538 = vmatprep.subr.bf16.mxu0 %v3216_v6  ;;  %v3232_v6 = vunpack.c.l.s8.bf16 %v1868_v2 }
 0x400   : > { %8782 = vmatmul.mubr.bf16.gmra.mrb[24].mxu1 %v17235_v9  ;;  %v17259_v9 = vld [vmem:[%s18649_s23 + $0x678] ss:$392 sps:$4 sm:$0xff]  }
 0x401   : > { %11494 = vmatmul.mubr.bf16.gmra.mrb[24].mxu0 %v17236_v10  ;;  %8827 = vmatpush1.bf16.msra.mxu1 %v2447_v11  ;;  %v17260_v10 = vld [vmem:[%s18649_s23 + $0x738] ss:$392 sps:$4 sm:$0xff]   ;;  %v2463_v11 = vunpack.c.l.s8.bf16 %v1483_v7 }
 0x402   : > { %11539 = vmatpush1.bf16.msra.mxu0 %v3215_v12  ;;  %8828 = vmatprep.subr.bf16.mxu1 %v2450_v13  ;;  %v3231_v12 = vunpack.c.l.s8.bf16 %v1867_v8  ;;  %v2466_v13 = vunpack.c.h.s8.bf16 %v1484_v1  ;;  %v1492_v1 = vld [vmem:[%s18656_s2 + $0x668] sm:$0xff] }
 0x403   : > { %11540 = vmatprep.subr.bf16.mxu0 %v3218_v14  ;;  %8791 = vmatprep.mubr.bf16.mxu1 %v17237_v15  ;;  %v3234_v14 = vunpack.c.h.s8.bf16 %v1868_v2  ;;  %v17261_v15 = vld [vmem:[%s18649_s23 + $0x98c] ss:$392 sps:$4 sm:$0xff]  }
 0x404   : > { %11503 = vmatprep.mubr.bf16.mxu0 %v17239_v16  ;;  %v17263_v16 = vld [vmem:[%s18649_s23 + $0xa4c] ss:$392 sps:$4 sm:$0xff]  }
 0x405   : > { %8829 = vmatpush1.bf16.msra.mxu1 %v2449_v19  ;;  %v2465_v19 = vunpack.c.h.s8.bf16 %v1483_v7  ;;  %v1876_v2 = vld [vmem:[%s18656_s2 + $0x1268] sm:$0xff]  ;;  %v1491_v7 = vld [vmem:[%s18656_s2 + $0x660] sm:$0xff] }
 0x406   : > { %11541 = vmatpush1.bf16.msra.mxu0 %v3217_v20  ;;  %8830 = vmatprep.subr.bf16.mxu1 %v2452_v21  ;;  %v3233_v20 = vunpack.c.h.s8.bf16 %v1867_v8  ;;  %v2468_v21 = vunpack.c.l.s8.bf16 %v1486_v17  ;;  %v1875_v8 = vld [vmem:[%s18656_s2 + $0x1260] sm:$0xff] }
 0x407   : > { %11542 = vmatprep.subr.bf16.mxu0 %v3220_v22  ;;  %v3236_v22 = vunpack.c.l.s8.bf16 %v1870_v18 }
 0x408   : > { %8792 = vmatmul.mubr.bf16.gmra.mrb[28].mxu1 %v17241_v25  ;;  %v17265_v25 = vld [vmem:[%s18649_s23 + $0x988] ss:$392 sps:$4 sm:$0xff]  }
 0x409   : > { %11504 = vmatmul.mubr.bf16.gmra.mrb[28].mxu0 %v17242_v26  ;;  %8831 = vmatpush1.bf16.msra.mxu1 %v2451_v27  ;;  %v17266_v26 = vld [vmem:[%s18649_s23 + $0xa48] ss:$392 sps:$4 sm:$0xff]   ;;  %v2467_v27 = vunpack.c.l.s8.bf16 %v1485_v23 }
 0x40a   : > { %11543 = vmatpush1.bf16.msra.mxu0 %v3219_v28  ;;  %8832 = vmatprep.subr.bf16.mxu1 %v2454_v29  ;;  %v3235_v28 = vunpack.c.l.s8.bf16 %v1869_v24  ;;  %v2470_v29 = vunpack.c.h.s8.bf16 %v1486_v17  ;;  %v1494_v17 = vld [vmem:[%s18656_s2 + $0x678] sm:$0xff] }
 0x40b   : > { %11544 = vmatprep.subr.bf16.mxu0 %v3222_v30  ;;  %8834 = vmatprep.mubr.bf16.mxu1 %v17245_v31  ;;  %v3238_v30 = vunpack.c.h.s8.bf16 %v1870_v18  ;;  %v17267_v31 = vld [vmem:[%s18649_s23 + $0xc9c] ss:$392 sps:$4 sm:$0xff]  }
 0x40c   : > { %11546 = vmatprep.mubr.bf16.mxu0 %v17248_v32  ;;  %v17269_v32 = vld [vmem:[%s18649_s23 + $0xd5c] ss:$392 sps:$4 sm:$0xff]  }
 0x40d   : > { %8833 = vmatpush1.bf16.msra.mxu1 %v2453_v35  ;;  %v2469_v35 = vunpack.c.h.s8.bf16 %v1485_v23  ;;  %v1878_v18 = vld [vmem:[%s18656_s2 + $0x1278] sm:$0xff]  ;;  %v1493_v23 = vld [vmem:[%s18656_s2 + $0x670] sm:$0xff] }
 0x40e   : > { %11545 = vmatpush1.bf16.msra.mxu0 %v3221_v36  ;;  %8915 = vmatprep.subr.bf16.mxu1 %v2456_v37  ;;  %v3237_v36 = vunpack.c.h.s8.bf16 %v1869_v24  ;;  %v2472_v37 = vunpack.c.l.s8.bf16 %v1488_v33  ;;  %v1877_v24 = vld [vmem:[%s18656_s2 + $0x1270] sm:$0xff] }
 0x40f   : > { %11627 = vmatprep.subr.bf16.mxu0 %v3224_v38  ;;  %v3240_v38 = vunpack.c.l.s8.bf16 %v1872_v34 }
 0x410   : > { %8835 = vmatmul.mubr.bf16.vlgmr.msra.gmra.mrb[0].mxu1 %v17243_v41  ;;  %v17271_v41 = vld [vmem:[%s18649_s23 + $0xc98] ss:$392 sps:$4 sm:$0xff]  }
 0x411   : > { %11547 = vmatmul.mubr.bf16.vlgmr.msra.gmra.mrb[0].mxu0 %v17246_v42  ;;  %8916 = vmatpush1.bf16.msra.mxu1 %v2455_v43  ;;  %v17272_v42 = vld [vmem:[%s18649_s23 + $0xd58] ss:$392 sps:$4 sm:$0xff]   ;;  %v2471_v43 = vunpack.c.l.s8.bf16 %v1487_v39 }
 0x412   : > { %11628 = vmatpush1.bf16.msra.mxu0 %v3223_v44  ;;  %8917 = vmatprep.subr.bf16.mxu1 %v2458_v45  ;;  %v3239_v44 = vunpack.c.l.s8.bf16 %v1871_v40  ;;  %v2474_v45 = vunpack.c.h.s8.bf16 %v1488_v33  ;;  %v1496_v33 = vld [vmem:[%s18656_s2 + $0x688] sm:$0xff] }
 0x413   : > { %11629 = vmatprep.subr.bf16.mxu0 %v3226_v46  ;;  %8844 = vmatprep.mubr.bf16.mxu1 %v17249_v47  ;;  %v3242_v46 = vunpack.c.h.s8.bf16 %v1872_v34  ;;  %v17273_v47 = vld [vmem:[%s18649_s23 + $0xfac] ss:$392 sps:$4 sm:$0xff]  }
 0x414   : > { %11556 = vmatprep.mubr.bf16.mxu0 %v17251_v48  ;;  %v17275_v48 = vld [vmem:[%s18649_s23 + $0x106c] ss:$392 sps:$4 sm:$0xff]  }
 0x415   : > { %8918 = vmatpush1.bf16.msra.mxu1 %v2457_v51  ;;  %v2473_v51 = vunpack.c.h.s8.bf16 %v1487_v39  ;;  %v1880_v34 = vld [vmem:[%s18656_s2 + $0x1288] sm:$0xff]  ;;  %v1495_v39 = vld [vmem:[%s18656_s2 + $0x680] sm:$0xff] }
 0x416   : > { %11630 = vmatpush1.bf16.msra.mxu0 %v3225_v52  ;;  %8919 = vmatprep.subr.bf16.mxu1 %v2460_v53  ;;  %v3241_v52 = vunpack.c.h.s8.bf16 %v1871_v40  ;;  %v2476_v53 = vunpack.c.l.s8.bf16 %v1490_v49  ;;  %v1879_v40 = vld [vmem:[%s18656_s2 + $0x1280] sm:$0xff] }
 0x417   : > { %11631 = vmatprep.subr.bf16.mxu0 %v3228_v54  ;;  %v3244_v54 = vunpack.c.l.s8.bf16 %v1874_v50 }
 0x418   : > { %8845 = vmatmul.mubr.bf16.gmra.mrb[4].mxu1 %v17253_v57  ;;  %v17277_v57 = vld [vmem:[%s18649_s23 + $0xfa8] ss:$392 sps:$4 sm:$0xff]  }
 0x419   : > { %11557 = vmatmul.mubr.bf16.gmra.mrb[4].mxu0 %v17254_v58  ;;  %8920 = vmatpush1.bf16.msra.mxu1 %v2459_v59  ;;  %v17278_v58 = vld [vmem:[%s18649_s23 + $0x1068] ss:$392 sps:$4 sm:$0xff]   ;;  %v2475_v59 = vunpack.c.l.s8.bf16 %v1489_v55 }
 0x41a   : > { %11632 = vmatpush1.bf16.msra.mxu0 %v3227_v60  ;;  %8921 = vmatprep.subr.bf16.mxu1 %v2462_v61  ;;  %v3243_v60 = vunpack.c.l.s8.bf16 %v1873_v56  ;;  %v2478_v61 = vunpack.c.h.s8.bf16 %v1490_v49  ;;  %v1498_v49 = vld [vmem:[%s18656_s2 + $0x698] sm:$0xff] }
 0x41b   : > { %11633 = vmatprep.subr.bf16.mxu0 %v3230_v62  ;;  %8854 = vmatprep.mubr.bf16.mxu1 %v17255_v63  ;;  %v3246_v62 = vunpack.c.h.s8.bf16 %v1874_v50  ;;  %v17279_v63 = vld [vmem:[%s18649_s23 + $0x12bc] ss:$392 sps:$4 sm:$0xff]  }
 0x41c   : > { %11566 = vmatprep.mubr.bf16.mxu0 %v17257_v0  ;;  %v17281_v0 = vld [vmem:[%s18649_s23 + $0x137c] ss:$392 sps:$4 sm:$0xff]  }
 0x41d   : > { %8922 = vmatpush1.bf16.msra.mxu1 %v2461_v3  ;;  %v2477_v3 = vunpack.c.h.s8.bf16 %v1489_v55  ;;  %v1882_v50 = vld [vmem:[%s18656_s2 + $0x1298] sm:$0xff]  ;;  %v1497_v55 = vld [vmem:[%s18656_s2 + $0x690] sm:$0xff] }
 0x41e   : > { %11634 = vmatpush1.bf16.msra.mxu0 %v3229_v4  ;;  %8923 = vmatprep.subr.bf16.mxu1 %v2464_v5  ;;  %v3245_v4 = vunpack.c.h.s8.bf16 %v1873_v56  ;;  %v2480_v5 = vunpack.c.l.s8.bf16 %v1492_v1  ;;  %v1881_v56 = vld [vmem:[%s18656_s2 + $0x1290] sm:$0xff] }
 0x41f   : > { %11635 = vmatprep.subr.bf16.mxu0 %v3232_v6  ;;  %v3248_v6 = vunpack.c.l.s8.bf16 %v1876_v2 }
 0x420   : > { %8855 = vmatmul.mubr.bf16.gmra.mrb[8].mxu1 %v17259_v9  ;;  %v17283_v9 = vld [vmem:[%s18649_s23 + $0x12b8] ss:$392 sps:$4 sm:$0xff]  }
 0x421   : > { %11567 = vmatmul.mubr.bf16.gmra.mrb[8].mxu0 %v17260_v10  ;;  %8924 = vmatpush1.bf16.msra.mxu1 %v2463_v11  ;;  %v17284_v10 = vld [vmem:[%s18649_s23 + $0x1378] ss:$392 sps:$4 sm:$0xff]   ;;  %v2479_v11 = vunpack.c.l.s8.bf16 %v1491_v7 }
 0x422   : > { %11636 = vmatpush1.bf16.msra.mxu0 %v3231_v12  ;;  %8925 = vmatprep.subr.bf16.mxu1 %v2466_v13  ;;  %v3247_v12 = vunpack.c.l.s8.bf16 %v1875_v8  ;;  %v2482_v13 = vunpack.c.h.s8.bf16 %v1492_v1  ;;  %v1500_v1 = vld [vmem:[%s18656_s2 + $0x6a8] sm:$0xff] }
 0x423   : > { %11637 = vmatprep.subr.bf16.mxu0 %v3234_v14  ;;  %8864 = vmatprep.mubr.bf16.mxu1 %v17261_v15  ;;  %v3250_v14 = vunpack.c.h.s8.bf16 %v1876_v2  ;;  %v17285_v15 = vld [vmem:[%s18649_s23 + $0x15cc] ss:$392 sps:$4 sm:$0xff]  }
 0x424   : > { %11576 = vmatprep.mubr.bf16.mxu0 %v17263_v16  ;;  %v17287_v16 = vld [vmem:[%s18649_s23 + $0x168c] ss:$392 sps:$4 sm:$0xff]  }
 0x425   : > { %8926 = vmatpush1.bf16.msra.mxu1 %v2465_v19  ;;  %v2481_v19 = vunpack.c.h.s8.bf16 %v1491_v7  ;;  %v1884_v2 = vld [vmem:[%s18656_s2 + $0x12a8] sm:$0xff]  ;;  %v1499_v7 = vld [vmem:[%s18656_s2 + $0x6a0] sm:$0xff] }
 0x426   : > { %11638 = vmatpush1.bf16.msra.mxu0 %v3233_v20  ;;  %8927 = vmatprep.subr.bf16.mxu1 %v2468_v21  ;;  %v3249_v20 = vunpack.c.h.s8.bf16 %v1875_v8  ;;  %v2484_v21 = vunpack.c.l.s8.bf16 %v1494_v17  ;;  %v1883_v8 = vld [vmem:[%s18656_s2 + $0x12a0] sm:$0xff] }
 0x427   : > { %11639 = vmatprep.subr.bf16.mxu0 %v3236_v22  ;;  %v3252_v22 = vunpack.c.l.s8.bf16 %v1878_v18 }
 0x428   : > { %8865 = vmatmul.mubr.bf16.gmra.mrb[12].mxu1 %v17265_v25  ;;  %v17289_v25 = vld [vmem:[%s18649_s23 + $0x15c8] ss:$392 sps:$4 sm:$0xff]  }
 0x429   : > { %11577 = vmatmul.mubr.bf16.gmra.mrb[12].mxu0 %v17266_v26  ;;  %8928 = vmatpush1.bf16.msra.mxu1 %v2467_v27  ;;  %v17290_v26 = vld [vmem:[%s18649_s23 + $0x1688] ss:$392 sps:$4 sm:$0xff]   ;;  %v2483_v27 = vunpack.c.l.s8.bf16 %v1493_v23 }
 0x42a   : > { %11640 = vmatpush1.bf16.msra.mxu0 %v3235_v28  ;;  %8929 = vmatprep.subr.bf16.mxu1 %v2470_v29  ;;  %v3251_v28 = vunpack.c.l.s8.bf16 %v1877_v24  ;;  %v2486_v29 = vunpack.c.h.s8.bf16 %v1494_v17  ;;  %v1502_v17 = vld [vmem:[%s18656_s2 + $0x6b8] sm:$0xff] }
 0x42b   : > { %11641 = vmatprep.subr.bf16.mxu0 %v3238_v30  ;;  %8874 = vmatprep.mubr.bf16.mxu1 %v17267_v31  ;;  %v3254_v30 = vunpack.c.h.s8.bf16 %v1878_v18  ;;  %v17293_v31 = vld [vmem:[%s18649_s23 + $0x64] ss:$392 sps:$4 sm:$0xff]   ;;  %v1886_v18 = vld [vmem:[%s18656_s2 + $0x12b8] sm:$0xff] }
 0x42c   : > { %11586 = vmatprep.mubr.bf16.mxu0 %v17269_v32  ;;  %v17296_v32 = vld [vmem:[%s18649_s23 + $0x124] ss:$392 sps:$4 sm:$0xff]  }
 0x42d   : > { %8930 = vmatpush1.bf16.msra.mxu1 %v2469_v35  ;;  %v2485_v35 = vunpack.c.h.s8.bf16 %v1493_v23  ;;  %v1501_v23 = vld [vmem:[%s18656_s2 + $0x6b0] sm:$0xff] }
 0x42e   : > { %11642 = vmatpush1.bf16.msra.mxu0 %v3237_v36  ;;  %8931 = vmatprep.subr.bf16.mxu1 %v2472_v37  ;;  %v3253_v36 = vunpack.c.h.s8.bf16 %v1877_v24  ;;  %v2488_v37 = vunpack.c.l.s8.bf16 %v1496_v33  ;;  %v1885_v24 = vld [vmem:[%s18656_s2 + $0x12b0] sm:$0xff] }
 0x42f   : > { %11643 = vmatprep.subr.bf16.mxu0 %v3240_v38  ;;  %v3256_v38 = vunpack.c.l.s8.bf16 %v1880_v34 }
 0x430   : > { %8875 = vmatmul.mubr.bf16.gmra.mrb[16].mxu1 %v17271_v41  ;;  %v17291_v41 = vld [vmem:[%s18649_s23 + $0x60] ss:$392 sps:$4 sm:$0xff]  }
 0x431   : > { %11587 = vmatmul.mubr.bf16.gmra.mrb[16].mxu0 %v17272_v42  ;;  %8932 = vmatpush1.bf16.msra.mxu1 %v2471_v43  ;;  %v17294_v42 = vld [vmem:[%s18649_s23 + $0x120] ss:$392 sps:$4 sm:$0xff]   ;;  %v2487_v43 = vunpack.c.l.s8.bf16 %v1495_v39 }
 0x432   : > { %11644 = vmatpush1.bf16.msra.mxu0 %v3239_v44  ;;  %8933 = vmatprep.subr.bf16.mxu1 %v2474_v45  ;;  %v3255_v44 = vunpack.c.l.s8.bf16 %v1879_v40  ;;  %v2490_v45 = vunpack.c.h.s8.bf16 %v1496_v33  ;;  %v1504_v33 = vld [vmem:[%s18656_s2 + $0x6c8] sm:$0xff] }
 0x433   : > { %11645 = vmatprep.subr.bf16.mxu0 %v3242_v46  ;;  %8884 = vmatprep.mubr.bf16.mxu1 %v17273_v47  ;;  %v3258_v46 = vunpack.c.h.s8.bf16 %v1880_v34  ;;  %v17297_v47 = vld [vmem:[%s18649_s23 + $0x374] ss:$392 sps:$4 sm:$0xff]   ;;  %v1888_v34 = vld [vmem:[%s18656_s2 + $0x12c8] sm:$0xff] }
 0x434   : > { %11596 = vmatprep.mubr.bf16.mxu0 %v17275_v48  ;;  %v17299_v48 = vld [vmem:[%s18649_s23 + $0x434] ss:$392 sps:$4 sm:$0xff]  }
 0x435   : > { %8934 = vmatpush1.bf16.msra.mxu1 %v2473_v51  ;;  %v2489_v51 = vunpack.c.h.s8.bf16 %v1495_v39  ;;  %v1503_v39 = vld [vmem:[%s18656_s2 + $0x6c0] sm:$0xff] }
 0x436   : > { %11646 = vmatpush1.bf16.msra.mxu0 %v3241_v52  ;;  %8935 = vmatprep.subr.bf16.mxu1 %v2476_v53  ;;  %v3257_v52 = vunpack.c.h.s8.bf16 %v1879_v40  ;;  %v2492_v53 = vunpack.c.l.s8.bf16 %v1498_v49  ;;  %v1887_v40 = vld [vmem:[%s18656_s2 + $0x12c0] sm:$0xff] }
 0x437   : > { %11647 = vmatprep.subr.bf16.mxu0 %v3244_v54  ;;  %v3260_v54 = vunpack.c.l.s8.bf16 %v1882_v50 }
 0x438   : > { %8885 = vmatmul.mubr.bf16.gmra.mrb[20].mxu1 %v17277_v57  ;;  %v17301_v57 = vld [vmem:[%s18649_s23 + $0x370] ss:$392 sps:$4 sm:$0xff]  }
 0x439   : > { %11597 = vmatmul.mubr.bf16.gmra.mrb[20].mxu0 %v17278_v58  ;;  %8936 = vmatpush1.bf16.msra.mxu1 %v2475_v59  ;;  %v17302_v58 = vld [vmem:[%s18649_s23 + $0x430] ss:$392 sps:$4 sm:$0xff]   ;;  %v2491_v59 = vunpack.c.l.s8.bf16 %v1497_v55 }
 0x43a   : > { %11648 = vmatpush1.bf16.msra.mxu0 %v3243_v60  ;;  %8937 = vmatprep.subr.bf16.mxu1 %v2478_v61  ;;  %v3259_v60 = vunpack.c.l.s8.bf16 %v1881_v56  ;;  %v2494_v61 = vunpack.c.h.s8.bf16 %v1498_v49  ;;  %v1506_v49 = vld [vmem:[%s18656_s2 + $0x6d8] sm:$0xff] }
 0x43b   : > { %11649 = vmatprep.subr.bf16.mxu0 %v3246_v62  ;;  %8894 = vmatprep.mubr.bf16.mxu1 %v17279_v63  ;;  %v3262_v62 = vunpack.c.h.s8.bf16 %v1882_v50  ;;  %v17303_v63 = vld [vmem:[%s18649_s23 + $0x684] ss:$392 sps:$4 sm:$0xff]   ;;  %v1890_v50 = vld [vmem:[%s18656_s2 + $0x12d8] sm:$0xff] }
 0x43c   : > { %11606 = vmatprep.mubr.bf16.mxu0 %v17281_v0  ;;  %v17305_v0 = vld [vmem:[%s18649_s23 + $0x744] ss:$392 sps:$4 sm:$0xff]  }
 0x43d   : > { %8938 = vmatpush1.bf16.msra.mxu1 %v2477_v3  ;;  %v2493_v3 = vunpack.c.h.s8.bf16 %v1497_v55  ;;  %v1505_v55 = vld [vmem:[%s18656_s2 + $0x6d0] sm:$0xff] }
 0x43e   : > { %11650 = vmatpush1.bf16.msra.mxu0 %v3245_v4  ;;  %8939 = vmatprep.subr.bf16.mxu1 %v2480_v5  ;;  %v3261_v4 = vunpack.c.h.s8.bf16 %v1881_v56  ;;  %v2496_v5 = vunpack.c.l.s8.bf16 %v1500_v1  ;;  %v1889_v56 = vld [vmem:[%s18656_s2 + $0x12d0] sm:$0xff] }
 0x43f   : > { %11651 = vmatprep.subr.bf16.mxu0 %v3248_v6  ;;  %v3264_v6 = vunpack.c.l.s8.bf16 %v1884_v2 }
 0x440   : > { %8895 = vmatmul.mubr.bf16.gmra.mrb[24].mxu1 %v17283_v9  ;;  %v17307_v9 = vld [vmem:[%s18649_s23 + $0x680] ss:$392 sps:$4 sm:$0xff]  }
 0x441   : > { %11607 = vmatmul.mubr.bf16.gmra.mrb[24].mxu0 %v17284_v10  ;;  %8940 = vmatpush1.bf16.msra.mxu1 %v2479_v11  ;;  %v17308_v10 = vld [vmem:[%s18649_s23 + $0x740] ss:$392 sps:$4 sm:$0xff]   ;;  %v2495_v11 = vunpack.c.l.s8.bf16 %v1499_v7 }
 0x442   : > { %11652 = vmatpush1.bf16.msra.mxu0 %v3247_v12  ;;  %8941 = vmatprep.subr.bf16.mxu1 %v2482_v13  ;;  %v3263_v12 = vunpack.c.l.s8.bf16 %v1883_v8  ;;  %v2498_v13 = vunpack.c.h.s8.bf16 %v1500_v1  ;;  %v1508_v1 = vld [vmem:[%s18656_s2 + $0x6e8] sm:$0xff] }
 0x443   : > { %11653 = vmatprep.subr.bf16.mxu0 %v3250_v14  ;;  %8904 = vmatprep.mubr.bf16.mxu1 %v17285_v15  ;;  %v3266_v14 = vunpack.c.h.s8.bf16 %v1884_v2  ;;  %v17309_v15 = vld [vmem:[%s18649_s23 + $0x994] ss:$392 sps:$4 sm:$0xff]   ;;  %v1892_v2 = vld [vmem:[%s18656_s2 + $0x12e8] sm:$0xff] }
 0x444   : > { %11616 = vmatprep.mubr.bf16.mxu0 %v17287_v16  ;;  %v17311_v16 = vld [vmem:[%s18649_s23 + $0xa54] ss:$392 sps:$4 sm:$0xff]  }
 0x445   : > { %8942 = vmatpush1.bf16.msra.mxu1 %v2481_v19  ;;  %v2497_v19 = vunpack.c.h.s8.bf16 %v1499_v7  ;;  %v1507_v7 = vld [vmem:[%s18656_s2 + $0x6e0] sm:$0xff] }
 0x446   : > { %11654 = vmatpush1.bf16.msra.mxu0 %v3249_v20  ;;  %8943 = vmatprep.subr.bf16.mxu1 %v2484_v21  ;;  %v3265_v20 = vunpack.c.h.s8.bf16 %v1883_v8  ;;  %v2500_v21 = vunpack.c.l.s8.bf16 %v1502_v17  ;;  %v1891_v8 = vld [vmem:[%s18656_s2 + $0x12e0] sm:$0xff] }
 0x447   : > { %11655 = vmatprep.subr.bf16.mxu0 %v3252_v22  ;;  %v3268_v22 = vunpack.c.l.s8.bf16 %v1886_v18 }
 0x448   : > { %8905 = vmatmul.mubr.bf16.gmra.mrb[28].mxu1 %v17289_v25  ;;  %v17313_v25 = vld [vmem:[%s18649_s23 + $0x990] ss:$392 sps:$4 sm:$0xff]  }
 0x449   : > { %11617 = vmatmul.mubr.bf16.gmra.mrb[28].mxu0 %v17290_v26  ;;  %8944 = vmatpush1.bf16.msra.mxu1 %v2483_v27  ;;  %v17314_v26 = vld [vmem:[%s18649_s23 + $0xa50] ss:$392 sps:$4 sm:$0xff]   ;;  %v2499_v27 = vunpack.c.l.s8.bf16 %v1501_v23 }
 0x44a   : > { %11656 = vmatpush1.bf16.msra.mxu0 %v3251_v28  ;;  %8945 = vmatprep.subr.bf16.mxu1 %v2486_v29  ;;  %v3267_v28 = vunpack.c.l.s8.bf16 %v1885_v24  ;;  %v2502_v29 = vunpack.c.h.s8.bf16 %v1502_v17  ;;  %v1510_v17 = vld [vmem:[%s18656_s2 + $0x6f8] sm:$0xff] }
 0x44b   : > { %11657 = vmatprep.subr.bf16.mxu0 %v3254_v30  ;;  %8947 = vmatprep.mubr.bf16.mxu1 %v17293_v31  ;;  %v3270_v30 = vunpack.c.h.s8.bf16 %v1886_v18  ;;  %v17315_v31 = vld [vmem:[%s18649_s23 + $0xca4] ss:$392 sps:$4 sm:$0xff]   ;;  %v1894_v18 = vld [vmem:[%s18656_s2 + $0x12f8] sm:$0xff] }
 0x44c   : > { %11659 = vmatprep.mubr.bf16.mxu0 %v17296_v32  ;;  %v17317_v32 = vld [vmem:[%s18649_s23 + $0xd64] ss:$392 sps:$4 sm:$0xff]  }
 0x44d   : > { %8946 = vmatpush1.bf16.msra.mxu1 %v2485_v35  ;;  %v2501_v35 = vunpack.c.h.s8.bf16 %v1501_v23  ;;  %v1509_v23 = vld [vmem:[%s18656_s2 + $0x6f0] sm:$0xff] }
 0x44e   : > { %11658 = vmatpush1.bf16.msra.mxu0 %v3253_v36  ;;  %9028 = vmatprep.subr.bf16.mxu1 %v2488_v37  ;;  %v3269_v36 = vunpack.c.h.s8.bf16 %v1885_v24  ;;  %v2504_v37 = vunpack.c.l.s8.bf16 %v1504_v33  ;;  %v1893_v24 = vld [vmem:[%s18656_s2 + $0x12f0] sm:$0xff] }
 0x44f   : > { %11740 = vmatprep.subr.bf16.mxu0 %v3256_v38  ;;  %v3272_v38 = vunpack.c.l.s8.bf16 %v1888_v34 }
 0x450   : > { %8948 = vmatmul.mubr.bf16.vlgmr.msra.gmra.mrb[0].mxu1 %v17291_v41  ;;  %v17319_v41 = vld [vmem:[%s18649_s23 + $0xca0] ss:$392 sps:$4 sm:$0xff]  }
 0x451   : > { %11660 = vmatmul.mubr.bf16.vlgmr.msra.gmra.mrb[0].mxu0 %v17294_v42  ;;  %9029 = vmatpush1.bf16.msra.mxu1 %v2487_v43  ;;  %v17320_v42 = vld [vmem:[%s18649_s23 + $0xd60] ss:$392 sps:$4 sm:$0xff]   ;;  %v2503_v43 = vunpack.c.l.s8.bf16 %v1503_v39 }
 0x452   : > { %11741 = vmatpush1.bf16.msra.mxu0 %v3255_v44  ;;  %9030 = vmatprep.subr.bf16.mxu1 %v2490_v45  ;;  %v3271_v44 = vunpack.c.l.s8.bf16 %v1887_v40  ;;  %v2506_v45 = vunpack.c.h.s8.bf16 %v1504_v33  ;;  %v1512_v33 = vld [vmem:[%s18656_s2 + $0x708] sm:$0xff] }
 0x453   : > { %11742 = vmatprep.subr.bf16.mxu0 %v3258_v46  ;;  %8957 = vmatprep.mubr.bf16.mxu1 %v17297_v47  ;;  %v3274_v46 = vunpack.c.h.s8.bf16 %v1888_v34  ;;  %v17321_v47 = vld [vmem:[%s18649_s23 + $0xfb4] ss:$392 sps:$4 sm:$0xff]   ;;  %v1896_v34 = vld [vmem:[%s18656_s2 + $0x1308] sm:$0xff] }
 0x454   : > { %11669 = vmatprep.mubr.bf16.mxu0 %v17299_v48  ;;  %v17323_v48 = vld [vmem:[%s18649_s23 + $0x1074] ss:$392 sps:$4 sm:$0xff]  }
 0x455   : > { %9031 = vmatpush1.bf16.msra.mxu1 %v2489_v51  ;;  %v2505_v51 = vunpack.c.h.s8.bf16 %v1503_v39  ;;  %v1511_v39 = vld [vmem:[%s18656_s2 + $0x700] sm:$0xff] }
 0x456   : > { %11743 = vmatpush1.bf16.msra.mxu0 %v3257_v52  ;;  %9032 = vmatprep.subr.bf16.mxu1 %v2492_v53  ;;  %v3273_v52 = vunpack.c.h.s8.bf16 %v1887_v40  ;;  %v2508_v53 = vunpack.c.l.s8.bf16 %v1506_v49  ;;  %v1895_v40 = vld [vmem:[%s18656_s2 + $0x1300] sm:$0xff] }
 0x457   : > { %11744 = vmatprep.subr.bf16.mxu0 %v3260_v54  ;;  %v3276_v54 = vunpack.c.l.s8.bf16 %v1890_v50 }
 0x458   : > { %8958 = vmatmul.mubr.bf16.gmra.mrb[4].mxu1 %v17301_v57  ;;  %v17325_v57 = vld [vmem:[%s18649_s23 + $0xfb0] ss:$392 sps:$4 sm:$0xff]  }
 0x459   : > { %11670 = vmatmul.mubr.bf16.gmra.mrb[4].mxu0 %v17302_v58  ;;  %9033 = vmatpush1.bf16.msra.mxu1 %v2491_v59  ;;  %v17326_v58 = vld [vmem:[%s18649_s23 + $0x1070] ss:$392 sps:$4 sm:$0xff]   ;;  %v2507_v59 = vunpack.c.l.s8.bf16 %v1505_v55 }
 0x45a   : > { %11745 = vmatpush1.bf16.msra.mxu0 %v3259_v60  ;;  %9034 = vmatprep.subr.bf16.mxu1 %v2494_v61  ;;  %v3275_v60 = vunpack.c.l.s8.bf16 %v1889_v56  ;;  %v2510_v61 = vunpack.c.h.s8.bf16 %v1506_v49  ;;  %v1514_v49 = vld [vmem:[%s18656_s2 + $0x718] sm:$0xff] }
 0x45b   : > { %11746 = vmatprep.subr.bf16.mxu0 %v3262_v62  ;;  %8967 = vmatprep.mubr.bf16.mxu1 %v17303_v63  ;;  %v3278_v62 = vunpack.c.h.s8.bf16 %v1890_v50  ;;  %v17327_v63 = vld [vmem:[%s18649_s23 + $0x12c4] ss:$392 sps:$4 sm:$0xff]   ;;  %v1898_v50 = vld [vmem:[%s18656_s2 + $0x1318] sm:$0xff] }
 0x45c   : > { %11679 = vmatprep.mubr.bf16.mxu0 %v17305_v0  ;;  %v17329_v0 = vld [vmem:[%s18649_s23 + $0x1384] ss:$392 sps:$4 sm:$0xff]  }
 0x45d   : > { %9035 = vmatpush1.bf16.msra.mxu1 %v2493_v3  ;;  %v2509_v3 = vunpack.c.h.s8.bf16 %v1505_v55  ;;  %v1513_v55 = vld [vmem:[%s18656_s2 + $0x710] sm:$0xff] }
 0x45e   : > { %11747 = vmatpush1.bf16.msra.mxu0 %v3261_v4  ;;  %9036 = vmatprep.subr.bf16.mxu1 %v2496_v5  ;;  %v3277_v4 = vunpack.c.h.s8.bf16 %v1889_v56  ;;  %v2512_v5 = vunpack.c.l.s8.bf16 %v1508_v1  ;;  %v1897_v56 = vld [vmem:[%s18656_s2 + $0x1310] sm:$0xff] }
 0x45f   : > { %11748 = vmatprep.subr.bf16.mxu0 %v3264_v6  ;;  %v3280_v6 = vunpack.c.l.s8.bf16 %v1892_v2 }
 0x460   : > { %8968 = vmatmul.mubr.bf16.gmra.mrb[8].mxu1 %v17307_v9  ;;  %v17331_v9 = vld [vmem:[%s18649_s23 + $0x12c0] ss:$392 sps:$4 sm:$0xff]  }
 0x461   : > { %11680 = vmatmul.mubr.bf16.gmra.mrb[8].mxu0 %v17308_v10  ;;  %9037 = vmatpush1.bf16.msra.mxu1 %v2495_v11  ;;  %v17332_v10 = vld [vmem:[%s18649_s23 + $0x1380] ss:$392 sps:$4 sm:$0xff]   ;;  %v2511_v11 = vunpack.c.l.s8.bf16 %v1507_v7 }
 0x462   : > { %11749 = vmatpush1.bf16.msra.mxu0 %v3263_v12  ;;  %9038 = vmatprep.subr.bf16.mxu1 %v2498_v13  ;;  %v3279_v12 = vunpack.c.l.s8.bf16 %v1891_v8  ;;  %v2514_v13 = vunpack.c.h.s8.bf16 %v1508_v1  ;;  %v1516_v1 = vld [vmem:[%s18656_s2 + $0x728] sm:$0xff] }
 0x463   : > { %11750 = vmatprep.subr.bf16.mxu0 %v3266_v14  ;;  %8977 = vmatprep.mubr.bf16.mxu1 %v17309_v15  ;;  %v3282_v14 = vunpack.c.h.s8.bf16 %v1892_v2  ;;  %v17333_v15 = vld [vmem:[%s18649_s23 + $0x15d4] ss:$392 sps:$4 sm:$0xff]   ;;  %v1900_v2 = vld [vmem:[%s18656_s2 + $0x1328] sm:$0xff] }
 0x464   : > { %11689 = vmatprep.mubr.bf16.mxu0 %v17311_v16  ;;  %v17335_v16 = vld [vmem:[%s18649_s23 + $0x1694] ss:$392 sps:$4 sm:$0xff]  }
 0x465   : > { %9039 = vmatpush1.bf16.msra.mxu1 %v2497_v19  ;;  %v2513_v19 = vunpack.c.h.s8.bf16 %v1507_v7  ;;  %v1515_v7 = vld [vmem:[%s18656_s2 + $0x720] sm:$0xff] }
 0x466   : > { %11751 = vmatpush1.bf16.msra.mxu0 %v3265_v20  ;;  %9040 = vmatprep.subr.bf16.mxu1 %v2500_v21  ;;  %v3281_v20 = vunpack.c.h.s8.bf16 %v1891_v8  ;;  %v2516_v21 = vunpack.c.l.s8.bf16 %v1510_v17  ;;  %v1899_v8 = vld [vmem:[%s18656_s2 + $0x1320] sm:$0xff] }
 0x467   : > { %11752 = vmatprep.subr.bf16.mxu0 %v3268_v22  ;;  %v3284_v22 = vunpack.c.l.s8.bf16 %v1894_v18 }
 0x468   : > { %8978 = vmatmul.mubr.bf16.gmra.mrb[12].mxu1 %v17313_v25  ;;  %v17337_v25 = vld [vmem:[%s18649_s23 + $0x15d0] ss:$392 sps:$4 sm:$0xff]  }
 0x469   : > { %11690 = vmatmul.mubr.bf16.gmra.mrb[12].mxu0 %v17314_v26  ;;  %9041 = vmatpush1.bf16.msra.mxu1 %v2499_v27  ;;  %v17338_v26 = vld [vmem:[%s18649_s23 + $0x1690] ss:$392 sps:$4 sm:$0xff]   ;;  %v2515_v27 = vunpack.c.l.s8.bf16 %v1509_v23 }
 0x46a   : > { %11753 = vmatpush1.bf16.msra.mxu0 %v3267_v28  ;;  %9042 = vmatprep.subr.bf16.mxu1 %v2502_v29  ;;  %v3283_v28 = vunpack.c.l.s8.bf16 %v1893_v24  ;;  %v2518_v29 = vunpack.c.h.s8.bf16 %v1510_v17  ;;  %v1518_v17 = vld [vmem:[%s18656_s2 + $0x738] sm:$0xff] }
 0x46b   : > { %11754 = vmatprep.subr.bf16.mxu0 %v3270_v30  ;;  %8987 = vmatprep.mubr.bf16.mxu1 %v17315_v31  ;;  %v3286_v30 = vunpack.c.h.s8.bf16 %v1894_v18  ;;  %v17341_v31 = vld [vmem:[%s18649_s23 + $0x6c] ss:$392 sps:$4 sm:$0xff]   ;;  %v1902_v18 = vld [vmem:[%s18656_s2 + $0x1338] sm:$0xff] }
 0x46c   : > { %11699 = vmatprep.mubr.bf16.mxu0 %v17317_v32  ;;  %v17344_v32 = vld [vmem:[%s18649_s23 + $0x12c] ss:$392 sps:$4 sm:$0xff]  }
 0x46d   : > { %9043 = vmatpush1.bf16.msra.mxu1 %v2501_v35  ;;  %v2517_v35 = vunpack.c.h.s8.bf16 %v1509_v23  ;;  %v1517_v23 = vld [vmem:[%s18656_s2 + $0x730] sm:$0xff] }
 0x46e   : > { %11755 = vmatpush1.bf16.msra.mxu0 %v3269_v36  ;;  %9044 = vmatprep.subr.bf16.mxu1 %v2504_v37  ;;  %v3285_v36 = vunpack.c.h.s8.bf16 %v1893_v24  ;;  %v2520_v37 = vunpack.c.l.s8.bf16 %v1512_v33  ;;  %v1901_v24 = vld [vmem:[%s18656_s2 + $0x1330] sm:$0xff] }
 0x46f   : > { %11756 = vmatprep.subr.bf16.mxu0 %v3272_v38  ;;  %v3288_v38 = vunpack.c.l.s8.bf16 %v1896_v34 }
 0x470   : > { %8988 = vmatmul.mubr.bf16.gmra.mrb[16].mxu1 %v17319_v41  ;;  %v17339_v41 = vld [vmem:[%s18649_s23 + $0x68] ss:$392 sps:$4 sm:$0xff]  }
 0x471   : > { %11700 = vmatmul.mubr.bf16.gmra.mrb[16].mxu0 %v17320_v42  ;;  %9045 = vmatpush1.bf16.msra.mxu1 %v2503_v43  ;;  %v17342_v42 = vld [vmem:[%s18649_s23 + $0x128] ss:$392 sps:$4 sm:$0xff]   ;;  %v2519_v43 = vunpack.c.l.s8.bf16 %v1511_v39 }
 0x472   : > { %11757 = vmatpush1.bf16.msra.mxu0 %v3271_v44  ;;  %9046 = vmatprep.subr.bf16.mxu1 %v2506_v45  ;;  %v3287_v44 = vunpack.c.l.s8.bf16 %v1895_v40  ;;  %v2522_v45 = vunpack.c.h.s8.bf16 %v1512_v33  ;;  %v1520_v33 = vld [vmem:[%s18656_s2 + $0x748] sm:$0xff] }
 0x473   : > { %11758 = vmatprep.subr.bf16.mxu0 %v3274_v46  ;;  %8997 = vmatprep.mubr.bf16.mxu1 %v17321_v47  ;;  %v3290_v46 = vunpack.c.h.s8.bf16 %v1896_v34  ;;  %v17345_v47 = vld [vmem:[%s18649_s23 + $0x37c] ss:$392 sps:$4 sm:$0xff]   ;;  %v1904_v34 = vld [vmem:[%s18656_s2 + $0x1348] sm:$0xff] }
 0x474   : > { %11709 = vmatprep.mubr.bf16.mxu0 %v17323_v48  ;;  %v17347_v48 = vld [vmem:[%s18649_s23 + $0x43c] ss:$392 sps:$4 sm:$0xff]  }
 0x475   : > { %9047 = vmatpush1.bf16.msra.mxu1 %v2505_v51  ;;  %v2521_v51 = vunpack.c.h.s8.bf16 %v1511_v39  ;;  %v1519_v39 = vld [vmem:[%s18656_s2 + $0x740] sm:$0xff] }
 0x476   : > { %11759 = vmatpush1.bf16.msra.mxu0 %v3273_v52  ;;  %9048 = vmatprep.subr.bf16.mxu1 %v2508_v53  ;;  %v3289_v52 = vunpack.c.h.s8.bf16 %v1895_v40  ;;  %v2524_v53 = vunpack.c.l.s8.bf16 %v1514_v49  ;;  %v1903_v40 = vld [vmem:[%s18656_s2 + $0x1340] sm:$0xff] }
 0x477   : > { %11760 = vmatprep.subr.bf16.mxu0 %v3276_v54  ;;  %v3292_v54 = vunpack.c.l.s8.bf16 %v1898_v50 }
 0x478   : > { %8998 = vmatmul.mubr.bf16.gmra.mrb[20].mxu1 %v17325_v57  ;;  %v17349_v57 = vld [vmem:[%s18649_s23 + $0x378] ss:$392 sps:$4 sm:$0xff]  }
 0x479   : > { %11710 = vmatmul.mubr.bf16.gmra.mrb[20].mxu0 %v17326_v58  ;;  %9049 = vmatpush1.bf16.msra.mxu1 %v2507_v59  ;;  %v17350_v58 = vld [vmem:[%s18649_s23 + $0x438] ss:$392 sps:$4 sm:$0xff]   ;;  %v2523_v59 = vunpack.c.l.s8.bf16 %v1513_v55 }
 0x47a   : > { %11761 = vmatpush1.bf16.msra.mxu0 %v3275_v60  ;;  %9050 = vmatprep.subr.bf16.mxu1 %v2510_v61  ;;  %v3291_v60 = vunpack.c.l.s8.bf16 %v1897_v56  ;;  %v2526_v61 = vunpack.c.h.s8.bf16 %v1514_v49  ;;  %v1522_v49 = vld [vmem:[%s18656_s2 + $0x758] sm:$0xff] }
 0x47b   : > { %11762 = vmatprep.subr.bf16.mxu0 %v3278_v62  ;;  %9007 = vmatprep.mubr.bf16.mxu1 %v17327_v63  ;;  %v3294_v62 = vunpack.c.h.s8.bf16 %v1898_v50  ;;  %v17351_v63 = vld [vmem:[%s18649_s23 + $0x68c] ss:$392 sps:$4 sm:$0xff]   ;;  %v1906_v50 = vld [vmem:[%s18656_s2 + $0x1358] sm:$0xff] }
 0x47c   : > { %11719 = vmatprep.mubr.bf16.mxu0 %v17329_v0  ;;  %v17353_v0 = vld [vmem:[%s18649_s23 + $0x74c] ss:$392 sps:$4 sm:$0xff]  }
 0x47d   : > { %9051 = vmatpush1.bf16.msra.mxu1 %v2509_v3  ;;  %v2525_v3 = vunpack.c.h.s8.bf16 %v1513_v55  ;;  %v1521_v55 = vld [vmem:[%s18656_s2 + $0x750] sm:$0xff] }
 0x47e   : > { %11763 = vmatpush1.bf16.msra.mxu0 %v3277_v4  ;;  %9052 = vmatprep.subr.bf16.mxu1 %v2512_v5  ;;  %v3293_v4 = vunpack.c.h.s8.bf16 %v1897_v56  ;;  %v2528_v5 = vunpack.c.l.s8.bf16 %v1516_v1  ;;  %v1905_v56 = vld [vmem:[%s18656_s2 + $0x1350] sm:$0xff] }
 0x47f   : > { %11764 = vmatprep.subr.bf16.mxu0 %v3280_v6  ;;  %v3296_v6 = vunpack.c.l.s8.bf16 %v1900_v2 }
 0x480   : > { %9008 = vmatmul.mubr.bf16.gmra.mrb[24].mxu1 %v17331_v9  ;;  %v17355_v9 = vld [vmem:[%s18649_s23 + $0x688] ss:$392 sps:$4 sm:$0xff]  }
 0x481   : > { %11720 = vmatmul.mubr.bf16.gmra.mrb[24].mxu0 %v17332_v10  ;;  %9053 = vmatpush1.bf16.msra.mxu1 %v2511_v11  ;;  %v17356_v10 = vld [vmem:[%s18649_s23 + $0x748] ss:$392 sps:$4 sm:$0xff]   ;;  %v2527_v11 = vunpack.c.l.s8.bf16 %v1515_v7 }
 0x482   : > { %11765 = vmatpush1.bf16.msra.mxu0 %v3279_v12  ;;  %9054 = vmatprep.subr.bf16.mxu1 %v2514_v13  ;;  %v3295_v12 = vunpack.c.l.s8.bf16 %v1899_v8  ;;  %v2530_v13 = vunpack.c.h.s8.bf16 %v1516_v1  ;;  %v1524_v1 = vld [vmem:[%s18656_s2 + $0x768] sm:$0xff] }
 0x483   : > { %11766 = vmatprep.subr.bf16.mxu0 %v3282_v14  ;;  %9017 = vmatprep.mubr.bf16.mxu1 %v17333_v15  ;;  %v3298_v14 = vunpack.c.h.s8.bf16 %v1900_v2  ;;  %v17357_v15 = vld [vmem:[%s18649_s23 + $0x99c] ss:$392 sps:$4 sm:$0xff]   ;;  %v1908_v2 = vld [vmem:[%s18656_s2 + $0x1368] sm:$0xff] }
 0x484   : > { %11729 = vmatprep.mubr.bf16.mxu0 %v17335_v16  ;;  %v17359_v16 = vld [vmem:[%s18649_s23 + $0xa5c] ss:$392 sps:$4 sm:$0xff]  }
 0x485   : > { %9055 = vmatpush1.bf16.msra.mxu1 %v2513_v19  ;;  %v2529_v19 = vunpack.c.h.s8.bf16 %v1515_v7  ;;  %v1523_v7 = vld [vmem:[%s18656_s2 + $0x760] sm:$0xff] }
 0x486   : > { %11767 = vmatpush1.bf16.msra.mxu0 %v3281_v20  ;;  %9056 = vmatprep.subr.bf16.mxu1 %v2516_v21  ;;  %v3297_v20 = vunpack.c.h.s8.bf16 %v1899_v8  ;;  %v2532_v21 = vunpack.c.l.s8.bf16 %v1518_v17  ;;  %v1907_v8 = vld [vmem:[%s18656_s2 + $0x1360] sm:$0xff] }
 0x487   : > { %11768 = vmatprep.subr.bf16.mxu0 %v3284_v22  ;;  %v3300_v22 = vunpack.c.l.s8.bf16 %v1902_v18 }
 0x488   : > { %9018 = vmatmul.mubr.bf16.gmra.mrb[28].mxu1 %v17337_v25  ;;  %v17361_v25 = vld [vmem:[%s18649_s23 + $0x998] ss:$392 sps:$4 sm:$0xff]  }
 0x489   : > { %11730 = vmatmul.mubr.bf16.gmra.mrb[28].mxu0 %v17338_v26  ;;  %9057 = vmatpush1.bf16.msra.mxu1 %v2515_v27  ;;  %v17362_v26 = vld [vmem:[%s18649_s23 + $0xa58] ss:$392 sps:$4 sm:$0xff]   ;;  %v2531_v27 = vunpack.c.l.s8.bf16 %v1517_v23 }
 0x48a   : > { %11769 = vmatpush1.bf16.msra.mxu0 %v3283_v28  ;;  %9058 = vmatprep.subr.bf16.mxu1 %v2518_v29  ;;  %v3299_v28 = vunpack.c.l.s8.bf16 %v1901_v24  ;;  %v2534_v29 = vunpack.c.h.s8.bf16 %v1518_v17  ;;  %v1526_v17 = vld [vmem:[%s18656_s2 + $0x778] sm:$0xff] }
 0x48b   : > { %11770 = vmatprep.subr.bf16.mxu0 %v3286_v30  ;;  %9060 = vmatprep.mubr.bf16.mxu1 %v17341_v31  ;;  %v3302_v30 = vunpack.c.h.s8.bf16 %v1902_v18  ;;  %v17363_v31 = vld [vmem:[%s18649_s23 + $0xcac] ss:$392 sps:$4 sm:$0xff]   ;;  %v1910_v18 = vld [vmem:[%s18656_s2 + $0x1378] sm:$0xff] }
 0x48c   : > { %11772 = vmatprep.mubr.bf16.mxu0 %v17344_v32  ;;  %v17365_v32 = vld [vmem:[%s18649_s23 + $0xd6c] ss:$392 sps:$4 sm:$0xff]  }
 0x48d   : > { %9059 = vmatpush1.bf16.msra.mxu1 %v2517_v35  ;;  %v2533_v35 = vunpack.c.h.s8.bf16 %v1517_v23  ;;  %v1525_v23 = vld [vmem:[%s18656_s2 + $0x770] sm:$0xff] }
 0x48e   : > { %11771 = vmatpush1.bf16.msra.mxu0 %v3285_v36  ;;  %9141 = vmatprep.subr.bf16.mxu1 %v2520_v37  ;;  %v3301_v36 = vunpack.c.h.s8.bf16 %v1901_v24  ;;  %v2536_v37 = vunpack.c.l.s8.bf16 %v1520_v33  ;;  %v1909_v24 = vld [vmem:[%s18656_s2 + $0x1370] sm:$0xff] }
 0x48f   : > { %11853 = vmatprep.subr.bf16.mxu0 %v3288_v38  ;;  %v3304_v38 = vunpack.c.l.s8.bf16 %v1904_v34 }
 0x490   : > { %9061 = vmatmul.mubr.bf16.vlgmr.msra.gmra.mrb[0].mxu1 %v17339_v41  ;;  %v17367_v41 = vld [vmem:[%s18649_s23 + $0xca8] ss:$392 sps:$4 sm:$0xff]  }
 0x491   : > { %11773 = vmatmul.mubr.bf16.vlgmr.msra.gmra.mrb[0].mxu0 %v17342_v42  ;;  %9142 = vmatpush1.bf16.msra.mxu1 %v2519_v43  ;;  %v17368_v42 = vld [vmem:[%s18649_s23 + $0xd68] ss:$392 sps:$4 sm:$0xff]   ;;  %v2535_v43 = vunpack.c.l.s8.bf16 %v1519_v39 }
 0x492   : > { %11854 = vmatpush1.bf16.msra.mxu0 %v3287_v44  ;;  %9143 = vmatprep.subr.bf16.mxu1 %v2522_v45  ;;  %v3303_v44 = vunpack.c.l.s8.bf16 %v1903_v40  ;;  %v2538_v45 = vunpack.c.h.s8.bf16 %v1520_v33  ;;  %v1528_v33 = vld [vmem:[%s18656_s2 + $0x788] sm:$0xff] }
 0x493   : > { %11855 = vmatprep.subr.bf16.mxu0 %v3290_v46  ;;  %9070 = vmatprep.mubr.bf16.mxu1 %v17345_v47  ;;  %v3306_v46 = vunpack.c.h.s8.bf16 %v1904_v34  ;;  %v17369_v47 = vld [vmem:[%s18649_s23 + $0xfbc] ss:$392 sps:$4 sm:$0xff]   ;;  %v1912_v34 = vld [vmem:[%s18656_s2 + $0x1388] sm:$0xff] }
 0x494   : > { %11782 = vmatprep.mubr.bf16.mxu0 %v17347_v48  ;;  %v17371_v48 = vld [vmem:[%s18649_s23 + $0x107c] ss:$392 sps:$4 sm:$0xff]  }
 0x495   : > { %9144 = vmatpush1.bf16.msra.mxu1 %v2521_v51  ;;  %v2537_v51 = vunpack.c.h.s8.bf16 %v1519_v39  ;;  %v1527_v39 = vld [vmem:[%s18656_s2 + $0x780] sm:$0xff] }
 0x496   : > { %11856 = vmatpush1.bf16.msra.mxu0 %v3289_v52  ;;  %9145 = vmatprep.subr.bf16.mxu1 %v2524_v53  ;;  %v3305_v52 = vunpack.c.h.s8.bf16 %v1903_v40  ;;  %v2540_v53 = vunpack.c.l.s8.bf16 %v1522_v49  ;;  %v1911_v40 = vld [vmem:[%s18656_s2 + $0x1380] sm:$0xff] }
 0x497   : > { %11857 = vmatprep.subr.bf16.mxu0 %v3292_v54  ;;  %v3308_v54 = vunpack.c.l.s8.bf16 %v1906_v50 }
 0x498   : > { %9071 = vmatmul.mubr.bf16.gmra.mrb[4].mxu1 %v17349_v57  ;;  %v17373_v57 = vld [vmem:[%s18649_s23 + $0xfb8] ss:$392 sps:$4 sm:$0xff]  }
 0x499   : > { %11783 = vmatmul.mubr.bf16.gmra.mrb[4].mxu0 %v17350_v58  ;;  %9146 = vmatpush1.bf16.msra.mxu1 %v2523_v59  ;;  %v17374_v58 = vld [vmem:[%s18649_s23 + $0x1078] ss:$392 sps:$4 sm:$0xff]   ;;  %v2539_v59 = vunpack.c.l.s8.bf16 %v1521_v55 }
 0x49a   : > { %11858 = vmatpush1.bf16.msra.mxu0 %v3291_v60  ;;  %9147 = vmatprep.subr.bf16.mxu1 %v2526_v61  ;;  %v3307_v60 = vunpack.c.l.s8.bf16 %v1905_v56  ;;  %v2542_v61 = vunpack.c.h.s8.bf16 %v1522_v49  ;;  %v1530_v49 = vld [vmem:[%s18656_s2 + $0x798] sm:$0xff] }
 0x49b   : > { %11859 = vmatprep.subr.bf16.mxu0 %v3294_v62  ;;  %9080 = vmatprep.mubr.bf16.mxu1 %v17351_v63  ;;  %v3310_v62 = vunpack.c.h.s8.bf16 %v1906_v50  ;;  %v17375_v63 = vld [vmem:[%s18649_s23 + $0x12cc] ss:$392 sps:$4 sm:$0xff]   ;;  %v1914_v50 = vld [vmem:[%s18656_s2 + $0x1398] sm:$0xff] }
 0x49c   : > { %11792 = vmatprep.mubr.bf16.mxu0 %v17353_v0  ;;  %v17377_v0 = vld [vmem:[%s18649_s23 + $0x138c] ss:$392 sps:$4 sm:$0xff]  }
 0x49d   : > { %9148 = vmatpush1.bf16.msra.mxu1 %v2525_v3  ;;  %v2541_v3 = vunpack.c.h.s8.bf16 %v1521_v55  ;;  %v1529_v55 = vld [vmem:[%s18656_s2 + $0x790] sm:$0xff] }
 0x49e   : > { %11860 = vmatpush1.bf16.msra.mxu0 %v3293_v4  ;;  %9149 = vmatprep.subr.bf16.mxu1 %v2528_v5  ;;  %v3309_v4 = vunpack.c.h.s8.bf16 %v1905_v56  ;;  %v2544_v5 = vunpack.c.l.s8.bf16 %v1524_v1  ;;  %v1913_v56 = vld [vmem:[%s18656_s2 + $0x1390] sm:$0xff] }
 0x49f   : > { %11861 = vmatprep.subr.bf16.mxu0 %v3296_v6  ;;  %v3312_v6 = vunpack.c.l.s8.bf16 %v1908_v2 }
 0x4a0   : > { %9081 = vmatmul.mubr.bf16.gmra.mrb[8].mxu1 %v17355_v9  ;;  %v17379_v9 = vld [vmem:[%s18649_s23 + $0x12c8] ss:$392 sps:$4 sm:$0xff]  }
 0x4a1   : > { %11793 = vmatmul.mubr.bf16.gmra.mrb[8].mxu0 %v17356_v10  ;;  %9150 = vmatpush1.bf16.msra.mxu1 %v2527_v11  ;;  %v17380_v10 = vld [vmem:[%s18649_s23 + $0x1388] ss:$392 sps:$4 sm:$0xff]   ;;  %v2543_v11 = vunpack.c.l.s8.bf16 %v1523_v7 }
 0x4a2   : > { %11862 = vmatpush1.bf16.msra.mxu0 %v3295_v12  ;;  %9151 = vmatprep.subr.bf16.mxu1 %v2530_v13  ;;  %v3311_v12 = vunpack.c.l.s8.bf16 %v1907_v8  ;;  %v2546_v13 = vunpack.c.h.s8.bf16 %v1524_v1  ;;  %v1532_v1 = vld [vmem:[%s18656_s2 + $0x7a8] sm:$0xff] }
 0x4a3   : > { %11863 = vmatprep.subr.bf16.mxu0 %v3298_v14  ;;  %9090 = vmatprep.mubr.bf16.mxu1 %v17357_v15  ;;  %v3314_v14 = vunpack.c.h.s8.bf16 %v1908_v2  ;;  %v17381_v15 = vld [vmem:[%s18649_s23 + $0x15dc] ss:$392 sps:$4 sm:$0xff]   ;;  %v1916_v2 = vld [vmem:[%s18656_s2 + $0x13a8] sm:$0xff] }
 0x4a4   : > { %11802 = vmatprep.mubr.bf16.mxu0 %v17359_v16  ;;  %v17383_v16 = vld [vmem:[%s18649_s23 + $0x169c] ss:$392 sps:$4 sm:$0xff]  }
 0x4a5   : > { %9152 = vmatpush1.bf16.msra.mxu1 %v2529_v19  ;;  %v2545_v19 = vunpack.c.h.s8.bf16 %v1523_v7  ;;  %v1531_v7 = vld [vmem:[%s18656_s2 + $0x7a0] sm:$0xff] }
 0x4a6   : > { %11864 = vmatpush1.bf16.msra.mxu0 %v3297_v20  ;;  %9153 = vmatprep.subr.bf16.mxu1 %v2532_v21  ;;  %v3313_v20 = vunpack.c.h.s8.bf16 %v1907_v8  ;;  %v2548_v21 = vunpack.c.l.s8.bf16 %v1526_v17  ;;  %v1915_v8 = vld [vmem:[%s18656_s2 + $0x13a0] sm:$0xff] }
 0x4a7   : > { %11865 = vmatprep.subr.bf16.mxu0 %v3300_v22  ;;  %v3316_v22 = vunpack.c.l.s8.bf16 %v1910_v18 }
 0x4a8   : > { %9091 = vmatmul.mubr.bf16.gmra.mrb[12].mxu1 %v17361_v25  ;;  %v17385_v25 = vld [vmem:[%s18649_s23 + $0x15d8] ss:$392 sps:$4 sm:$0xff]  }
 0x4a9   : > { %11803 = vmatmul.mubr.bf16.gmra.mrb[12].mxu0 %v17362_v26  ;;  %9154 = vmatpush1.bf16.msra.mxu1 %v2531_v27  ;;  %v17386_v26 = vld [vmem:[%s18649_s23 + $0x1698] ss:$392 sps:$4 sm:$0xff]   ;;  %v2547_v27 = vunpack.c.l.s8.bf16 %v1525_v23 }
 0x4aa   : > { %11866 = vmatpush1.bf16.msra.mxu0 %v3299_v28  ;;  %9155 = vmatprep.subr.bf16.mxu1 %v2534_v29  ;;  %v3315_v28 = vunpack.c.l.s8.bf16 %v1909_v24  ;;  %v2550_v29 = vunpack.c.h.s8.bf16 %v1526_v17  ;;  %v1534_v17 = vld [vmem:[%s18656_s2 + $0x7b8] sm:$0xff] }
 0x4ab   : > { %11867 = vmatprep.subr.bf16.mxu0 %v3302_v30  ;;  %9100 = vmatprep.mubr.bf16.mxu1 %v17363_v31  ;;  %v3318_v30 = vunpack.c.h.s8.bf16 %v1910_v18  ;;  %v17389_v31 = vld [vmem:[%s18649_s23 + $0x74] ss:$392 sps:$4 sm:$0xff]  }
 0x4ac   : > { %11812 = vmatprep.mubr.bf16.mxu0 %v17365_v32  ;;  %v17392_v32 = vld [vmem:[%s18649_s23 + $0x134] ss:$392 sps:$4 sm:$0xff]  }
 0x4ad   : > { %9156 = vmatpush1.bf16.msra.mxu1 %v2533_v35  ;;  %v2549_v35 = vunpack.c.h.s8.bf16 %v1525_v23  ;;  %v1918_v18 = vld [vmem:[%s18656_s2 + $0x13b8] sm:$0xff]  ;;  %v1533_v23 = vld [vmem:[%s18656_s2 + $0x7b0] sm:$0xff] }
 0x4ae   : > { %11868 = vmatpush1.bf16.msra.mxu0 %v3301_v36  ;;  %9157 = vmatprep.subr.bf16.mxu1 %v2536_v37  ;;  %v3317_v36 = vunpack.c.h.s8.bf16 %v1909_v24  ;;  %v2552_v37 = vunpack.c.l.s8.bf16 %v1528_v33  ;;  %v1917_v24 = vld [vmem:[%s18656_s2 + $0x13b0] sm:$0xff] }
 0x4af   : > { %11869 = vmatprep.subr.bf16.mxu0 %v3304_v38  ;;  %v3320_v38 = vunpack.c.l.s8.bf16 %v1912_v34 }
 0x4b0   : > { %9101 = vmatmul.mubr.bf16.gmra.mrb[16].mxu1 %v17367_v41  ;;  %v17387_v41 = vld [vmem:[%s18649_s23 + $0x70] ss:$392 sps:$4 sm:$0xff]  }
 0x4b1   : > { %11813 = vmatmul.mubr.bf16.gmra.mrb[16].mxu0 %v17368_v42  ;;  %9158 = vmatpush1.bf16.msra.mxu1 %v2535_v43  ;;  %v17390_v42 = vld [vmem:[%s18649_s23 + $0x130] ss:$392 sps:$4 sm:$0xff]   ;;  %v2551_v43 = vunpack.c.l.s8.bf16 %v1527_v39 }
 0x4b2   : > { %11870 = vmatpush1.bf16.msra.mxu0 %v3303_v44  ;;  %9159 = vmatprep.subr.bf16.mxu1 %v2538_v45  ;;  %v3319_v44 = vunpack.c.l.s8.bf16 %v1911_v40  ;;  %v2554_v45 = vunpack.c.h.s8.bf16 %v1528_v33  ;;  %v1536_v33 = vld [vmem:[%s18656_s2 + $0x7c8] sm:$0xff] }
 0x4b3   : > { %11871 = vmatprep.subr.bf16.mxu0 %v3306_v46  ;;  %9110 = vmatprep.mubr.bf16.mxu1 %v17369_v47  ;;  %v3322_v46 = vunpack.c.h.s8.bf16 %v1912_v34  ;;  %v17393_v47 = vld [vmem:[%s18649_s23 + $0x384] ss:$392 sps:$4 sm:$0xff]  }
 0x4b4   : > { %11822 = vmatprep.mubr.bf16.mxu0 %v17371_v48  ;;  %v17395_v48 = vld [vmem:[%s18649_s23 + $0x444] ss:$392 sps:$4 sm:$0xff]  }
 0x4b5   : > { %9160 = vmatpush1.bf16.msra.mxu1 %v2537_v51  ;;  %v2553_v51 = vunpack.c.h.s8.bf16 %v1527_v39  ;;  %v1920_v34 = vld [vmem:[%s18656_s2 + $0x13c8] sm:$0xff]  ;;  %v1535_v39 = vld [vmem:[%s18656_s2 + $0x7c0] sm:$0xff] }
 0x4b6   : > { %11872 = vmatpush1.bf16.msra.mxu0 %v3305_v52  ;;  %9161 = vmatprep.subr.bf16.mxu1 %v2540_v53  ;;  %v3321_v52 = vunpack.c.h.s8.bf16 %v1911_v40  ;;  %v2556_v53 = vunpack.c.l.s8.bf16 %v1530_v49  ;;  %v1919_v40 = vld [vmem:[%s18656_s2 + $0x13c0] sm:$0xff] }
 0x4b7   : > { %11873 = vmatprep.subr.bf16.mxu0 %v3308_v54  ;;  %v3324_v54 = vunpack.c.l.s8.bf16 %v1914_v50 }
 0x4b8   : > { %9111 = vmatmul.mubr.bf16.gmra.mrb[20].mxu1 %v17373_v57  ;;  %v17397_v57 = vld [vmem:[%s18649_s23 + $0x380] ss:$392 sps:$4 sm:$0xff]  }
 0x4b9   : > { %11823 = vmatmul.mubr.bf16.gmra.mrb[20].mxu0 %v17374_v58  ;;  %9162 = vmatpush1.bf16.msra.mxu1 %v2539_v59  ;;  %v17398_v58 = vld [vmem:[%s18649_s23 + $0x440] ss:$392 sps:$4 sm:$0xff]   ;;  %v2555_v59 = vunpack.c.l.s8.bf16 %v1529_v55 }
 0x4ba   : > { %11874 = vmatpush1.bf16.msra.mxu0 %v3307_v60  ;;  %9163 = vmatprep.subr.bf16.mxu1 %v2542_v61  ;;  %v3323_v60 = vunpack.c.l.s8.bf16 %v1913_v56  ;;  %v2558_v61 = vunpack.c.h.s8.bf16 %v1530_v49  ;;  %v1538_v49 = vld [vmem:[%s18656_s2 + $0x7d8] sm:$0xff] }
 0x4bb   : > { %11875 = vmatprep.subr.bf16.mxu0 %v3310_v62  ;;  %9120 = vmatprep.mubr.bf16.mxu1 %v17375_v63  ;;  %v3326_v62 = vunpack.c.h.s8.bf16 %v1914_v50  ;;  %v17399_v63 = vld [vmem:[%s18649_s23 + $0x694] ss:$392 sps:$4 sm:$0xff]  }
 0x4bc   : > { %11832 = vmatprep.mubr.bf16.mxu0 %v17377_v0  ;;  %v17401_v0 = vld [vmem:[%s18649_s23 + $0x754] ss:$392 sps:$4 sm:$0xff]  }
 0x4bd   : > { %9164 = vmatpush1.bf16.msra.mxu1 %v2541_v3  ;;  %v2557_v3 = vunpack.c.h.s8.bf16 %v1529_v55  ;;  %v1922_v50 = vld [vmem:[%s18656_s2 + $0x13d8] sm:$0xff]  ;;  %v1537_v55 = vld [vmem:[%s18656_s2 + $0x7d0] sm:$0xff] }
 0x4be   : > { %11876 = vmatpush1.bf16.msra.mxu0 %v3309_v4  ;;  %9165 = vmatprep.subr.bf16.mxu1 %v2544_v5  ;;  %v3325_v4 = vunpack.c.h.s8.bf16 %v1913_v56  ;;  %v2560_v5 = vunpack.c.l.s8.bf16 %v1532_v1  ;;  %v1921_v56 = vld [vmem:[%s18656_s2 + $0x13d0] sm:$0xff] }
 0x4bf   : > { %11877 = vmatprep.subr.bf16.mxu0 %v3312_v6  ;;  %v3328_v6 = vunpack.c.l.s8.bf16 %v1916_v2 }
 0x4c0   : > { %9121 = vmatmul.mubr.bf16.gmra.mrb[24].mxu1 %v17379_v9  ;;  %v17403_v9 = vld [vmem:[%s18649_s23 + $0x690] ss:$392 sps:$4 sm:$0xff]  }
 0x4c1   : > { %11833 = vmatmul.mubr.bf16.gmra.mrb[24].mxu0 %v17380_v10  ;;  %9166 = vmatpush1.bf16.msra.mxu1 %v2543_v11  ;;  %v17404_v10 = vld [vmem:[%s18649_s23 + $0x750] ss:$392 sps:$4 sm:$0xff]   ;;  %v2559_v11 = vunpack.c.l.s8.bf16 %v1531_v7 }
 0x4c2   : > { %11878 = vmatpush1.bf16.msra.mxu0 %v3311_v12  ;;  %9167 = vmatprep.subr.bf16.mxu1 %v2546_v13  ;;  %v3327_v12 = vunpack.c.l.s8.bf16 %v1915_v8  ;;  %v2562_v13 = vunpack.c.h.s8.bf16 %v1532_v1  ;;  %v1540_v1 = vld [vmem:[%s18656_s2 + $0x7e8] sm:$0xff] }
 0x4c3   : > { %11879 = vmatprep.subr.bf16.mxu0 %v3314_v14  ;;  %9130 = vmatprep.mubr.bf16.mxu1 %v17381_v15  ;;  %v3330_v14 = vunpack.c.h.s8.bf16 %v1916_v2  ;;  %v17405_v15 = vld [vmem:[%s18649_s23 + $0x9a4] ss:$392 sps:$4 sm:$0xff]  }
 0x4c4   : > { %11842 = vmatprep.mubr.bf16.mxu0 %v17383_v16  ;;  %v17407_v16 = vld [vmem:[%s18649_s23 + $0xa64] ss:$392 sps:$4 sm:$0xff]  }
 0x4c5   : > { %9168 = vmatpush1.bf16.msra.mxu1 %v2545_v19  ;;  %v2561_v19 = vunpack.c.h.s8.bf16 %v1531_v7  ;;  %v1924_v2 = vld [vmem:[%s18656_s2 + $0x13e8] sm:$0xff]  ;;  %v1539_v7 = vld [vmem:[%s18656_s2 + $0x7e0] sm:$0xff] }
 0x4c6   : > { %11880 = vmatpush1.bf16.msra.mxu0 %v3313_v20  ;;  %9169 = vmatprep.subr.bf16.mxu1 %v2548_v21  ;;  %v3329_v20 = vunpack.c.h.s8.bf16 %v1915_v8  ;;  %v2564_v21 = vunpack.c.l.s8.bf16 %v1534_v17  ;;  %v1923_v8 = vld [vmem:[%s18656_s2 + $0x13e0] sm:$0xff] }
 0x4c7   : > { %11881 = vmatprep.subr.bf16.mxu0 %v3316_v22  ;;  %v3332_v22 = vunpack.c.l.s8.bf16 %v1918_v18 }
 0x4c8   : > { %9131 = vmatmul.mubr.bf16.gmra.mrb[28].mxu1 %v17385_v25  ;;  %v17409_v25 = vld [vmem:[%s18649_s23 + $0x9a0] ss:$392 sps:$4 sm:$0xff]  }
 0x4c9   : > { %11843 = vmatmul.mubr.bf16.gmra.mrb[28].mxu0 %v17386_v26  ;;  %9170 = vmatpush1.bf16.msra.mxu1 %v2547_v27  ;;  %v17410_v26 = vld [vmem:[%s18649_s23 + $0xa60] ss:$392 sps:$4 sm:$0xff]   ;;  %v2563_v27 = vunpack.c.l.s8.bf16 %v1533_v23 }
 0x4ca   : > { %11882 = vmatpush1.bf16.msra.mxu0 %v3315_v28  ;;  %9171 = vmatprep.subr.bf16.mxu1 %v2550_v29  ;;  %v3331_v28 = vunpack.c.l.s8.bf16 %v1917_v24  ;;  %v2566_v29 = vunpack.c.h.s8.bf16 %v1534_v17  ;;  %v1542_v17 = vld [vmem:[%s18656_s2 + $0x7f8] sm:$0xff] }
 0x4cb   : > { %11883 = vmatprep.subr.bf16.mxu0 %v3318_v30  ;;  %9173 = vmatprep.mubr.bf16.mxu1 %v17389_v31  ;;  %v3334_v30 = vunpack.c.h.s8.bf16 %v1918_v18  ;;  %v17411_v31 = vld [vmem:[%s18649_s23 + $0xcb4] ss:$392 sps:$4 sm:$0xff]  }
 0x4cc   : > { %11885 = vmatprep.mubr.bf16.mxu0 %v17392_v32  ;;  %v17413_v32 = vld [vmem:[%s18649_s23 + $0xd74] ss:$392 sps:$4 sm:$0xff]  }
 0x4cd   : > { %9172 = vmatpush1.bf16.msra.mxu1 %v2549_v35  ;;  %v2565_v35 = vunpack.c.h.s8.bf16 %v1533_v23  ;;  %v1926_v18 = vld [vmem:[%s18656_s2 + $0x13f8] sm:$0xff]  ;;  %v1541_v23 = vld [vmem:[%s18656_s2 + $0x7f0] sm:$0xff] }
 0x4ce   : > { %11884 = vmatpush1.bf16.msra.mxu0 %v3317_v36  ;;  %9254 = vmatprep.subr.bf16.mxu1 %v2552_v37  ;;  %v3333_v36 = vunpack.c.h.s8.bf16 %v1917_v24  ;;  %v2568_v37 = vunpack.c.l.s8.bf16 %v1536_v33  ;;  %v1925_v24 = vld [vmem:[%s18656_s2 + $0x13f0] sm:$0xff] }
 0x4cf   : > { %11966 = vmatprep.subr.bf16.mxu0 %v3320_v38  ;;  %v3336_v38 = vunpack.c.l.s8.bf16 %v1920_v34 }
 0x4d0   : > { %9174 = vmatmul.mubr.bf16.vlgmr.msra.gmra.mrb[0].mxu1 %v17387_v41  ;;  %v17415_v41 = vld [vmem:[%s18649_s23 + $0xcb0] ss:$392 sps:$4 sm:$0xff]  }
 0x4d1   : > { %11886 = vmatmul.mubr.bf16.vlgmr.msra.gmra.mrb[0].mxu0 %v17390_v42  ;;  %9255 = vmatpush1.bf16.msra.mxu1 %v2551_v43  ;;  %v17416_v42 = vld [vmem:[%s18649_s23 + $0xd70] ss:$392 sps:$4 sm:$0xff]   ;;  %v2567_v43 = vunpack.c.l.s8.bf16 %v1535_v39 }
 0x4d2   : > { %11967 = vmatpush1.bf16.msra.mxu0 %v3319_v44  ;;  %9256 = vmatprep.subr.bf16.mxu1 %v2554_v45  ;;  %v3335_v44 = vunpack.c.l.s8.bf16 %v1919_v40  ;;  %v2570_v45 = vunpack.c.h.s8.bf16 %v1536_v33  ;;  %v1544_v33 = vld [vmem:[%s18656_s2 + $0x808] sm:$0xff] }
 0x4d3   : > { %11968 = vmatprep.subr.bf16.mxu0 %v3322_v46  ;;  %9183 = vmatprep.mubr.bf16.mxu1 %v17393_v47  ;;  %v3338_v46 = vunpack.c.h.s8.bf16 %v1920_v34  ;;  %v17417_v47 = vld [vmem:[%s18649_s23 + $0xfc4] ss:$392 sps:$4 sm:$0xff]  }
 0x4d4   : > { %11895 = vmatprep.mubr.bf16.mxu0 %v17395_v48  ;;  %v17419_v48 = vld [vmem:[%s18649_s23 + $0x1084] ss:$392 sps:$4 sm:$0xff]  }
 0x4d5   : > { %9257 = vmatpush1.bf16.msra.mxu1 %v2553_v51  ;;  %v2569_v51 = vunpack.c.h.s8.bf16 %v1535_v39  ;;  %v1928_v34 = vld [vmem:[%s18656_s2 + $0x1408] sm:$0xff]  ;;  %v1543_v39 = vld [vmem:[%s18656_s2 + $0x800] sm:$0xff] }
 0x4d6   : > { %11969 = vmatpush1.bf16.msra.mxu0 %v3321_v52  ;;  %9258 = vmatprep.subr.bf16.mxu1 %v2556_v53  ;;  %v3337_v52 = vunpack.c.h.s8.bf16 %v1919_v40  ;;  %v2572_v53 = vunpack.c.l.s8.bf16 %v1538_v49  ;;  %v1927_v40 = vld [vmem:[%s18656_s2 + $0x1400] sm:$0xff] }
 0x4d7   : > { %11970 = vmatprep.subr.bf16.mxu0 %v3324_v54  ;;  %v3340_v54 = vunpack.c.l.s8.bf16 %v1922_v50 }
 0x4d8   : > { %9184 = vmatmul.mubr.bf16.gmra.mrb[4].mxu1 %v17397_v57  ;;  %v17421_v57 = vld [vmem:[%s18649_s23 + $0xfc0] ss:$392 sps:$4 sm:$0xff]  }
 0x4d9   : > { %11896 = vmatmul.mubr.bf16.gmra.mrb[4].mxu0 %v17398_v58  ;;  %9259 = vmatpush1.bf16.msra.mxu1 %v2555_v59  ;;  %v17422_v58 = vld [vmem:[%s18649_s23 + $0x1080] ss:$392 sps:$4 sm:$0xff]   ;;  %v2571_v59 = vunpack.c.l.s8.bf16 %v1537_v55 }
 0x4da   : > { %11971 = vmatpush1.bf16.msra.mxu0 %v3323_v60  ;;  %9260 = vmatprep.subr.bf16.mxu1 %v2558_v61  ;;  %v3339_v60 = vunpack.c.l.s8.bf16 %v1921_v56  ;;  %v2574_v61 = vunpack.c.h.s8.bf16 %v1538_v49  ;;  %v1546_v49 = vld [vmem:[%s18656_s2 + $0x818] sm:$0xff] }
 0x4db   : > { %11972 = vmatprep.subr.bf16.mxu0 %v3326_v62  ;;  %9193 = vmatprep.mubr.bf16.mxu1 %v17399_v63  ;;  %v3342_v62 = vunpack.c.h.s8.bf16 %v1922_v50  ;;  %v17423_v63 = vld [vmem:[%s18649_s23 + $0x12d4] ss:$392 sps:$4 sm:$0xff]  }
 0x4dc   : > { %11905 = vmatprep.mubr.bf16.mxu0 %v17401_v0  ;;  %v17425_v0 = vld [vmem:[%s18649_s23 + $0x1394] ss:$392 sps:$4 sm:$0xff]  }
 0x4dd   : > { %9261 = vmatpush1.bf16.msra.mxu1 %v2557_v3  ;;  %v2573_v3 = vunpack.c.h.s8.bf16 %v1537_v55  ;;  %v1930_v50 = vld [vmem:[%s18656_s2 + $0x1418] sm:$0xff]  ;;  %v1545_v55 = vld [vmem:[%s18656_s2 + $0x810] sm:$0xff] }
 0x4de   : > { %11973 = vmatpush1.bf16.msra.mxu0 %v3325_v4  ;;  %9262 = vmatprep.subr.bf16.mxu1 %v2560_v5  ;;  %v3341_v4 = vunpack.c.h.s8.bf16 %v1921_v56  ;;  %v2576_v5 = vunpack.c.l.s8.bf16 %v1540_v1  ;;  %v1929_v56 = vld [vmem:[%s18656_s2 + $0x1410] sm:$0xff] }
 0x4df   : > { %11974 = vmatprep.subr.bf16.mxu0 %v3328_v6  ;;  %v3344_v6 = vunpack.c.l.s8.bf16 %v1924_v2 }
 0x4e0   : > { %9194 = vmatmul.mubr.bf16.gmra.mrb[8].mxu1 %v17403_v9  ;;  %v17427_v9 = vld [vmem:[%s18649_s23 + $0x12d0] ss:$392 sps:$4 sm:$0xff]  }
 0x4e1   : > { %11906 = vmatmul.mubr.bf16.gmra.mrb[8].mxu0 %v17404_v10  ;;  %9263 = vmatpush1.bf16.msra.mxu1 %v2559_v11  ;;  %v17428_v10 = vld [vmem:[%s18649_s23 + $0x1390] ss:$392 sps:$4 sm:$0xff]   ;;  %v2575_v11 = vunpack.c.l.s8.bf16 %v1539_v7 }
 0x4e2   : > { %11975 = vmatpush1.bf16.msra.mxu0 %v3327_v12  ;;  %9264 = vmatprep.subr.bf16.mxu1 %v2562_v13  ;;  %v3343_v12 = vunpack.c.l.s8.bf16 %v1923_v8  ;;  %v2578_v13 = vunpack.c.h.s8.bf16 %v1540_v1  ;;  %v1548_v1 = vld [vmem:[%s18656_s2 + $0x828] sm:$0xff] }
 0x4e3   : > { %11976 = vmatprep.subr.bf16.mxu0 %v3330_v14  ;;  %9203 = vmatprep.mubr.bf16.mxu1 %v17405_v15  ;;  %v3346_v14 = vunpack.c.h.s8.bf16 %v1924_v2  ;;  %v17429_v15 = vld [vmem:[%s18649_s23 + $0x15e4] ss:$392 sps:$4 sm:$0xff]  }
 0x4e4   : > { %11915 = vmatprep.mubr.bf16.mxu0 %v17407_v16  ;;  %v17431_v16 = vld [vmem:[%s18649_s23 + $0x16a4] ss:$392 sps:$4 sm:$0xff]  }
 0x4e5   : > { %9265 = vmatpush1.bf16.msra.mxu1 %v2561_v19  ;;  %v2577_v19 = vunpack.c.h.s8.bf16 %v1539_v7  ;;  %v1932_v2 = vld [vmem:[%s18656_s2 + $0x1428] sm:$0xff]  ;;  %v1547_v7 = vld [vmem:[%s18656_s2 + $0x820] sm:$0xff] }
 0x4e6   : > { %11977 = vmatpush1.bf16.msra.mxu0 %v3329_v20  ;;  %9266 = vmatprep.subr.bf16.mxu1 %v2564_v21  ;;  %v3345_v20 = vunpack.c.h.s8.bf16 %v1923_v8  ;;  %v2580_v21 = vunpack.c.l.s8.bf16 %v1542_v17  ;;  %v1931_v8 = vld [vmem:[%s18656_s2 + $0x1420] sm:$0xff] }
 0x4e7   : > { %11978 = vmatprep.subr.bf16.mxu0 %v3332_v22  ;;  %v3348_v22 = vunpack.c.l.s8.bf16 %v1926_v18 }
 0x4e8   : > { %9204 = vmatmul.mubr.bf16.gmra.mrb[12].mxu1 %v17409_v25  ;;  %v17433_v25 = vld [vmem:[%s18649_s23 + $0x15e0] ss:$392 sps:$4 sm:$0xff]  }
 0x4e9   : > { %11916 = vmatmul.mubr.bf16.gmra.mrb[12].mxu0 %v17410_v26  ;;  %9267 = vmatpush1.bf16.msra.mxu1 %v2563_v27  ;;  %v17434_v26 = vld [vmem:[%s18649_s23 + $0x16a0] ss:$392 sps:$4 sm:$0xff]   ;;  %v2579_v27 = vunpack.c.l.s8.bf16 %v1541_v23 }
 0x4ea   : > { %11979 = vmatpush1.bf16.msra.mxu0 %v3331_v28  ;;  %9268 = vmatprep.subr.bf16.mxu1 %v2566_v29  ;;  %v3347_v28 = vunpack.c.l.s8.bf16 %v1925_v24  ;;  %v2582_v29 = vunpack.c.h.s8.bf16 %v1542_v17  ;;  %v1550_v17 = vld [vmem:[%s18656_s2 + $0x838] sm:$0xff] }
 0x4eb   : > { %11980 = vmatprep.subr.bf16.mxu0 %v3334_v30  ;;  %9213 = vmatprep.mubr.bf16.mxu1 %v17411_v31  ;;  %v3350_v30 = vunpack.c.h.s8.bf16 %v1926_v18  ;;  %v17437_v31 = vld [vmem:[%s18649_s23 + $0x7c] ss:$392 sps:$4 sm:$0xff]  }
 0x4ec   : > { %11925 = vmatprep.mubr.bf16.mxu0 %v17413_v32  ;;  %v17440_v32 = vld [vmem:[%s18649_s23 + $0x13c] ss:$392 sps:$4 sm:$0xff]  }
 0x4ed   : > { %9269 = vmatpush1.bf16.msra.mxu1 %v2565_v35  ;;  %v2581_v35 = vunpack.c.h.s8.bf16 %v1541_v23  ;;  %v1934_v18 = vld [vmem:[%s18656_s2 + $0x1438] sm:$0xff]  ;;  %v1549_v23 = vld [vmem:[%s18656_s2 + $0x830] sm:$0xff] }
 0x4ee   : > { %11981 = vmatpush1.bf16.msra.mxu0 %v3333_v36  ;;  %9270 = vmatprep.subr.bf16.mxu1 %v2568_v37  ;;  %v3349_v36 = vunpack.c.h.s8.bf16 %v1925_v24  ;;  %v2584_v37 = vunpack.c.l.s8.bf16 %v1544_v33  ;;  %v1933_v24 = vld [vmem:[%s18656_s2 + $0x1430] sm:$0xff] }
 0x4ef   : > { %11982 = vmatprep.subr.bf16.mxu0 %v3336_v38  ;;  %v3352_v38 = vunpack.c.l.s8.bf16 %v1928_v34 }
 0x4f0   : > { %9214 = vmatmul.mubr.bf16.gmra.mrb[16].mxu1 %v17415_v41  ;;  %v17435_v41 = vld [vmem:[%s18649_s23 + $0x78] ss:$392 sps:$4 sm:$0xff]  }
 0x4f1   : > { %11926 = vmatmul.mubr.bf16.gmra.mrb[16].mxu0 %v17416_v42  ;;  %9271 = vmatpush1.bf16.msra.mxu1 %v2567_v43  ;;  %v17438_v42 = vld [vmem:[%s18649_s23 + $0x138] ss:$392 sps:$4 sm:$0xff]   ;;  %v2583_v43 = vunpack.c.l.s8.bf16 %v1543_v39 }
 0x4f2   : > { %11983 = vmatpush1.bf16.msra.mxu0 %v3335_v44  ;;  %9272 = vmatprep.subr.bf16.mxu1 %v2570_v45  ;;  %v3351_v44 = vunpack.c.l.s8.bf16 %v1927_v40  ;;  %v2586_v45 = vunpack.c.h.s8.bf16 %v1544_v33  ;;  %v1552_v33 = vld [vmem:[%s18656_s2 + $0x848] sm:$0xff] }
 0x4f3   : > { %11984 = vmatprep.subr.bf16.mxu0 %v3338_v46  ;;  %9223 = vmatprep.mubr.bf16.mxu1 %v17417_v47  ;;  %v3354_v46 = vunpack.c.h.s8.bf16 %v1928_v34  ;;  %v17441_v47 = vld [vmem:[%s18649_s23 + $0x38c] ss:$392 sps:$4 sm:$0xff]  }
 0x4f4   : > { %11935 = vmatprep.mubr.bf16.mxu0 %v17419_v48  ;;  %v17443_v48 = vld [vmem:[%s18649_s23 + $0x44c] ss:$392 sps:$4 sm:$0xff]  }
 0x4f5   : > { %9273 = vmatpush1.bf16.msra.mxu1 %v2569_v51  ;;  %v2585_v51 = vunpack.c.h.s8.bf16 %v1543_v39  ;;  %v1936_v34 = vld [vmem:[%s18656_s2 + $0x1448] sm:$0xff]  ;;  %v1551_v39 = vld [vmem:[%s18656_s2 + $0x840] sm:$0xff] }
 0x4f6   : > { %11985 = vmatpush1.bf16.msra.mxu0 %v3337_v52  ;;  %9274 = vmatprep.subr.bf16.mxu1 %v2572_v53  ;;  %v3353_v52 = vunpack.c.h.s8.bf16 %v1927_v40  ;;  %v2588_v53 = vunpack.c.l.s8.bf16 %v1546_v49  ;;  %v1935_v40 = vld [vmem:[%s18656_s2 + $0x1440] sm:$0xff] }
 0x4f7   : > { %11986 = vmatprep.subr.bf16.mxu0 %v3340_v54  ;;  %v3356_v54 = vunpack.c.l.s8.bf16 %v1930_v50 }
 0x4f8   : > { %9224 = vmatmul.mubr.bf16.gmra.mrb[20].mxu1 %v17421_v57  ;;  %v17445_v57 = vld [vmem:[%s18649_s23 + $0x388] ss:$392 sps:$4 sm:$0xff]  }
 0x4f9   : > { %11936 = vmatmul.mubr.bf16.gmra.mrb[20].mxu0 %v17422_v58  ;;  %9275 = vmatpush1.bf16.msra.mxu1 %v2571_v59  ;;  %v17446_v58 = vld [vmem:[%s18649_s23 + $0x448] ss:$392 sps:$4 sm:$0xff]   ;;  %v2587_v59 = vunpack.c.l.s8.bf16 %v1545_v55 }
 0x4fa   : > { %11987 = vmatpush1.bf16.msra.mxu0 %v3339_v60  ;;  %9276 = vmatprep.subr.bf16.mxu1 %v2574_v61  ;;  %v3355_v60 = vunpack.c.l.s8.bf16 %v1929_v56  ;;  %v2590_v61 = vunpack.c.h.s8.bf16 %v1546_v49  ;;  %v1554_v49 = vld [vmem:[%s18656_s2 + $0x858] sm:$0xff] }
 0x4fb   : > { %11988 = vmatprep.subr.bf16.mxu0 %v3342_v62  ;;  %9233 = vmatprep.mubr.bf16.mxu1 %v17423_v63  ;;  %v3358_v62 = vunpack.c.h.s8.bf16 %v1930_v50  ;;  %v17447_v63 = vld [vmem:[%s18649_s23 + $0x69c] ss:$392 sps:$4 sm:$0xff]  }
 0x4fc   : > { %11945 = vmatprep.mubr.bf16.mxu0 %v17425_v0  ;;  %v17449_v0 = vld [vmem:[%s18649_s23 + $0x75c] ss:$392 sps:$4 sm:$0xff]  }
 0x4fd   : > { %9277 = vmatpush1.bf16.msra.mxu1 %v2573_v3  ;;  %v2589_v3 = vunpack.c.h.s8.bf16 %v1545_v55  ;;  %v1938_v50 = vld [vmem:[%s18656_s2 + $0x1458] sm:$0xff]  ;;  %v1553_v55 = vld [vmem:[%s18656_s2 + $0x850] sm:$0xff] }
 0x4fe   : > { %11989 = vmatpush1.bf16.msra.mxu0 %v3341_v4  ;;  %9278 = vmatprep.subr.bf16.mxu1 %v2576_v5  ;;  %v3357_v4 = vunpack.c.h.s8.bf16 %v1929_v56  ;;  %v2592_v5 = vunpack.c.l.s8.bf16 %v1548_v1  ;;  %v1937_v56 = vld [vmem:[%s18656_s2 + $0x1450] sm:$0xff] }
 0x4ff   : > { %11990 = vmatprep.subr.bf16.mxu0 %v3344_v6  ;;  %v3360_v6 = vunpack.c.l.s8.bf16 %v1932_v2 }
 0x500   : > { %9234 = vmatmul.mubr.bf16.gmra.mrb[24].mxu1 %v17427_v9  ;;  %v17451_v9 = vld [vmem:[%s18649_s23 + $0x698] ss:$392 sps:$4 sm:$0xff]  }
 0x501   : > { %11946 = vmatmul.mubr.bf16.gmra.mrb[24].mxu0 %v17428_v10  ;;  %9279 = vmatpush1.bf16.msra.mxu1 %v2575_v11  ;;  %v17452_v10 = vld [vmem:[%s18649_s23 + $0x758] ss:$392 sps:$4 sm:$0xff]   ;;  %v2591_v11 = vunpack.c.l.s8.bf16 %v1547_v7 }
 0x502   : > { %11991 = vmatpush1.bf16.msra.mxu0 %v3343_v12  ;;  %9280 = vmatprep.subr.bf16.mxu1 %v2578_v13  ;;  %v3359_v12 = vunpack.c.l.s8.bf16 %v1931_v8  ;;  %v2594_v13 = vunpack.c.h.s8.bf16 %v1548_v1  ;;  %v1556_v1 = vld [vmem:[%s18656_s2 + $0x868] sm:$0xff] }
 0x503   : > { %11992 = vmatprep.subr.bf16.mxu0 %v3346_v14  ;;  %9243 = vmatprep.mubr.bf16.mxu1 %v17429_v15  ;;  %v3362_v14 = vunpack.c.h.s8.bf16 %v1932_v2  ;;  %v17453_v15 = vld [vmem:[%s18649_s23 + $0x9ac] ss:$392 sps:$4 sm:$0xff]  }
 0x504   : > { %11955 = vmatprep.mubr.bf16.mxu0 %v17431_v16  ;;  %v17455_v16 = vld [vmem:[%s18649_s23 + $0xa6c] ss:$392 sps:$4 sm:$0xff]  }
 0x505   : > { %9281 = vmatpush1.bf16.msra.mxu1 %v2577_v19  ;;  %v2593_v19 = vunpack.c.h.s8.bf16 %v1547_v7  ;;  %v1940_v2 = vld [vmem:[%s18656_s2 + $0x1468] sm:$0xff]  ;;  %v1555_v7 = vld [vmem:[%s18656_s2 + $0x860] sm:$0xff] }
 0x506   : > { %11993 = vmatpush1.bf16.msra.mxu0 %v3345_v20  ;;  %9282 = vmatprep.subr.bf16.mxu1 %v2580_v21  ;;  %v3361_v20 = vunpack.c.h.s8.bf16 %v1931_v8  ;;  %v2596_v21 = vunpack.c.l.s8.bf16 %v1550_v17  ;;  %v1939_v8 = vld [vmem:[%s18656_s2 + $0x1460] sm:$0xff] }
 0x507   : > { %11994 = vmatprep.subr.bf16.mxu0 %v3348_v22  ;;  %v3364_v22 = vunpack.c.l.s8.bf16 %v1934_v18 }
 0x508   : > { %9244 = vmatmul.mubr.bf16.gmra.mrb[28].mxu1 %v17433_v25  ;;  %v17457_v25 = vld [vmem:[%s18649_s23 + $0x9a8] ss:$392 sps:$4 sm:$0xff]  }
 0x509   : > { %11956 = vmatmul.mubr.bf16.gmra.mrb[28].mxu0 %v17434_v26  ;;  %9283 = vmatpush1.bf16.msra.mxu1 %v2579_v27  ;;  %v17458_v26 = vld [vmem:[%s18649_s23 + $0xa68] ss:$392 sps:$4 sm:$0xff]   ;;  %v2595_v27 = vunpack.c.l.s8.bf16 %v1549_v23 }
 0x50a   : > { %11995 = vmatpush1.bf16.msra.mxu0 %v3347_v28  ;;  %9284 = vmatprep.subr.bf16.mxu1 %v2582_v29  ;;  %v3363_v28 = vunpack.c.l.s8.bf16 %v1933_v24  ;;  %v2598_v29 = vunpack.c.h.s8.bf16 %v1550_v17  ;;  %v1558_v17 = vld [vmem:[%s18656_s2 + $0x878] sm:$0xff] }
 0x50b   : > { %11996 = vmatprep.subr.bf16.mxu0 %v3350_v30  ;;  %9286 = vmatprep.mubr.bf16.mxu1 %v17437_v31  ;;  %v3366_v30 = vunpack.c.h.s8.bf16 %v1934_v18  ;;  %v17459_v31 = vld [vmem:[%s18649_s23 + $0xcbc] ss:$392 sps:$4 sm:$0xff]  }
 0x50c   : > { %11998 = vmatprep.mubr.bf16.mxu0 %v17440_v32  ;;  %v17461_v32 = vld [vmem:[%s18649_s23 + $0xd7c] ss:$392 sps:$4 sm:$0xff]  }
 0x50d   : > { %9285 = vmatpush1.bf16.msra.mxu1 %v2581_v35  ;;  %v2597_v35 = vunpack.c.h.s8.bf16 %v1549_v23  ;;  %v1942_v18 = vld [vmem:[%s18656_s2 + $0x1478] sm:$0xff]  ;;  %v1557_v23 = vld [vmem:[%s18656_s2 + $0x870] sm:$0xff] }
 0x50e   : > { %11997 = vmatpush1.bf16.msra.mxu0 %v3349_v36  ;;  %9367 = vmatprep.subr.bf16.mxu1 %v2584_v37  ;;  %v3365_v36 = vunpack.c.h.s8.bf16 %v1933_v24  ;;  %v2600_v37 = vunpack.c.l.s8.bf16 %v1552_v33  ;;  %v1941_v24 = vld [vmem:[%s18656_s2 + $0x1470] sm:$0xff] }
 0x50f   : > { %12079 = vmatprep.subr.bf16.mxu0 %v3352_v38  ;;  %v3368_v38 = vunpack.c.l.s8.bf16 %v1936_v34 }
 0x510   : > { %9287 = vmatmul.mubr.bf16.vlgmr.msra.gmra.mrb[0].mxu1 %v17435_v41  ;;  %v17463_v41 = vld [vmem:[%s18649_s23 + $0xcb8] ss:$392 sps:$4 sm:$0xff]  }
 0x511   : > { %11999 = vmatmul.mubr.bf16.vlgmr.msra.gmra.mrb[0].mxu0 %v17438_v42  ;;  %9368 = vmatpush1.bf16.msra.mxu1 %v2583_v43  ;;  %v17464_v42 = vld [vmem:[%s18649_s23 + $0xd78] ss:$392 sps:$4 sm:$0xff]   ;;  %v2599_v43 = vunpack.c.l.s8.bf16 %v1551_v39 }
 0x512   : > { %12080 = vmatpush1.bf16.msra.mxu0 %v3351_v44  ;;  %9369 = vmatprep.subr.bf16.mxu1 %v2586_v45  ;;  %v3367_v44 = vunpack.c.l.s8.bf16 %v1935_v40  ;;  %v2602_v45 = vunpack.c.h.s8.bf16 %v1552_v33  ;;  %v1560_v33 = vld [vmem:[%s18656_s2 + $0x888] sm:$0xff] }
 0x513   : > { %12081 = vmatprep.subr.bf16.mxu0 %v3354_v46  ;;  %9296 = vmatprep.mubr.bf16.mxu1 %v17441_v47  ;;  %v3370_v46 = vunpack.c.h.s8.bf16 %v1936_v34  ;;  %v17465_v47 = vld [vmem:[%s18649_s23 + $0xfcc] ss:$392 sps:$4 sm:$0xff]  }
 0x514   : > { %12008 = vmatprep.mubr.bf16.mxu0 %v17443_v48  ;;  %v17467_v48 = vld [vmem:[%s18649_s23 + $0x108c] ss:$392 sps:$4 sm:$0xff]  }
 0x515   : > { %9370 = vmatpush1.bf16.msra.mxu1 %v2585_v51  ;;  %v2601_v51 = vunpack.c.h.s8.bf16 %v1551_v39  ;;  %v1944_v34 = vld [vmem:[%s18656_s2 + $0x1488] sm:$0xff]  ;;  %v1559_v39 = vld [vmem:[%s18656_s2 + $0x880] sm:$0xff] }
 0x516   : > { %12082 = vmatpush1.bf16.msra.mxu0 %v3353_v52  ;;  %9371 = vmatprep.subr.bf16.mxu1 %v2588_v53  ;;  %v3369_v52 = vunpack.c.h.s8.bf16 %v1935_v40  ;;  %v2604_v53 = vunpack.c.l.s8.bf16 %v1554_v49  ;;  %v1943_v40 = vld [vmem:[%s18656_s2 + $0x1480] sm:$0xff] }
 0x517   : > { %12083 = vmatprep.subr.bf16.mxu0 %v3356_v54  ;;  %v3372_v54 = vunpack.c.l.s8.bf16 %v1938_v50 }
 0x518   : > { %9297 = vmatmul.mubr.bf16.gmra.mrb[4].mxu1 %v17445_v57  ;;  %v17469_v57 = vld [vmem:[%s18649_s23 + $0xfc8] ss:$392 sps:$4 sm:$0xff]  }
 0x519   : > { %12009 = vmatmul.mubr.bf16.gmra.mrb[4].mxu0 %v17446_v58  ;;  %9372 = vmatpush1.bf16.msra.mxu1 %v2587_v59  ;;  %v17470_v58 = vld [vmem:[%s18649_s23 + $0x1088] ss:$392 sps:$4 sm:$0xff]   ;;  %v2603_v59 = vunpack.c.l.s8.bf16 %v1553_v55 }
 0x51a   : > { %12084 = vmatpush1.bf16.msra.mxu0 %v3355_v60  ;;  %9373 = vmatprep.subr.bf16.mxu1 %v2590_v61  ;;  %v3371_v60 = vunpack.c.l.s8.bf16 %v1937_v56  ;;  %v2606_v61 = vunpack.c.h.s8.bf16 %v1554_v49  ;;  %v1562_v49 = vld [vmem:[%s18656_s2 + $0x898] sm:$0xff] }
 0x51b   : > { %12085 = vmatprep.subr.bf16.mxu0 %v3358_v62  ;;  %9306 = vmatprep.mubr.bf16.mxu1 %v17447_v63  ;;  %v3374_v62 = vunpack.c.h.s8.bf16 %v1938_v50  ;;  %v17471_v63 = vld [vmem:[%s18649_s23 + $0x12dc] ss:$392 sps:$4 sm:$0xff]  }
 0x51c   : > { %12018 = vmatprep.mubr.bf16.mxu0 %v17449_v0  ;;  %v17473_v0 = vld [vmem:[%s18649_s23 + $0x139c] ss:$392 sps:$4 sm:$0xff]  }
 0x51d   : > { %9374 = vmatpush1.bf16.msra.mxu1 %v2589_v3  ;;  %v2605_v3 = vunpack.c.h.s8.bf16 %v1553_v55  ;;  %v1946_v50 = vld [vmem:[%s18656_s2 + $0x1498] sm:$0xff]  ;;  %v1561_v55 = vld [vmem:[%s18656_s2 + $0x890] sm:$0xff] }
 0x51e   : > { %12086 = vmatpush1.bf16.msra.mxu0 %v3357_v4  ;;  %9375 = vmatprep.subr.bf16.mxu1 %v2592_v5  ;;  %v3373_v4 = vunpack.c.h.s8.bf16 %v1937_v56  ;;  %v2608_v5 = vunpack.c.l.s8.bf16 %v1556_v1  ;;  %v1945_v56 = vld [vmem:[%s18656_s2 + $0x1490] sm:$0xff] }
 0x51f   : > { %12087 = vmatprep.subr.bf16.mxu0 %v3360_v6  ;;  %v3376_v6 = vunpack.c.l.s8.bf16 %v1940_v2 }
 0x520   : > { %9307 = vmatmul.mubr.bf16.gmra.mrb[8].mxu1 %v17451_v9  ;;  %v17475_v9 = vld [vmem:[%s18649_s23 + $0x12d8] ss:$392 sps:$4 sm:$0xff]  }
 0x521   : > { %12019 = vmatmul.mubr.bf16.gmra.mrb[8].mxu0 %v17452_v10  ;;  %9376 = vmatpush1.bf16.msra.mxu1 %v2591_v11  ;;  %v17476_v10 = vld [vmem:[%s18649_s23 + $0x1398] ss:$392 sps:$4 sm:$0xff]   ;;  %v2607_v11 = vunpack.c.l.s8.bf16 %v1555_v7 }
 0x522   : > { %12088 = vmatpush1.bf16.msra.mxu0 %v3359_v12  ;;  %9377 = vmatprep.subr.bf16.mxu1 %v2594_v13  ;;  %v3375_v12 = vunpack.c.l.s8.bf16 %v1939_v8  ;;  %v2610_v13 = vunpack.c.h.s8.bf16 %v1556_v1  ;;  %v1564_v1 = vld [vmem:[%s18656_s2 + $0x8a8] sm:$0xff] }
 0x523   : > { %12089 = vmatprep.subr.bf16.mxu0 %v3362_v14  ;;  %9316 = vmatprep.mubr.bf16.mxu1 %v17453_v15  ;;  %v3378_v14 = vunpack.c.h.s8.bf16 %v1940_v2  ;;  %v17477_v15 = vld [vmem:[%s18649_s23 + $0x15ec] ss:$392 sps:$4 sm:$0xff]  }
 0x524   : > { %12028 = vmatprep.mubr.bf16.mxu0 %v17455_v16  ;;  %v17479_v16 = vld [vmem:[%s18649_s23 + $0x16ac] ss:$392 sps:$4 sm:$0xff]  }
 0x525   : > { %9378 = vmatpush1.bf16.msra.mxu1 %v2593_v19  ;;  %v2609_v19 = vunpack.c.h.s8.bf16 %v1555_v7  ;;  %v1948_v2 = vld [vmem:[%s18656_s2 + $0x14a8] sm:$0xff]  ;;  %v1563_v7 = vld [vmem:[%s18656_s2 + $0x8a0] sm:$0xff] }
 0x526   : > { %12090 = vmatpush1.bf16.msra.mxu0 %v3361_v20  ;;  %9379 = vmatprep.subr.bf16.mxu1 %v2596_v21  ;;  %v3377_v20 = vunpack.c.h.s8.bf16 %v1939_v8  ;;  %v2612_v21 = vunpack.c.l.s8.bf16 %v1558_v17  ;;  %v1947_v8 = vld [vmem:[%s18656_s2 + $0x14a0] sm:$0xff] }
 0x527   : > { %12091 = vmatprep.subr.bf16.mxu0 %v3364_v22  ;;  %v3380_v22 = vunpack.c.l.s8.bf16 %v1942_v18 }
 0x528   : > { %9317 = vmatmul.mubr.bf16.gmra.mrb[12].mxu1 %v17457_v25  ;;  %v17481_v25 = vld [vmem:[%s18649_s23 + $0x15e8] ss:$392 sps:$4 sm:$0xff]  }
 0x529   : > { %12029 = vmatmul.mubr.bf16.gmra.mrb[12].mxu0 %v17458_v26  ;;  %9380 = vmatpush1.bf16.msra.mxu1 %v2595_v27  ;;  %v17482_v26 = vld [vmem:[%s18649_s23 + $0x16a8] ss:$392 sps:$4 sm:$0xff]   ;;  %v2611_v27 = vunpack.c.l.s8.bf16 %v1557_v23 }
 0x52a   : > { %12092 = vmatpush1.bf16.msra.mxu0 %v3363_v28  ;;  %9381 = vmatprep.subr.bf16.mxu1 %v2598_v29  ;;  %v3379_v28 = vunpack.c.l.s8.bf16 %v1941_v24  ;;  %v2614_v29 = vunpack.c.h.s8.bf16 %v1558_v17  ;;  %v1566_v17 = vld [vmem:[%s18656_s2 + $0x8b8] sm:$0xff] }
 0x52b   : > { %12093 = vmatprep.subr.bf16.mxu0 %v3366_v30  ;;  %9326 = vmatprep.mubr.bf16.mxu1 %v17459_v31  ;;  %v3382_v30 = vunpack.c.h.s8.bf16 %v1942_v18  ;;  %v17485_v31 = vld [vmem:[%s18649_s23 + $0x84] ss:$392 sps:$4 sm:$0xff]   ;;  %v1950_v18 = vld [vmem:[%s18656_s2 + $0x14b8] sm:$0xff] }
 0x52c   : > { %12038 = vmatprep.mubr.bf16.mxu0 %v17461_v32  ;;  %v17488_v32 = vld [vmem:[%s18649_s23 + $0x144] ss:$392 sps:$4 sm:$0xff]  }
 0x52d   : > { %9382 = vmatpush1.bf16.msra.mxu1 %v2597_v35  ;;  %v2613_v35 = vunpack.c.h.s8.bf16 %v1557_v23  ;;  %v1565_v23 = vld [vmem:[%s18656_s2 + $0x8b0] sm:$0xff] }
 0x52e   : > { %12094 = vmatpush1.bf16.msra.mxu0 %v3365_v36  ;;  %9383 = vmatprep.subr.bf16.mxu1 %v2600_v37  ;;  %v3381_v36 = vunpack.c.h.s8.bf16 %v1941_v24  ;;  %v2616_v37 = vunpack.c.l.s8.bf16 %v1560_v33  ;;  %v1949_v24 = vld [vmem:[%s18656_s2 + $0x14b0] sm:$0xff] }
 0x52f   : > { %12095 = vmatprep.subr.bf16.mxu0 %v3368_v38  ;;  %v3384_v38 = vunpack.c.l.s8.bf16 %v1944_v34 }
 0x530   : > { %9327 = vmatmul.mubr.bf16.gmra.mrb[16].mxu1 %v17463_v41  ;;  %v17483_v41 = vld [vmem:[%s18649_s23 + $0x80] ss:$392 sps:$4 sm:$0xff]  }
 0x531   : > { %12039 = vmatmul.mubr.bf16.gmra.mrb[16].mxu0 %v17464_v42  ;;  %9384 = vmatpush1.bf16.msra.mxu1 %v2599_v43  ;;  %v17486_v42 = vld [vmem:[%s18649_s23 + $0x140] ss:$392 sps:$4 sm:$0xff]   ;;  %v2615_v43 = vunpack.c.l.s8.bf16 %v1559_v39 }
 0x532   : > { %12096 = vmatpush1.bf16.msra.mxu0 %v3367_v44  ;;  %9385 = vmatprep.subr.bf16.mxu1 %v2602_v45  ;;  %v3383_v44 = vunpack.c.l.s8.bf16 %v1943_v40  ;;  %v2618_v45 = vunpack.c.h.s8.bf16 %v1560_v33  ;;  %v1568_v33 = vld [vmem:[%s18656_s2 + $0x8c8] sm:$0xff] }
 0x533   : > { %12097 = vmatprep.subr.bf16.mxu0 %v3370_v46  ;;  %9336 = vmatprep.mubr.bf16.mxu1 %v17465_v47  ;;  %v3386_v46 = vunpack.c.h.s8.bf16 %v1944_v34  ;;  %v17489_v47 = vld [vmem:[%s18649_s23 + $0x394] ss:$392 sps:$4 sm:$0xff]   ;;  %v1952_v34 = vld [vmem:[%s18656_s2 + $0x14c8] sm:$0xff] }
 0x534   : > { %12048 = vmatprep.mubr.bf16.mxu0 %v17467_v48  ;;  %v17491_v48 = vld [vmem:[%s18649_s23 + $0x454] ss:$392 sps:$4 sm:$0xff]  }
 0x535   : > { %9386 = vmatpush1.bf16.msra.mxu1 %v2601_v51  ;;  %v2617_v51 = vunpack.c.h.s8.bf16 %v1559_v39  ;;  %v1567_v39 = vld [vmem:[%s18656_s2 + $0x8c0] sm:$0xff] }
 0x536   : > { %12098 = vmatpush1.bf16.msra.mxu0 %v3369_v52  ;;  %9387 = vmatprep.subr.bf16.mxu1 %v2604_v53  ;;  %v3385_v52 = vunpack.c.h.s8.bf16 %v1943_v40  ;;  %v2620_v53 = vunpack.c.l.s8.bf16 %v1562_v49  ;;  %v1951_v40 = vld [vmem:[%s18656_s2 + $0x14c0] sm:$0xff] }
 0x537   : > { %12099 = vmatprep.subr.bf16.mxu0 %v3372_v54  ;;  %v3388_v54 = vunpack.c.l.s8.bf16 %v1946_v50 }
 0x538   : > { %9337 = vmatmul.mubr.bf16.gmra.mrb[20].mxu1 %v17469_v57  ;;  %v17493_v57 = vld [vmem:[%s18649_s23 + $0x390] ss:$392 sps:$4 sm:$0xff]  }
 0x539   : > { %12049 = vmatmul.mubr.bf16.gmra.mrb[20].mxu0 %v17470_v58  ;;  %9388 = vmatpush1.bf16.msra.mxu1 %v2603_v59  ;;  %v17494_v58 = vld [vmem:[%s18649_s23 + $0x450] ss:$392 sps:$4 sm:$0xff]   ;;  %v2619_v59 = vunpack.c.l.s8.bf16 %v1561_v55 }
 0x53a   : > { %12100 = vmatpush1.bf16.msra.mxu0 %v3371_v60  ;;  %9389 = vmatprep.subr.bf16.mxu1 %v2606_v61  ;;  %v3387_v60 = vunpack.c.l.s8.bf16 %v1945_v56  ;;  %v2622_v61 = vunpack.c.h.s8.bf16 %v1562_v49  ;;  %v1570_v49 = vld [vmem:[%s18656_s2 + $0x8d8] sm:$0xff] }
 0x53b   : > { %12101 = vmatprep.subr.bf16.mxu0 %v3374_v62  ;;  %9346 = vmatprep.mubr.bf16.mxu1 %v17471_v63  ;;  %v3390_v62 = vunpack.c.h.s8.bf16 %v1946_v50  ;;  %v17495_v63 = vld [vmem:[%s18649_s23 + $0x6a4] ss:$392 sps:$4 sm:$0xff]   ;;  %v1954_v50 = vld [vmem:[%s18656_s2 + $0x14d8] sm:$0xff] }
 0x53c   : > { %12058 = vmatprep.mubr.bf16.mxu0 %v17473_v0  ;;  %v17497_v0 = vld [vmem:[%s18649_s23 + $0x764] ss:$392 sps:$4 sm:$0xff]  }
 0x53d   : > { %9390 = vmatpush1.bf16.msra.mxu1 %v2605_v3  ;;  %v2621_v3 = vunpack.c.h.s8.bf16 %v1561_v55  ;;  %v1569_v55 = vld [vmem:[%s18656_s2 + $0x8d0] sm:$0xff] }
 0x53e   : > { %12102 = vmatpush1.bf16.msra.mxu0 %v3373_v4  ;;  %9391 = vmatprep.subr.bf16.mxu1 %v2608_v5  ;;  %v3389_v4 = vunpack.c.h.s8.bf16 %v1945_v56  ;;  %v2624_v5 = vunpack.c.l.s8.bf16 %v1564_v1  ;;  %v1953_v56 = vld [vmem:[%s18656_s2 + $0x14d0] sm:$0xff] }
 0x53f   : > { %12103 = vmatprep.subr.bf16.mxu0 %v3376_v6  ;;  %v3392_v6 = vunpack.c.l.s8.bf16 %v1948_v2 }
 0x540   : > { %9347 = vmatmul.mubr.bf16.gmra.mrb[24].mxu1 %v17475_v9  ;;  %v17499_v9 = vld [vmem:[%s18649_s23 + $0x6a0] ss:$392 sps:$4 sm:$0xff]  }
 0x541   : > { %12059 = vmatmul.mubr.bf16.gmra.mrb[24].mxu0 %v17476_v10  ;;  %9392 = vmatpush1.bf16.msra.mxu1 %v2607_v11  ;;  %v17500_v10 = vld [vmem:[%s18649_s23 + $0x760] ss:$392 sps:$4 sm:$0xff]   ;;  %v2623_v11 = vunpack.c.l.s8.bf16 %v1563_v7 }
 0x542   : > { %12104 = vmatpush1.bf16.msra.mxu0 %v3375_v12  ;;  %9393 = vmatprep.subr.bf16.mxu1 %v2610_v13  ;;  %v3391_v12 = vunpack.c.l.s8.bf16 %v1947_v8  ;;  %v2626_v13 = vunpack.c.h.s8.bf16 %v1564_v1  ;;  %v1572_v1 = vld [vmem:[%s18656_s2 + $0x8e8] sm:$0xff] }
 0x543   : > { %12105 = vmatprep.subr.bf16.mxu0 %v3378_v14  ;;  %9356 = vmatprep.mubr.bf16.mxu1 %v17477_v15  ;;  %v3394_v14 = vunpack.c.h.s8.bf16 %v1948_v2  ;;  %v17501_v15 = vld [vmem:[%s18649_s23 + $0x9b4] ss:$392 sps:$4 sm:$0xff]   ;;  %v1956_v2 = vld [vmem:[%s18656_s2 + $0x14e8] sm:$0xff] }
 0x544   : > { %12068 = vmatprep.mubr.bf16.mxu0 %v17479_v16  ;;  %v17503_v16 = vld [vmem:[%s18649_s23 + $0xa74] ss:$392 sps:$4 sm:$0xff]  }
 0x545   : > { %9394 = vmatpush1.bf16.msra.mxu1 %v2609_v19  ;;  %v2625_v19 = vunpack.c.h.s8.bf16 %v1563_v7  ;;  %v1571_v7 = vld [vmem:[%s18656_s2 + $0x8e0] sm:$0xff] }
 0x546   : > { %12106 = vmatpush1.bf16.msra.mxu0 %v3377_v20  ;;  %9395 = vmatprep.subr.bf16.mxu1 %v2612_v21  ;;  %v3393_v20 = vunpack.c.h.s8.bf16 %v1947_v8  ;;  %v2628_v21 = vunpack.c.l.s8.bf16 %v1566_v17  ;;  %v1955_v8 = vld [vmem:[%s18656_s2 + $0x14e0] sm:$0xff] }
 0x547   : > { %12107 = vmatprep.subr.bf16.mxu0 %v3380_v22  ;;  %v3396_v22 = vunpack.c.l.s8.bf16 %v1950_v18 }
 0x548   : > { %9357 = vmatmul.mubr.bf16.gmra.mrb[28].mxu1 %v17481_v25  ;;  %v17505_v25 = vld [vmem:[%s18649_s23 + $0x9b0] ss:$392 sps:$4 sm:$0xff]  }
 0x549   : > { %12069 = vmatmul.mubr.bf16.gmra.mrb[28].mxu0 %v17482_v26  ;;  %9396 = vmatpush1.bf16.msra.mxu1 %v2611_v27  ;;  %v17506_v26 = vld [vmem:[%s18649_s23 + $0xa70] ss:$392 sps:$4 sm:$0xff]   ;;  %v2627_v27 = vunpack.c.l.s8.bf16 %v1565_v23 }
 0x54a   : > { %12108 = vmatpush1.bf16.msra.mxu0 %v3379_v28  ;;  %9397 = vmatprep.subr.bf16.mxu1 %v2614_v29  ;;  %v3395_v28 = vunpack.c.l.s8.bf16 %v1949_v24  ;;  %v2630_v29 = vunpack.c.h.s8.bf16 %v1566_v17  ;;  %v1574_v17 = vld [vmem:[%s18656_s2 + $0x8f8] sm:$0xff] }
 0x54b   : > { %12109 = vmatprep.subr.bf16.mxu0 %v3382_v30  ;;  %9399 = vmatprep.mubr.bf16.mxu1 %v17485_v31  ;;  %v3398_v30 = vunpack.c.h.s8.bf16 %v1950_v18  ;;  %v17507_v31 = vld [vmem:[%s18649_s23 + $0xcc4] ss:$392 sps:$4 sm:$0xff]   ;;  %v1958_v18 = vld [vmem:[%s18656_s2 + $0x14f8] sm:$0xff] }
 0x54c   : > { %12111 = vmatprep.mubr.bf16.mxu0 %v17488_v32  ;;  %v17509_v32 = vld [vmem:[%s18649_s23 + $0xd84] ss:$392 sps:$4 sm:$0xff]  }
 0x54d   : > { %9398 = vmatpush1.bf16.msra.mxu1 %v2613_v35  ;;  %v2629_v35 = vunpack.c.h.s8.bf16 %v1565_v23  ;;  %v1573_v23 = vld [vmem:[%s18656_s2 + $0x8f0] sm:$0xff] }
 0x54e   : > { %12110 = vmatpush1.bf16.msra.mxu0 %v3381_v36  ;;  %9480 = vmatprep.subr.bf16.mxu1 %v2616_v37  ;;  %v3397_v36 = vunpack.c.h.s8.bf16 %v1949_v24  ;;  %v2632_v37 = vunpack.c.l.s8.bf16 %v1568_v33  ;;  %v1957_v24 = vld [vmem:[%s18656_s2 + $0x14f0] sm:$0xff] }
 0x54f   : > { %12192 = vmatprep.subr.bf16.mxu0 %v3384_v38  ;;  %v3400_v38 = vunpack.c.l.s8.bf16 %v1952_v34 }
 0x550   : > { %9400 = vmatmul.mubr.bf16.vlgmr.msra.gmra.mrb[0].mxu1 %v17483_v41  ;;  %v17511_v41 = vld [vmem:[%s18649_s23 + $0xcc0] ss:$392 sps:$4 sm:$0xff]  }
 0x551   : > { %12112 = vmatmul.mubr.bf16.vlgmr.msra.gmra.mrb[0].mxu0 %v17486_v42  ;;  %9481 = vmatpush1.bf16.msra.mxu1 %v2615_v43  ;;  %v17512_v42 = vld [vmem:[%s18649_s23 + $0xd80] ss:$392 sps:$4 sm:$0xff]   ;;  %v2631_v43 = vunpack.c.l.s8.bf16 %v1567_v39 }
 0x552   : > { %12193 = vmatpush1.bf16.msra.mxu0 %v3383_v44  ;;  %9482 = vmatprep.subr.bf16.mxu1 %v2618_v45  ;;  %v3399_v44 = vunpack.c.l.s8.bf16 %v1951_v40  ;;  %v2634_v45 = vunpack.c.h.s8.bf16 %v1568_v33  ;;  %v1576_v33 = vld [vmem:[%s18656_s2 + $0x908] sm:$0xff] }
 0x553   : > { %12194 = vmatprep.subr.bf16.mxu0 %v3386_v46  ;;  %9409 = vmatprep.mubr.bf16.mxu1 %v17489_v47  ;;  %v3402_v46 = vunpack.c.h.s8.bf16 %v1952_v34  ;;  %v17513_v47 = vld [vmem:[%s18649_s23 + $0xfd4] ss:$392 sps:$4 sm:$0xff]   ;;  %v1960_v34 = vld [vmem:[%s18656_s2 + $0x1508] sm:$0xff] }
 0x554   : > { %12121 = vmatprep.mubr.bf16.mxu0 %v17491_v48  ;;  %v17515_v48 = vld [vmem:[%s18649_s23 + $0x1094] ss:$392 sps:$4 sm:$0xff]  }
 0x555   : > { %9483 = vmatpush1.bf16.msra.mxu1 %v2617_v51  ;;  %v2633_v51 = vunpack.c.h.s8.bf16 %v1567_v39  ;;  %v1575_v39 = vld [vmem:[%s18656_s2 + $0x900] sm:$0xff] }
 0x556   : > { %12195 = vmatpush1.bf16.msra.mxu0 %v3385_v52  ;;  %9484 = vmatprep.subr.bf16.mxu1 %v2620_v53  ;;  %v3401_v52 = vunpack.c.h.s8.bf16 %v1951_v40  ;;  %v2636_v53 = vunpack.c.l.s8.bf16 %v1570_v49  ;;  %v1959_v40 = vld [vmem:[%s18656_s2 + $0x1500] sm:$0xff] }
 0x557   : > { %12196 = vmatprep.subr.bf16.mxu0 %v3388_v54  ;;  %v3404_v54 = vunpack.c.l.s8.bf16 %v1954_v50 }
 0x558   : > { %9410 = vmatmul.mubr.bf16.gmra.mrb[4].mxu1 %v17493_v57  ;;  %v17517_v57 = vld [vmem:[%s18649_s23 + $0xfd0] ss:$392 sps:$4 sm:$0xff]  }
 0x559   : > { %12122 = vmatmul.mubr.bf16.gmra.mrb[4].mxu0 %v17494_v58  ;;  %9485 = vmatpush1.bf16.msra.mxu1 %v2619_v59  ;;  %v17518_v58 = vld [vmem:[%s18649_s23 + $0x1090] ss:$392 sps:$4 sm:$0xff]   ;;  %v2635_v59 = vunpack.c.l.s8.bf16 %v1569_v55 }
 0x55a   : > { %12197 = vmatpush1.bf16.msra.mxu0 %v3387_v60  ;;  %9486 = vmatprep.subr.bf16.mxu1 %v2622_v61  ;;  %v3403_v60 = vunpack.c.l.s8.bf16 %v1953_v56  ;;  %v2638_v61 = vunpack.c.h.s8.bf16 %v1570_v49  ;;  %v1578_v49 = vld [vmem:[%s18656_s2 + $0x918] sm:$0xff] }
 0x55b   : > { %12198 = vmatprep.subr.bf16.mxu0 %v3390_v62  ;;  %9419 = vmatprep.mubr.bf16.mxu1 %v17495_v63  ;;  %v3406_v62 = vunpack.c.h.s8.bf16 %v1954_v50  ;;  %v17519_v63 = vld [vmem:[%s18649_s23 + $0x12e4] ss:$392 sps:$4 sm:$0xff]   ;;  %v1962_v50 = vld [vmem:[%s18656_s2 + $0x1518] sm:$0xff] }
 0x55c   : > { %12131 = vmatprep.mubr.bf16.mxu0 %v17497_v0  ;;  %v17521_v0 = vld [vmem:[%s18649_s23 + $0x13a4] ss:$392 sps:$4 sm:$0xff]  }
 0x55d   : > { %9487 = vmatpush1.bf16.msra.mxu1 %v2621_v3  ;;  %v2637_v3 = vunpack.c.h.s8.bf16 %v1569_v55  ;;  %v1577_v55 = vld [vmem:[%s18656_s2 + $0x910] sm:$0xff] }
 0x55e   : > { %12199 = vmatpush1.bf16.msra.mxu0 %v3389_v4  ;;  %9488 = vmatprep.subr.bf16.mxu1 %v2624_v5  ;;  %v3405_v4 = vunpack.c.h.s8.bf16 %v1953_v56  ;;  %v2640_v5 = vunpack.c.l.s8.bf16 %v1572_v1  ;;  %v1961_v56 = vld [vmem:[%s18656_s2 + $0x1510] sm:$0xff] }
 0x55f   : > { %12200 = vmatprep.subr.bf16.mxu0 %v3392_v6  ;;  %v3408_v6 = vunpack.c.l.s8.bf16 %v1956_v2 }
 0x560   : > { %9420 = vmatmul.mubr.bf16.gmra.mrb[8].mxu1 %v17499_v9  ;;  %v17523_v9 = vld [vmem:[%s18649_s23 + $0x12e0] ss:$392 sps:$4 sm:$0xff]  }
 0x561   : > { %12132 = vmatmul.mubr.bf16.gmra.mrb[8].mxu0 %v17500_v10  ;;  %9489 = vmatpush1.bf16.msra.mxu1 %v2623_v11  ;;  %v17524_v10 = vld [vmem:[%s18649_s23 + $0x13a0] ss:$392 sps:$4 sm:$0xff]   ;;  %v2639_v11 = vunpack.c.l.s8.bf16 %v1571_v7 }
 0x562   : > { %12201 = vmatpush1.bf16.msra.mxu0 %v3391_v12  ;;  %9490 = vmatprep.subr.bf16.mxu1 %v2626_v13  ;;  %v3407_v12 = vunpack.c.l.s8.bf16 %v1955_v8  ;;  %v2642_v13 = vunpack.c.h.s8.bf16 %v1572_v1  ;;  %v1580_v1 = vld [vmem:[%s18656_s2 + $0x928] sm:$0xff] }
 0x563   : > { %12202 = vmatprep.subr.bf16.mxu0 %v3394_v14  ;;  %9429 = vmatprep.mubr.bf16.mxu1 %v17501_v15  ;;  %v3410_v14 = vunpack.c.h.s8.bf16 %v1956_v2  ;;  %v17525_v15 = vld [vmem:[%s18649_s23 + $0x15f4] ss:$392 sps:$4 sm:$0xff]   ;;  %v1964_v2 = vld [vmem:[%s18656_s2 + $0x1528] sm:$0xff] }
 0x564   : > { %12141 = vmatprep.mubr.bf16.mxu0 %v17503_v16  ;;  %v17527_v16 = vld [vmem:[%s18649_s23 + $0x16b4] ss:$392 sps:$4 sm:$0xff]  }
 0x565   : > { %9491 = vmatpush1.bf16.msra.mxu1 %v2625_v19  ;;  %v2641_v19 = vunpack.c.h.s8.bf16 %v1571_v7  ;;  %v1579_v7 = vld [vmem:[%s18656_s2 + $0x920] sm:$0xff] }
 0x566   : > { %12203 = vmatpush1.bf16.msra.mxu0 %v3393_v20  ;;  %9492 = vmatprep.subr.bf16.mxu1 %v2628_v21  ;;  %v3409_v20 = vunpack.c.h.s8.bf16 %v1955_v8  ;;  %v2644_v21 = vunpack.c.l.s8.bf16 %v1574_v17  ;;  %v1963_v8 = vld [vmem:[%s18656_s2 + $0x1520] sm:$0xff] }
 0x567   : > { %12204 = vmatprep.subr.bf16.mxu0 %v3396_v22  ;;  %v3412_v22 = vunpack.c.l.s8.bf16 %v1958_v18 }
 0x568   : > { %9430 = vmatmul.mubr.bf16.gmra.mrb[12].mxu1 %v17505_v25  ;;  %v17529_v25 = vld [vmem:[%s18649_s23 + $0x15f0] ss:$392 sps:$4 sm:$0xff]  }
 0x569   : > { %12142 = vmatmul.mubr.bf16.gmra.mrb[12].mxu0 %v17506_v26  ;;  %9493 = vmatpush1.bf16.msra.mxu1 %v2627_v27  ;;  %v17530_v26 = vld [vmem:[%s18649_s23 + $0x16b0] ss:$392 sps:$4 sm:$0xff]   ;;  %v2643_v27 = vunpack.c.l.s8.bf16 %v1573_v23 }
 0x56a   : > { %12205 = vmatpush1.bf16.msra.mxu0 %v3395_v28  ;;  %9494 = vmatprep.subr.bf16.mxu1 %v2630_v29  ;;  %v3411_v28 = vunpack.c.l.s8.bf16 %v1957_v24  ;;  %v2646_v29 = vunpack.c.h.s8.bf16 %v1574_v17  ;;  %v1582_v17 = vld [vmem:[%s18656_s2 + $0x938] sm:$0xff] }
 0x56b   : > { %12206 = vmatprep.subr.bf16.mxu0 %v3398_v30  ;;  %9439 = vmatprep.mubr.bf16.mxu1 %v17507_v31  ;;  %v3414_v30 = vunpack.c.h.s8.bf16 %v1958_v18  ;;  %v17533_v31 = vld [vmem:[%s18649_s23 + $0x8c] ss:$392 sps:$4 sm:$0xff]   ;;  %v1966_v18 = vld [vmem:[%s18656_s2 + $0x1538] sm:$0xff] }
 0x56c   : > { %12151 = vmatprep.mubr.bf16.mxu0 %v17509_v32  ;;  %v17536_v32 = vld [vmem:[%s18649_s23 + $0x14c] ss:$392 sps:$4 sm:$0xff]  }
 0x56d   : > { %9495 = vmatpush1.bf16.msra.mxu1 %v2629_v35  ;;  %v2645_v35 = vunpack.c.h.s8.bf16 %v1573_v23  ;;  %v1581_v23 = vld [vmem:[%s18656_s2 + $0x930] sm:$0xff] }
 0x56e   : > { %12207 = vmatpush1.bf16.msra.mxu0 %v3397_v36  ;;  %9496 = vmatprep.subr.bf16.mxu1 %v2632_v37  ;;  %v3413_v36 = vunpack.c.h.s8.bf16 %v1957_v24  ;;  %v2648_v37 = vunpack.c.l.s8.bf16 %v1576_v33  ;;  %v1965_v24 = vld [vmem:[%s18656_s2 + $0x1530] sm:$0xff] }
 0x56f   : > { %12208 = vmatprep.subr.bf16.mxu0 %v3400_v38  ;;  %v3416_v38 = vunpack.c.l.s8.bf16 %v1960_v34 }
 0x570   : > { %9440 = vmatmul.mubr.bf16.gmra.mrb[16].mxu1 %v17511_v41  ;;  %v17531_v41 = vld [vmem:[%s18649_s23 + $0x88] ss:$392 sps:$4 sm:$0xff]  }
 0x571   : > { %12152 = vmatmul.mubr.bf16.gmra.mrb[16].mxu0 %v17512_v42  ;;  %9497 = vmatpush1.bf16.msra.mxu1 %v2631_v43  ;;  %v17534_v42 = vld [vmem:[%s18649_s23 + $0x148] ss:$392 sps:$4 sm:$0xff]   ;;  %v2647_v43 = vunpack.c.l.s8.bf16 %v1575_v39 }
 0x572   : > { %12209 = vmatpush1.bf16.msra.mxu0 %v3399_v44  ;;  %9498 = vmatprep.subr.bf16.mxu1 %v2634_v45  ;;  %v3415_v44 = vunpack.c.l.s8.bf16 %v1959_v40  ;;  %v2650_v45 = vunpack.c.h.s8.bf16 %v1576_v33  ;;  %v1584_v33 = vld [vmem:[%s18656_s2 + $0x948] sm:$0xff] }
 0x573   : > { %12210 = vmatprep.subr.bf16.mxu0 %v3402_v46  ;;  %9449 = vmatprep.mubr.bf16.mxu1 %v17513_v47  ;;  %v3418_v46 = vunpack.c.h.s8.bf16 %v1960_v34  ;;  %v17537_v47 = vld [vmem:[%s18649_s23 + $0x39c] ss:$392 sps:$4 sm:$0xff]   ;;  %v1968_v34 = vld [vmem:[%s18656_s2 + $0x1548] sm:$0xff] }
 0x574   : > { %12161 = vmatprep.mubr.bf16.mxu0 %v17515_v48  ;;  %v17539_v48 = vld [vmem:[%s18649_s23 + $0x45c] ss:$392 sps:$4 sm:$0xff]  }
 0x575   : > { %9499 = vmatpush1.bf16.msra.mxu1 %v2633_v51  ;;  %v2649_v51 = vunpack.c.h.s8.bf16 %v1575_v39  ;;  %v1583_v39 = vld [vmem:[%s18656_s2 + $0x940] sm:$0xff] }
 0x576   : > { %12211 = vmatpush1.bf16.msra.mxu0 %v3401_v52  ;;  %9500 = vmatprep.subr.bf16.mxu1 %v2636_v53  ;;  %v3417_v52 = vunpack.c.h.s8.bf16 %v1959_v40  ;;  %v2652_v53 = vunpack.c.l.s8.bf16 %v1578_v49  ;;  %v1967_v40 = vld [vmem:[%s18656_s2 + $0x1540] sm:$0xff] }
 0x577   : > { %12212 = vmatprep.subr.bf16.mxu0 %v3404_v54  ;;  %v3420_v54 = vunpack.c.l.s8.bf16 %v1962_v50 }
 0x578   : > { %9450 = vmatmul.mubr.bf16.gmra.mrb[20].mxu1 %v17517_v57  ;;  %v17541_v57 = vld [vmem:[%s18649_s23 + $0x398] ss:$392 sps:$4 sm:$0xff]  }
 0x579   : > { %12162 = vmatmul.mubr.bf16.gmra.mrb[20].mxu0 %v17518_v58  ;;  %9501 = vmatpush1.bf16.msra.mxu1 %v2635_v59  ;;  %v17542_v58 = vld [vmem:[%s18649_s23 + $0x458] ss:$392 sps:$4 sm:$0xff]   ;;  %v2651_v59 = vunpack.c.l.s8.bf16 %v1577_v55 }
 0x57a   : > { %12213 = vmatpush1.bf16.msra.mxu0 %v3403_v60  ;;  %9502 = vmatprep.subr.bf16.mxu1 %v2638_v61  ;;  %v3419_v60 = vunpack.c.l.s8.bf16 %v1961_v56  ;;  %v2654_v61 = vunpack.c.h.s8.bf16 %v1578_v49  ;;  %v1586_v49 = vld [vmem:[%s18656_s2 + $0x958] sm:$0xff] }
 0x57b   : > { %12214 = vmatprep.subr.bf16.mxu0 %v3406_v62  ;;  %9459 = vmatprep.mubr.bf16.mxu1 %v17519_v63  ;;  %v3422_v62 = vunpack.c.h.s8.bf16 %v1962_v50  ;;  %v17543_v63 = vld [vmem:[%s18649_s23 + $0x6ac] ss:$392 sps:$4 sm:$0xff]   ;;  %v1970_v50 = vld [vmem:[%s18656_s2 + $0x1558] sm:$0xff] }
 0x57c   : > { %12171 = vmatprep.mubr.bf16.mxu0 %v17521_v0  ;;  %v17545_v0 = vld [vmem:[%s18649_s23 + $0x76c] ss:$392 sps:$4 sm:$0xff]  }
 0x57d   : > { %9503 = vmatpush1.bf16.msra.mxu1 %v2637_v3  ;;  %v2653_v3 = vunpack.c.h.s8.bf16 %v1577_v55  ;;  %v1585_v55 = vld [vmem:[%s18656_s2 + $0x950] sm:$0xff] }
 0x57e   : > { %12215 = vmatpush1.bf16.msra.mxu0 %v3405_v4  ;;  %9504 = vmatprep.subr.bf16.mxu1 %v2640_v5  ;;  %v3421_v4 = vunpack.c.h.s8.bf16 %v1961_v56  ;;  %v2656_v5 = vunpack.c.l.s8.bf16 %v1580_v1  ;;  %v1969_v56 = vld [vmem:[%s18656_s2 + $0x1550] sm:$0xff] }
 0x57f   : > { %12216 = vmatprep.subr.bf16.mxu0 %v3408_v6  ;;  %v3424_v6 = vunpack.c.l.s8.bf16 %v1964_v2 }
 0x580   : > { %9460 = vmatmul.mubr.bf16.gmra.mrb[24].mxu1 %v17523_v9  ;;  %v17547_v9 = vld [vmem:[%s18649_s23 + $0x6a8] ss:$392 sps:$4 sm:$0xff]  }
 0x581   : > { %12172 = vmatmul.mubr.bf16.gmra.mrb[24].mxu0 %v17524_v10  ;;  %9505 = vmatpush1.bf16.msra.mxu1 %v2639_v11  ;;  %v17548_v10 = vld [vmem:[%s18649_s23 + $0x768] ss:$392 sps:$4 sm:$0xff]   ;;  %v2655_v11 = vunpack.c.l.s8.bf16 %v1579_v7 }
 0x582   : > { %12217 = vmatpush1.bf16.msra.mxu0 %v3407_v12  ;;  %9506 = vmatprep.subr.bf16.mxu1 %v2642_v13  ;;  %v3423_v12 = vunpack.c.l.s8.bf16 %v1963_v8  ;;  %v2658_v13 = vunpack.c.h.s8.bf16 %v1580_v1  ;;  %v1588_v1 = vld [vmem:[%s18656_s2 + $0x968] sm:$0xff] }
 0x583   : > { %12218 = vmatprep.subr.bf16.mxu0 %v3410_v14  ;;  %9469 = vmatprep.mubr.bf16.mxu1 %v17525_v15  ;;  %v3426_v14 = vunpack.c.h.s8.bf16 %v1964_v2  ;;  %v17549_v15 = vld [vmem:[%s18649_s23 + $0x9bc] ss:$392 sps:$4 sm:$0xff]   ;;  %v1972_v2 = vld [vmem:[%s18656_s2 + $0x1568] sm:$0xff] }
 0x584   : > { %12181 = vmatprep.mubr.bf16.mxu0 %v17527_v16  ;;  %v17551_v16 = vld [vmem:[%s18649_s23 + $0xa7c] ss:$392 sps:$4 sm:$0xff]  }
 0x585   : > { %9507 = vmatpush1.bf16.msra.mxu1 %v2641_v19  ;;  %v2657_v19 = vunpack.c.h.s8.bf16 %v1579_v7  ;;  %v1587_v7 = vld [vmem:[%s18656_s2 + $0x960] sm:$0xff] }
 0x586   : > { %12219 = vmatpush1.bf16.msra.mxu0 %v3409_v20  ;;  %9508 = vmatprep.subr.bf16.mxu1 %v2644_v21  ;;  %v3425_v20 = vunpack.c.h.s8.bf16 %v1963_v8  ;;  %v2660_v21 = vunpack.c.l.s8.bf16 %v1582_v17  ;;  %v1971_v8 = vld [vmem:[%s18656_s2 + $0x1560] sm:$0xff] }
 0x587   : > { %12220 = vmatprep.subr.bf16.mxu0 %v3412_v22  ;;  %v3428_v22 = vunpack.c.l.s8.bf16 %v1966_v18 }
 0x588   : > { %9470 = vmatmul.mubr.bf16.gmra.mrb[28].mxu1 %v17529_v25  ;;  %v17553_v25 = vld [vmem:[%s18649_s23 + $0x9b8] ss:$392 sps:$4 sm:$0xff]  }
 0x589   : > { %12182 = vmatmul.mubr.bf16.gmra.mrb[28].mxu0 %v17530_v26  ;;  %9509 = vmatpush1.bf16.msra.mxu1 %v2643_v27  ;;  %v17554_v26 = vld [vmem:[%s18649_s23 + $0xa78] ss:$392 sps:$4 sm:$0xff]   ;;  %v2659_v27 = vunpack.c.l.s8.bf16 %v1581_v23 }
 0x58a   : > { %12221 = vmatpush1.bf16.msra.mxu0 %v3411_v28  ;;  %9510 = vmatprep.subr.bf16.mxu1 %v2646_v29  ;;  %v3427_v28 = vunpack.c.l.s8.bf16 %v1965_v24  ;;  %v2662_v29 = vunpack.c.h.s8.bf16 %v1582_v17  ;;  %v1590_v17 = vld [vmem:[%s18656_s2 + $0x978] sm:$0xff] }
 0x58b   : > { %12222 = vmatprep.subr.bf16.mxu0 %v3414_v30  ;;  %9512 = vmatprep.mubr.bf16.mxu1 %v17533_v31  ;;  %v3430_v30 = vunpack.c.h.s8.bf16 %v1966_v18  ;;  %v17555_v31 = vld [vmem:[%s18649_s23 + $0xccc] ss:$392 sps:$4 sm:$0xff]   ;;  %v1974_v18 = vld [vmem:[%s18656_s2 + $0x1578] sm:$0xff] }
 0x58c   : > { %12224 = vmatprep.mubr.bf16.mxu0 %v17536_v32  ;;  %v17557_v32 = vld [vmem:[%s18649_s23 + $0xd8c] ss:$392 sps:$4 sm:$0xff]  }
 0x58d   : > { %9511 = vmatpush1.bf16.msra.mxu1 %v2645_v35  ;;  %v2661_v35 = vunpack.c.h.s8.bf16 %v1581_v23  ;;  %v1589_v23 = vld [vmem:[%s18656_s2 + $0x970] sm:$0xff] }
 0x58e   : > { %12223 = vmatpush1.bf16.msra.mxu0 %v3413_v36  ;;  %9593 = vmatprep.subr.bf16.mxu1 %v2648_v37  ;;  %v3429_v36 = vunpack.c.h.s8.bf16 %v1965_v24  ;;  %v2664_v37 = vunpack.c.l.s8.bf16 %v1584_v33  ;;  %v1973_v24 = vld [vmem:[%s18656_s2 + $0x1570] sm:$0xff] }
 0x58f   : > { %12305 = vmatprep.subr.bf16.mxu0 %v3416_v38  ;;  %v3432_v38 = vunpack.c.l.s8.bf16 %v1968_v34 }
 0x590   : > { %9513 = vmatmul.mubr.bf16.vlgmr.msra.gmra.mrb[0].mxu1 %v17531_v41  ;;  %v17559_v41 = vld [vmem:[%s18649_s23 + $0xcc8] ss:$392 sps:$4 sm:$0xff]  }
 0x591   : > { %12225 = vmatmul.mubr.bf16.vlgmr.msra.gmra.mrb[0].mxu0 %v17534_v42  ;;  %9594 = vmatpush1.bf16.msra.mxu1 %v2647_v43  ;;  %v17560_v42 = vld [vmem:[%s18649_s23 + $0xd88] ss:$392 sps:$4 sm:$0xff]   ;;  %v2663_v43 = vunpack.c.l.s8.bf16 %v1583_v39 }
 0x592   : > { %12306 = vmatpush1.bf16.msra.mxu0 %v3415_v44  ;;  %9595 = vmatprep.subr.bf16.mxu1 %v2650_v45  ;;  %v3431_v44 = vunpack.c.l.s8.bf16 %v1967_v40  ;;  %v2666_v45 = vunpack.c.h.s8.bf16 %v1584_v33  ;;  %v1592_v33 = vld [vmem:[%s18656_s2 + $0x988] sm:$0xff] }
 0x593   : > { %12307 = vmatprep.subr.bf16.mxu0 %v3418_v46  ;;  %9522 = vmatprep.mubr.bf16.mxu1 %v17537_v47  ;;  %v3434_v46 = vunpack.c.h.s8.bf16 %v1968_v34  ;;  %v17561_v47 = vld [vmem:[%s18649_s23 + $0xfdc] ss:$392 sps:$4 sm:$0xff]   ;;  %v1976_v34 = vld [vmem:[%s18656_s2 + $0x1588] sm:$0xff] }
 0x594   : > { %12234 = vmatprep.mubr.bf16.mxu0 %v17539_v48  ;;  %v17563_v48 = vld [vmem:[%s18649_s23 + $0x109c] ss:$392 sps:$4 sm:$0xff]  }
 0x595   : > { %9596 = vmatpush1.bf16.msra.mxu1 %v2649_v51  ;;  %v2665_v51 = vunpack.c.h.s8.bf16 %v1583_v39  ;;  %v1591_v39 = vld [vmem:[%s18656_s2 + $0x980] sm:$0xff] }
 0x596   : > { %12308 = vmatpush1.bf16.msra.mxu0 %v3417_v52  ;;  %9597 = vmatprep.subr.bf16.mxu1 %v2652_v53  ;;  %v3433_v52 = vunpack.c.h.s8.bf16 %v1967_v40  ;;  %v2668_v53 = vunpack.c.l.s8.bf16 %v1586_v49  ;;  %v1975_v40 = vld [vmem:[%s18656_s2 + $0x1580] sm:$0xff] }
 0x597   : > { %12309 = vmatprep.subr.bf16.mxu0 %v3420_v54  ;;  %v3436_v54 = vunpack.c.l.s8.bf16 %v1970_v50 }
 0x598   : > { %9523 = vmatmul.mubr.bf16.gmra.mrb[4].mxu1 %v17541_v57  ;;  %v17565_v57 = vld [vmem:[%s18649_s23 + $0xfd8] ss:$392 sps:$4 sm:$0xff]  }
 0x599   : > { %12235 = vmatmul.mubr.bf16.gmra.mrb[4].mxu0 %v17542_v58  ;;  %9598 = vmatpush1.bf16.msra.mxu1 %v2651_v59  ;;  %v17566_v58 = vld [vmem:[%s18649_s23 + $0x1098] ss:$392 sps:$4 sm:$0xff]   ;;  %v2667_v59 = vunpack.c.l.s8.bf16 %v1585_v55 }
 0x59a   : > { %12310 = vmatpush1.bf16.msra.mxu0 %v3419_v60  ;;  %9599 = vmatprep.subr.bf16.mxu1 %v2654_v61  ;;  %v3435_v60 = vunpack.c.l.s8.bf16 %v1969_v56  ;;  %v2670_v61 = vunpack.c.h.s8.bf16 %v1586_v49  ;;  %v1594_v49 = vld [vmem:[%s18656_s2 + $0x998] sm:$0xff] }
 0x59b   : > { %12311 = vmatprep.subr.bf16.mxu0 %v3422_v62  ;;  %9532 = vmatprep.mubr.bf16.mxu1 %v17543_v63  ;;  %v3438_v62 = vunpack.c.h.s8.bf16 %v1970_v50  ;;  %v17567_v63 = vld [vmem:[%s18649_s23 + $0x12ec] ss:$392 sps:$4 sm:$0xff]   ;;  %v1978_v50 = vld [vmem:[%s18656_s2 + $0x1598] sm:$0xff] }
 0x59c   : > { %12244 = vmatprep.mubr.bf16.mxu0 %v17545_v0  ;;  %v17569_v0 = vld [vmem:[%s18649_s23 + $0x13ac] ss:$392 sps:$4 sm:$0xff]  }
 0x59d   : > { %9600 = vmatpush1.bf16.msra.mxu1 %v2653_v3  ;;  %v2669_v3 = vunpack.c.h.s8.bf16 %v1585_v55  ;;  %v1593_v55 = vld [vmem:[%s18656_s2 + $0x990] sm:$0xff] }
 0x59e   : > { %12312 = vmatpush1.bf16.msra.mxu0 %v3421_v4  ;;  %9601 = vmatprep.subr.bf16.mxu1 %v2656_v5  ;;  %v3437_v4 = vunpack.c.h.s8.bf16 %v1969_v56  ;;  %v2672_v5 = vunpack.c.l.s8.bf16 %v1588_v1  ;;  %v1977_v56 = vld [vmem:[%s18656_s2 + $0x1590] sm:$0xff] }
 0x59f   : > { %12313 = vmatprep.subr.bf16.mxu0 %v3424_v6  ;;  %v3440_v6 = vunpack.c.l.s8.bf16 %v1972_v2 }
 0x5a0   : > { %9533 = vmatmul.mubr.bf16.gmra.mrb[8].mxu1 %v17547_v9  ;;  %v17571_v9 = vld [vmem:[%s18649_s23 + $0x12e8] ss:$392 sps:$4 sm:$0xff]  }
 0x5a1   : > { %12245 = vmatmul.mubr.bf16.gmra.mrb[8].mxu0 %v17548_v10  ;;  %9602 = vmatpush1.bf16.msra.mxu1 %v2655_v11  ;;  %v17572_v10 = vld [vmem:[%s18649_s23 + $0x13a8] ss:$392 sps:$4 sm:$0xff]   ;;  %v2671_v11 = vunpack.c.l.s8.bf16 %v1587_v7 }
 0x5a2   : > { %12314 = vmatpush1.bf16.msra.mxu0 %v3423_v12  ;;  %9603 = vmatprep.subr.bf16.mxu1 %v2658_v13  ;;  %v3439_v12 = vunpack.c.l.s8.bf16 %v1971_v8  ;;  %v2674_v13 = vunpack.c.h.s8.bf16 %v1588_v1  ;;  %v1596_v1 = vld [vmem:[%s18656_s2 + $0x9a8] sm:$0xff] }
 0x5a3   : > { %12315 = vmatprep.subr.bf16.mxu0 %v3426_v14  ;;  %9542 = vmatprep.mubr.bf16.mxu1 %v17549_v15  ;;  %v3442_v14 = vunpack.c.h.s8.bf16 %v1972_v2  ;;  %v17573_v15 = vld [vmem:[%s18649_s23 + $0x15fc] ss:$392 sps:$4 sm:$0xff]   ;;  %v1980_v2 = vld [vmem:[%s18656_s2 + $0x15a8] sm:$0xff] }
 0x5a4   : > { %12254 = vmatprep.mubr.bf16.mxu0 %v17551_v16  ;;  %v17575_v16 = vld [vmem:[%s18649_s23 + $0x16bc] ss:$392 sps:$4 sm:$0xff]  }
 0x5a5   : > { %9604 = vmatpush1.bf16.msra.mxu1 %v2657_v19  ;;  %v2673_v19 = vunpack.c.h.s8.bf16 %v1587_v7  ;;  %v1595_v7 = vld [vmem:[%s18656_s2 + $0x9a0] sm:$0xff] }
 0x5a6   : > { %12316 = vmatpush1.bf16.msra.mxu0 %v3425_v20  ;;  %9605 = vmatprep.subr.bf16.mxu1 %v2660_v21  ;;  %v3441_v20 = vunpack.c.h.s8.bf16 %v1971_v8  ;;  %v2676_v21 = vunpack.c.l.s8.bf16 %v1590_v17  ;;  %v1979_v8 = vld [vmem:[%s18656_s2 + $0x15a0] sm:$0xff] }
 0x5a7   : > { %12317 = vmatprep.subr.bf16.mxu0 %v3428_v22  ;;  %v3444_v22 = vunpack.c.l.s8.bf16 %v1974_v18 }
 0x5a8   : > { %9543 = vmatmul.mubr.bf16.gmra.mrb[12].mxu1 %v17553_v25  ;;  %v17577_v25 = vld [vmem:[%s18649_s23 + $0x15f8] ss:$392 sps:$4 sm:$0xff]  }
 0x5a9   : > { %12255 = vmatmul.mubr.bf16.gmra.mrb[12].mxu0 %v17554_v26  ;;  %9606 = vmatpush1.bf16.msra.mxu1 %v2659_v27  ;;  %v17578_v26 = vld [vmem:[%s18649_s23 + $0x16b8] ss:$392 sps:$4 sm:$0xff]   ;;  %v2675_v27 = vunpack.c.l.s8.bf16 %v1589_v23 }
 0x5aa   : > { %12318 = vmatpush1.bf16.msra.mxu0 %v3427_v28  ;;  %9607 = vmatprep.subr.bf16.mxu1 %v2662_v29  ;;  %v3443_v28 = vunpack.c.l.s8.bf16 %v1973_v24  ;;  %v2678_v29 = vunpack.c.h.s8.bf16 %v1590_v17  ;;  %v1598_v17 = vld [vmem:[%s18656_s2 + $0x9b8] sm:$0xff] }
 0x5ab   : > { %12319 = vmatprep.subr.bf16.mxu0 %v3430_v30  ;;  %9552 = vmatprep.mubr.bf16.mxu1 %v17555_v31  ;;  %v3446_v30 = vunpack.c.h.s8.bf16 %v1974_v18  ;;  %v17581_v31 = vld [vmem:[%s18649_s23 + $0x94] ss:$392 sps:$4 sm:$0xff]  }
 0x5ac   : > { %12264 = vmatprep.mubr.bf16.mxu0 %v17557_v32  ;;  %v17584_v32 = vld [vmem:[%s18649_s23 + $0x154] ss:$392 sps:$4 sm:$0xff]  }
 0x5ad   : > { %9608 = vmatpush1.bf16.msra.mxu1 %v2661_v35  ;;  %v2677_v35 = vunpack.c.h.s8.bf16 %v1589_v23  ;;  %v1982_v18 = vld [vmem:[%s18656_s2 + $0x15b8] sm:$0xff]  ;;  %v1597_v23 = vld [vmem:[%s18656_s2 + $0x9b0] sm:$0xff] }
 0x5ae   : > { %12320 = vmatpush1.bf16.msra.mxu0 %v3429_v36  ;;  %9609 = vmatprep.subr.bf16.mxu1 %v2664_v37  ;;  %v3445_v36 = vunpack.c.h.s8.bf16 %v1973_v24  ;;  %v2680_v37 = vunpack.c.l.s8.bf16 %v1592_v33  ;;  %v1981_v24 = vld [vmem:[%s18656_s2 + $0x15b0] sm:$0xff] }
 0x5af   : > { %12321 = vmatprep.subr.bf16.mxu0 %v3432_v38  ;;  %v3448_v38 = vunpack.c.l.s8.bf16 %v1976_v34 }
 0x5b0   : > { %9553 = vmatmul.mubr.bf16.gmra.mrb[16].mxu1 %v17559_v41  ;;  %v17579_v41 = vld [vmem:[%s18649_s23 + $0x90] ss:$392 sps:$4 sm:$0xff]  }
 0x5b1   : > { %12265 = vmatmul.mubr.bf16.gmra.mrb[16].mxu0 %v17560_v42  ;;  %9610 = vmatpush1.bf16.msra.mxu1 %v2663_v43  ;;  %v17582_v42 = vld [vmem:[%s18649_s23 + $0x150] ss:$392 sps:$4 sm:$0xff]   ;;  %v2679_v43 = vunpack.c.l.s8.bf16 %v1591_v39 }
 0x5b2   : > { %12322 = vmatpush1.bf16.msra.mxu0 %v3431_v44  ;;  %9611 = vmatprep.subr.bf16.mxu1 %v2666_v45  ;;  %v3447_v44 = vunpack.c.l.s8.bf16 %v1975_v40  ;;  %v2682_v45 = vunpack.c.h.s8.bf16 %v1592_v33  ;;  %v1600_v33 = vld [vmem:[%s18656_s2 + $0x9c8] sm:$0xff] }
 0x5b3   : > { %12323 = vmatprep.subr.bf16.mxu0 %v3434_v46  ;;  %9562 = vmatprep.mubr.bf16.mxu1 %v17561_v47  ;;  %v3450_v46 = vunpack.c.h.s8.bf16 %v1976_v34  ;;  %v17585_v47 = vld [vmem:[%s18649_s23 + $0x3a4] ss:$392 sps:$4 sm:$0xff]  }
 0x5b4   : > { %12274 = vmatprep.mubr.bf16.mxu0 %v17563_v48  ;;  %v17587_v48 = vld [vmem:[%s18649_s23 + $0x464] ss:$392 sps:$4 sm:$0xff]  }
 0x5b5   : > { %9612 = vmatpush1.bf16.msra.mxu1 %v2665_v51  ;;  %v2681_v51 = vunpack.c.h.s8.bf16 %v1591_v39  ;;  %v1984_v34 = vld [vmem:[%s18656_s2 + $0x15c8] sm:$0xff]  ;;  %v1599_v39 = vld [vmem:[%s18656_s2 + $0x9c0] sm:$0xff] }
 0x5b6   : > { %12324 = vmatpush1.bf16.msra.mxu0 %v3433_v52  ;;  %9613 = vmatprep.subr.bf16.mxu1 %v2668_v53  ;;  %v3449_v52 = vunpack.c.h.s8.bf16 %v1975_v40  ;;  %v2684_v53 = vunpack.c.l.s8.bf16 %v1594_v49  ;;  %v1983_v40 = vld [vmem:[%s18656_s2 + $0x15c0] sm:$0xff] }
 0x5b7   : > { %12325 = vmatprep.subr.bf16.mxu0 %v3436_v54  ;;  %v3452_v54 = vunpack.c.l.s8.bf16 %v1978_v50 }
 0x5b8   : > { %9563 = vmatmul.mubr.bf16.gmra.mrb[20].mxu1 %v17565_v57  ;;  %v17589_v57 = vld [vmem:[%s18649_s23 + $0x3a0] ss:$392 sps:$4 sm:$0xff]  }
 0x5b9   : > { %12275 = vmatmul.mubr.bf16.gmra.mrb[20].mxu0 %v17566_v58  ;;  %9614 = vmatpush1.bf16.msra.mxu1 %v2667_v59  ;;  %v17590_v58 = vld [vmem:[%s18649_s23 + $0x460] ss:$392 sps:$4 sm:$0xff]   ;;  %v2683_v59 = vunpack.c.l.s8.bf16 %v1593_v55 }
 0x5ba   : > { %12326 = vmatpush1.bf16.msra.mxu0 %v3435_v60  ;;  %9615 = vmatprep.subr.bf16.mxu1 %v2670_v61  ;;  %v3451_v60 = vunpack.c.l.s8.bf16 %v1977_v56  ;;  %v2686_v61 = vunpack.c.h.s8.bf16 %v1594_v49  ;;  %v1602_v49 = vld [vmem:[%s18656_s2 + $0x9d8] sm:$0xff] }
 0x5bb   : > { %12327 = vmatprep.subr.bf16.mxu0 %v3438_v62  ;;  %9572 = vmatprep.mubr.bf16.mxu1 %v17567_v63  ;;  %v3454_v62 = vunpack.c.h.s8.bf16 %v1978_v50  ;;  %v17591_v63 = vld [vmem:[%s18649_s23 + $0x6b4] ss:$392 sps:$4 sm:$0xff]  }
 0x5bc   : > { %12284 = vmatprep.mubr.bf16.mxu0 %v17569_v0  ;;  %v17593_v0 = vld [vmem:[%s18649_s23 + $0x774] ss:$392 sps:$4 sm:$0xff]  }
 0x5bd   : > { %9616 = vmatpush1.bf16.msra.mxu1 %v2669_v3  ;;  %v2685_v3 = vunpack.c.h.s8.bf16 %v1593_v55  ;;  %v1986_v50 = vld [vmem:[%s18656_s2 + $0x15d8] sm:$0xff]  ;;  %v1601_v55 = vld [vmem:[%s18656_s2 + $0x9d0] sm:$0xff] }
 0x5be   : > { %12328 = vmatpush1.bf16.msra.mxu0 %v3437_v4  ;;  %9617 = vmatprep.subr.bf16.mxu1 %v2672_v5  ;;  %v3453_v4 = vunpack.c.h.s8.bf16 %v1977_v56  ;;  %v2688_v5 = vunpack.c.l.s8.bf16 %v1596_v1  ;;  %v1985_v56 = vld [vmem:[%s18656_s2 + $0x15d0] sm:$0xff] }
 0x5bf   : > { %12329 = vmatprep.subr.bf16.mxu0 %v3440_v6  ;;  %v3456_v6 = vunpack.c.l.s8.bf16 %v1980_v2 }
 0x5c0   : > { %9573 = vmatmul.mubr.bf16.gmra.mrb[24].mxu1 %v17571_v9  ;;  %v17595_v9 = vld [vmem:[%s18649_s23 + $0x6b0] ss:$392 sps:$4 sm:$0xff]  }
 0x5c1   : > { %12285 = vmatmul.mubr.bf16.gmra.mrb[24].mxu0 %v17572_v10  ;;  %9618 = vmatpush1.bf16.msra.mxu1 %v2671_v11  ;;  %v17596_v10 = vld [vmem:[%s18649_s23 + $0x770] ss:$392 sps:$4 sm:$0xff]   ;;  %v2687_v11 = vunpack.c.l.s8.bf16 %v1595_v7 }
 0x5c2   : > { %12330 = vmatpush1.bf16.msra.mxu0 %v3439_v12  ;;  %9619 = vmatprep.subr.bf16.mxu1 %v2674_v13  ;;  %v3455_v12 = vunpack.c.l.s8.bf16 %v1979_v8  ;;  %v2690_v13 = vunpack.c.h.s8.bf16 %v1596_v1  ;;  %v1604_v1 = vld [vmem:[%s18656_s2 + $0x9e8] sm:$0xff] }
 0x5c3   : > { %12331 = vmatprep.subr.bf16.mxu0 %v3442_v14  ;;  %9582 = vmatprep.mubr.bf16.mxu1 %v17573_v15  ;;  %v3458_v14 = vunpack.c.h.s8.bf16 %v1980_v2  ;;  %v17597_v15 = vld [vmem:[%s18649_s23 + $0x9c4] ss:$392 sps:$4 sm:$0xff]  }
 0x5c4   : > { %12294 = vmatprep.mubr.bf16.mxu0 %v17575_v16  ;;  %v17599_v16 = vld [vmem:[%s18649_s23 + $0xa84] ss:$392 sps:$4 sm:$0xff]  }
 0x5c5   : > { %9620 = vmatpush1.bf16.msra.mxu1 %v2673_v19  ;;  %v2689_v19 = vunpack.c.h.s8.bf16 %v1595_v7  ;;  %v1988_v2 = vld [vmem:[%s18656_s2 + $0x15e8] sm:$0xff]  ;;  %v1603_v7 = vld [vmem:[%s18656_s2 + $0x9e0] sm:$0xff] }
 0x5c6   : > { %12332 = vmatpush1.bf16.msra.mxu0 %v3441_v20  ;;  %9621 = vmatprep.subr.bf16.mxu1 %v2676_v21  ;;  %v3457_v20 = vunpack.c.h.s8.bf16 %v1979_v8  ;;  %v2692_v21 = vunpack.c.l.s8.bf16 %v1598_v17  ;;  %v1987_v8 = vld [vmem:[%s18656_s2 + $0x15e0] sm:$0xff] }
 0x5c7   : > { %12333 = vmatprep.subr.bf16.mxu0 %v3444_v22  ;;  %v3460_v22 = vunpack.c.l.s8.bf16 %v1982_v18 }
 0x5c8   : > { %9583 = vmatmul.mubr.bf16.gmra.mrb[28].mxu1 %v17577_v25  ;;  %v17601_v25 = vld [vmem:[%s18649_s23 + $0x9c0] ss:$392 sps:$4 sm:$0xff]  }
 0x5c9   : > { %12295 = vmatmul.mubr.bf16.gmra.mrb[28].mxu0 %v17578_v26  ;;  %9622 = vmatpush1.bf16.msra.mxu1 %v2675_v27  ;;  %v17602_v26 = vld [vmem:[%s18649_s23 + $0xa80] ss:$392 sps:$4 sm:$0xff]   ;;  %v2691_v27 = vunpack.c.l.s8.bf16 %v1597_v23 }
 0x5ca   : > { %12334 = vmatpush1.bf16.msra.mxu0 %v3443_v28  ;;  %9623 = vmatprep.subr.bf16.mxu1 %v2678_v29  ;;  %v3459_v28 = vunpack.c.l.s8.bf16 %v1981_v24  ;;  %v2694_v29 = vunpack.c.h.s8.bf16 %v1598_v17  ;;  %v1606_v17 = vld [vmem:[%s18656_s2 + $0x9f8] sm:$0xff] }
 0x5cb   : > { %12335 = vmatprep.subr.bf16.mxu0 %v3446_v30  ;;  %9625 = vmatprep.mubr.bf16.mxu1 %v17581_v31  ;;  %v3462_v30 = vunpack.c.h.s8.bf16 %v1982_v18  ;;  %v17603_v31 = vld [vmem:[%s18649_s23 + $0xcd4] ss:$392 sps:$4 sm:$0xff]  }
 0x5cc   : > { %12337 = vmatprep.mubr.bf16.mxu0 %v17584_v32  ;;  %v17605_v32 = vld [vmem:[%s18649_s23 + $0xd94] ss:$392 sps:$4 sm:$0xff]  }
 0x5cd   : > { %9624 = vmatpush1.bf16.msra.mxu1 %v2677_v35  ;;  %v2693_v35 = vunpack.c.h.s8.bf16 %v1597_v23  ;;  %v1990_v18 = vld [vmem:[%s18656_s2 + $0x15f8] sm:$0xff]  ;;  %v1605_v23 = vld [vmem:[%s18656_s2 + $0x9f0] sm:$0xff] }
 0x5ce   : > { %12336 = vmatpush1.bf16.msra.mxu0 %v3445_v36  ;;  %9706 = vmatprep.subr.bf16.mxu1 %v2680_v37  ;;  %v3461_v36 = vunpack.c.h.s8.bf16 %v1981_v24  ;;  %v2696_v37 = vunpack.c.l.s8.bf16 %v1600_v33  ;;  %v1989_v24 = vld [vmem:[%s18656_s2 + $0x15f0] sm:$0xff] }
 0x5cf   : > { %12418 = vmatprep.subr.bf16.mxu0 %v3448_v38  ;;  %v3464_v38 = vunpack.c.l.s8.bf16 %v1984_v34 }
 0x5d0   : > { %9626 = vmatmul.mubr.bf16.vlgmr.msra.gmra.mrb[0].mxu1 %v17579_v41  ;;  %v17607_v41 = vld [vmem:[%s18649_s23 + $0xcd0] ss:$392 sps:$4 sm:$0xff]  }
 0x5d1   : > { %12338 = vmatmul.mubr.bf16.vlgmr.msra.gmra.mrb[0].mxu0 %v17582_v42  ;;  %9707 = vmatpush1.bf16.msra.mxu1 %v2679_v43  ;;  %v17608_v42 = vld [vmem:[%s18649_s23 + $0xd90] ss:$392 sps:$4 sm:$0xff]   ;;  %v2695_v43 = vunpack.c.l.s8.bf16 %v1599_v39 }
 0x5d2   : > { %12419 = vmatpush1.bf16.msra.mxu0 %v3447_v44  ;;  %9708 = vmatprep.subr.bf16.mxu1 %v2682_v45  ;;  %v3463_v44 = vunpack.c.l.s8.bf16 %v1983_v40  ;;  %v2698_v45 = vunpack.c.h.s8.bf16 %v1600_v33  ;;  %v1608_v33 = vld [vmem:[%s18656_s2 + $0xa08] sm:$0xff] }
 0x5d3   : > { %12420 = vmatprep.subr.bf16.mxu0 %v3450_v46  ;;  %9635 = vmatprep.mubr.bf16.mxu1 %v17585_v47  ;;  %v3466_v46 = vunpack.c.h.s8.bf16 %v1984_v34  ;;  %v17609_v47 = vld [vmem:[%s18649_s23 + $0xfe4] ss:$392 sps:$4 sm:$0xff]  }
 0x5d4   : > { %12347 = vmatprep.mubr.bf16.mxu0 %v17587_v48  ;;  %v17611_v48 = vld [vmem:[%s18649_s23 + $0x10a4] ss:$392 sps:$4 sm:$0xff]  }
 0x5d5   : > { %9709 = vmatpush1.bf16.msra.mxu1 %v2681_v51  ;;  %v2697_v51 = vunpack.c.h.s8.bf16 %v1599_v39  ;;  %v1992_v34 = vld [vmem:[%s18656_s2 + $0x1608] sm:$0xff]  ;;  %v1607_v39 = vld [vmem:[%s18656_s2 + $0xa00] sm:$0xff] }
 0x5d6   : > { %12421 = vmatpush1.bf16.msra.mxu0 %v3449_v52  ;;  %9710 = vmatprep.subr.bf16.mxu1 %v2684_v53  ;;  %v3465_v52 = vunpack.c.h.s8.bf16 %v1983_v40  ;;  %v2700_v53 = vunpack.c.l.s8.bf16 %v1602_v49  ;;  %v1991_v40 = vld [vmem:[%s18656_s2 + $0x1600] sm:$0xff] }
 0x5d7   : > { %12422 = vmatprep.subr.bf16.mxu0 %v3452_v54  ;;  %v3468_v54 = vunpack.c.l.s8.bf16 %v1986_v50 }
 0x5d8   : > { %9636 = vmatmul.mubr.bf16.gmra.mrb[4].mxu1 %v17589_v57  ;;  %v17613_v57 = vld [vmem:[%s18649_s23 + $0xfe0] ss:$392 sps:$4 sm:$0xff]  }
 0x5d9   : > { %12348 = vmatmul.mubr.bf16.gmra.mrb[4].mxu0 %v17590_v58  ;;  %9711 = vmatpush1.bf16.msra.mxu1 %v2683_v59  ;;  %v17614_v58 = vld [vmem:[%s18649_s23 + $0x10a0] ss:$392 sps:$4 sm:$0xff]   ;;  %v2699_v59 = vunpack.c.l.s8.bf16 %v1601_v55 }
 0x5da   : > { %12423 = vmatpush1.bf16.msra.mxu0 %v3451_v60  ;;  %9712 = vmatprep.subr.bf16.mxu1 %v2686_v61  ;;  %v3467_v60 = vunpack.c.l.s8.bf16 %v1985_v56  ;;  %v2702_v61 = vunpack.c.h.s8.bf16 %v1602_v49  ;;  %v1610_v49 = vld [vmem:[%s18656_s2 + $0xa18] sm:$0xff] }
 0x5db   : > { %12424 = vmatprep.subr.bf16.mxu0 %v3454_v62  ;;  %9645 = vmatprep.mubr.bf16.mxu1 %v17591_v63  ;;  %v3470_v62 = vunpack.c.h.s8.bf16 %v1986_v50  ;;  %v17615_v63 = vld [vmem:[%s18649_s23 + $0x12f4] ss:$392 sps:$4 sm:$0xff]  }
 0x5dc   : > { %12357 = vmatprep.mubr.bf16.mxu0 %v17593_v0  ;;  %v17617_v0 = vld [vmem:[%s18649_s23 + $0x13b4] ss:$392 sps:$4 sm:$0xff]  }
 0x5dd   : > { %9713 = vmatpush1.bf16.msra.mxu1 %v2685_v3  ;;  %v2701_v3 = vunpack.c.h.s8.bf16 %v1601_v55  ;;  %v1994_v50 = vld [vmem:[%s18656_s2 + $0x1618] sm:$0xff]  ;;  %v1609_v55 = vld [vmem:[%s18656_s2 + $0xa10] sm:$0xff] }
 0x5de   : > { %12425 = vmatpush1.bf16.msra.mxu0 %v3453_v4  ;;  %9714 = vmatprep.subr.bf16.mxu1 %v2688_v5  ;;  %v3469_v4 = vunpack.c.h.s8.bf16 %v1985_v56  ;;  %v2704_v5 = vunpack.c.l.s8.bf16 %v1604_v1  ;;  %v1993_v56 = vld [vmem:[%s18656_s2 + $0x1610] sm:$0xff] }
 0x5df   : > { %12426 = vmatprep.subr.bf16.mxu0 %v3456_v6  ;;  %v3472_v6 = vunpack.c.l.s8.bf16 %v1988_v2 }
 0x5e0   : > { %9646 = vmatmul.mubr.bf16.gmra.mrb[8].mxu1 %v17595_v9  ;;  %v17619_v9 = vld [vmem:[%s18649_s23 + $0x12f0] ss:$392 sps:$4 sm:$0xff]  }
 0x5e1   : > { %12358 = vmatmul.mubr.bf16.gmra.mrb[8].mxu0 %v17596_v10  ;;  %9715 = vmatpush1.bf16.msra.mxu1 %v2687_v11  ;;  %v17620_v10 = vld [vmem:[%s18649_s23 + $0x13b0] ss:$392 sps:$4 sm:$0xff]   ;;  %v2703_v11 = vunpack.c.l.s8.bf16 %v1603_v7 }
 0x5e2   : > { %12427 = vmatpush1.bf16.msra.mxu0 %v3455_v12  ;;  %9716 = vmatprep.subr.bf16.mxu1 %v2690_v13  ;;  %v3471_v12 = vunpack.c.l.s8.bf16 %v1987_v8  ;;  %v2706_v13 = vunpack.c.h.s8.bf16 %v1604_v1  ;;  %v1612_v1 = vld [vmem:[%s18656_s2 + $0xa28] sm:$0xff] }
 0x5e3   : > { %12428 = vmatprep.subr.bf16.mxu0 %v3458_v14  ;;  %9655 = vmatprep.mubr.bf16.mxu1 %v17597_v15  ;;  %v3474_v14 = vunpack.c.h.s8.bf16 %v1988_v2  ;;  %v17621_v15 = vld [vmem:[%s18649_s23 + $0x1604] ss:$392 sps:$4 sm:$0xff]  }
 0x5e4   : > { %12367 = vmatprep.mubr.bf16.mxu0 %v17599_v16  ;;  %v17623_v16 = vld [vmem:[%s18649_s23 + $0x16c4] ss:$392 sps:$4 sm:$0xff]  }
 0x5e5   : > { %9717 = vmatpush1.bf16.msra.mxu1 %v2689_v19  ;;  %v2705_v19 = vunpack.c.h.s8.bf16 %v1603_v7  ;;  %v1996_v2 = vld [vmem:[%s18656_s2 + $0x1628] sm:$0xff]  ;;  %v1611_v7 = vld [vmem:[%s18656_s2 + $0xa20] sm:$0xff] }
 0x5e6   : > { %12429 = vmatpush1.bf16.msra.mxu0 %v3457_v20  ;;  %9718 = vmatprep.subr.bf16.mxu1 %v2692_v21  ;;  %v3473_v20 = vunpack.c.h.s8.bf16 %v1987_v8  ;;  %v2708_v21 = vunpack.c.l.s8.bf16 %v1606_v17  ;;  %v1995_v8 = vld [vmem:[%s18656_s2 + $0x1620] sm:$0xff] }
 0x5e7   : > { %12430 = vmatprep.subr.bf16.mxu0 %v3460_v22  ;;  %v3476_v22 = vunpack.c.l.s8.bf16 %v1990_v18 }
 0x5e8   : > { %9656 = vmatmul.mubr.bf16.gmra.mrb[12].mxu1 %v17601_v25  ;;  %v17625_v25 = vld [vmem:[%s18649_s23 + $0x1600] ss:$392 sps:$4 sm:$0xff]  }
 0x5e9   : > { %12368 = vmatmul.mubr.bf16.gmra.mrb[12].mxu0 %v17602_v26  ;;  %9719 = vmatpush1.bf16.msra.mxu1 %v2691_v27  ;;  %v17626_v26 = vld [vmem:[%s18649_s23 + $0x16c0] ss:$392 sps:$4 sm:$0xff]   ;;  %v2707_v27 = vunpack.c.l.s8.bf16 %v1605_v23 }
 0x5ea   : > { %12431 = vmatpush1.bf16.msra.mxu0 %v3459_v28  ;;  %9720 = vmatprep.subr.bf16.mxu1 %v2694_v29  ;;  %v3475_v28 = vunpack.c.l.s8.bf16 %v1989_v24  ;;  %v2710_v29 = vunpack.c.h.s8.bf16 %v1606_v17  ;;  %v1614_v17 = vld [vmem:[%s18656_s2 + $0xa38] sm:$0xff] }
 0x5eb   : > { %12432 = vmatprep.subr.bf16.mxu0 %v3462_v30  ;;  %9665 = vmatprep.mubr.bf16.mxu1 %v17603_v31  ;;  %v3478_v30 = vunpack.c.h.s8.bf16 %v1990_v18  ;;  %v17629_v31 = vld [vmem:[%s18649_s23 + $0x9c] ss:$392 sps:$4 sm:$0xff]  }
 0x5ec   : > { %12377 = vmatprep.mubr.bf16.mxu0 %v17605_v32  ;;  %v17632_v32 = vld [vmem:[%s18649_s23 + $0x15c] ss:$392 sps:$4 sm:$0xff]  }
 0x5ed   : > { %9721 = vmatpush1.bf16.msra.mxu1 %v2693_v35  ;;  %v2709_v35 = vunpack.c.h.s8.bf16 %v1605_v23  ;;  %v1998_v18 = vld [vmem:[%s18656_s2 + $0x1638] sm:$0xff]  ;;  %v1613_v23 = vld [vmem:[%s18656_s2 + $0xa30] sm:$0xff] }
 0x5ee   : > { %12433 = vmatpush1.bf16.msra.mxu0 %v3461_v36  ;;  %9722 = vmatprep.subr.bf16.mxu1 %v2696_v37  ;;  %v3477_v36 = vunpack.c.h.s8.bf16 %v1989_v24  ;;  %v2712_v37 = vunpack.c.l.s8.bf16 %v1608_v33  ;;  %v1997_v24 = vld [vmem:[%s18656_s2 + $0x1630] sm:$0xff] }
 0x5ef   : > { %12434 = vmatprep.subr.bf16.mxu0 %v3464_v38  ;;  %v3480_v38 = vunpack.c.l.s8.bf16 %v1992_v34 }
 0x5f0   : > { %9666 = vmatmul.mubr.bf16.gmra.mrb[16].mxu1 %v17607_v41  ;;  %v17627_v41 = vld [vmem:[%s18649_s23 + $0x98] ss:$392 sps:$4 sm:$0xff]  }
 0x5f1   : > { %12378 = vmatmul.mubr.bf16.gmra.mrb[16].mxu0 %v17608_v42  ;;  %9723 = vmatpush1.bf16.msra.mxu1 %v2695_v43  ;;  %v17630_v42 = vld [vmem:[%s18649_s23 + $0x158] ss:$392 sps:$4 sm:$0xff]   ;;  %v2711_v43 = vunpack.c.l.s8.bf16 %v1607_v39 }
 0x5f2   : > { %12435 = vmatpush1.bf16.msra.mxu0 %v3463_v44  ;;  %9724 = vmatprep.subr.bf16.mxu1 %v2698_v45  ;;  %v3479_v44 = vunpack.c.l.s8.bf16 %v1991_v40  ;;  %v2714_v45 = vunpack.c.h.s8.bf16 %v1608_v33  ;;  %v1616_v33 = vld [vmem:[%s18656_s2 + $0xa48] sm:$0xff] }
 0x5f3   : > { %12436 = vmatprep.subr.bf16.mxu0 %v3466_v46  ;;  %9675 = vmatprep.mubr.bf16.mxu1 %v17609_v47  ;;  %v3482_v46 = vunpack.c.h.s8.bf16 %v1992_v34  ;;  %v17633_v47 = vld [vmem:[%s18649_s23 + $0x3ac] ss:$392 sps:$4 sm:$0xff]  }
 0x5f4   : > { %12387 = vmatprep.mubr.bf16.mxu0 %v17611_v48  ;;  %v17635_v48 = vld [vmem:[%s18649_s23 + $0x46c] ss:$392 sps:$4 sm:$0xff]  }
 0x5f5   : > { %9725 = vmatpush1.bf16.msra.mxu1 %v2697_v51  ;;  %v2713_v51 = vunpack.c.h.s8.bf16 %v1607_v39  ;;  %v2000_v34 = vld [vmem:[%s18656_s2 + $0x1648] sm:$0xff]  ;;  %v1615_v39 = vld [vmem:[%s18656_s2 + $0xa40] sm:$0xff] }
 0x5f6   : > { %12437 = vmatpush1.bf16.msra.mxu0 %v3465_v52  ;;  %9726 = vmatprep.subr.bf16.mxu1 %v2700_v53  ;;  %v3481_v52 = vunpack.c.h.s8.bf16 %v1991_v40  ;;  %v2716_v53 = vunpack.c.l.s8.bf16 %v1610_v49  ;;  %v1999_v40 = vld [vmem:[%s18656_s2 + $0x1640] sm:$0xff] }
 0x5f7   : > { %12438 = vmatprep.subr.bf16.mxu0 %v3468_v54  ;;  %v3484_v54 = vunpack.c.l.s8.bf16 %v1994_v50 }
 0x5f8   : > { %9676 = vmatmul.mubr.bf16.gmra.mrb[20].mxu1 %v17613_v57  ;;  %v17637_v57 = vld [vmem:[%s18649_s23 + $0x3a8] ss:$392 sps:$4 sm:$0xff]  }
 0x5f9   : > { %12388 = vmatmul.mubr.bf16.gmra.mrb[20].mxu0 %v17614_v58  ;;  %9727 = vmatpush1.bf16.msra.mxu1 %v2699_v59  ;;  %v17638_v58 = vld [vmem:[%s18649_s23 + $0x468] ss:$392 sps:$4 sm:$0xff]   ;;  %v2715_v59 = vunpack.c.l.s8.bf16 %v1609_v55 }
 0x5fa   : > { %12439 = vmatpush1.bf16.msra.mxu0 %v3467_v60  ;;  %9728 = vmatprep.subr.bf16.mxu1 %v2702_v61  ;;  %v3483_v60 = vunpack.c.l.s8.bf16 %v1993_v56  ;;  %v2718_v61 = vunpack.c.h.s8.bf16 %v1610_v49  ;;  %v1618_v49 = vld [vmem:[%s18656_s2 + $0xa58] sm:$0xff] }
 0x5fb   : > { %12440 = vmatprep.subr.bf16.mxu0 %v3470_v62  ;;  %9685 = vmatprep.mubr.bf16.mxu1 %v17615_v63  ;;  %v3486_v62 = vunpack.c.h.s8.bf16 %v1994_v50  ;;  %v17639_v63 = vld [vmem:[%s18649_s23 + $0x6bc] ss:$392 sps:$4 sm:$0xff]  }
 0x5fc   : > { %12397 = vmatprep.mubr.bf16.mxu0 %v17617_v0  ;;  %v17641_v0 = vld [vmem:[%s18649_s23 + $0x77c] ss:$392 sps:$4 sm:$0xff]  }
 0x5fd   : > { %9729 = vmatpush1.bf16.msra.mxu1 %v2701_v3  ;;  %v2717_v3 = vunpack.c.h.s8.bf16 %v1609_v55  ;;  %v2002_v50 = vld [vmem:[%s18656_s2 + $0x1658] sm:$0xff]  ;;  %v1617_v55 = vld [vmem:[%s18656_s2 + $0xa50] sm:$0xff] }
 0x5fe   : > { %12441 = vmatpush1.bf16.msra.mxu0 %v3469_v4  ;;  %9730 = vmatprep.subr.bf16.mxu1 %v2704_v5  ;;  %v3485_v4 = vunpack.c.h.s8.bf16 %v1993_v56  ;;  %v2720_v5 = vunpack.c.l.s8.bf16 %v1612_v1  ;;  %v2001_v56 = vld [vmem:[%s18656_s2 + $0x1650] sm:$0xff] }
 0x5ff   : > { %12442 = vmatprep.subr.bf16.mxu0 %v3472_v6  ;;  %v3488_v6 = vunpack.c.l.s8.bf16 %v1996_v2 }
 0x600   : > { %9686 = vmatmul.mubr.bf16.gmra.mrb[24].mxu1 %v17619_v9  ;;  %v17643_v9 = vld [vmem:[%s18649_s23 + $0x6b8] ss:$392 sps:$4 sm:$0xff]  }
 0x601   : > { %12398 = vmatmul.mubr.bf16.gmra.mrb[24].mxu0 %v17620_v10  ;;  %9731 = vmatpush1.bf16.msra.mxu1 %v2703_v11  ;;  %v17644_v10 = vld [vmem:[%s18649_s23 + $0x778] ss:$392 sps:$4 sm:$0xff]   ;;  %v2719_v11 = vunpack.c.l.s8.bf16 %v1611_v7 }
 0x602   : > { %12443 = vmatpush1.bf16.msra.mxu0 %v3471_v12  ;;  %9732 = vmatprep.subr.bf16.mxu1 %v2706_v13  ;;  %v3487_v12 = vunpack.c.l.s8.bf16 %v1995_v8  ;;  %v2722_v13 = vunpack.c.h.s8.bf16 %v1612_v1  ;;  %v1620_v1 = vld [vmem:[%s18656_s2 + $0xa68] sm:$0xff] }
 0x603   : > { %12444 = vmatprep.subr.bf16.mxu0 %v3474_v14  ;;  %9695 = vmatprep.mubr.bf16.mxu1 %v17621_v15  ;;  %v3490_v14 = vunpack.c.h.s8.bf16 %v1996_v2  ;;  %v17645_v15 = vld [vmem:[%s18649_s23 + $0x9cc] ss:$392 sps:$4 sm:$0xff]  }
 0x604   : > { %12407 = vmatprep.mubr.bf16.mxu0 %v17623_v16  ;;  %v17647_v16 = vld [vmem:[%s18649_s23 + $0xa8c] ss:$392 sps:$4 sm:$0xff]  }
 0x605   : > { %9733 = vmatpush1.bf16.msra.mxu1 %v2705_v19  ;;  %v2721_v19 = vunpack.c.h.s8.bf16 %v1611_v7  ;;  %v2004_v2 = vld [vmem:[%s18656_s2 + $0x1668] sm:$0xff]  ;;  %v1619_v7 = vld [vmem:[%s18656_s2 + $0xa60] sm:$0xff] }
 0x606   : > { %12445 = vmatpush1.bf16.msra.mxu0 %v3473_v20  ;;  %9734 = vmatprep.subr.bf16.mxu1 %v2708_v21  ;;  %v3489_v20 = vunpack.c.h.s8.bf16 %v1995_v8  ;;  %v2724_v21 = vunpack.c.l.s8.bf16 %v1614_v17  ;;  %v2003_v8 = vld [vmem:[%s18656_s2 + $0x1660] sm:$0xff] }
 0x607   : > { %12446 = vmatprep.subr.bf16.mxu0 %v3476_v22  ;;  %v3492_v22 = vunpack.c.l.s8.bf16 %v1998_v18 }
 0x608   : > { %9696 = vmatmul.mubr.bf16.gmra.mrb[28].mxu1 %v17625_v25  ;;  %v17649_v25 = vld [vmem:[%s18649_s23 + $0x9c8] ss:$392 sps:$4 sm:$0xff]  }
 0x609   : > { %12408 = vmatmul.mubr.bf16.gmra.mrb[28].mxu0 %v17626_v26  ;;  %9735 = vmatpush1.bf16.msra.mxu1 %v2707_v27  ;;  %v17650_v26 = vld [vmem:[%s18649_s23 + $0xa88] ss:$392 sps:$4 sm:$0xff]   ;;  %v2723_v27 = vunpack.c.l.s8.bf16 %v1613_v23 }
 0x60a   : > { %12447 = vmatpush1.bf16.msra.mxu0 %v3475_v28  ;;  %9736 = vmatprep.subr.bf16.mxu1 %v2710_v29  ;;  %v3491_v28 = vunpack.c.l.s8.bf16 %v1997_v24  ;;  %v2726_v29 = vunpack.c.h.s8.bf16 %v1614_v17  ;;  %v1622_v17 = vld [vmem:[%s18656_s2 + $0xa78] sm:$0xff] }
 0x60b   : > { %12448 = vmatprep.subr.bf16.mxu0 %v3478_v30  ;;  %9738 = vmatprep.mubr.bf16.mxu1 %v17629_v31  ;;  %v3494_v30 = vunpack.c.h.s8.bf16 %v1998_v18  ;;  %v17651_v31 = vld [vmem:[%s18649_s23 + $0xcdc] ss:$392 sps:$4 sm:$0xff]  }
 0x60c   : > { %12450 = vmatprep.mubr.bf16.mxu0 %v17632_v32  ;;  %v17653_v32 = vld [vmem:[%s18649_s23 + $0xd9c] ss:$392 sps:$4 sm:$0xff]  }
 0x60d   : > { %9737 = vmatpush1.bf16.msra.mxu1 %v2709_v35  ;;  %v2725_v35 = vunpack.c.h.s8.bf16 %v1613_v23  ;;  %v2006_v18 = vld [vmem:[%s18656_s2 + $0x1678] sm:$0xff]  ;;  %v1621_v23 = vld [vmem:[%s18656_s2 + $0xa70] sm:$0xff] }
 0x60e   : > { %12449 = vmatpush1.bf16.msra.mxu0 %v3477_v36  ;;  %9819 = vmatprep.subr.bf16.mxu1 %v2712_v37  ;;  %v3493_v36 = vunpack.c.h.s8.bf16 %v1997_v24  ;;  %v2728_v37 = vunpack.c.l.s8.bf16 %v1616_v33  ;;  %v2005_v24 = vld [vmem:[%s18656_s2 + $0x1670] sm:$0xff] }
 0x60f   : > { %12531 = vmatprep.subr.bf16.mxu0 %v3480_v38  ;;  %v3496_v38 = vunpack.c.l.s8.bf16 %v2000_v34 }
 0x610   : > { %9739 = vmatmul.mubr.bf16.vlgmr.msra.gmra.mrb[0].mxu1 %v17627_v41  ;;  %v17655_v41 = vld [vmem:[%s18649_s23 + $0xcd8] ss:$392 sps:$4 sm:$0xff]  }
 0x611   : > { %12451 = vmatmul.mubr.bf16.vlgmr.msra.gmra.mrb[0].mxu0 %v17630_v42  ;;  %9820 = vmatpush1.bf16.msra.mxu1 %v2711_v43  ;;  %v17656_v42 = vld [vmem:[%s18649_s23 + $0xd98] ss:$392 sps:$4 sm:$0xff]   ;;  %v2727_v43 = vunpack.c.l.s8.bf16 %v1615_v39 }
 0x612   : > { %12532 = vmatpush1.bf16.msra.mxu0 %v3479_v44  ;;  %9821 = vmatprep.subr.bf16.mxu1 %v2714_v45  ;;  %v3495_v44 = vunpack.c.l.s8.bf16 %v1999_v40  ;;  %v2730_v45 = vunpack.c.h.s8.bf16 %v1616_v33  ;;  %v1624_v33 = vld [vmem:[%s18656_s2 + $0xa88] sm:$0xff] }
 0x613   : > { %12533 = vmatprep.subr.bf16.mxu0 %v3482_v46  ;;  %9748 = vmatprep.mubr.bf16.mxu1 %v17633_v47  ;;  %v3498_v46 = vunpack.c.h.s8.bf16 %v2000_v34  ;;  %v17657_v47 = vld [vmem:[%s18649_s23 + $0xfec] ss:$392 sps:$4 sm:$0xff]  }
 0x614   : > { %12460 = vmatprep.mubr.bf16.mxu0 %v17635_v48  ;;  %v17659_v48 = vld [vmem:[%s18649_s23 + $0x10ac] ss:$392 sps:$4 sm:$0xff]  }
 0x615   : > { %9822 = vmatpush1.bf16.msra.mxu1 %v2713_v51  ;;  %v2729_v51 = vunpack.c.h.s8.bf16 %v1615_v39  ;;  %v2008_v34 = vld [vmem:[%s18656_s2 + $0x1688] sm:$0xff]  ;;  %v1623_v39 = vld [vmem:[%s18656_s2 + $0xa80] sm:$0xff] }
 0x616   : > { %12534 = vmatpush1.bf16.msra.mxu0 %v3481_v52  ;;  %9823 = vmatprep.subr.bf16.mxu1 %v2716_v53  ;;  %v3497_v52 = vunpack.c.h.s8.bf16 %v1999_v40  ;;  %v2732_v53 = vunpack.c.l.s8.bf16 %v1618_v49  ;;  %v2007_v40 = vld [vmem:[%s18656_s2 + $0x1680] sm:$0xff] }
 0x617   : > { %12535 = vmatprep.subr.bf16.mxu0 %v3484_v54  ;;  %v3500_v54 = vunpack.c.l.s8.bf16 %v2002_v50 }
 0x618   : > { %9749 = vmatmul.mubr.bf16.gmra.mrb[4].mxu1 %v17637_v57  ;;  %v17661_v57 = vld [vmem:[%s18649_s23 + $0xfe8] ss:$392 sps:$4 sm:$0xff]  }
 0x619   : > { %12461 = vmatmul.mubr.bf16.gmra.mrb[4].mxu0 %v17638_v58  ;;  %9824 = vmatpush1.bf16.msra.mxu1 %v2715_v59  ;;  %v17662_v58 = vld [vmem:[%s18649_s23 + $0x10a8] ss:$392 sps:$4 sm:$0xff]   ;;  %v2731_v59 = vunpack.c.l.s8.bf16 %v1617_v55 }
 0x61a   : > { %12536 = vmatpush1.bf16.msra.mxu0 %v3483_v60  ;;  %9825 = vmatprep.subr.bf16.mxu1 %v2718_v61  ;;  %v3499_v60 = vunpack.c.l.s8.bf16 %v2001_v56  ;;  %v2734_v61 = vunpack.c.h.s8.bf16 %v1618_v49  ;;  %v1626_v49 = vld [vmem:[%s18656_s2 + $0xa98] sm:$0xff] }
 0x61b   : > { %12537 = vmatprep.subr.bf16.mxu0 %v3486_v62  ;;  %9758 = vmatprep.mubr.bf16.mxu1 %v17639_v63  ;;  %v3502_v62 = vunpack.c.h.s8.bf16 %v2002_v50  ;;  %v17663_v63 = vld [vmem:[%s18649_s23 + $0x12fc] ss:$392 sps:$4 sm:$0xff]  }
 0x61c   : > { %12470 = vmatprep.mubr.bf16.mxu0 %v17641_v0  ;;  %v17665_v0 = vld [vmem:[%s18649_s23 + $0x13bc] ss:$392 sps:$4 sm:$0xff]  }
 0x61d   : > { %9826 = vmatpush1.bf16.msra.mxu1 %v2717_v3  ;;  %v2733_v3 = vunpack.c.h.s8.bf16 %v1617_v55  ;;  %v2010_v50 = vld [vmem:[%s18656_s2 + $0x1698] sm:$0xff]  ;;  %v1625_v55 = vld [vmem:[%s18656_s2 + $0xa90] sm:$0xff] }
 0x61e   : > { %12538 = vmatpush1.bf16.msra.mxu0 %v3485_v4  ;;  %9827 = vmatprep.subr.bf16.mxu1 %v2720_v5  ;;  %v3501_v4 = vunpack.c.h.s8.bf16 %v2001_v56  ;;  %v2736_v5 = vunpack.c.l.s8.bf16 %v1620_v1  ;;  %v2009_v56 = vld [vmem:[%s18656_s2 + $0x1690] sm:$0xff] }
 0x61f   : > { %12539 = vmatprep.subr.bf16.mxu0 %v3488_v6  ;;  %v3504_v6 = vunpack.c.l.s8.bf16 %v2004_v2 }
 0x620   : > { %9759 = vmatmul.mubr.bf16.gmra.mrb[8].mxu1 %v17643_v9  ;;  %v17667_v9 = vld [vmem:[%s18649_s23 + $0x12f8] ss:$392 sps:$4 sm:$0xff]  }
 0x621   : > { %12471 = vmatmul.mubr.bf16.gmra.mrb[8].mxu0 %v17644_v10  ;;  %9828 = vmatpush1.bf16.msra.mxu1 %v2719_v11  ;;  %v17668_v10 = vld [vmem:[%s18649_s23 + $0x13b8] ss:$392 sps:$4 sm:$0xff]   ;;  %v2735_v11 = vunpack.c.l.s8.bf16 %v1619_v7 }
 0x622   : > { %12540 = vmatpush1.bf16.msra.mxu0 %v3487_v12  ;;  %9829 = vmatprep.subr.bf16.mxu1 %v2722_v13  ;;  %v3503_v12 = vunpack.c.l.s8.bf16 %v2003_v8  ;;  %v2738_v13 = vunpack.c.h.s8.bf16 %v1620_v1  ;;  %v1628_v1 = vld [vmem:[%s18656_s2 + $0xaa8] sm:$0xff] }
 0x623   : > { %12541 = vmatprep.subr.bf16.mxu0 %v3490_v14  ;;  %9768 = vmatprep.mubr.bf16.mxu1 %v17645_v15  ;;  %v3506_v14 = vunpack.c.h.s8.bf16 %v2004_v2  ;;  %v17669_v15 = vld [vmem:[%s18649_s23 + $0x160c] ss:$392 sps:$4 sm:$0xff]  }
 0x624   : > { %12480 = vmatprep.mubr.bf16.mxu0 %v17647_v16  ;;  %v17671_v16 = vld [vmem:[%s18649_s23 + $0x16cc] ss:$392 sps:$4 sm:$0xff]  }
 0x625   : > { %9830 = vmatpush1.bf16.msra.mxu1 %v2721_v19  ;;  %v2737_v19 = vunpack.c.h.s8.bf16 %v1619_v7  ;;  %v2012_v2 = vld [vmem:[%s18656_s2 + $0x16a8] sm:$0xff]  ;;  %v1627_v7 = vld [vmem:[%s18656_s2 + $0xaa0] sm:$0xff] }
 0x626   : > { %12542 = vmatpush1.bf16.msra.mxu0 %v3489_v20  ;;  %9831 = vmatprep.subr.bf16.mxu1 %v2724_v21  ;;  %v3505_v20 = vunpack.c.h.s8.bf16 %v2003_v8  ;;  %v2740_v21 = vunpack.c.l.s8.bf16 %v1622_v17  ;;  %v2011_v8 = vld [vmem:[%s18656_s2 + $0x16a0] sm:$0xff] }
 0x627   : > { %12543 = vmatprep.subr.bf16.mxu0 %v3492_v22  ;;  %v3508_v22 = vunpack.c.l.s8.bf16 %v2006_v18 }
 0x628   : > { %9769 = vmatmul.mubr.bf16.gmra.mrb[12].mxu1 %v17649_v25  ;;  %v17673_v25 = vld [vmem:[%s18649_s23 + $0x1608] ss:$392 sps:$4 sm:$0xff]  }
 0x629   : > { %12481 = vmatmul.mubr.bf16.gmra.mrb[12].mxu0 %v17650_v26  ;;  %9832 = vmatpush1.bf16.msra.mxu1 %v2723_v27  ;;  %v17674_v26 = vld [vmem:[%s18649_s23 + $0x16c8] ss:$392 sps:$4 sm:$0xff]   ;;  %v2739_v27 = vunpack.c.l.s8.bf16 %v1621_v23 }
 0x62a   : > { %12544 = vmatpush1.bf16.msra.mxu0 %v3491_v28  ;;  %9833 = vmatprep.subr.bf16.mxu1 %v2726_v29  ;;  %v3507_v28 = vunpack.c.l.s8.bf16 %v2005_v24  ;;  %v2742_v29 = vunpack.c.h.s8.bf16 %v1622_v17  ;;  %v1630_v17 = vld [vmem:[%s18656_s2 + $0xab8] sm:$0xff] }
 0x62b   : > { %12545 = vmatprep.subr.bf16.mxu0 %v3494_v30  ;;  %9778 = vmatprep.mubr.bf16.mxu1 %v17651_v31  ;;  %v3510_v30 = vunpack.c.h.s8.bf16 %v2006_v18  ;;  %v17677_v31 = vld [vmem:[%s18649_s23 + $0xa4] ss:$392 sps:$4 sm:$0xff]   ;;  %v2014_v18 = vld [vmem:[%s18656_s2 + $0x16b8] sm:$0xff] }
 0x62c   : > { %12490 = vmatprep.mubr.bf16.mxu0 %v17653_v32  ;;  %v17680_v32 = vld [vmem:[%s18649_s23 + $0x164] ss:$392 sps:$4 sm:$0xff]  }
 0x62d   : > { %9834 = vmatpush1.bf16.msra.mxu1 %v2725_v35  ;;  %v2741_v35 = vunpack.c.h.s8.bf16 %v1621_v23  ;;  %v1629_v23 = vld [vmem:[%s18656_s2 + $0xab0] sm:$0xff] }
 0x62e   : > { %12546 = vmatpush1.bf16.msra.mxu0 %v3493_v36  ;;  %9835 = vmatprep.subr.bf16.mxu1 %v2728_v37  ;;  %v3509_v36 = vunpack.c.h.s8.bf16 %v2005_v24  ;;  %v2744_v37 = vunpack.c.l.s8.bf16 %v1624_v33  ;;  %v2013_v24 = vld [vmem:[%s18656_s2 + $0x16b0] sm:$0xff] }
 0x62f   : > { %12547 = vmatprep.subr.bf16.mxu0 %v3496_v38  ;;  %v3512_v38 = vunpack.c.l.s8.bf16 %v2008_v34 }
 0x630   : > { %9779 = vmatmul.mubr.bf16.gmra.mrb[16].mxu1 %v17655_v41  ;;  %v17675_v41 = vld [vmem:[%s18649_s23 + $0xa0] ss:$392 sps:$4 sm:$0xff]  }
 0x631   : > { %12491 = vmatmul.mubr.bf16.gmra.mrb[16].mxu0 %v17656_v42  ;;  %9836 = vmatpush1.bf16.msra.mxu1 %v2727_v43  ;;  %v17678_v42 = vld [vmem:[%s18649_s23 + $0x160] ss:$392 sps:$4 sm:$0xff]   ;;  %v2743_v43 = vunpack.c.l.s8.bf16 %v1623_v39 }
 0x632   : > { %12548 = vmatpush1.bf16.msra.mxu0 %v3495_v44  ;;  %9837 = vmatprep.subr.bf16.mxu1 %v2730_v45  ;;  %v3511_v44 = vunpack.c.l.s8.bf16 %v2007_v40  ;;  %v2746_v45 = vunpack.c.h.s8.bf16 %v1624_v33  ;;  %v1632_v33 = vld [vmem:[%s18656_s2 + $0xac8] sm:$0xff] }
 0x633   : > { %12549 = vmatprep.subr.bf16.mxu0 %v3498_v46  ;;  %9788 = vmatprep.mubr.bf16.mxu1 %v17657_v47  ;;  %v3514_v46 = vunpack.c.h.s8.bf16 %v2008_v34  ;;  %v17681_v47 = vld [vmem:[%s18649_s23 + $0x3b4] ss:$392 sps:$4 sm:$0xff]   ;;  %v2016_v34 = vld [vmem:[%s18656_s2 + $0x16c8] sm:$0xff] }
 0x634   : > { %12500 = vmatprep.mubr.bf16.mxu0 %v17659_v48  ;;  %v17683_v48 = vld [vmem:[%s18649_s23 + $0x474] ss:$392 sps:$4 sm:$0xff]  }
 0x635   : > { %9838 = vmatpush1.bf16.msra.mxu1 %v2729_v51  ;;  %v2745_v51 = vunpack.c.h.s8.bf16 %v1623_v39  ;;  %v1631_v39 = vld [vmem:[%s18656_s2 + $0xac0] sm:$0xff] }
 0x636   : > { %12550 = vmatpush1.bf16.msra.mxu0 %v3497_v52  ;;  %9839 = vmatprep.subr.bf16.mxu1 %v2732_v53  ;;  %v3513_v52 = vunpack.c.h.s8.bf16 %v2007_v40  ;;  %v2748_v53 = vunpack.c.l.s8.bf16 %v1626_v49  ;;  %v2015_v40 = vld [vmem:[%s18656_s2 + $0x16c0] sm:$0xff] }
 0x637   : > { %12551 = vmatprep.subr.bf16.mxu0 %v3500_v54  ;;  %v3516_v54 = vunpack.c.l.s8.bf16 %v2010_v50 }
 0x638   : > { %9789 = vmatmul.mubr.bf16.gmra.mrb[20].mxu1 %v17661_v57  ;;  %v17685_v57 = vld [vmem:[%s18649_s23 + $0x3b0] ss:$392 sps:$4 sm:$0xff]  }
 0x639   : > { %12501 = vmatmul.mubr.bf16.gmra.mrb[20].mxu0 %v17662_v58  ;;  %9840 = vmatpush1.bf16.msra.mxu1 %v2731_v59  ;;  %v17686_v58 = vld [vmem:[%s18649_s23 + $0x470] ss:$392 sps:$4 sm:$0xff]   ;;  %v2747_v59 = vunpack.c.l.s8.bf16 %v1625_v55 }
 0x63a   : > { %12552 = vmatpush1.bf16.msra.mxu0 %v3499_v60  ;;  %9841 = vmatprep.subr.bf16.mxu1 %v2734_v61  ;;  %v3515_v60 = vunpack.c.l.s8.bf16 %v2009_v56  ;;  %v2750_v61 = vunpack.c.h.s8.bf16 %v1626_v49  ;;  %v1634_v49 = vld [vmem:[%s18656_s2 + $0xad8] sm:$0xff] }
 0x63b   : > { %12553 = vmatprep.subr.bf16.mxu0 %v3502_v62  ;;  %9798 = vmatprep.mubr.bf16.mxu1 %v17663_v63  ;;  %v3518_v62 = vunpack.c.h.s8.bf16 %v2010_v50  ;;  %v17687_v63 = vld [vmem:[%s18649_s23 + $0x6c4] ss:$392 sps:$4 sm:$0xff]   ;;  %v2018_v50 = vld [vmem:[%s18656_s2 + $0x16d8] sm:$0xff] }
 0x63c   : > { %12510 = vmatprep.mubr.bf16.mxu0 %v17665_v0  ;;  %v17689_v0 = vld [vmem:[%s18649_s23 + $0x784] ss:$392 sps:$4 sm:$0xff]  }
 0x63d   : > { %9842 = vmatpush1.bf16.msra.mxu1 %v2733_v3  ;;  %v2749_v3 = vunpack.c.h.s8.bf16 %v1625_v55  ;;  %v1633_v55 = vld [vmem:[%s18656_s2 + $0xad0] sm:$0xff] }
 0x63e   : > { %12554 = vmatpush1.bf16.msra.mxu0 %v3501_v4  ;;  %9843 = vmatprep.subr.bf16.mxu1 %v2736_v5  ;;  %v3517_v4 = vunpack.c.h.s8.bf16 %v2009_v56  ;;  %v2752_v5 = vunpack.c.l.s8.bf16 %v1628_v1  ;;  %v2017_v56 = vld [vmem:[%s18656_s2 + $0x16d0] sm:$0xff] }
 0x63f   : > { %12555 = vmatprep.subr.bf16.mxu0 %v3504_v6  ;;  %v3520_v6 = vunpack.c.l.s8.bf16 %v2012_v2 }
 0x640   : > { %9799 = vmatmul.mubr.bf16.gmra.mrb[24].mxu1 %v17667_v9  ;;  %v17691_v9 = vld [vmem:[%s18649_s23 + $0x6c0] ss:$392 sps:$4 sm:$0xff]  }
 0x641   : > { %12511 = vmatmul.mubr.bf16.gmra.mrb[24].mxu0 %v17668_v10  ;;  %9844 = vmatpush1.bf16.msra.mxu1 %v2735_v11  ;;  %v17692_v10 = vld [vmem:[%s18649_s23 + $0x780] ss:$392 sps:$4 sm:$0xff]   ;;  %v2751_v11 = vunpack.c.l.s8.bf16 %v1627_v7 }
 0x642   : > { %12556 = vmatpush1.bf16.msra.mxu0 %v3503_v12  ;;  %9845 = vmatprep.subr.bf16.mxu1 %v2738_v13  ;;  %v3519_v12 = vunpack.c.l.s8.bf16 %v2011_v8  ;;  %v2754_v13 = vunpack.c.h.s8.bf16 %v1628_v1  ;;  %v1636_v1 = vld [vmem:[%s18656_s2 + $0xae8] sm:$0xff] }
 0x643   : > { %12557 = vmatprep.subr.bf16.mxu0 %v3506_v14  ;;  %9808 = vmatprep.mubr.bf16.mxu1 %v17669_v15  ;;  %v3522_v14 = vunpack.c.h.s8.bf16 %v2012_v2  ;;  %v17693_v15 = vld [vmem:[%s18649_s23 + $0x9d4] ss:$392 sps:$4 sm:$0xff]   ;;  %v2020_v2 = vld [vmem:[%s18656_s2 + $0x16e8] sm:$0xff] }
 0x644   : > { %12520 = vmatprep.mubr.bf16.mxu0 %v17671_v16  ;;  %v17695_v16 = vld [vmem:[%s18649_s23 + $0xa94] ss:$392 sps:$4 sm:$0xff]  }
 0x645   : > { %9846 = vmatpush1.bf16.msra.mxu1 %v2737_v19  ;;  %v2753_v19 = vunpack.c.h.s8.bf16 %v1627_v7  ;;  %v1635_v7 = vld [vmem:[%s18656_s2 + $0xae0] sm:$0xff] }
 0x646   : > { %12558 = vmatpush1.bf16.msra.mxu0 %v3505_v20  ;;  %9847 = vmatprep.subr.bf16.mxu1 %v2740_v21  ;;  %v3521_v20 = vunpack.c.h.s8.bf16 %v2011_v8  ;;  %v2756_v21 = vunpack.c.l.s8.bf16 %v1630_v17  ;;  %v2019_v8 = vld [vmem:[%s18656_s2 + $0x16e0] sm:$0xff] }
 0x647   : > { %12559 = vmatprep.subr.bf16.mxu0 %v3508_v22  ;;  %v3524_v22 = vunpack.c.l.s8.bf16 %v2014_v18 }
 0x648   : > { %9809 = vmatmul.mubr.bf16.gmra.mrb[28].mxu1 %v17673_v25  ;;  %v17697_v25 = vld [vmem:[%s18649_s23 + $0x9d0] ss:$392 sps:$4 sm:$0xff]  }
 0x649   : > { %12521 = vmatmul.mubr.bf16.gmra.mrb[28].mxu0 %v17674_v26  ;;  %9848 = vmatpush1.bf16.msra.mxu1 %v2739_v27  ;;  %v17698_v26 = vld [vmem:[%s18649_s23 + $0xa90] ss:$392 sps:$4 sm:$0xff]   ;;  %v2755_v27 = vunpack.c.l.s8.bf16 %v1629_v23 }
 0x64a   : > { %12560 = vmatpush1.bf16.msra.mxu0 %v3507_v28  ;;  %9849 = vmatprep.subr.bf16.mxu1 %v2742_v29  ;;  %v3523_v28 = vunpack.c.l.s8.bf16 %v2013_v24  ;;  %v2758_v29 = vunpack.c.h.s8.bf16 %v1630_v17  ;;  %v1638_v17 = vld [vmem:[%s18656_s2 + $0xaf8] sm:$0xff] }
 0x64b   : > { %12561 = vmatprep.subr.bf16.mxu0 %v3510_v30  ;;  %9851 = vmatprep.mubr.bf16.mxu1 %v17677_v31  ;;  %v3526_v30 = vunpack.c.h.s8.bf16 %v2014_v18  ;;  %v17699_v31 = vld [vmem:[%s18649_s23 + $0xce4] ss:$392 sps:$4 sm:$0xff]   ;;  %v2022_v18 = vld [vmem:[%s18656_s2 + $0x16f8] sm:$0xff] }
 0x64c   : > { %12563 = vmatprep.mubr.bf16.mxu0 %v17680_v32  ;;  %v17701_v32 = vld [vmem:[%s18649_s23 + $0xda4] ss:$392 sps:$4 sm:$0xff]  }
 0x64d   : > { %9850 = vmatpush1.bf16.msra.mxu1 %v2741_v35  ;;  %v2757_v35 = vunpack.c.h.s8.bf16 %v1629_v23  ;;  %v1637_v23 = vld [vmem:[%s18656_s2 + $0xaf0] sm:$0xff] }
 0x64e   : > { %12562 = vmatpush1.bf16.msra.mxu0 %v3509_v36  ;;  %9932 = vmatprep.subr.bf16.mxu1 %v2744_v37  ;;  %v3525_v36 = vunpack.c.h.s8.bf16 %v2013_v24  ;;  %v2760_v37 = vunpack.c.l.s8.bf16 %v1632_v33  ;;  %v2021_v24 = vld [vmem:[%s18656_s2 + $0x16f0] sm:$0xff] }
 0x64f   : > { %12644 = vmatprep.subr.bf16.mxu0 %v3512_v38  ;;  %v3528_v38 = vunpack.c.l.s8.bf16 %v2016_v34 }
 0x650   : > { %9852 = vmatmul.mubr.bf16.vlgmr.msra.gmra.mrb[0].mxu1 %v17675_v41  ;;  %v17703_v41 = vld [vmem:[%s18649_s23 + $0xce0] ss:$392 sps:$4 sm:$0xff]  }
 0x651   : > { %12564 = vmatmul.mubr.bf16.vlgmr.msra.gmra.mrb[0].mxu0 %v17678_v42  ;;  %9933 = vmatpush1.bf16.msra.mxu1 %v2743_v43  ;;  %v17704_v42 = vld [vmem:[%s18649_s23 + $0xda0] ss:$392 sps:$4 sm:$0xff]   ;;  %v2759_v43 = vunpack.c.l.s8.bf16 %v1631_v39 }
 0x652   : > { %12645 = vmatpush1.bf16.msra.mxu0 %v3511_v44  ;;  %9934 = vmatprep.subr.bf16.mxu1 %v2746_v45  ;;  %v3527_v44 = vunpack.c.l.s8.bf16 %v2015_v40  ;;  %v2762_v45 = vunpack.c.h.s8.bf16 %v1632_v33  ;;  %v1640_v33 = vld [vmem:[%s18656_s2 + $0xb08] sm:$0xff] }
 0x653   : > { %12646 = vmatprep.subr.bf16.mxu0 %v3514_v46  ;;  %9861 = vmatprep.mubr.bf16.mxu1 %v17681_v47  ;;  %v3530_v46 = vunpack.c.h.s8.bf16 %v2016_v34  ;;  %v17705_v47 = vld [vmem:[%s18649_s23 + $0xff4] ss:$392 sps:$4 sm:$0xff]   ;;  %v2024_v34 = vld [vmem:[%s18656_s2 + $0x1708] sm:$0xff] }
 0x654   : > { %12573 = vmatprep.mubr.bf16.mxu0 %v17683_v48  ;;  %v17707_v48 = vld [vmem:[%s18649_s23 + $0x10b4] ss:$392 sps:$4 sm:$0xff]  }
 0x655   : > { %9935 = vmatpush1.bf16.msra.mxu1 %v2745_v51  ;;  %v2761_v51 = vunpack.c.h.s8.bf16 %v1631_v39  ;;  %v1639_v39 = vld [vmem:[%s18656_s2 + $0xb00] sm:$0xff] }
 0x656   : > { %12647 = vmatpush1.bf16.msra.mxu0 %v3513_v52  ;;  %9936 = vmatprep.subr.bf16.mxu1 %v2748_v53  ;;  %v3529_v52 = vunpack.c.h.s8.bf16 %v2015_v40  ;;  %v2764_v53 = vunpack.c.l.s8.bf16 %v1634_v49  ;;  %v2023_v40 = vld [vmem:[%s18656_s2 + $0x1700] sm:$0xff] }
 0x657   : > { %12648 = vmatprep.subr.bf16.mxu0 %v3516_v54  ;;  %v3532_v54 = vunpack.c.l.s8.bf16 %v2018_v50 }
 0x658   : > { %9862 = vmatmul.mubr.bf16.gmra.mrb[4].mxu1 %v17685_v57  ;;  %v17709_v57 = vld [vmem:[%s18649_s23 + $0xff0] ss:$392 sps:$4 sm:$0xff]  }
 0x659   : > { %12574 = vmatmul.mubr.bf16.gmra.mrb[4].mxu0 %v17686_v58  ;;  %9937 = vmatpush1.bf16.msra.mxu1 %v2747_v59  ;;  %v17710_v58 = vld [vmem:[%s18649_s23 + $0x10b0] ss:$392 sps:$4 sm:$0xff]   ;;  %v2763_v59 = vunpack.c.l.s8.bf16 %v1633_v55 }
 0x65a   : > { %12649 = vmatpush1.bf16.msra.mxu0 %v3515_v60  ;;  %9938 = vmatprep.subr.bf16.mxu1 %v2750_v61  ;;  %v3531_v60 = vunpack.c.l.s8.bf16 %v2017_v56  ;;  %v2766_v61 = vunpack.c.h.s8.bf16 %v1634_v49  ;;  %v1642_v49 = vld [vmem:[%s18656_s2 + $0xb18] sm:$0xff] }
 0x65b   : > { %12650 = vmatprep.subr.bf16.mxu0 %v3518_v62  ;;  %9871 = vmatprep.mubr.bf16.mxu1 %v17687_v63  ;;  %v3534_v62 = vunpack.c.h.s8.bf16 %v2018_v50  ;;  %v17711_v63 = vld [vmem:[%s18649_s23 + $0x1304] ss:$392 sps:$4 sm:$0xff]   ;;  %v2026_v50 = vld [vmem:[%s18656_s2 + $0x1718] sm:$0xff] }
 0x65c   : > { %12583 = vmatprep.mubr.bf16.mxu0 %v17689_v0  ;;  %v17713_v0 = vld [vmem:[%s18649_s23 + $0x13c4] ss:$392 sps:$4 sm:$0xff]  }
 0x65d   : > { %9939 = vmatpush1.bf16.msra.mxu1 %v2749_v3  ;;  %v2765_v3 = vunpack.c.h.s8.bf16 %v1633_v55  ;;  %v1641_v55 = vld [vmem:[%s18656_s2 + $0xb10] sm:$0xff] }
 0x65e   : > { %12651 = vmatpush1.bf16.msra.mxu0 %v3517_v4  ;;  %9940 = vmatprep.subr.bf16.mxu1 %v2752_v5  ;;  %v3533_v4 = vunpack.c.h.s8.bf16 %v2017_v56  ;;  %v2768_v5 = vunpack.c.l.s8.bf16 %v1636_v1  ;;  %v2025_v56 = vld [vmem:[%s18656_s2 + $0x1710] sm:$0xff] }
 0x65f   : > { %12652 = vmatprep.subr.bf16.mxu0 %v3520_v6  ;;  %v3536_v6 = vunpack.c.l.s8.bf16 %v2020_v2 }
 0x660   : > { %9872 = vmatmul.mubr.bf16.gmra.mrb[8].mxu1 %v17691_v9  ;;  %v17715_v9 = vld [vmem:[%s18649_s23 + $0x1300] ss:$392 sps:$4 sm:$0xff]  }
 0x661   : > { %12584 = vmatmul.mubr.bf16.gmra.mrb[8].mxu0 %v17692_v10  ;;  %9941 = vmatpush1.bf16.msra.mxu1 %v2751_v11  ;;  %v17716_v10 = vld [vmem:[%s18649_s23 + $0x13c0] ss:$392 sps:$4 sm:$0xff]   ;;  %v2767_v11 = vunpack.c.l.s8.bf16 %v1635_v7 }
 0x662   : > { %12653 = vmatpush1.bf16.msra.mxu0 %v3519_v12  ;;  %9942 = vmatprep.subr.bf16.mxu1 %v2754_v13  ;;  %v3535_v12 = vunpack.c.l.s8.bf16 %v2019_v8  ;;  %v2770_v13 = vunpack.c.h.s8.bf16 %v1636_v1  ;;  %v1644_v1 = vld [vmem:[%s18656_s2 + $0xb28] sm:$0xff] }
 0x663   : > { %12654 = vmatprep.subr.bf16.mxu0 %v3522_v14  ;;  %9881 = vmatprep.mubr.bf16.mxu1 %v17693_v15  ;;  %v3538_v14 = vunpack.c.h.s8.bf16 %v2020_v2  ;;  %v17717_v15 = vld [vmem:[%s18649_s23 + $0x1614] ss:$392 sps:$4 sm:$0xff]   ;;  %v2028_v2 = vld [vmem:[%s18656_s2 + $0x1728] sm:$0xff] }
 0x664   : > { %12593 = vmatprep.mubr.bf16.mxu0 %v17695_v16  ;;  %v17719_v16 = vld [vmem:[%s18649_s23 + $0x16d4] ss:$392 sps:$4 sm:$0xff]  }
 0x665   : > { %9943 = vmatpush1.bf16.msra.mxu1 %v2753_v19  ;;  %v2769_v19 = vunpack.c.h.s8.bf16 %v1635_v7  ;;  %v1643_v7 = vld [vmem:[%s18656_s2 + $0xb20] sm:$0xff] }
 0x666   : > { %12655 = vmatpush1.bf16.msra.mxu0 %v3521_v20  ;;  %9944 = vmatprep.subr.bf16.mxu1 %v2756_v21  ;;  %v3537_v20 = vunpack.c.h.s8.bf16 %v2019_v8  ;;  %v2772_v21 = vunpack.c.l.s8.bf16 %v1638_v17  ;;  %v2027_v8 = vld [vmem:[%s18656_s2 + $0x1720] sm:$0xff] }
 0x667   : > { %12656 = vmatprep.subr.bf16.mxu0 %v3524_v22  ;;  %v3540_v22 = vunpack.c.l.s8.bf16 %v2022_v18 }
 0x668   : > { %9882 = vmatmul.mubr.bf16.gmra.mrb[12].mxu1 %v17697_v25  ;;  %v17721_v25 = vld [vmem:[%s18649_s23 + $0x1610] ss:$392 sps:$4 sm:$0xff]  }
 0x669   : > { %12594 = vmatmul.mubr.bf16.gmra.mrb[12].mxu0 %v17698_v26  ;;  %9945 = vmatpush1.bf16.msra.mxu1 %v2755_v27  ;;  %v17722_v26 = vld [vmem:[%s18649_s23 + $0x16d0] ss:$392 sps:$4 sm:$0xff]   ;;  %v2771_v27 = vunpack.c.l.s8.bf16 %v1637_v23 }
 0x66a   : > { %12657 = vmatpush1.bf16.msra.mxu0 %v3523_v28  ;;  %9946 = vmatprep.subr.bf16.mxu1 %v2758_v29  ;;  %v3539_v28 = vunpack.c.l.s8.bf16 %v2021_v24  ;;  %v2774_v29 = vunpack.c.h.s8.bf16 %v1638_v17  ;;  %v1646_v17 = vld [vmem:[%s18656_s2 + $0xb38] sm:$0xff] }
 0x66b   : > { %12658 = vmatprep.subr.bf16.mxu0 %v3526_v30  ;;  %9891 = vmatprep.mubr.bf16.mxu1 %v17699_v31  ;;  %v3542_v30 = vunpack.c.h.s8.bf16 %v2022_v18  ;;  %v17725_v31 = vld [vmem:[%s18649_s23 + $0xac] ss:$392 sps:$4 sm:$0xff]   ;;  %v2030_v18 = vld [vmem:[%s18656_s2 + $0x1738] sm:$0xff] }
 0x66c   : > { %12603 = vmatprep.mubr.bf16.mxu0 %v17701_v32  ;;  %v17728_v32 = vld [vmem:[%s18649_s23 + $0x16c] ss:$392 sps:$4 sm:$0xff]  }
 0x66d   : > { %9947 = vmatpush1.bf16.msra.mxu1 %v2757_v35  ;;  %v2773_v35 = vunpack.c.h.s8.bf16 %v1637_v23  ;;  %v1645_v23 = vld [vmem:[%s18656_s2 + $0xb30] sm:$0xff] }
 0x66e   : > { %12659 = vmatpush1.bf16.msra.mxu0 %v3525_v36  ;;  %9948 = vmatprep.subr.bf16.mxu1 %v2760_v37  ;;  %v3541_v36 = vunpack.c.h.s8.bf16 %v2021_v24  ;;  %v2776_v37 = vunpack.c.l.s8.bf16 %v1640_v33  ;;  %v2029_v24 = vld [vmem:[%s18656_s2 + $0x1730] sm:$0xff] }
 0x66f   : > { %12660 = vmatprep.subr.bf16.mxu0 %v3528_v38  ;;  %v3544_v38 = vunpack.c.l.s8.bf16 %v2024_v34 }
 0x670   : > { %9892 = vmatmul.mubr.bf16.gmra.mrb[16].mxu1 %v17703_v41  ;;  %v17723_v41 = vld [vmem:[%s18649_s23 + $0xa8] ss:$392 sps:$4 sm:$0xff]  }
 0x671   : > { %12604 = vmatmul.mubr.bf16.gmra.mrb[16].mxu0 %v17704_v42  ;;  %9949 = vmatpush1.bf16.msra.mxu1 %v2759_v43  ;;  %v17726_v42 = vld [vmem:[%s18649_s23 + $0x168] ss:$392 sps:$4 sm:$0xff]   ;;  %v2775_v43 = vunpack.c.l.s8.bf16 %v1639_v39 }
 0x672   : > { %12661 = vmatpush1.bf16.msra.mxu0 %v3527_v44  ;;  %9950 = vmatprep.subr.bf16.mxu1 %v2762_v45  ;;  %v3543_v44 = vunpack.c.l.s8.bf16 %v2023_v40  ;;  %v2778_v45 = vunpack.c.h.s8.bf16 %v1640_v33  ;;  %v1648_v33 = vld [vmem:[%s18656_s2 + $0xb48] sm:$0xff] }
 0x673   : > { %12662 = vmatprep.subr.bf16.mxu0 %v3530_v46  ;;  %9901 = vmatprep.mubr.bf16.mxu1 %v17705_v47  ;;  %v3546_v46 = vunpack.c.h.s8.bf16 %v2024_v34  ;;  %v17729_v47 = vld [vmem:[%s18649_s23 + $0x3bc] ss:$392 sps:$4 sm:$0xff]   ;;  %v2032_v34 = vld [vmem:[%s18656_s2 + $0x1748] sm:$0xff] }
 0x674   : > { %12613 = vmatprep.mubr.bf16.mxu0 %v17707_v48  ;;  %v17731_v48 = vld [vmem:[%s18649_s23 + $0x47c] ss:$392 sps:$4 sm:$0xff]  }
 0x675   : > { %9951 = vmatpush1.bf16.msra.mxu1 %v2761_v51  ;;  %v2777_v51 = vunpack.c.h.s8.bf16 %v1639_v39  ;;  %v1647_v39 = vld [vmem:[%s18656_s2 + $0xb40] sm:$0xff] }
 0x676   : > { %12663 = vmatpush1.bf16.msra.mxu0 %v3529_v52  ;;  %9952 = vmatprep.subr.bf16.mxu1 %v2764_v53  ;;  %v3545_v52 = vunpack.c.h.s8.bf16 %v2023_v40  ;;  %v2780_v53 = vunpack.c.l.s8.bf16 %v1642_v49  ;;  %v2031_v40 = vld [vmem:[%s18656_s2 + $0x1740] sm:$0xff] }
 0x677   : > { %12664 = vmatprep.subr.bf16.mxu0 %v3532_v54  ;;  %v3548_v54 = vunpack.c.l.s8.bf16 %v2026_v50 }
 0x678   : > { %9902 = vmatmul.mubr.bf16.gmra.mrb[20].mxu1 %v17709_v57  ;;  %v17733_v57 = vld [vmem:[%s18649_s23 + $0x3b8] ss:$392 sps:$4 sm:$0xff]  }
 0x679   : > { %12614 = vmatmul.mubr.bf16.gmra.mrb[20].mxu0 %v17710_v58  ;;  %9953 = vmatpush1.bf16.msra.mxu1 %v2763_v59  ;;  %v17734_v58 = vld [vmem:[%s18649_s23 + $0x478] ss:$392 sps:$4 sm:$0xff]   ;;  %v2779_v59 = vunpack.c.l.s8.bf16 %v1641_v55 }
 0x67a   : > { %12665 = vmatpush1.bf16.msra.mxu0 %v3531_v60  ;;  %9954 = vmatprep.subr.bf16.mxu1 %v2766_v61  ;;  %v3547_v60 = vunpack.c.l.s8.bf16 %v2025_v56  ;;  %v2782_v61 = vunpack.c.h.s8.bf16 %v1642_v49  ;;  %v1650_v49 = vld [vmem:[%s18656_s2 + $0xb58] sm:$0xff] }
 0x67b   : > { %12666 = vmatprep.subr.bf16.mxu0 %v3534_v62  ;;  %9911 = vmatprep.mubr.bf16.mxu1 %v17711_v63  ;;  %v3550_v62 = vunpack.c.h.s8.bf16 %v2026_v50  ;;  %v17735_v63 = vld [vmem:[%s18649_s23 + $0x6cc] ss:$392 sps:$4 sm:$0xff]   ;;  %v2034_v50 = vld [vmem:[%s18656_s2 + $0x1758] sm:$0xff] }
 0x67c   : > { %12623 = vmatprep.mubr.bf16.mxu0 %v17713_v0  ;;  %v17737_v0 = vld [vmem:[%s18649_s23 + $0x78c] ss:$392 sps:$4 sm:$0xff]  }
 0x67d   : > { %9955 = vmatpush1.bf16.msra.mxu1 %v2765_v3  ;;  %v2781_v3 = vunpack.c.h.s8.bf16 %v1641_v55  ;;  %v1649_v55 = vld [vmem:[%s18656_s2 + $0xb50] sm:$0xff] }
 0x67e   : > { %12667 = vmatpush1.bf16.msra.mxu0 %v3533_v4  ;;  %9956 = vmatprep.subr.bf16.mxu1 %v2768_v5  ;;  %v3549_v4 = vunpack.c.h.s8.bf16 %v2025_v56  ;;  %v2784_v5 = vunpack.c.l.s8.bf16 %v1644_v1  ;;  %v2033_v56 = vld [vmem:[%s18656_s2 + $0x1750] sm:$0xff] }
 0x67f   : > { %12668 = vmatprep.subr.bf16.mxu0 %v3536_v6  ;;  %v3552_v6 = vunpack.c.l.s8.bf16 %v2028_v2 }
 0x680   : > { %9912 = vmatmul.mubr.bf16.gmra.mrb[24].mxu1 %v17715_v9  ;;  %v17739_v9 = vld [vmem:[%s18649_s23 + $0x6c8] ss:$392 sps:$4 sm:$0xff]  }
 0x681   : > { %12624 = vmatmul.mubr.bf16.gmra.mrb[24].mxu0 %v17716_v10  ;;  %9957 = vmatpush1.bf16.msra.mxu1 %v2767_v11  ;;  %v17740_v10 = vld [vmem:[%s18649_s23 + $0x788] ss:$392 sps:$4 sm:$0xff]   ;;  %v2783_v11 = vunpack.c.l.s8.bf16 %v1643_v7 }
 0x682   : > { %12669 = vmatpush1.bf16.msra.mxu0 %v3535_v12  ;;  %9958 = vmatprep.subr.bf16.mxu1 %v2770_v13  ;;  %v3551_v12 = vunpack.c.l.s8.bf16 %v2027_v8  ;;  %v2786_v13 = vunpack.c.h.s8.bf16 %v1644_v1  ;;  %v1652_v1 = vld [vmem:[%s18656_s2 + $0xb68] sm:$0xff] }
 0x683   : > { %12670 = vmatprep.subr.bf16.mxu0 %v3538_v14  ;;  %9921 = vmatprep.mubr.bf16.mxu1 %v17717_v15  ;;  %v3554_v14 = vunpack.c.h.s8.bf16 %v2028_v2  ;;  %v17741_v15 = vld [vmem:[%s18649_s23 + $0x9dc] ss:$392 sps:$4 sm:$0xff]   ;;  %v2036_v2 = vld [vmem:[%s18656_s2 + $0x1768] sm:$0xff] }
 0x684   : > { %12633 = vmatprep.mubr.bf16.mxu0 %v17719_v16  ;;  %v17743_v16 = vld [vmem:[%s18649_s23 + $0xa9c] ss:$392 sps:$4 sm:$0xff]  }
 0x685   : > { %9959 = vmatpush1.bf16.msra.mxu1 %v2769_v19  ;;  %v2785_v19 = vunpack.c.h.s8.bf16 %v1643_v7  ;;  %v1651_v7 = vld [vmem:[%s18656_s2 + $0xb60] sm:$0xff] }
 0x686   : > { %12671 = vmatpush1.bf16.msra.mxu0 %v3537_v20  ;;  %9960 = vmatprep.subr.bf16.mxu1 %v2772_v21  ;;  %v3553_v20 = vunpack.c.h.s8.bf16 %v2027_v8  ;;  %v2788_v21 = vunpack.c.l.s8.bf16 %v1646_v17  ;;  %v2035_v8 = vld [vmem:[%s18656_s2 + $0x1760] sm:$0xff] }
 0x687   : > { %12672 = vmatprep.subr.bf16.mxu0 %v3540_v22  ;;  %v3556_v22 = vunpack.c.l.s8.bf16 %v2030_v18 }
 0x688   : > { %9922 = vmatmul.mubr.bf16.gmra.mrb[28].mxu1 %v17721_v25  ;;  %v17745_v25 = vld [vmem:[%s18649_s23 + $0x9d8] ss:$392 sps:$4 sm:$0xff]  }
 0x689   : > { %12634 = vmatmul.mubr.bf16.gmra.mrb[28].mxu0 %v17722_v26  ;;  %9961 = vmatpush1.bf16.msra.mxu1 %v2771_v27  ;;  %v17746_v26 = vld [vmem:[%s18649_s23 + $0xa98] ss:$392 sps:$4 sm:$0xff]   ;;  %v2787_v27 = vunpack.c.l.s8.bf16 %v1645_v23 }
 0x68a   : > { %12673 = vmatpush1.bf16.msra.mxu0 %v3539_v28  ;;  %9962 = vmatprep.subr.bf16.mxu1 %v2774_v29  ;;  %v3555_v28 = vunpack.c.l.s8.bf16 %v2029_v24  ;;  %v2790_v29 = vunpack.c.h.s8.bf16 %v1646_v17  ;;  %v1654_v17 = vld [vmem:[%s18656_s2 + $0xb78] sm:$0xff] }
 0x68b   : > { %12674 = vmatprep.subr.bf16.mxu0 %v3542_v30  ;;  %9964 = vmatprep.mubr.bf16.mxu1 %v17725_v31  ;;  %v3558_v30 = vunpack.c.h.s8.bf16 %v2030_v18  ;;  %v17747_v31 = vld [vmem:[%s18649_s23 + $0xcec] ss:$392 sps:$4 sm:$0xff]   ;;  %v2038_v18 = vld [vmem:[%s18656_s2 + $0x1778] sm:$0xff] }
 0x68c   : > { %12676 = vmatprep.mubr.bf16.mxu0 %v17728_v32  ;;  %v17749_v32 = vld [vmem:[%s18649_s23 + $0xdac] ss:$392 sps:$4 sm:$0xff]  }
 0x68d   : > { %9963 = vmatpush1.bf16.msra.mxu1 %v2773_v35  ;;  %v2789_v35 = vunpack.c.h.s8.bf16 %v1645_v23  ;;  %v1653_v23 = vld [vmem:[%s18656_s2 + $0xb70] sm:$0xff] }
 0x68e   : > { %12675 = vmatpush1.bf16.msra.mxu0 %v3541_v36  ;;  %10045 = vmatprep.subr.bf16.mxu1 %v2776_v37  ;;  %v3557_v36 = vunpack.c.h.s8.bf16 %v2029_v24  ;;  %v2792_v37 = vunpack.c.l.s8.bf16 %v1648_v33  ;;  %v2037_v24 = vld [vmem:[%s18656_s2 + $0x1770] sm:$0xff] }
 0x68f   : > { %12757 = vmatprep.subr.bf16.mxu0 %v3544_v38  ;;  %v3560_v38 = vunpack.c.l.s8.bf16 %v2032_v34 }
 0x690   : > { %9965 = vmatmul.mubr.bf16.vlgmr.msra.gmra.mrb[0].mxu1 %v17723_v41  ;;  %v17751_v41 = vld [vmem:[%s18649_s23 + $0xce8] ss:$392 sps:$4 sm:$0xff]  }
 0x691   : > { %12677 = vmatmul.mubr.bf16.vlgmr.msra.gmra.mrb[0].mxu0 %v17726_v42  ;;  %10046 = vmatpush1.bf16.msra.mxu1 %v2775_v43  ;;  %v17752_v42 = vld [vmem:[%s18649_s23 + $0xda8] ss:$392 sps:$4 sm:$0xff]   ;;  %v2791_v43 = vunpack.c.l.s8.bf16 %v1647_v39 }
 0x692   : > { %12758 = vmatpush1.bf16.msra.mxu0 %v3543_v44  ;;  %10047 = vmatprep.subr.bf16.mxu1 %v2778_v45  ;;  %v3559_v44 = vunpack.c.l.s8.bf16 %v2031_v40  ;;  %v2794_v45 = vunpack.c.h.s8.bf16 %v1648_v33  ;;  %v1656_v33 = vld [vmem:[%s18656_s2 + $0xb88] sm:$0xff] }
 0x693   : > { %12759 = vmatprep.subr.bf16.mxu0 %v3546_v46  ;;  %9974 = vmatprep.mubr.bf16.mxu1 %v17729_v47  ;;  %v3562_v46 = vunpack.c.h.s8.bf16 %v2032_v34  ;;  %v17753_v47 = vld [vmem:[%s18649_s23 + $0xffc] ss:$392 sps:$4 sm:$0xff]   ;;  %v2040_v34 = vld [vmem:[%s18656_s2 + $0x1788] sm:$0xff] }
 0x694   : > { %12686 = vmatprep.mubr.bf16.mxu0 %v17731_v48  ;;  %v17755_v48 = vld [vmem:[%s18649_s23 + $0x10bc] ss:$392 sps:$4 sm:$0xff]  }
 0x695   : > { %10048 = vmatpush1.bf16.msra.mxu1 %v2777_v51  ;;  %v2793_v51 = vunpack.c.h.s8.bf16 %v1647_v39  ;;  %v1655_v39 = vld [vmem:[%s18656_s2 + $0xb80] sm:$0xff] }
 0x696   : > { %12760 = vmatpush1.bf16.msra.mxu0 %v3545_v52  ;;  %10049 = vmatprep.subr.bf16.mxu1 %v2780_v53  ;;  %v3561_v52 = vunpack.c.h.s8.bf16 %v2031_v40  ;;  %v2796_v53 = vunpack.c.l.s8.bf16 %v1650_v49  ;;  %v2039_v40 = vld [vmem:[%s18656_s2 + $0x1780] sm:$0xff] }
 0x697   : > { %12761 = vmatprep.subr.bf16.mxu0 %v3548_v54  ;;  %v3564_v54 = vunpack.c.l.s8.bf16 %v2034_v50 }
 0x698   : > { %9975 = vmatmul.mubr.bf16.gmra.mrb[4].mxu1 %v17733_v57  ;;  %v17757_v57 = vld [vmem:[%s18649_s23 + $0xff8] ss:$392 sps:$4 sm:$0xff]  }
 0x699   : > { %12687 = vmatmul.mubr.bf16.gmra.mrb[4].mxu0 %v17734_v58  ;;  %10050 = vmatpush1.bf16.msra.mxu1 %v2779_v59  ;;  %v17758_v58 = vld [vmem:[%s18649_s23 + $0x10b8] ss:$392 sps:$4 sm:$0xff]   ;;  %v2795_v59 = vunpack.c.l.s8.bf16 %v1649_v55 }
 0x69a   : > { %12762 = vmatpush1.bf16.msra.mxu0 %v3547_v60  ;;  %10051 = vmatprep.subr.bf16.mxu1 %v2782_v61  ;;  %v3563_v60 = vunpack.c.l.s8.bf16 %v2033_v56  ;;  %v2798_v61 = vunpack.c.h.s8.bf16 %v1650_v49  ;;  %v1658_v49 = vld [vmem:[%s18656_s2 + $0xb98] sm:$0xff] }
 0x69b   : > { %12763 = vmatprep.subr.bf16.mxu0 %v3550_v62  ;;  %9984 = vmatprep.mubr.bf16.mxu1 %v17735_v63  ;;  %v3566_v62 = vunpack.c.h.s8.bf16 %v2034_v50  ;;  %v17759_v63 = vld [vmem:[%s18649_s23 + $0x130c] ss:$392 sps:$4 sm:$0xff]   ;;  %v2042_v50 = vld [vmem:[%s18656_s2 + $0x1798] sm:$0xff] }
 0x69c   : > { %12696 = vmatprep.mubr.bf16.mxu0 %v17737_v0  ;;  %v17761_v0 = vld [vmem:[%s18649_s23 + $0x13cc] ss:$392 sps:$4 sm:$0xff]  }
 0x69d   : > { %10052 = vmatpush1.bf16.msra.mxu1 %v2781_v3  ;;  %v2797_v3 = vunpack.c.h.s8.bf16 %v1649_v55  ;;  %v1657_v55 = vld [vmem:[%s18656_s2 + $0xb90] sm:$0xff] }
 0x69e   : > { %12764 = vmatpush1.bf16.msra.mxu0 %v3549_v4  ;;  %10053 = vmatprep.subr.bf16.mxu1 %v2784_v5  ;;  %v3565_v4 = vunpack.c.h.s8.bf16 %v2033_v56  ;;  %v2800_v5 = vunpack.c.l.s8.bf16 %v1652_v1  ;;  %v2041_v56 = vld [vmem:[%s18656_s2 + $0x1790] sm:$0xff] }
 0x69f   : > { %12765 = vmatprep.subr.bf16.mxu0 %v3552_v6  ;;  %v3568_v6 = vunpack.c.l.s8.bf16 %v2036_v2 }
 0x6a0   : > { %9985 = vmatmul.mubr.bf16.gmra.mrb[8].mxu1 %v17739_v9  ;;  %v17763_v9 = vld [vmem:[%s18649_s23 + $0x1308] ss:$392 sps:$4 sm:$0xff]  }
 0x6a1   : > { %12697 = vmatmul.mubr.bf16.gmra.mrb[8].mxu0 %v17740_v10  ;;  %10054 = vmatpush1.bf16.msra.mxu1 %v2783_v11  ;;  %v17764_v10 = vld [vmem:[%s18649_s23 + $0x13c8] ss:$392 sps:$4 sm:$0xff]   ;;  %v2799_v11 = vunpack.c.l.s8.bf16 %v1651_v7 }
 0x6a2   : > { %12766 = vmatpush1.bf16.msra.mxu0 %v3551_v12  ;;  %10055 = vmatprep.subr.bf16.mxu1 %v2786_v13  ;;  %v3567_v12 = vunpack.c.l.s8.bf16 %v2035_v8  ;;  %v2802_v13 = vunpack.c.h.s8.bf16 %v1652_v1  ;;  %v1660_v1 = vld [vmem:[%s18656_s2 + $0xba8] sm:$0xff] }
 0x6a3   : > { %12767 = vmatprep.subr.bf16.mxu0 %v3554_v14  ;;  %9994 = vmatprep.mubr.bf16.mxu1 %v17741_v15  ;;  %v3570_v14 = vunpack.c.h.s8.bf16 %v2036_v2  ;;  %v17765_v15 = vld [vmem:[%s18649_s23 + $0x161c] ss:$392 sps:$4 sm:$0xff]   ;;  %v2044_v2 = vld [vmem:[%s18656_s2 + $0x17a8] sm:$0xff] }
 0x6a4   : > { %12706 = vmatprep.mubr.bf16.mxu0 %v17743_v16  ;;  %v17767_v16 = vld [vmem:[%s18649_s23 + $0x16dc] ss:$392 sps:$4 sm:$0xff]  }
 0x6a5   : > { %10056 = vmatpush1.bf16.msra.mxu1 %v2785_v19  ;;  %v2801_v19 = vunpack.c.h.s8.bf16 %v1651_v7  ;;  %v1659_v7 = vld [vmem:[%s18656_s2 + $0xba0] sm:$0xff] }
 0x6a6   : > { %12768 = vmatpush1.bf16.msra.mxu0 %v3553_v20  ;;  %10057 = vmatprep.subr.bf16.mxu1 %v2788_v21  ;;  %v3569_v20 = vunpack.c.h.s8.bf16 %v2035_v8  ;;  %v2804_v21 = vunpack.c.l.s8.bf16 %v1654_v17  ;;  %v2043_v8 = vld [vmem:[%s18656_s2 + $0x17a0] sm:$0xff] }
 0x6a7   : > { %12769 = vmatprep.subr.bf16.mxu0 %v3556_v22  ;;  %v3572_v22 = vunpack.c.l.s8.bf16 %v2038_v18 }
 0x6a8   : > { %9995 = vmatmul.mubr.bf16.gmra.mrb[12].mxu1 %v17745_v25  ;;  %v17769_v25 = vld [vmem:[%s18649_s23 + $0x1618] ss:$392 sps:$4 sm:$0xff]  }
 0x6a9   : > { %12707 = vmatmul.mubr.bf16.gmra.mrb[12].mxu0 %v17746_v26  ;;  %10058 = vmatpush1.bf16.msra.mxu1 %v2787_v27  ;;  %v17770_v26 = vld [vmem:[%s18649_s23 + $0x16d8] ss:$392 sps:$4 sm:$0xff]   ;;  %v2803_v27 = vunpack.c.l.s8.bf16 %v1653_v23 }
 0x6aa   : > { %12770 = vmatpush1.bf16.msra.mxu0 %v3555_v28  ;;  %10059 = vmatprep.subr.bf16.mxu1 %v2790_v29  ;;  %v3571_v28 = vunpack.c.l.s8.bf16 %v2037_v24  ;;  %v2806_v29 = vunpack.c.h.s8.bf16 %v1654_v17  ;;  %v1662_v17 = vld [vmem:[%s18656_s2 + $0xbb8] sm:$0xff] }
 0x6ab   : > { %12771 = vmatprep.subr.bf16.mxu0 %v3558_v30  ;;  %10004 = vmatprep.mubr.bf16.mxu1 %v17747_v31  ;;  %v3574_v30 = vunpack.c.h.s8.bf16 %v2038_v18  ;;  %v17773_v31 = vld [vmem:[%s18649_s23 + $0xb4] ss:$392 sps:$4 sm:$0xff]  }
 0x6ac   : > { %12716 = vmatprep.mubr.bf16.mxu0 %v17749_v32  ;;  %v17776_v32 = vld [vmem:[%s18649_s23 + $0x174] ss:$392 sps:$4 sm:$0xff]  }
 0x6ad   : > { %10060 = vmatpush1.bf16.msra.mxu1 %v2789_v35  ;;  %v2805_v35 = vunpack.c.h.s8.bf16 %v1653_v23  ;;  %v2046_v18 = vld [vmem:[%s18656_s2 + $0x17b8] sm:$0xff]  ;;  %v1661_v23 = vld [vmem:[%s18656_s2 + $0xbb0] sm:$0xff] }
 0x6ae   : > { %12772 = vmatpush1.bf16.msra.mxu0 %v3557_v36  ;;  %10061 = vmatprep.subr.bf16.mxu1 %v2792_v37  ;;  %v3573_v36 = vunpack.c.h.s8.bf16 %v2037_v24  ;;  %v2808_v37 = vunpack.c.l.s8.bf16 %v1656_v33  ;;  %v2045_v24 = vld [vmem:[%s18656_s2 + $0x17b0] sm:$0xff] }
 0x6af   : > { %12773 = vmatprep.subr.bf16.mxu0 %v3560_v38  ;;  %v3576_v38 = vunpack.c.l.s8.bf16 %v2040_v34 }
 0x6b0   : > { %10005 = vmatmul.mubr.bf16.gmra.mrb[16].mxu1 %v17751_v41  ;;  %v17771_v41 = vld [vmem:[%s18649_s23 + $0xb0] ss:$392 sps:$4 sm:$0xff]  }
 0x6b1   : > { %12717 = vmatmul.mubr.bf16.gmra.mrb[16].mxu0 %v17752_v42  ;;  %10062 = vmatpush1.bf16.msra.mxu1 %v2791_v43  ;;  %v17774_v42 = vld [vmem:[%s18649_s23 + $0x170] ss:$392 sps:$4 sm:$0xff]   ;;  %v2807_v43 = vunpack.c.l.s8.bf16 %v1655_v39 }
 0x6b2   : > { %12774 = vmatpush1.bf16.msra.mxu0 %v3559_v44  ;;  %10063 = vmatprep.subr.bf16.mxu1 %v2794_v45  ;;  %v3575_v44 = vunpack.c.l.s8.bf16 %v2039_v40  ;;  %v2810_v45 = vunpack.c.h.s8.bf16 %v1656_v33  ;;  %v1664_v33 = vld [vmem:[%s18656_s2 + $0xbc8] sm:$0xff] }
 0x6b3   : > { %12775 = vmatprep.subr.bf16.mxu0 %v3562_v46  ;;  %10014 = vmatprep.mubr.bf16.mxu1 %v17753_v47  ;;  %v3578_v46 = vunpack.c.h.s8.bf16 %v2040_v34  ;;  %v17777_v47 = vld [vmem:[%s18649_s23 + $0x3c4] ss:$392 sps:$4 sm:$0xff]  }
 0x6b4   : > { %12726 = vmatprep.mubr.bf16.mxu0 %v17755_v48  ;;  %v17779_v48 = vld [vmem:[%s18649_s23 + $0x484] ss:$392 sps:$4 sm:$0xff]  }
 0x6b5   : > { %10064 = vmatpush1.bf16.msra.mxu1 %v2793_v51  ;;  %v2809_v51 = vunpack.c.h.s8.bf16 %v1655_v39  ;;  %v2048_v34 = vld [vmem:[%s18656_s2 + $0x17c8] sm:$0xff]  ;;  %v1663_v39 = vld [vmem:[%s18656_s2 + $0xbc0] sm:$0xff] }
 0x6b6   : > { %12776 = vmatpush1.bf16.msra.mxu0 %v3561_v52  ;;  %10065 = vmatprep.subr.bf16.mxu1 %v2796_v53  ;;  %v3577_v52 = vunpack.c.h.s8.bf16 %v2039_v40  ;;  %v2812_v53 = vunpack.c.l.s8.bf16 %v1658_v49  ;;  %v2047_v40 = vld [vmem:[%s18656_s2 + $0x17c0] sm:$0xff] }
 0x6b7   : > { %12777 = vmatprep.subr.bf16.mxu0 %v3564_v54  ;;  %v3580_v54 = vunpack.c.l.s8.bf16 %v2042_v50 }
 0x6b8   : > { %10015 = vmatmul.mubr.bf16.gmra.mrb[20].mxu1 %v17757_v57  ;;  %v17781_v57 = vld [vmem:[%s18649_s23 + $0x3c0] ss:$392 sps:$4 sm:$0xff]  }
 0x6b9   : > { %12727 = vmatmul.mubr.bf16.gmra.mrb[20].mxu0 %v17758_v58  ;;  %10066 = vmatpush1.bf16.msra.mxu1 %v2795_v59  ;;  %v17782_v58 = vld [vmem:[%s18649_s23 + $0x480] ss:$392 sps:$4 sm:$0xff]   ;;  %v2811_v59 = vunpack.c.l.s8.bf16 %v1657_v55 }
 0x6ba   : > { %12778 = vmatpush1.bf16.msra.mxu0 %v3563_v60  ;;  %10067 = vmatprep.subr.bf16.mxu1 %v2798_v61  ;;  %v3579_v60 = vunpack.c.l.s8.bf16 %v2041_v56  ;;  %v2814_v61 = vunpack.c.h.s8.bf16 %v1658_v49  ;;  %v1666_v49 = vld [vmem:[%s18656_s2 + $0xbd8] sm:$0xff] }
 0x6bb   : > { %12779 = vmatprep.subr.bf16.mxu0 %v3566_v62  ;;  %10024 = vmatprep.mubr.bf16.mxu1 %v17759_v63  ;;  %v3582_v62 = vunpack.c.h.s8.bf16 %v2042_v50  ;;  %v17783_v63 = vld [vmem:[%s18649_s23 + $0x6d4] ss:$392 sps:$4 sm:$0xff]  }
 0x6bc   : > { %12736 = vmatprep.mubr.bf16.mxu0 %v17761_v0  ;;  %v17785_v0 = vld [vmem:[%s18649_s23 + $0x794] ss:$392 sps:$4 sm:$0xff]  }
 0x6bd   : > { %10068 = vmatpush1.bf16.msra.mxu1 %v2797_v3  ;;  %v2813_v3 = vunpack.c.h.s8.bf16 %v1657_v55  ;;  %v2050_v50 = vld [vmem:[%s18656_s2 + $0x17d8] sm:$0xff]  ;;  %v1665_v55 = vld [vmem:[%s18656_s2 + $0xbd0] sm:$0xff] }
 0x6be   : > { %12780 = vmatpush1.bf16.msra.mxu0 %v3565_v4  ;;  %10069 = vmatprep.subr.bf16.mxu1 %v2800_v5  ;;  %v3581_v4 = vunpack.c.h.s8.bf16 %v2041_v56  ;;  %v2816_v5 = vunpack.c.l.s8.bf16 %v1660_v1  ;;  %v2049_v56 = vld [vmem:[%s18656_s2 + $0x17d0] sm:$0xff] }
 0x6bf   : > { %12781 = vmatprep.subr.bf16.mxu0 %v3568_v6  ;;  %v3584_v6 = vunpack.c.l.s8.bf16 %v2044_v2 }
 0x6c0   : > { %10025 = vmatmul.mubr.bf16.gmra.mrb[24].mxu1 %v17763_v9  ;;  %v17787_v9 = vld [vmem:[%s18649_s23 + $0x6d0] ss:$392 sps:$4 sm:$0xff]  }
 0x6c1   : > { %12737 = vmatmul.mubr.bf16.gmra.mrb[24].mxu0 %v17764_v10  ;;  %10070 = vmatpush1.bf16.msra.mxu1 %v2799_v11  ;;  %v17788_v10 = vld [vmem:[%s18649_s23 + $0x790] ss:$392 sps:$4 sm:$0xff]   ;;  %v2815_v11 = vunpack.c.l.s8.bf16 %v1659_v7 }
 0x6c2   : > { %12782 = vmatpush1.bf16.msra.mxu0 %v3567_v12  ;;  %10071 = vmatprep.subr.bf16.mxu1 %v2802_v13  ;;  %v3583_v12 = vunpack.c.l.s8.bf16 %v2043_v8  ;;  %v2818_v13 = vunpack.c.h.s8.bf16 %v1660_v1  ;;  %v1668_v1 = vld [vmem:[%s18656_s2 + $0xbe8] sm:$0xff] }
 0x6c3   : > { %12783 = vmatprep.subr.bf16.mxu0 %v3570_v14  ;;  %10034 = vmatprep.mubr.bf16.mxu1 %v17765_v15  ;;  %v3586_v14 = vunpack.c.h.s8.bf16 %v2044_v2  ;;  %v17789_v15 = vld [vmem:[%s18649_s23 + $0x9e4] ss:$392 sps:$4 sm:$0xff]  }
 0x6c4   : > { %12746 = vmatprep.mubr.bf16.mxu0 %v17767_v16  ;;  %v17791_v16 = vld [vmem:[%s18649_s23 + $0xaa4] ss:$392 sps:$4 sm:$0xff]  }
 0x6c5   : > { %10072 = vmatpush1.bf16.msra.mxu1 %v2801_v19  ;;  %v2817_v19 = vunpack.c.h.s8.bf16 %v1659_v7  ;;  %v2052_v2 = vld [vmem:[%s18656_s2 + $0x17e8] sm:$0xff]  ;;  %v1667_v7 = vld [vmem:[%s18656_s2 + $0xbe0] sm:$0xff] }
 0x6c6   : > { %12784 = vmatpush1.bf16.msra.mxu0 %v3569_v20  ;;  %10073 = vmatprep.subr.bf16.mxu1 %v2804_v21  ;;  %v3585_v20 = vunpack.c.h.s8.bf16 %v2043_v8  ;;  %v2820_v21 = vunpack.c.l.s8.bf16 %v1662_v17  ;;  %v2051_v8 = vld [vmem:[%s18656_s2 + $0x17e0] sm:$0xff] }
 0x6c7   : > { %12785 = vmatprep.subr.bf16.mxu0 %v3572_v22  ;;  %v3588_v22 = vunpack.c.l.s8.bf16 %v2046_v18 }
 0x6c8   : > { %10035 = vmatmul.mubr.bf16.gmra.mrb[28].mxu1 %v17769_v25  ;;  %v17793_v25 = vld [vmem:[%s18649_s23 + $0x9e0] ss:$392 sps:$4 sm:$0xff]  }
 0x6c9   : > { %12747 = vmatmul.mubr.bf16.gmra.mrb[28].mxu0 %v17770_v26  ;;  %10074 = vmatpush1.bf16.msra.mxu1 %v2803_v27  ;;  %v17794_v26 = vld [vmem:[%s18649_s23 + $0xaa0] ss:$392 sps:$4 sm:$0xff]   ;;  %v2819_v27 = vunpack.c.l.s8.bf16 %v1661_v23 }
 0x6ca   : > { %12786 = vmatpush1.bf16.msra.mxu0 %v3571_v28  ;;  %10075 = vmatprep.subr.bf16.mxu1 %v2806_v29  ;;  %v3587_v28 = vunpack.c.l.s8.bf16 %v2045_v24  ;;  %v2822_v29 = vunpack.c.h.s8.bf16 %v1662_v17  ;;  %v1670_v17 = vld [vmem:[%s18656_s2 + $0xbf8] sm:$0xff] }
 0x6cb   : > { %12787 = vmatprep.subr.bf16.mxu0 %v3574_v30  ;;  %10077 = vmatprep.mubr.bf16.mxu1 %v17773_v31  ;;  %v3590_v30 = vunpack.c.h.s8.bf16 %v2046_v18  ;;  %v17795_v31 = vld [vmem:[%s18649_s23 + $0xcf4] ss:$392 sps:$4 sm:$0xff]  }
 0x6cc   : > { %12789 = vmatprep.mubr.bf16.mxu0 %v17776_v32  ;;  %v17797_v32 = vld [vmem:[%s18649_s23 + $0xdb4] ss:$392 sps:$4 sm:$0xff]  }
 0x6cd   : > { %10076 = vmatpush1.bf16.msra.mxu1 %v2805_v35  ;;  %v2821_v35 = vunpack.c.h.s8.bf16 %v1661_v23  ;;  %v2054_v18 = vld [vmem:[%s18656_s2 + $0x17f8] sm:$0xff]  ;;  %v1669_v23 = vld [vmem:[%s18656_s2 + $0xbf0] sm:$0xff] }
 0x6ce   : > { %12788 = vmatpush1.bf16.msra.mxu0 %v3573_v36  ;;  %10158 = vmatprep.subr.bf16.mxu1 %v2808_v37  ;;  %v3589_v36 = vunpack.c.h.s8.bf16 %v2045_v24  ;;  %v2824_v37 = vunpack.c.l.s8.bf16 %v1664_v33  ;;  %v2053_v24 = vld [vmem:[%s18656_s2 + $0x17f0] sm:$0xff] }
 0x6cf   : > { %12870 = vmatprep.subr.bf16.mxu0 %v3576_v38  ;;  %v3592_v38 = vunpack.c.l.s8.bf16 %v2048_v34 }
 0x6d0   : > { %10078 = vmatmul.mubr.bf16.vlgmr.msra.gmra.mrb[0].mxu1 %v17771_v41  ;;  %v17799_v41 = vld [vmem:[%s18649_s23 + $0xcf0] ss:$392 sps:$4 sm:$0xff]  }
 0x6d1   : > { %12790 = vmatmul.mubr.bf16.vlgmr.msra.gmra.mrb[0].mxu0 %v17774_v42  ;;  %10159 = vmatpush1.bf16.msra.mxu1 %v2807_v43  ;;  %v17800_v42 = vld [vmem:[%s18649_s23 + $0xdb0] ss:$392 sps:$4 sm:$0xff]   ;;  %v2823_v43 = vunpack.c.l.s8.bf16 %v1663_v39 }
 0x6d2   : > { %12871 = vmatpush1.bf16.msra.mxu0 %v3575_v44  ;;  %10160 = vmatprep.subr.bf16.mxu1 %v2810_v45  ;;  %v3591_v44 = vunpack.c.l.s8.bf16 %v2047_v40  ;;  %v2826_v45 = vunpack.c.h.s8.bf16 %v1664_v33  ;;  %v2056_v33 = vld [vmem:[%s18656_s2 + $0x1808] sm:$0xff] }
 0x6d3   : > { %12872 = vmatprep.subr.bf16.mxu0 %v3578_v46  ;;  %10087 = vmatprep.mubr.bf16.mxu1 %v17777_v47  ;;  %v3594_v46 = vunpack.c.h.s8.bf16 %v2048_v34  ;;  %v17801_v47 = vld [vmem:[%s18649_s23 + $0x1004] ss:$392 sps:$4 sm:$0xff]   ;;  %v2837_v34 = vunpack.c.h.s8.bf16 %v1669_v23 }
 0x6d4   : > { %12799 = vmatprep.mubr.bf16.mxu0 %v17779_v48  ;;  %v17803_v48 = vld [vmem:[%s18649_s23 + $0x10c4] ss:$392 sps:$4 sm:$0xff]  }
 0x6d5   : > { %10161 = vmatpush1.bf16.msra.mxu1 %v2809_v51  ;;  %v2825_v51 = vunpack.c.h.s8.bf16 %v1663_v39  ;;  %v17822_v39 = vld [vmem:[%s18649_s23 + $0x178] ss:$392 sps:$4 sm:$0xff]  }
 0x6d6   : > { %12873 = vmatpush1.bf16.msra.mxu0 %v3577_v52  ;;  %10162 = vmatprep.subr.bf16.mxu1 %v2812_v53  ;;  %v3593_v52 = vunpack.c.h.s8.bf16 %v2047_v40  ;;  %v2828_v53 = vunpack.c.l.s8.bf16 %v1666_v49 }
 0x6d7   : > { %12874 = vmatprep.subr.bf16.mxu0 %v3580_v54  ;;  %v3596_v54 = vunpack.c.l.s8.bf16 %v2050_v50 }
 0x6d8   : > { %10088 = vmatmul.mubr.bf16.gmra.mrb[4].mxu1 %v17781_v57  ;;  %v17805_v57 = vld [vmem:[%s18649_s23 + $0x1000] ss:$392 sps:$4 sm:$0xff]  }
 0x6d9   : > { %12800 = vmatmul.mubr.bf16.gmra.mrb[4].mxu0 %v17782_v58  ;;  %10163 = vmatpush1.bf16.msra.mxu1 %v2811_v59  ;;  %v17806_v58 = vld [vmem:[%s18649_s23 + $0x10c0] ss:$392 sps:$4 sm:$0xff]   ;;  %v2827_v59 = vunpack.c.l.s8.bf16 %v1665_v55 }
 0x6da   : > { %12875 = vmatpush1.bf16.msra.mxu0 %v3579_v60  ;;  %10164 = vmatprep.subr.bf16.mxu1 %v2814_v61  ;;  %v3595_v60 = vunpack.c.l.s8.bf16 %v2049_v56  ;;  %v2830_v61 = vunpack.c.h.s8.bf16 %v1666_v49  ;;  %v17830_v49 = vld [vmem:[%s18649_s23 + $0x488] ss:$392 sps:$4 sm:$0xff]  }
 0x6db   : > { %12876 = vmatprep.subr.bf16.mxu0 %v3582_v62  ;;  %10097 = vmatprep.mubr.bf16.mxu1 %v17783_v63  ;;  %v3598_v62 = vunpack.c.h.s8.bf16 %v2050_v50  ;;  %v17807_v63 = vld [vmem:[%s18649_s23 + $0x1314] ss:$392 sps:$4 sm:$0xff]  }
 0x6dc   : > { %12809 = vmatprep.mubr.bf16.mxu0 %v17785_v0  ;;  %v17809_v0 = vld [vmem:[%s18649_s23 + $0x13d4] ss:$392 sps:$4 sm:$0xff]  }
 0x6dd   : > { %10165 = vmatpush1.bf16.msra.mxu1 %v2813_v3  ;;  %v2829_v3 = vunpack.c.h.s8.bf16 %v1665_v55 }
 0x6de   : > { %12877 = vmatpush1.bf16.msra.mxu0 %v3581_v4  ;;  %10166 = vmatprep.subr.bf16.mxu1 %v2816_v5  ;;  %v3597_v4 = vunpack.c.h.s8.bf16 %v2049_v56  ;;  %v2832_v5 = vunpack.c.l.s8.bf16 %v1668_v1 }
 0x6df   : > { %12878 = vmatprep.subr.bf16.mxu0 %v3584_v6  ;;  %v3600_v6 = vunpack.c.l.s8.bf16 %v2052_v2 }
 0x6e0   : > { %10098 = vmatmul.mubr.bf16.gmra.mrb[8].mxu1 %v17787_v9  ;;  %v17811_v9 = vld [vmem:[%s18649_s23 + $0x1310] ss:$392 sps:$4 sm:$0xff]  }
 0x6e1   : > { %12810 = vmatmul.mubr.bf16.gmra.mrb[8].mxu0 %v17788_v10  ;;  %10167 = vmatpush1.bf16.msra.mxu1 %v2815_v11  ;;  %v17812_v10 = vld [vmem:[%s18649_s23 + $0x13d0] ss:$392 sps:$4 sm:$0xff]   ;;  %v2831_v11 = vunpack.c.l.s8.bf16 %v1667_v7 }
 0x6e2   : > { %12879 = vmatpush1.bf16.msra.mxu0 %v3583_v12  ;;  %10168 = vmatprep.subr.bf16.mxu1 %v2818_v13  ;;  %v3599_v12 = vunpack.c.l.s8.bf16 %v2051_v8  ;;  %v2834_v13 = vunpack.c.h.s8.bf16 %v1668_v1 }
 0x6e3   : > { %12880 = vmatprep.subr.bf16.mxu0 %v3586_v14  ;;  %10107 = vmatprep.mubr.bf16.mxu1 %v17789_v15  ;;  %v3602_v14 = vunpack.c.h.s8.bf16 %v2052_v2  ;;  %v17813_v15 = vld [vmem:[%s18649_s23 + $0x1624] ss:$392 sps:$4 sm:$0xff]  }
 0x6e4   : > { %12819 = vmatprep.mubr.bf16.mxu0 %v17791_v16  ;;  %v17815_v16 = vld [vmem:[%s18649_s23 + $0x16e4] ss:$392 sps:$4 sm:$0xff]  }
 0x6e5   : > { %10169 = vmatpush1.bf16.msra.mxu1 %v2817_v19  ;;  %v2833_v19 = vunpack.c.h.s8.bf16 %v1667_v7 }
 0x6e6   : > { %12881 = vmatpush1.bf16.msra.mxu0 %v3585_v20  ;;  %10170 = vmatprep.subr.bf16.mxu1 %v2820_v21  ;;  %v3601_v20 = vunpack.c.h.s8.bf16 %v2051_v8  ;;  %v2836_v21 = vunpack.c.l.s8.bf16 %v1670_v17  ;;  %v17843_v8 = vld [vmem:[%s18649_s23 + $0xcfc] ss:$392 sps:$4 sm:$0xff]  }
 0x6e7   : > { %12882 = vmatprep.subr.bf16.mxu0 %v3588_v22  ;;  %v3604_v22 = vunpack.c.l.s8.bf16 %v2054_v18 }
 0x6e8   : > { %10108 = vmatmul.mubr.bf16.gmra.mrb[12].mxu1 %v17793_v25  ;;  %v17817_v25 = vld [vmem:[%s18649_s23 + $0x1620] ss:$392 sps:$4 sm:$0xff]  }
 0x6e9   : > { %12820 = vmatmul.mubr.bf16.gmra.mrb[12].mxu0 %v17794_v26  ;;  %10171 = vmatpush1.bf16.msra.mxu1 %v2819_v27  ;;  %v17818_v26 = vld [vmem:[%s18649_s23 + $0x16e0] ss:$392 sps:$4 sm:$0xff]   ;;  %v2835_v27 = vunpack.c.l.s8.bf16 %v1669_v23  ;;  %v2065_v23 = vld [vmem:[%s18656_s2 + $0x1850] sm:$0xff] }
 0x6ea   : > { %12883 = vmatpush1.bf16.msra.mxu0 %v3587_v28  ;;  %10172 = vmatprep.subr.bf16.mxu1 %v2822_v29  ;;  %v3603_v28 = vunpack.c.l.s8.bf16 %v2053_v24  ;;  %v2838_v29 = vunpack.c.h.s8.bf16 %v1670_v17 }
 0x6eb   : > { %12884 = vmatprep.subr.bf16.mxu0 %v3590_v30  ;;  %10117 = vmatprep.mubr.bf16.mxu1 %v17795_v31  ;;  %v3606_v30 = vunpack.c.h.s8.bf16 %v2054_v18  ;;  %v17821_v31 = vld [vmem:[%s18649_s23 + $0xbc] ss:$392 sps:$4 sm:$0xff]   ;;  %v17849_v18 = vld [vmem:[%s18649_s23 + $0x100c] ss:$392 sps:$4 sm:$0xff]  }
 0x6ec   : > { %12829 = vmatprep.mubr.bf16.mxu0 %v17797_v32  ;;  %v17824_v32 = vld [vmem:[%s18649_s23 + $0x17c] ss:$392 sps:$4 sm:$0xff]  }
 0x6ed   : > { %10173 = vmatpush1.bf16.msra.mxu1 %v2821_v35  ;;  %v3605_v35 = vunpack.c.h.s8.bf16 %v2053_v24  ;;  %v17853_v24 = vld [vmem:[%s18649_s23 + $0x1008] ss:$392 sps:$4 sm:$0xff]  }
 0x6ee   : > { %12885 = vmatpush1.bf16.msra.mxu0 %v3589_v36  ;;  %10174 = vmatprep.subr.bf16.mxu1 %v2824_v37  ;;  %v3608_v36 = vunpack.c.l.s8.bf16 %v2056_v33  ;;  %v2055_v37 = vld [vmem:[%s18656_s2 + $0x1800] sm:$0xff] }
 0x6ef   : > { %12886 = vmatprep.subr.bf16.mxu0 %v3592_v38  ;;  %v17819_v38 = vld [vmem:[%s18649_s23 + $0xb8] ss:$392 sps:$4 sm:$0xff]   ;;  %v3607_v40 = vunpack.c.l.s8.bf16 %v2055_v37 }
 0x6f0   : > { %10118 = vmatmul.mubr.bf16.gmra.mrb[16].mxu1 %v17799_v41  ;;  %v3610_v41 = vunpack.c.h.s8.bf16 %v2056_v33  ;;  %v2067_v33 = vld [vmem:[%s18656_s2 + $0x1860] sm:$0xff] }
 0x6f1   : > { %12830 = vmatmul.mubr.bf16.gmra.mrb[16].mxu0 %v17800_v42  ;;  %10175 = vmatpush1.bf16.msra.mxu1 %v2823_v43  ;;  %v17825_v42 = vld [vmem:[%s18649_s23 + $0x3cc] ss:$392 sps:$4 sm:$0xff]  }
 0x6f2   : > { %12887 = vmatpush1.bf16.msra.mxu0 %v3591_v44  ;;  %10176 = vmatprep.subr.bf16.mxu1 %v2826_v45  ;;  %v17827_v43 = vld [vmem:[%s18649_s23 + $0x48c] ss:$392 sps:$4 sm:$0xff]   ;;  %v2058_v44 = vld [vmem:[%s18656_s2 + $0x1818] sm:$0xff]  ;;  %v3609_v45 = vunpack.c.h.s8.bf16 %v2055_v37 }
 0x6f3   : > { %12888 = vmatprep.subr.bf16.mxu0 %v3594_v46  ;;  %10127 = vmatprep.mubr.bf16.mxu1 %v17801_v47  ;;  %v3612_v46 = vunpack.c.l.s8.bf16 %v2058_v44  ;;  %v2057_v47 = vld [vmem:[%s18656_s2 + $0x1810] sm:$0xff] }
 0x6f4   : > { %12839 = vmatprep.mubr.bf16.mxu0 %v17803_v48  ;;  %v17829_v48 = vld [vmem:[%s18649_s23 + $0x3c8] ss:$392 sps:$4 sm:$0xff]   ;;  %v3611_v50 = vunpack.c.l.s8.bf16 %v2057_v47  ;;  %v3613_v55 = vunpack.c.h.s8.bf16 %v2057_v47 }
 0x6f5   : > { %10177 = vmatpush1.bf16.msra.mxu1 %v2825_v51  ;;  %v3614_v51 = vunpack.c.h.s8.bf16 %v2058_v44  ;;  %v17865_v44 = vld [vmem:[%s18649_s23 + $0x1628] ss:$392 sps:$4 sm:$0xff]  }
 0x6f6   : > { %12889 = vmatpush1.bf16.msra.mxu0 %v3593_v52  ;;  %10178 = vmatprep.subr.bf16.mxu1 %v2828_v53  ;;  %v17831_v52 = vld [vmem:[%s18649_s23 + $0x6dc] ss:$392 sps:$4 sm:$0xff]  }
 0x6f7   : > { %12890 = vmatprep.subr.bf16.mxu0 %v3596_v54  ;;  %v17833_v53 = vld [vmem:[%s18649_s23 + $0x79c] ss:$392 sps:$4 sm:$0xff]   ;;  %v2060_v54 = vld [vmem:[%s18656_s2 + $0x1828] sm:$0xff] }
 0x6f8   : > { %10128 = vmatmul.mubr.bf16.gmra.mrb[20].mxu1 %v17805_v57  ;;  %v3616_v56 = vunpack.c.l.s8.bf16 %v2060_v54  ;;  %v2059_v57 = vld [vmem:[%s18656_s2 + $0x1820] sm:$0xff] }
 0x6f9   : > { %12840 = vmatmul.mubr.bf16.gmra.mrb[20].mxu0 %v17806_v58  ;;  %10179 = vmatpush1.bf16.msra.mxu1 %v2827_v59  ;;  %v17835_v58 = vld [vmem:[%s18649_s23 + $0x6d8] ss:$392 sps:$4 sm:$0xff]   ;;  %v3617_v1 = vunpack.c.h.s8.bf16 %v2059_v57 }
 0x6fa   : > { %12891 = vmatpush1.bf16.msra.mxu0 %v3595_v60  ;;  %10180 = vmatprep.subr.bf16.mxu1 %v2830_v61  ;;  %v17836_v59 = vld [vmem:[%s18649_s23 + $0x798] ss:$392 sps:$4 sm:$0xff]   ;;  %v3615_v60 = vunpack.c.l.s8.bf16 %v2059_v57  ;;  %v3618_v61 = vunpack.c.h.s8.bf16 %v2060_v54  ;;  %v17875_v54 = vld [vmem:[%s18649_s23 + $0x10d4] ss:$392 sps:$4 sm:$0xff]   ;;  %v17879_v57 = vld [vmem:[%s18649_s23 + $0x7a4] ss:$392 sps:$4 sm:$0xff]  }
 0x6fb   : > { %12892 = vmatprep.subr.bf16.mxu0 %v3598_v62  ;;  %10137 = vmatprep.mubr.bf16.mxu1 %v17807_v63  ;;  %v17837_v62 = vld [vmem:[%s18649_s23 + $0x9ec] ss:$392 sps:$4 sm:$0xff]  }
 0x6fc   : > { %12849 = vmatprep.mubr.bf16.mxu0 %v17809_v0  ;;  %v17839_v63 = vld [vmem:[%s18649_s23 + $0xaac] ss:$392 sps:$4 sm:$0xff]   ;;  %v2062_v0 = vld [vmem:[%s18656_s2 + $0x1838] sm:$0xff] }
 0x6fd   : > { %10181 = vmatpush1.bf16.msra.mxu1 %v2829_v3  ;;  %v3620_v2 = vunpack.c.l.s8.bf16 %v2062_v0  ;;  %v2061_v3 = vld [vmem:[%s18656_s2 + $0x1830] sm:$0xff]  ;;  %v3622_v7 = vunpack.c.h.s8.bf16 %v2062_v0 }
 0x6fe   : > { %12893 = vmatpush1.bf16.msra.mxu0 %v3597_v4  ;;  %10182 = vmatprep.subr.bf16.mxu1 %v2832_v5  ;;  %v17841_v4 = vld [vmem:[%s18649_s23 + $0x9e8] ss:$392 sps:$4 sm:$0xff]  }
 0x6ff   : > { %12894 = vmatprep.subr.bf16.mxu0 %v3600_v6  ;;  %v17842_v5 = vld [vmem:[%s18649_s23 + $0xaa8] ss:$392 sps:$4 sm:$0xff]   ;;  %v3619_v6 = vunpack.c.l.s8.bf16 %v2061_v3 }
 0x700   : > { %10138 = vmatmul.mubr.bf16.gmra.mrb[24].mxu1 %v17811_v9  ;;  %v17845_v9 = vld [vmem:[%s18649_s23 + $0xdbc] ss:$392 sps:$4 sm:$0xff]   ;;  %v17890_v0 = vld [vmem:[%s18649_s23 + $0x16f0] ss:$392 sps:$4 sm:$0xff]  }
 0x701   : > { %12850 = vmatmul.mubr.bf16.gmra.mrb[24].mxu0 %v17812_v10  ;;  %10183 = vmatpush1.bf16.msra.mxu1 %v2831_v11  ;;  %v2064_v10 = vld [vmem:[%s18656_s2 + $0x1848] sm:$0xff]  ;;  %v3621_v11 = vunpack.c.h.s8.bf16 %v2061_v3 }
 0x702   : > { %12895 = vmatpush1.bf16.msra.mxu0 %v3599_v12  ;;  %10184 = vmatprep.subr.bf16.mxu1 %v2834_v13  ;;  %v3624_v12 = vunpack.c.l.s8.bf16 %v2064_v10  ;;  %v2063_v13 = vld [vmem:[%s18656_s2 + $0x1840] sm:$0xff]  ;;  %v3626_v17 = vunpack.c.h.s8.bf16 %v2064_v10 }
 0x703   : > { %12896 = vmatprep.subr.bf16.mxu0 %v3602_v14  ;;  %10147 = vmatprep.mubr.bf16.mxu1 %v17813_v15  ;;  %v17847_v14 = vld [vmem:[%s18649_s23 + $0xcf8] ss:$392 sps:$4 sm:$0xff]  }
 0x704   : > { %12859 = vmatprep.mubr.bf16.mxu0 %v17815_v16  ;;  %v17848_v15 = vld [vmem:[%s18649_s23 + $0xdb8] ss:$392 sps:$4 sm:$0xff]   ;;  %v3623_v16 = vunpack.c.l.s8.bf16 %v2063_v13 }
 0x705   : > { %10185 = vmatpush1.bf16.msra.mxu1 %v2833_v19  ;;  %v17851_v19 = vld [vmem:[%s18649_s23 + $0x10cc] ss:$392 sps:$4 sm:$0xff]  }
 0x706   : > { %12897 = vmatpush1.bf16.msra.mxu0 %v3601_v20  ;;  %10186 = vmatprep.subr.bf16.mxu1 %v2836_v21  ;;  %v2066_v20 = vld [vmem:[%s18656_s2 + $0x1858] sm:$0xff]  ;;  %v3625_v21 = vunpack.c.h.s8.bf16 %v2063_v13 }
 0x707   : > { %12898 = vmatprep.subr.bf16.mxu0 %v3604_v22  ;;  %v3628_v22 = vunpack.c.l.s8.bf16 %v2066_v20 }
 0x708   : > { %10148 = vmatmul.mubr.bf16.gmra.mrb[28].mxu1 %v17817_v25  ;;  %v17854_v25 = vld [vmem:[%s18649_s23 + $0x10c8] ss:$392 sps:$4 sm:$0xff]  }
 0x709   : > { %12860 = vmatmul.mubr.bf16.gmra.mrb[28].mxu0 %v17818_v26  ;;  %10187 = vmatpush1.bf16.msra.mxu1 %v2835_v27  ;;  %v3627_v26 = vunpack.c.l.s8.bf16 %v2065_v23  ;;  %v3630_v27 = vunpack.c.h.s8.bf16 %v2066_v20 }
 0x70a   : > { %12899 = vmatpush1.bf16.msra.mxu0 %v3603_v28  ;;  %10188 = vmatprep.subr.bf16.mxu1 %v2838_v29  ;;  %v17855_v28 = vld [vmem:[%s18649_s23 + $0x131c] ss:$392 sps:$4 sm:$0xff]  }
 0x70b   : > { %12900 = vmatprep.subr.bf16.mxu0 %v3606_v30  ;;  %10190 = vmatprep.mubr.bf16.mxu1 %v17821_v31  ;;  %v17857_v29 = vld [vmem:[%s18649_s23 + $0x13dc] ss:$392 sps:$4 sm:$0xff]   ;;  %v2068_v30 = vld [vmem:[%s18656_s2 + $0x1868] sm:$0xff]  ;;  %v3629_v31 = vunpack.c.h.s8.bf16 %v2065_v23 }
 0x70c   : > { %12902 = vmatprep.mubr.bf16.mxu0 %v17824_v32  ;;  %v3632_v32 = vunpack.c.l.s8.bf16 %v2068_v30  ;;  %v3634_v37 = vunpack.c.h.s8.bf16 %v2068_v30 }
 0x70d   : > { %10189 = vmatpush1.bf16.msra.mxu1 %v2837_v34  ;;  %v17859_v34 = vld [vmem:[%s18649_s23 + $0x1318] ss:$392 sps:$4 sm:$0xff]  }
 0x70e   : > { %12901 = vmatpush1.bf16.msra.mxu0 %v3605_v35  ;;  %15022 = vmatprep.subr.bf16.mxu1 %v3608_v36  ;;  %v17860_v35 = vld [vmem:[%s18649_s23 + $0x13d8] ss:$392 sps:$4 sm:$0xff]  }
 0x70f   : > { %12983 = vmatprep.subr.bf16.mxu0 %v3608_v36  ;;  %v3631_v36 = vunpack.c.l.s8.bf16 %v2067_v33 }
 0x710   : > { %10191 = vmatmul.mubr.bf16.vlgmr.msra.gmra.mrb[0].mxu1 %v17819_v38  ;;  %v17861_v38 = vld [vmem:[%s18649_s23 + $0x162c] ss:$392 sps:$4 sm:$0xff]  }
 0x711   : > { %12903 = vmatmul.mubr.bf16.vlgmr.msra.gmra.mrb[0].mxu0 %v17822_v39  ;;  %15038 = vmatpush1.bf16.msra.mxu1 %v3607_v40  ;;  %v17863_v39 = vld [vmem:[%s18649_s23 + $0x16ec] ss:$392 sps:$4 sm:$0xff]  }
 0x712   : > { %12984 = vmatpush1.bf16.msra.mxu0 %v3607_v40  ;;  %15023 = vmatprep.subr.bf16.mxu1 %v3610_v41  ;;  %v2070_v40 = vld [vmem:[%s18656_s2 + $0x1878] sm:$0xff] }
 0x713   : > { %12985 = vmatprep.subr.bf16.mxu0 %v3610_v41  ;;  %10200 = vmatprep.mubr.bf16.mxu1 %v17825_v42  ;;  %v3633_v41 = vunpack.c.h.s8.bf16 %v2067_v33  ;;  %v3636_v42 = vunpack.c.l.s8.bf16 %v2070_v40  ;;  %v3638_v47 = vunpack.c.h.s8.bf16 %v2070_v40 }
 0x714   : > { %12912 = vmatprep.mubr.bf16.mxu0 %v17827_v43  ;;  %v2069_v43 = vld [vmem:[%s18656_s2 + $0x1870] sm:$0xff] }
 0x715   : > { %15039 = vmatpush1.bf16.msra.mxu1 %v3609_v45 }
 0x716   : > { %12986 = vmatpush1.bf16.msra.mxu0 %v3609_v45  ;;  %15024 = vmatprep.subr.bf16.mxu1 %v3612_v46  ;;  %v17866_v45 = vld [vmem:[%s18649_s23 + $0x16e8] ss:$392 sps:$4 sm:$0xff]  }
 0x717   : > { %12987 = vmatprep.subr.bf16.mxu0 %v3612_v46  ;;  %v3635_v46 = vunpack.c.l.s8.bf16 %v2069_v43 }
 0x718   : > { %10201 = vmatmul.mubr.bf16.gmra.mrb[4].mxu1 %v17829_v48  ;;  %v17869_v48 = vld [vmem:[%s18649_s23 + $0x184] ss:$392 sps:$4 sm:$0xff]  }
 0x719   : > { %12913 = vmatmul.mubr.bf16.gmra.mrb[4].mxu0 %v17830_v49  ;;  %15040 = vmatpush1.bf16.msra.mxu1 %v3611_v50  ;;  %v17872_v49 = vld [vmem:[%s18649_s23 + $0xdc4] ss:$392 sps:$4 sm:$0xff]  }
 0x71a   : > { %12988 = vmatpush1.bf16.msra.mxu0 %v3611_v50  ;;  %15025 = vmatprep.subr.bf16.mxu1 %v3614_v51  ;;  %v3637_v50 = vunpack.c.h.s8.bf16 %v2069_v43 }
 0x71b   : > { %12989 = vmatprep.subr.bf16.mxu0 %v3614_v51  ;;  %10210 = vmatprep.mubr.bf16.mxu1 %v17831_v52  ;;  %v17867_v51 = vld [vmem:[%s18649_s23 + $0x180] ss:$392 sps:$4 sm:$0xff]  }
 0x71c   : > { %12922 = vmatprep.mubr.bf16.mxu0 %v17833_v53  ;;  %v17870_v52 = vld [vmem:[%s18649_s23 + $0xdc0] ss:$392 sps:$4 sm:$0xff]   ;;  %v17873_v53 = vld [vmem:[%s18649_s23 + $0x494] ss:$392 sps:$4 sm:$0xff]  }
 0x71d   : > { %15041 = vmatpush1.bf16.msra.mxu1 %v3613_v55 }
 0x71e   : > { %12990 = vmatpush1.bf16.msra.mxu0 %v3613_v55  ;;  %15026 = vmatprep.subr.bf16.mxu1 %v3616_v56  ;;  %v17877_v55 = vld [vmem:[%s18649_s23 + $0x490] ss:$392 sps:$4 sm:$0xff]  }
 0x71f   : > { %12991 = vmatprep.subr.bf16.mxu0 %v3616_v56  ;;  %v17878_v56 = vld [vmem:[%s18649_s23 + $0x10d0] ss:$392 sps:$4 sm:$0xff]  }
 0x720   : > { %10211 = vmatmul.mubr.bf16.gmra.mrb[8].mxu1 %v17835_v58  ;;  %v17881_v58 = vld [vmem:[%s18649_s23 + $0x13e4] ss:$392 sps:$4 sm:$0xff]  }
 0x721   : > { %12923 = vmatmul.mubr.bf16.gmra.mrb[8].mxu0 %v17836_v59  ;;  %15042 = vmatpush1.bf16.msra.mxu1 %v3615_v60  ;;  %v17883_v59 = vld [vmem:[%s18649_s23 + $0x7a0] ss:$392 sps:$4 sm:$0xff]  }
 0x722   : > { %12992 = vmatpush1.bf16.msra.mxu0 %v3615_v60  ;;  %15027 = vmatprep.subr.bf16.mxu1 %v3618_v61  ;;  %v17884_v60 = vld [vmem:[%s18649_s23 + $0x13e0] ss:$392 sps:$4 sm:$0xff]  }
 0x723   : > { %12993 = vmatprep.subr.bf16.mxu0 %v3618_v61  ;;  %10220 = vmatprep.mubr.bf16.mxu1 %v17837_v62  ;;  %v17885_v61 = vld [vmem:[%s18649_s23 + $0xab4] ss:$392 sps:$4 sm:$0xff]  }
 0x724   : > { %12932 = vmatprep.mubr.bf16.mxu0 %v17839_v63  ;;  %v17887_v62 = vld [vmem:[%s18649_s23 + $0x16f4] ss:$392 sps:$4 sm:$0xff]   ;;  %v17889_v63 = vld [vmem:[%s18649_s23 + $0xab0] ss:$392 sps:$4 sm:$0xff]  }
 0x725   : > { %15043 = vmatpush1.bf16.msra.mxu1 %v3617_v1 }
 0x726   : > { %12994 = vmatpush1.bf16.msra.mxu0 %v3617_v1  ;;  %15028 = vmatprep.subr.bf16.mxu1 %v3620_v2 }
 0x727   : > { %12995 = vmatprep.subr.bf16.mxu0 %v3620_v2 }
 0x728   : > { %10221 = vmatmul.mubr.bf16.gmra.mrb[12].mxu1 %v17841_v4 }
 0x729   : > { %12933 = vmatmul.mubr.bf16.gmra.mrb[12].mxu0 %v17842_v5  ;;  %15044 = vmatpush1.bf16.msra.mxu1 %v3619_v6 }
 0x72a   : > { %12996 = vmatpush1.bf16.msra.mxu0 %v3619_v6  ;;  %15029 = vmatprep.subr.bf16.mxu1 %v3622_v7 }
 0x72b   : > { %12997 = vmatprep.subr.bf16.mxu0 %v3622_v7  ;;  %10230 = vmatprep.mubr.bf16.mxu1 %v17843_v8 }
 0x72c   : > { %12942 = vmatprep.mubr.bf16.mxu0 %v17845_v9 }
 0x72d   : > { %15045 = vmatpush1.bf16.msra.mxu1 %v3621_v11 }
 0x72e   : > { %12998 = vmatpush1.bf16.msra.mxu0 %v3621_v11  ;;  %15030 = vmatprep.subr.bf16.mxu1 %v3624_v12 }
 0x72f   : > { %12999 = vmatprep.subr.bf16.mxu0 %v3624_v12 }
 0x730   : > { %10231 = vmatmul.mubr.bf16.gmra.mrb[16].mxu1 %v17847_v14 }
 0x731   : > { %12943 = vmatmul.mubr.bf16.gmra.mrb[16].mxu0 %v17848_v15  ;;  %15046 = vmatpush1.bf16.msra.mxu1 %v3623_v16 }
 0x732   : > { %13000 = vmatpush1.bf16.msra.mxu0 %v3623_v16  ;;  %15031 = vmatprep.subr.bf16.mxu1 %v3626_v17 }
 0x733   : > { %13001 = vmatprep.subr.bf16.mxu0 %v3626_v17  ;;  %10240 = vmatprep.mubr.bf16.mxu1 %v17849_v18 }
 0x734   : > { %12952 = vmatprep.mubr.bf16.mxu0 %v17851_v19 }
 0x735   : > { %15047 = vmatpush1.bf16.msra.mxu1 %v3625_v21 }
 0x736   : > { %13002 = vmatpush1.bf16.msra.mxu0 %v3625_v21  ;;  %15032 = vmatprep.subr.bf16.mxu1 %v3628_v22 }
 0x737   : > { %13003 = vmatprep.subr.bf16.mxu0 %v3628_v22 }
 0x738   : > { %10241 = vmatmul.mubr.bf16.gmra.mrb[20].mxu1 %v17853_v24 }
 0x739   : > { %12953 = vmatmul.mubr.bf16.gmra.mrb[20].mxu0 %v17854_v25  ;;  %15048 = vmatpush1.bf16.msra.mxu1 %v3627_v26 }
 0x73a   : > { %13004 = vmatpush1.bf16.msra.mxu0 %v3627_v26  ;;  %15033 = vmatprep.subr.bf16.mxu1 %v3630_v27 }
 0x73b   : > { %13005 = vmatprep.subr.bf16.mxu0 %v3630_v27  ;;  %10250 = vmatprep.mubr.bf16.mxu1 %v17855_v28 }
 0x73c   : > { %12962 = vmatprep.mubr.bf16.mxu0 %v17857_v29 }
 0x73d   : > { %15049 = vmatpush1.bf16.msra.mxu1 %v3629_v31 }
 0x73e   : > { %13006 = vmatpush1.bf16.msra.mxu0 %v3629_v31  ;;  %15034 = vmatprep.subr.bf16.mxu1 %v3632_v32 }
 0x73f   : > { %13007 = vmatprep.subr.bf16.mxu0 %v3632_v32 }
 0x740   : > { %10251 = vmatmul.mubr.bf16.gmra.mrb[24].mxu1 %v17859_v34 }
 0x741   : > { %12963 = vmatmul.mubr.bf16.gmra.mrb[24].mxu0 %v17860_v35  ;;  %15050 = vmatpush1.bf16.msra.mxu1 %v3631_v36 }
 0x742   : > { %13008 = vmatpush1.bf16.msra.mxu0 %v3631_v36  ;;  %15035 = vmatprep.subr.bf16.mxu1 %v3634_v37 }
 0x743   : > { %13009 = vmatprep.subr.bf16.mxu0 %v3634_v37  ;;  %10260 = vmatprep.mubr.bf16.mxu1 %v17861_v38 }
 0x744   : > { %12972 = vmatprep.mubr.bf16.mxu0 %v17863_v39 }
 0x745   : > { %15051 = vmatpush1.bf16.msra.mxu1 %v3633_v41 }
 0x746   : > { %13010 = vmatpush1.bf16.msra.mxu0 %v3633_v41  ;;  %15036 = vmatprep.subr.bf16.mxu1 %v3636_v42 }
 0x747   : > { %13011 = vmatprep.subr.bf16.mxu0 %v3636_v42 }
 0x748   : > { %10261 = vmatmul.mubr.bf16.gmra.mrb[28].mxu1 %v17865_v44 }
 0x749   : > { %12973 = vmatmul.mubr.bf16.gmra.mrb[28].mxu0 %v17866_v45  ;;  %15052 = vmatpush1.bf16.msra.mxu1 %v3635_v46 }
 0x74a   : > { %13012 = vmatpush1.bf16.msra.mxu0 %v3635_v46  ;;  %15037 = vmatprep.subr.bf16.mxu1 %v3638_v47 }
 0x74b   : > { %13013 = vmatprep.subr.bf16.mxu0 %v3638_v47  ;;  %13015 = vmatprep.mubr.bf16.mxu0 %v17869_v48 }
 0x74c   : > { %13055 = vmatprep.mubr.bf16.mxu1 %v17872_v49 }
 0x74d   : > { %15053 = vmatpush1.bf16.msra.mxu1 %v3637_v50 }
 0x74e   : > { %13014 = vmatpush1.bf16.msra.mxu0 %v3637_v50 }
 0x750   : > { %13056 = vmatmul.mubr.bf16.vlgmr.msra.gmra.mrb[32].mxu1 %v17870_v52 }
 0x751   : > { %13016 = vmatmul.mubr.bf16.vlgmr.msra.gmra.mrb[0].mxu0 %v17867_v51  ;;  %13065 = vmatprep.mubr.bf16.mxu1 %v17875_v54 }
 0x752   : > { %13025 = vmatprep.mubr.bf16.mxu0 %v17873_v53 }
 0x758   : > { %13066 = vmatmul.mubr.bf16.gmra.mrb[36].mxu1 %v17878_v56 }
 0x759   : > { %13026 = vmatmul.mubr.bf16.gmra.mrb[4].mxu0 %v17877_v55  ;;  %13075 = vmatprep.mubr.bf16.mxu1 %v17881_v58 }
 0x75a   : > { %13035 = vmatprep.mubr.bf16.mxu0 %v17879_v57 }
 0x760   : > { %13076 = vmatmul.mubr.bf16.gmra.mrb[40].mxu1 %v17884_v60 }
 0x761   : > { %13036 = vmatmul.mubr.bf16.gmra.mrb[8].mxu0 %v17883_v59  ;;  %13085 = vmatprep.mubr.bf16.mxu1 %v17887_v62 }
 0x762   : > { %13045 = vmatprep.mubr.bf16.mxu0 %v17885_v61 }
 0x768   : > { %13086 = vmatmul.mubr.bf16.gmra.mrb[44].mxu1 %v17890_v0 }
 0x769   : > { %13046 = vmatmul.mubr.bf16.gmra.mrb[12].mxu0 %v17889_v63 }
 0x7e3   : > { %v20248_v1 = vpop.f32.mrb[0].mxu1 }
 0x7e4   : > { %v20250_v2 = vpop.f32.mrb[1].mxu1 }
 0x7e5   : > { %v20252_v3 = vpop.f32.mrb[2].mxu1 }
 0x7e6   : > { %v20254_v4 = vpop.f32.mrb[3].mxu1 }
 0x7eb   : > { %v20256_v5 = vpop.f32.mrb[4].mxu1 }
 0x7ec   : > { %v20258_v6 = vpop.f32.mrb[5].mxu1 }
 0x7ed   : > { %v20260_v7 = vpop.f32.mrb[6].mxu1 }
 0x7ee   : > { %v20262_v8 = vpop.f32.mrb[7].mxu1 }
 0x7f3   : > { %v20264_v9 = vpop.f32.mrb[8].mxu1 }
 0x7f4   : > { %v20266_v10 = vpop.f32.mrb[9].mxu1 }
 0x7f5   : > { %v20268_v11 = vpop.f32.mrb[10].mxu1 }
 0x7f6   : > { %v20270_v12 = vpop.f32.mrb[11].mxu1 }
 0x7fb   : > { %v20272_v13 = vpop.f32.mrb[12].mxu1 }
 0x7fc   : > { %v20274_v14 = vpop.f32.mrb[13].mxu1 }
 0x7fd   : > { %v20276_v15 = vpop.f32.mrb[14].mxu1 }
 0x7fe   : > { %v20278_v16 = vpop.f32.mrb[15].mxu1 }
 0x803   : > { %v10232_v17 = vpop.f32.mrb[16].mxu1 }
 0x804   : > { %v12944_v18 = vpop.f32.mrb[16].mxu0  ;;  %v10234_v20 = vpop.f32.mrb[17].mxu1 }
 0x805   : > { %v15070_v19 = vadd.f32 %v12944_v18, %v10232_v17  ;;  %v12946_v21 = vpop.f32.mrb[17].mxu0  ;;  %v10236_v23 = vpop.f32.mrb[18].mxu1  ;;  %v471_v17 = vld [vmem:[#allocation2] sm:$0xff] }
 0x806   : > { %v15072_v22 = vadd.f32 %v12946_v21, %v10234_v20  ;;  %v12948_v24 = vpop.f32.mrb[18].mxu0  ;;  %v10238_v26 = vpop.f32.mrb[19].mxu1  ;;  %v487_v20 = vld [vmem:[#allocation2 + $0x80] sm:$0xff] }
 0x807   : > { %v15074_v25 = vadd.f32 %v12948_v24, %v10236_v23  ;;  %v12950_v27 = vpop.f32.mrb[19].mxu0 }
 0x808   : > { %v20280_v28 = vadd.f32 %v12950_v27, %v10238_v26  ;;  %v472_v26 = vld [vmem:[#allocation2 + $0x8] sm:$0xff] }
 0x80b   : > { %v10242_v29 = vpop.f32.mrb[20].mxu1 }
 0x80c   : > { %v12954_v30 = vpop.f32.mrb[20].mxu0  ;;  %v10244_v32 = vpop.f32.mrb[21].mxu1 }
 0x80d   : > { %v20282_v31 = vadd.f32 %v12954_v30, %v10242_v29  ;;  %v12956_v33 = vpop.f32.mrb[21].mxu0  ;;  %v10246_v35 = vpop.f32.mrb[22].mxu1  ;;  %v488_v29 = vld [vmem:[#allocation2 + $0x88] sm:$0xff] }
 0x80e   : > { %v20284_v34 = vadd.f32 %v12956_v33, %v10244_v32  ;;  %v12958_v36 = vpop.f32.mrb[22].mxu0  ;;  %v10248_v38 = vpop.f32.mrb[23].mxu1 }
 0x80f   : > { %v20286_v37 = vadd.f32 %v12958_v36, %v10246_v35  ;;  %v12960_v39 = vpop.f32.mrb[23].mxu0  ;;  %v473_v35 = vld [vmem:[#allocation2 + $0x10] sm:$0xff] }
 0x810   : > { %v20288_v40 = vadd.f32 %v12960_v39, %v10248_v38  ;;  %v489_v38 = vld [vmem:[#allocation2 + $0x90] sm:$0xff] }
 0x813   : > { %v10252_v41 = vpop.f32.mrb[24].mxu1 }
 0x814   : > { %v12964_v42 = vpop.f32.mrb[24].mxu0  ;;  %v10254_v44 = vpop.f32.mrb[25].mxu1 }
 0x815   : > { %v20290_v43 = vadd.f32 %v12964_v42, %v10252_v41  ;;  %v12966_v45 = vpop.f32.mrb[25].mxu0  ;;  %v10256_v47 = vpop.f32.mrb[26].mxu1 }
 0x816   : > { %v20292_v46 = vadd.f32 %v12966_v45, %v10254_v44  ;;  %v12968_v48 = vpop.f32.mrb[26].mxu0  ;;  %v10258_v50 = vpop.f32.mrb[27].mxu1 }
 0x817   : > { %v20294_v49 = vadd.f32 %v12968_v48, %v10256_v47  ;;  %v12970_v51 = vpop.f32.mrb[27].mxu0  ;;  %v474_v47 = vld [vmem:[#allocation2 + $0x18] sm:$0xff] }
 0x818   : > { %v20296_v52 = vadd.f32 %v12970_v51, %v10258_v50 }
 0x81b   : > { %v10262_v53 = vpop.f32.mrb[28].mxu1 }
 0x81c   : > { %v12974_v54 = vpop.f32.mrb[28].mxu0  ;;  %v10264_v56 = vpop.f32.mrb[29].mxu1 }
 0x81d   : > { %v20298_v55 = vadd.f32 %v12974_v54, %v10262_v53  ;;  %v12976_v57 = vpop.f32.mrb[29].mxu0  ;;  %v10266_v59 = vpop.f32.mrb[30].mxu1 }
 0x81e   : > { %v20300_v58 = vadd.f32 %v12976_v57, %v10264_v56  ;;  %v12978_v60 = vpop.f32.mrb[30].mxu0  ;;  %v10268_v62 = vpop.f32.mrb[31].mxu1 }
 0x81f   : > { %v20302_v61 = vadd.f32 %v12978_v60, %v10266_v59  ;;  %v12980_v63 = vpop.f32.mrb[31].mxu0  ;;  %v491_v59 = vld [vmem:[#allocation2 + $0xa0] sm:$0xff] }
 0x820   : > { %v20304_v0 = vadd.f32 %v12980_v63, %v10268_v62  ;;  %v476_v62 = vld [vmem:[#allocation2 + $0x28] sm:$0xff] }
 0x823   : > { %v13057_v21 = vpop.f32.mrb[32].mxu1 }
 0x824   : > { %v13017_v18 = vpop.f32.mrb[0].mxu0  ;;  %v15071_v24 = vadd.f32 %v15070_v19, %v13057_v21  ;;  %v13059_v30 = vpop.f32.mrb[33].mxu1 }
 0x825   : > { %v15054_v23 = vadd.f32 %v13017_v18, %v20248_v1  ;;  %v13019_v27 = vpop.f32.mrb[1].mxu0  ;;  %v15073_v33 = vadd.f32 %v15072_v22, %v13059_v30  ;;  %v13061_v39 = vpop.f32.mrb[34].mxu1  ;;  %v490_v1 = vld [vmem:[#allocation2 + $0x98] sm:$0xff] }
 0x826   : > { %v15055_v32 = vadd.f32 %v13019_v27, %v20250_v2  ;;  %v13021_v36 = vpop.f32.mrb[2].mxu0  ;;  %v13112_v42 = vadd.f32 %v15071_v24, %v487_v20  ;;  %v15075_v45 = vadd.f32 %v15074_v25, %v13061_v39  ;;  %v13063_v19 = vpop.f32.mrb[35].mxu1 }
 0x827   : > { %v13096_v41 = vadd.f32 %v15054_v23, %v471_v17  ;;  %v15056_v44 = vadd.f32 %v13021_v36, %v20252_v3  ;;  %v13023_v48 = vpop.f32.mrb[3].mxu0  ;;  %v13113_v51 = vadd.f32 %v15073_v33, %v488_v29  ;;  %v15077_v2 = vadd.f32 %v20280_v28, %v13063_v19  ;;  %v475_v3 = vld [vmem:[#allocation2 + $0x20] sm:$0xff]  ;;  %v492_v17 = vld [vmem:[#allocation2 + $0xa8] sm:$0xff]  ;;  %v477_v23 = vld [vmem:[#allocation2 + $0x30] sm:$0xff] }
 0x828   : > { %v13097_v50 = vadd.f32 %v15055_v32, %v472_v26  ;;  %v15057_v53 = vadd.f32 %v13023_v48, %v20254_v4  ;;  %13144 = vst [vmem:[#allocation2 + $0x80] sm:$0xff] %v13112_v42  ;;  %v13114_v54 = vadd.f32 %v15075_v45, %v489_v38  ;;  %v493_v26 = vld [vmem:[#allocation2 + $0xb0] sm:$0xff]  ;;  %v478_v33 = vld [vmem:[#allocation2 + $0x38] sm:$0xff] }
 0x829   : > { %13128 = vst [vmem:[#allocation2] sm:$0xff] %v13096_v41  ;;  %v13098_v22 = vadd.f32 %v15056_v44, %v473_v35  ;;  %13145 = vst [vmem:[#allocation2 + $0x88] sm:$0xff] %v13113_v51  ;;  %v13115_v57 = vadd.f32 %v15077_v2, %v490_v1  ;;  %v494_v35 = vld [vmem:[#allocation2 + $0xb8] sm:$0xff]  ;;  %v480_v1 = vld [vmem:[#allocation2 + $0x48] sm:$0xff] }
 0x82a   : > { %13129 = vst [vmem:[#allocation2 + $0x8] sm:$0xff] %v13097_v50  ;;  %v13099_v56 = vadd.f32 %v15057_v53, %v474_v47  ;;  %13146 = vst [vmem:[#allocation2 + $0x90] sm:$0xff] %v13114_v54  ;;  %v495_v47 = vld [vmem:[#allocation2 + $0xc0] sm:$0xff]  ;;  %v496_v50 = vld [vmem:[#allocation2 + $0xc8] sm:$0xff] }
 0x82b   : > { %13130 = vst [vmem:[#allocation2 + $0x10] sm:$0xff] %v13098_v22  ;;  %13147 = vst [vmem:[#allocation2 + $0x98] sm:$0xff] %v13115_v57  ;;  %v13067_v60 = vpop.f32.mrb[36].mxu1  ;;  %v481_v22 = vld [vmem:[#allocation2 + $0x50] sm:$0xff] }
 0x82c   : > { %13131 = vst [vmem:[#allocation2 + $0x18] sm:$0xff] %v13099_v56  ;;  %v13027_v25 = vpop.f32.mrb[4].mxu0  ;;  %v15079_v28 = vadd.f32 %v20282_v31, %v13067_v60  ;;  %v13069_v18 = vpop.f32.mrb[37].mxu1  ;;  %v497_v56 = vld [vmem:[#allocation2 + $0xd0] sm:$0xff]  ;;  %v482_v60 = vld [vmem:[#allocation2 + $0x58] sm:$0xff] }
 0x82d   : > { %v15058_v4 = vadd.f32 %v13027_v25, %v20256_v5  ;;  %v13029_v63 = vpop.f32.mrb[5].mxu0  ;;  %v15081_v21 = vadd.f32 %v20284_v34, %v13069_v18  ;;  %v13071_v27 = vpop.f32.mrb[38].mxu1 }
 0x82e   : > { %v15059_v20 = vadd.f32 %v13029_v63, %v20258_v6  ;;  %v13031_v24 = vpop.f32.mrb[6].mxu0  ;;  %v13116_v30 = vadd.f32 %v15079_v28, %v491_v59  ;;  %v15083_v5 = vadd.f32 %v20286_v37, %v13071_v27  ;;  %v13073_v36 = vpop.f32.mrb[39].mxu1  ;;  %v479_v37 = vld [vmem:[#allocation2 + $0x40] sm:$0xff] }
 0x82f   : > { %v13100_v29 = vadd.f32 %v15058_v4, %v475_v3  ;;  %v15060_v32 = vadd.f32 %v13031_v24, %v20260_v7  ;;  %v13033_v31 = vpop.f32.mrb[7].mxu0  ;;  %v13117_v39 = vadd.f32 %v15081_v21, %v492_v17  ;;  %v15085_v34 = vadd.f32 %v20288_v40, %v13073_v36  ;;  %v498_v4 = vld [vmem:[#allocation2 + $0xd8] sm:$0xff] }
 0x830   : > { %v13101_v38 = vadd.f32 %v15059_v20, %v476_v62  ;;  %v15061_v6 = vadd.f32 %v13033_v31, %v20262_v8  ;;  %13148 = vst [vmem:[#allocation2 + $0xa0] sm:$0xff] %v13116_v30  ;;  %v13118_v42 = vadd.f32 %v15083_v5, %v493_v26  ;;  %v484_v26 = vld [vmem:[#allocation2 + $0x68] sm:$0xff] }
 0x831   : > { %13132 = vst [vmem:[#allocation2 + $0x20] sm:$0xff] %v13100_v29  ;;  %v13102_v41 = vadd.f32 %v15060_v32, %v477_v23  ;;  %13149 = vst [vmem:[#allocation2 + $0xa8] sm:$0xff] %v13117_v39  ;;  %v13119_v7 = vadd.f32 %v15085_v34, %v494_v35  ;;  %v499_v23 = vld [vmem:[#allocation2 + $0xe0] sm:$0xff]  ;;  %v500_v29 = vld [vmem:[#allocation2 + $0xe8] sm:$0xff] }
 0x832   : > { %13133 = vst [vmem:[#allocation2 + $0x28] sm:$0xff] %v13101_v38  ;;  %v13103_v44 = vadd.f32 %v15061_v6, %v478_v33  ;;  %13150 = vst [vmem:[#allocation2 + $0xb0] sm:$0xff] %v13118_v42  ;;  %v485_v33 = vld [vmem:[#allocation2 + $0x70] sm:$0xff]  ;;  %v486_v34 = vld [vmem:[#allocation2 + $0x78] sm:$0xff] }
 0x833   : > { %13134 = vst [vmem:[#allocation2 + $0x30] sm:$0xff] %v13102_v41  ;;  %13151 = vst [vmem:[#allocation2 + $0xb8] sm:$0xff] %v13119_v7  ;;  %v13077_v48 = vpop.f32.mrb[40].mxu1  ;;  %v501_v35 = vld [vmem:[#allocation2 + $0xf0] sm:$0xff]  ;;  %v502_v41 = vld [vmem:[#allocation2 + $0xf8] sm:$0xff] }
 0x834   : > { %13135 = vst [vmem:[#allocation2 + $0x38] sm:$0xff] %v13103_v44  ;;  %v13037_v45 = vpop.f32.mrb[8].mxu0  ;;  %v15087_v40 = vadd.f32 %v20290_v43, %v13077_v48  ;;  %v13079_v51 = vpop.f32.mrb[41].mxu1  ;;  %v17892_v48 = vld [vmem:[#allocation11] sm:$0xff] (!%p14875_p4)  }
 0x835   : > { %v15062_v8 = vadd.f32 %v13037_v45, %v20264_v9  ;;  %v13039_v19 = vpop.f32.mrb[9].mxu0  ;;  %v15089_v2 = vadd.f32 %v20292_v46, %v13079_v51  ;;  %v13081_v57 = vpop.f32.mrb[42].mxu1  ;;  %v17898_v51 = vld [vmem:[#allocation11 + $0x18] sm:$0xff] (!%p14875_p4)  }
 0x836   : > { %v15063_v53 = vadd.f32 %v13039_v19, %v20266_v10  ;;  %v13041_v54 = vpop.f32.mrb[10].mxu0  ;;  %v13120_v25 = vadd.f32 %v15087_v40, %v495_v47  ;;  %v15091_v9 = vadd.f32 %v20294_v49, %v13081_v57  ;;  %v13083_v28 = vpop.f32.mrb[43].mxu1  ;;  %v483_v49 = vld [vmem:[#allocation2 + $0x60] sm:$0xff]  ;;  %v13198_v40 = vlaneseq (!%p14875_p4)  ;;  %v13165_v57 = vld [vmem:[#allocation2 + $0x8] sm:$0xff] (!%p14875_p4) }
 0x837   : > { %v13104_v3 = vadd.f32 %v15062_v8, %v479_v37  ;;  %v15064_v59 = vadd.f32 %v13041_v54, %v20268_v11  ;;  %v13043_v43 = vpop.f32.mrb[11].mxu0  ;;  %v13121_v63 = vadd.f32 %v15089_v2, %v496_v50  ;;  %v15093_v46 = vadd.f32 %v20296_v52, %v13083_v28  ;;  %v17895_v8 = vld [vmem:[#allocation11 + $0x50] sm:$0xff] (!%p14875_p4)   ;;  %v17897_v19 = vld [vmem:[#allocation11 + $0x58] sm:$0xff] (!%p14875_p4)   ;;  %v17900_v54 = vld [vmem:[#allocation11 + $0x20] sm:$0xff] (!%p14875_p4)  }
 0x838   : > { %v13105_v62 = vadd.f32 %v15063_v53, %v480_v1  ;;  %v15065_v10 = vadd.f32 %v13043_v43, %v20270_v12  ;;  %13152 = vst [vmem:[#allocation2 + $0xc0] sm:$0xff] %v13120_v25  ;;  %v13122_v18 = vadd.f32 %v15091_v9, %v497_v56  ;;  %v17896_v1 = vld [vmem:[#allocation11 + $0x10] sm:$0xff] (!%p14875_p4)   ;;  %v13199_v50 = vshrl.u32 (!%p14875_p4), %v13198_v40, 7  ;;  %v17899_v53 = vld [vmem:[#allocation11 + $0x60] sm:$0xff] (!%p14875_p4)   ;;  %v17901_v56 = vld [vmem:[#allocation11 + $0x68] sm:$0xff] (!%p14875_p4)  }
 0x839   : > { %13136 = vst [vmem:[#allocation2 + $0x40] sm:$0xff] %v13104_v3  ;;  %v13106_v17 = vadd.f32 %v15064_v59, %v481_v22  ;;  %13153 = vst [vmem:[#allocation2 + $0xc8] sm:$0xff] %v13121_v63  ;;  %v13123_v11 = vadd.f32 %v15093_v46, %v498_v4  ;;  %v13167_v3 = vld [vmem:[#allocation2 + $0x18] sm:$0xff] (!%p14875_p4)  ;;  %v13196_v25 = vld [vmem:[#allocation8] sm:$0x3] (!%p14875_p4) }
 0x83a   : > { %13137 = vst [vmem:[#allocation2 + $0x48] sm:$0xff] %v13105_v62  ;;  %v13107_v20 = vadd.f32 %v15065_v10, %v482_v60  ;;  %13154 = vst [vmem:[#allocation2 + $0xd0] sm:$0xff] %v13122_v18  ;;  %v13200_v2 = vsub.s32 (!%p14875_p4), 0, %v13199_v50  ;;  %v13204_v22 = vsub.s32 (!%p14875_p4), 1, %v13199_v50  ;;  %v13240_v60 = vld [vmem:[#allocation9] sm:$0x3] (!%p14875_p4) }
 0x83b   : > { %13138 = vst [vmem:[#allocation2 + $0x50] sm:$0xff] %v13106_v17  ;;  %13155 = vst [vmem:[#allocation2 + $0xd8] sm:$0xff] %v13123_v11  ;;  %v13087_v24 = vpop.f32.mrb[44].mxu1  ;;  %v13164_v43 = vld [vmem:[#allocation2] sm:$0xff] (!%p14875_p4)  ;;  %v13166_v4 = vld [vmem:[#allocation2 + $0x10] sm:$0xff] (!%p14875_p4) }
 0x83c   : > { %13139 = vst [vmem:[#allocation2 + $0x58] sm:$0xff] %v13107_v20  ;;  %v13047_v21 = vpop.f32.mrb[12].mxu0  ;;  %v15095_v52 = vadd.f32 %v20298_v55, %v13087_v24  ;;  %v13089_v30 = vpop.f32.mrb[45].mxu1  ;;  %v20336_v59 = vrot.slane (!%p14875_p4), %v13196_v25, %v13200_v2  ;;  %v20338_v9 = vrot.slane (!%p14875_p4), %v13196_v25, %v13204_v22  ;;  %v20340_v28 = vrot.slane (!%p14875_p4), %v13240_v60, %v13200_v2  ;;  %v13169_v63 = vld [vmem:[#allocation2 + $0x28] sm:$0xff] (!%p14875_p4)  ;;  %v13171_v10 = vld [vmem:[#allocation2 + $0x38] sm:$0xff] (!%p14875_p4) }
 0x83d   : > { %v15066_v12 = vadd.f32 %v13047_v21, %v20272_v13  ;;  %v13049_v27 = vpop.f32.mrb[13].mxu0  ;;  %v15097_v5 = vadd.f32 %v20300_v58, %v13089_v30  ;;  %v13091_v36 = vpop.f32.mrb[46].mxu1  ;;  %v20342_v62 = vrot.slane (!%p14875_p4), %v13240_v60, %v13204_v22  ;;  %v17902_v46 = vld [vmem:[#allocation11 + $0x28] sm:$0xff] (!%p14875_p4)   ;;  %v17904_v30 = vld [vmem:[#allocation11 + $0x30] sm:$0xff] (!%p14875_p4)  }
 0x83e   : > { %v15067_v32 = vadd.f32 %v13049_v27, %v20274_v14  ;;  %v13051_v31 = vpop.f32.mrb[14].mxu0  ;;  %v13124_v39 = vadd.f32 %v15095_v52, %v499_v23  ;;  %v15099_v13 = vadd.f32 %v20302_v61, %v13091_v36  ;;  %v13093_v42 = vpop.f32.mrb[47].mxu1  ;;  %13163 = sbr.rel (%p14875_p4) target bundleno = 2958 (0xb8e), region = 92  ;;  %v17891_v61 = vld [vmem:[#allocation11 + $0x40] sm:$0xff] (!%p14875_p4)   ;;  %v13209_v17 = vmul.f32 (!%p14875_p4), %v20338_v9, %v13165_v57 }
 0x83f   : > { %v13108_v38 = vadd.f32 %v15066_v12, %v483_v49  ;;  %v15068_v6 = vadd.f32 %v13051_v31, %v20276_v15  ;;  %v13053_v55 = vpop.f32.mrb[15].mxu0  ;;  %v13125_v7 = vadd.f32 %v15097_v5, %v500_v29  ;;  %v15101_v58 = vadd.f32 %v20304_v0, %v13093_v42  ;;  %14910 = vmatprep.subr.bf16.mxu0 (!%p14875_p4), %v17891_v61  ;;  %v17894_v0 = vld [vmem:[#allocation11 + $0x8] sm:$0xff] (!%p14875_p4)   ;;  %v17903_v49 = vld [vmem:[#allocation11 + $0x70] sm:$0xff] (!%p14875_p4)   ;;  %v13168_v27 = vld [vmem:[#allocation2 + $0x20] sm:$0xff] (!%p14875_p4) }
 0x840   : > { %v13109_v44 = vadd.f32 %v15067_v32, %v484_v26  ;;  %v15069_v14 = vadd.f32 %v13053_v55, %v20278_v16  ;;  %13156 = vst [vmem:[#allocation2 + $0xe0] sm:$0xff] %v13124_v39  ;;  %v13126_v45 = vadd.f32 %v15099_v13, %v501_v35  ;;  %v17893_v16 = vld [vmem:[#allocation11 + $0x48] sm:$0xff] (!%p14875_p4)   ;;  %14911 = vmatpush3.bf16.msra.mxu0 (!%p14875_p4), %v17892_v48  ;;  %v17905_v35 = vld [vmem:[#allocation11 + $0x78] sm:$0xff] (!%p14875_p4)  }
 0x841   : > { %13140 = vst [vmem:[#allocation2 + $0x60] sm:$0xff] %v13108_v38  ;;  %v13110_v37 = vadd.f32 %v15068_v6, %v485_v33  ;;  %13157 = vst [vmem:[#allocation2 + $0xe8] sm:$0xff] %v13125_v7  ;;  %v13127_v15 = vadd.f32 %v15101_v58, %v502_v41  ;;  %14912 = vmatprep.subr.bf16.mxu0 (!%p14875_p4), %v17893_v16  ;;  %v13211_v18 = vmul.f32 (!%p14875_p4), %v20338_v9, %v13167_v3  ;;  %v13170_v29 = vld [vmem:[#allocation2 + $0x30] sm:$0xff] (!%p14875_p4)  ;;  %v13173_v36 = vld [vmem:[#allocation2 + $0x48] sm:$0xff] (!%p14875_p4) }
 0x842   : > { %13141 = vst [vmem:[#allocation2 + $0x68] sm:$0xff] %v13109_v44  ;;  %v13111_v47 = vadd.f32 %v15069_v14, %v486_v34  ;;  %13158 = vst [vmem:[#allocation2 + $0xf0] sm:$0xff] %v13126_v45  ;;  %v13208_v20 = vmul.f32 (!%p14875_p4), %v20336_v59, %v13164_v43  ;;  %v13210_v11 = vmul.f32 (!%p14875_p4), %v20336_v59, %v13166_v4  ;;  %v17906_v41 = vld [vmem:[#allocation11 + $0x38] sm:$0xff] (!%p14875_p4)   ;;  %v17907_v58 = vld [vmem:[#allocation14] sm:$0xff] (!%p14875_p4)  }
 0x843   : > { %13142 = vst [vmem:[#allocation2 + $0x70] sm:$0xff] %v13110_v37  ;;  %13159 = vst [vmem:[#allocation2 + $0xf8] sm:$0xff] %v13127_v15  ;;  %v13213_v21 = vmul.f32 (!%p14875_p4), %v20338_v9, %v13169_v63  ;;  %v13215_v23 = vmul.f32 (!%p14875_p4), %v20338_v9, %v13171_v10  ;;  %v13253_v24 = vadd.f32 (!%p14875_p4), %v20342_v62, %v13209_v17  ;;  %v13175_v38 = vld [vmem:[#allocation2 + $0x58] sm:$0xff] (!%p14875_p4)  ;;  %v13174_v15 = vld [vmem:[#allocation2 + $0x50] sm:$0xff] (!%p14875_p4)  ;;  %14990 = vmatprep.subr.bf16.mxu1 (!%p14875_p4), %v17907_v58 }
 0x844   : > { %13143 = vst [vmem:[#allocation2 + $0x78] sm:$0xff] %v13111_v47  ;;  %14913 = vmatpush3.bf16.msra.mxu0 (!%p14875_p4), %v17894_v0  ;;  %v13255_v12 = vadd.f32 (!%p14875_p4), %v20342_v62, %v13211_v18  ;;  %v13252_v52 = vadd.f32 (!%p14875_p4), %v20340_v28, %v13208_v20  ;;  %v13254_v26 = vadd.f32 (!%p14875_p4), %v20340_v28, %v13210_v11  ;;  %v13172_v47 = vld [vmem:[#allocation2 + $0x40] sm:$0xff] (!%p14875_p4)  ;;  %v17908_v16 = vld [vmem:[#allocation14 + $0x8] sm:$0xff] (!%p14875_p4)   ;;  %v13183_v18 = vld [vmem:[#allocation2 + $0x98] sm:$0xff] (!%p14875_p4) }
 0x845   : > { %14914 = vmatprep.subr.bf16.mxu0 %v17895_v8  ;;  %v13285_v32 = vmax.f32 %v13253_v24, 0.0  ;;  %v13257_v33 = vadd.f32 %v20342_v62, %v13213_v21  ;;  %v13259_v31 = vadd.f32 %v20342_v62, %v13215_v23  ;;  %v13212_v6 = vmul.f32 %v20336_v59, %v13168_v27  ;;  %14991 = vmatpush3.bf16.msra.mxu1 %v17907_v58  ;;  %v13181_v17 = vld [vmem:[#allocation2 + $0x88] sm:$0xff] }
 0x846   : > { %v13287_v5 = vmax.f32 %v13255_v12, 0.0  ;;  %v13214_v13 = vmul.f32 %v20336_v59, %v13170_v29  ;;  %v13284_v34 = vmax.f32 %v13252_v52, 0.0  ;;  %v13286_v55 = vmax.f32 %v13254_v26, 0.0  ;;  %14992 = vmatprep.subr.bf16.mxu1 %v17908_v16 }
 0x847   : > { %v13289_v42 = vmax.f32 %v13257_v33, 0.0  ;;  %v13291_v44 = vmax.f32 %v13259_v31, 0.0  ;;  %v13217_v7 = vmul.f32 %v20338_v9, %v13173_v36  ;;  %v13219_v14 = vmul.f32 %v20338_v9, %v13175_v38  ;;  %v13180_v33 = vld [vmem:[#allocation2 + $0x80] sm:$0xff]  ;;  %v13182_v31 = vld [vmem:[#allocation2 + $0x90] sm:$0xff]  ;;  %v13187_v36 = vld [vmem:[#allocation2 + $0xb8] sm:$0xff] }
 0x848   : > { %14915 = vmatpush3.bf16.msra.mxu0 %v17896_v1  ;;  %v13317_v39 = vpack.c.bf16 %v13287_v5, %v13285_v32  ;;  %v13256_v37 = vadd.f32 %v20340_v28, %v13212_v6  ;;  %v13258_v45 = vadd.f32 %v20340_v28, %v13214_v13  ;;  %v13316_v61 = vpack.c.bf16 %v13286_v55, %v13284_v34  ;;  %v13176_v10 = vld [vmem:[#allocation2 + $0x60] sm:$0xff] }
 0x849   : > { %14916 = vmatprep.subr.bf16.mxu0 %v17897_v19  ;;  %v13177_v48 = vld [vmem:[#allocation2 + $0x68] sm:$0xff]  ;;  %v13319_v0 = vpack.c.bf16 %v13291_v44, %v13289_v42  ;;  %v13261_v8 = vadd.f32 %v20342_v62, %v13217_v7  ;;  %v13263_v40 = vadd.f32 %v20342_v62, %v13219_v14  ;;  %v17909_v19 = vld [vmem:[#allocation14 + $0x10] sm:$0xff]   ;;  %v13218_v2 = vmul.f32 %v20336_v59, %v13174_v15 }
 0x84a   : > { %13499 = vmatprep.mubr.bf16.mxu0 %v13317_v39  ;;  %v13288_v50 = vmax.f32 %v13256_v37, 0.0  ;;  %14993 = vmatpush3.bf16.msra.mxu1 %v17908_v16  ;;  %v13225_v12 = vmul.f32 %v20338_v9, %v13181_v17  ;;  %v13227_v52 = vmul.f32 %v20338_v9, %v13183_v18  ;;  %v13224_v6 = vmul.f32 %v20336_v59, %v13180_v33  ;;  %v13186_v15 = vld [vmem:[#allocation2 + $0xb0] sm:$0xff] }
 0x84b   : > { %v13179_v1 = vld [vmem:[#allocation2 + $0x78] sm:$0xff]  ;;  %v13293_v22 = vmax.f32 %v13261_v8, 0.0  ;;  %14994 = vmatprep.subr.bf16.mxu1 %v17909_v19  ;;  %v13262_v60 = vadd.f32 %v20340_v28, %v13218_v2  ;;  %v13226_v13 = vmul.f32 %v20336_v59, %v13182_v31  ;;  %v13231_v42 = vmul.f32 %v20338_v9, %v13187_v36 }
 0x84c   : > { %14917 = vmatpush3.bf16.msra.mxu0 %v17898_v51  ;;  %v13290_v51 = vmax.f32 %v13258_v45, 0.0  ;;  %v13223_v57 = vmul.f32 %v20338_v9, %v13179_v1  ;;  %v13269_v32 = vadd.f32 %v20342_v62, %v13225_v12  ;;  %v13271_v5 = vadd.f32 %v20342_v62, %v13227_v52 }
 0x84d   : > { %14918 = vmatprep.subr.bf16.mxu0 %v17899_v53  ;;  %v13216_v53 = vmul.f32 %v20336_v59, %v13172_v47  ;;  %v13294_v11 = vmax.f32 %v13262_v60, 0.0  ;;  %v13268_v7 = vadd.f32 %v20340_v28, %v13224_v6  ;;  %v13270_v14 = vadd.f32 %v20340_v28, %v13226_v13  ;;  %v13184_v47 = vld [vmem:[#allocation2 + $0xa0] sm:$0xff]  ;;  %v13193_v60 = vld [vmem:[#allocation2 + $0xe8] sm:$0xff] }
 0x84e   : > { %v13318_v3 = vpack.c.bf16 %v13290_v51, %v13288_v50  ;;  %v13267_v63 = vadd.f32 %v20342_v62, %v13223_v57  ;;  %14995 = vmatpush3.bf16.msra.mxu1 %v17909_v19  ;;  %v13301_v34 = vmax.f32 %v13269_v32, 0.0  ;;  %v13303_v55 = vmax.f32 %v13271_v5, 0.0  ;;  %v17910_v13 = vld [vmem:[#allocation14 + $0x18] sm:$0xff]  }
 0x84f   : > { %v13260_v25 = vadd.f32 %v20340_v28, %v13216_v53  ;;  %v13275_v45 = vadd.f32 %v20342_v62, %v13231_v42  ;;  %v13300_v16 = vmax.f32 %v13268_v7, 0.0  ;;  %v13228_v8 = vmul.f32 %v20336_v59, %v13184_v47  ;;  %14996 = vmatprep.subr.bf16.mxu1 %v17910_v13 }
 0x850   : > { %14919 = vmatpush3.bf16.msra.mxu0 %v17900_v54  ;;  %v13295_v54 = vmax.f32 %v13263_v40, 0.0  ;;  %v13299_v24 = vmax.f32 %v13267_v63, 0.0  ;;  %v13325_v58 = vpack.c.bf16 %v13303_v55, %v13301_v34  ;;  %v13230_v40 = vmul.f32 %v20336_v59, %v13186_v15  ;;  %v17911_v34 = vld [vmem:[#allocation14 + $0x20] sm:$0xff]   ;;  %v17913_v55 = vld [vmem:[#allocation14 + $0x30] sm:$0xff]  }
 0x851   : > { %14920 = vmatprep.subr.bf16.mxu0 %v17901_v56  ;;  %v13221_v56 = vmul.f32 %v20338_v9, %v13177_v48  ;;  %v13292_v20 = vmax.f32 %v13260_v25, 0.0  ;;  %v13191_v48 = vld [vmem:[#allocation2 + $0xd8] sm:$0xff]  ;;  %v13307_v19 = vmax.f32 %v13275_v45, 0.0  ;;  %v13272_v2 = vadd.f32 %v20340_v28, %v13228_v8  ;;  %v13190_v25 = vld [vmem:[#allocation2 + $0xd0] sm:$0xff] }
 0x852   : > { %v13321_v43 = vpack.c.bf16 %v13295_v54, %v13293_v22  ;;  %v13235_v51 = vmul.f32 %v20338_v9, %v13191_v48  ;;  %v13274_v22 = vadd.f32 %v20340_v28, %v13230_v40  ;;  %14997 = vmatpush3.bf16.msra.mxu1 %v17910_v13 }
 0x853   : > { %v13265_v4 = vadd.f32 %v20342_v62, %v13221_v56  ;;  %v13320_v26 = vpack.c.bf16 %v13294_v11, %v13292_v20  ;;  %v13237_v20 = vmul.f32 %v20338_v9, %v13193_v60  ;;  %14998 = vmatprep.subr.bf16.mxu1 %v17911_v34 }
 0x854   : > { %14921 = vmatpush3.bf16.msra.mxu0 %v17902_v46  ;;  %v13178_v46 = vld [vmem:[#allocation2 + $0x70] sm:$0xff]  ;;  %v13279_v57 = vadd.f32 %v20342_v62, %v13235_v51  ;;  %v13306_v63 = vmax.f32 %v13274_v22, 0.0 }
 0x855   : > { %14922 = vmatprep.subr.bf16.mxu0 %v17903_v49  ;;  %v13220_v49 = vmul.f32 %v20336_v59, %v13176_v10  ;;  %v13222_v21 = vmul.f32 %v20336_v59, %v13178_v46  ;;  %v13297_v23 = vmax.f32 %v13265_v4, 0.0  ;;  %v13304_v4 = vmax.f32 %v13272_v2, 0.0 }
 0x856   : > { %v13234_v46 = vmul.f32 %v20336_v59, %v13190_v25  ;;  %v13311_v18 = vmax.f32 %v13279_v57, 0.0  ;;  %v13281_v12 = vadd.f32 %v20342_v62, %v13237_v20  ;;  %14999 = vmatpush3.bf16.msra.mxu1 %v17911_v34 }
 0x857   : > { %v13264_v27 = vadd.f32 %v20340_v28, %v13220_v49  ;;  %v13266_v29 = vadd.f32 %v20340_v28, %v13222_v21  ;;  %v13326_v49 = vpack.c.bf16 %v13306_v63, %v13304_v4 }
 0x858   : > { %14923 = vmatpush3.bf16.msra.mxu0 %v17904_v30  ;;  %v13323_v30 = vpack.c.bf16 %v13299_v24, %v13297_v23  ;;  %v13278_v23 = vadd.f32 %v20340_v28, %v13234_v46 }
 0x859   : > { %14924 = vmatprep.subr.bf16.mxu0 %v17905_v35  ;;  %v13185_v35 = vld [vmem:[#allocation2 + $0xa8] sm:$0xff]  ;;  %v13296_v38 = vmax.f32 %v13264_v27, 0.0  ;;  %v13298_v39 = vmax.f32 %v13266_v29, 0.0  ;;  %v13194_v27 = vld [vmem:[#allocation2 + $0xf0] sm:$0xff] }
 0x85a   : > { %v13238_v5 = vmul.f32 %v20336_v59, %v13194_v27 }
 0x85b   : > { %v13322_v44 = vpack.c.bf16 %v13298_v39, %v13296_v38 }
 0x85c   : > { %14925 = vmatpush3.bf16.msra.mxu0 %v17906_v41  ;;  %v13229_v41 = vmul.f32 %v20338_v9, %v13185_v35  ;;  %v13282_v36 = vadd.f32 %v20340_v28, %v13238_v5 }
 0x85e   : > { %v13273_v37 = vadd.f32 %v20342_v62, %v13229_v41  ;;  %v13314_v39 = vmax.f32 %v13282_v36, 0.0 }
 0x85f   : > { %13500 = vmatmul.mubr.bf16.vlgmr.msra.gmra.mrb[0].mxu0 %v13316_v61  ;;  %v13189_v61 = vld [vmem:[#allocation2 + $0xc8] sm:$0xff] }
 0x860   : > { %13507 = vmatprep.mubr.bf16.mxu0 %v13319_v0  ;;  %v13302_v0 = vmax.f32 %v13270_v14, 0.0  ;;  %v13305_v1 = vmax.f32 %v13273_v37, 0.0  ;;  %v13233_v50 = vmul.f32 %v20338_v9, %v13189_v61 }
 0x862   : > { %v13324_v53 = vpack.c.bf16 %v13302_v0, %v13300_v16  ;;  %v13327_v54 = vpack.c.bf16 %v13307_v19, %v13305_v1  ;;  %v13277_v56 = vadd.f32 %v20342_v62, %v13233_v50 }
 0x864   : > { %v13309_v17 = vmax.f32 %v13277_v56, 0.0 }
 0x866   : > { %v13329_v24 = vpack.c.bf16 %v13311_v18, %v13309_v17 }
 0x867   : > { %13508 = vmatmul.mubr.bf16.gmra.mrb[4].mxu0 %v13318_v3  ;;  %v13188_v3 = vld [vmem:[#allocation2 + $0xc0] sm:$0xff] }
 0x868   : > { %13515 = vmatprep.mubr.bf16.mxu0 %v13321_v43  ;;  %v13195_v43 = vld [vmem:[#allocation2 + $0xf8] sm:$0xff]  ;;  %v13232_v10 = vmul.f32 %v20336_v59, %v13188_v3 }
 0x869   : > { %v13239_v11 = vmul.f32 %v20338_v9, %v13195_v43  ;;  %v13313_v9 = vmax.f32 %v13281_v12, 0.0 }
 0x86a   : > { %v13276_v21 = vadd.f32 %v20340_v28, %v13232_v10 }
 0x86b   : > { %v13283_v52 = vadd.f32 %v20342_v62, %v13239_v11 }
 0x86c   : > { %v13308_v29 = vmax.f32 %v13276_v21, 0.0 }
 0x86d   : > { %v13315_v33 = vmax.f32 %v13283_v52, 0.0 }
 0x86f   : > { %13516 = vmatmul.mubr.bf16.gmra.mrb[8].mxu0 %v13320_v26  ;;  %v13192_v26 = vld [vmem:[#allocation2 + $0xe0] sm:$0xff]  ;;  %v13331_v38 = vpack.c.bf16 %v13315_v33, %v13313_v9 }
 0x870   : > { %13523 = vmatprep.mubr.bf16.mxu0 %v13323_v30  ;;  %v13310_v30 = vmax.f32 %v13278_v23, 0.0  ;;  %v13236_v32 = vmul.f32 %v20336_v59, %v13192_v26  ;;  %v17912_v59 = vld [vmem:[#allocation14 + $0x28] sm:$0xff]  }
 0x871   : > { %15000 = vmatprep.subr.bf16.mxu1 %v17912_v59 }
 0x872   : > { %v13328_v31 = vpack.c.bf16 %v13310_v30, %v13308_v29  ;;  %v13280_v35 = vadd.f32 %v20340_v28, %v13236_v32  ;;  %15001 = vmatpush3.bf16.msra.mxu1 %v17912_v59  ;;  %v17914_v28 = vld [vmem:[#allocation14 + $0x38] sm:$0xff]  }
 0x873   : > { %15002 = vmatprep.subr.bf16.mxu1 %v17913_v55 }
 0x874   : > { %v13312_v62 = vmax.f32 %v13280_v35, 0.0 }
 0x876   : > { %v13330_v6 = vpack.c.bf16 %v13314_v39, %v13312_v62  ;;  %15003 = vmatpush3.bf16.msra.mxu1 %v17913_v55 }
 0x877   : > { %13524 = vmatmul.mubr.bf16.gmra.mrb[12].mxu0 %v13322_v44  ;;  %15004 = vmatprep.subr.bf16.mxu1 %v17914_v28  ;;  %v20408_v44 = vld [vmem:[#allocation12] ss:$0 sm:$0xff] }
 0x878   : > { %13531 = vmatprep.mubr.bf16.mxu0 %v13325_v58 }
 0x87a   : > { %15005 = vmatpush3.bf16.msra.mxu1 %v17914_v28 }
 0x87f   : > { %13532 = vmatmul.mubr.bf16.gmra.mrb[16].mxu0 %v13324_v53 }
 0x880   : > { %13539 = vmatprep.mubr.bf16.mxu0 %v13327_v54 }
 0x887   : > { %13540 = vmatmul.mubr.bf16.gmra.mrb[20].mxu0 %v13326_v49 }
 0x888   : > { %13547 = vmatprep.mubr.bf16.mxu0 %v13329_v24 }
 0x88f   : > { %13548 = vmatmul.mubr.bf16.gmra.mrb[24].mxu0 %v13328_v31 }
 0x890   : > { %13555 = vmatprep.mubr.bf16.mxu0 %v13331_v38 }
 0x897   : > { %13556 = vmatmul.mubr.bf16.gmra.mrb[28].mxu0 %v13330_v6 }
 0x932   : > { %v14926_v41 = vpop.f32.mrb[0].mxu0 }
 0x933   : > { %v14927_v42 = vpop.f32.mrb[1].mxu0 }
 0x934   : > { %v14928_v7 = vadd.f32 %v14927_v42, %v14926_v41  ;;  %v14929_v14 = vpop.f32.mrb[2].mxu0 }
 0x935   : > { %v14930_v58 = vpop.f32.mrb[3].mxu0 }
 0x936   : > { %v14931_v37 = vadd.f32 %v14930_v58, %v14929_v14  ;;  %v13502_v45 = vadd.f32 %v14928_v7, %v20408_v44 }
 0x938   : > { %v13505_v47 = vadd.f32 %v14931_v37, %v20408_v44  ;;  %v13564_v61 = vmax.f32 %v13502_v45, 0.0 }
 0x93a   : > { %v14932_v15 = vpop.f32.mrb[4].mxu0  ;;  %v13565_v48 = vmax.f32 %v13505_v47, 0.0 }
 0x93b   : > { %v14933_v16 = vpop.f32.mrb[5].mxu0 }
 0x93c   : > { %v14934_v0 = vadd.f32 %v14933_v16, %v14932_v15  ;;  %v14935_v8 = vpop.f32.mrb[6].mxu0  ;;  %v13580_v40 = vpack.c.bf16 %v13565_v48, %v13564_v61 }
 0x93d   : > { %v14936_v1 = vpop.f32.mrb[7].mxu0 }
 0x93e   : > { %v13510_v19 = vadd.f32 %v14934_v0, %v20408_v44  ;;  %v14937_v50 = vadd.f32 %v14936_v1, %v14935_v8  ;;  %15006 = vmatprep.mubr.bf16.mxu1 %v13580_v40 }
 0x940   : > { %v13513_v51 = vadd.f32 %v14937_v50, %v20408_v44  ;;  %v13566_v53 = vmax.f32 %v13510_v19, 0.0 }
 0x942   : > { %v13567_v2 = vmax.f32 %v13513_v51, 0.0  ;;  %v14938_v22 = vpop.f32.mrb[8].mxu0 }
 0x943   : > { %v14939_v54 = vpop.f32.mrb[9].mxu0 }
 0x944   : > { %v14940_v56 = vadd.f32 %v14939_v54, %v14938_v22  ;;  %v14941_v57 = vpop.f32.mrb[10].mxu0  ;;  %v13581_v3 = vpack.c.bf16 %v13567_v2, %v13566_v53 }
 0x945   : > { %v14942_v25 = vpop.f32.mrb[11].mxu0 }
 0x946   : > { %v13518_v60 = vadd.f32 %v14940_v56, %v20408_v44  ;;  %v14943_v43 = vadd.f32 %v14942_v25, %v14941_v57  ;;  %15007 = vmatmul.mubr.bf16.vlgmr.msra.gmra.mrb[0].mxu1 %v13581_v3  ;;  %v14893_v3 = vld [vmem:[#allocation15] ss:$0 sm:$0xff] }
 0x948   : > { %v13521_v4 = vadd.f32 %v14943_v43, %v20408_v44  ;;  %v13568_v63 = vmax.f32 %v13518_v60, 0.0 }
 0x94a   : > { %v13569_v10 = vmax.f32 %v13521_v4, 0.0  ;;  %v14944_v46 = vpop.f32.mrb[12].mxu0 }
 0x94b   : > { %v14945_v17 = vpop.f32.mrb[13].mxu0 }
 0x94c   : > { %v14946_v18 = vadd.f32 %v14945_v17, %v14944_v46  ;;  %v14947_v20 = vpop.f32.mrb[14].mxu0  ;;  %v13582_v11 = vpack.c.bf16 %v13569_v10, %v13568_v63 }
 0x94d   : > { %v14948_v49 = vpop.f32.mrb[15].mxu0 }
 0x94e   : > { %v13526_v21 = vadd.f32 %v14946_v18, %v20408_v44  ;;  %v14949_v23 = vadd.f32 %v14948_v49, %v14947_v20  ;;  %15010 = vmatprep.mubr.bf16.mxu1 %v13582_v11 }
 0x950   : > { %v13529_v24 = vadd.f32 %v14949_v23, %v20408_v44  ;;  %v13570_v12 = vmax.f32 %v13526_v21, 0.0 }
 0x952   : > { %v13571_v52 = vmax.f32 %v13529_v24, 0.0  ;;  %v14950_v26 = vpop.f32.mrb[16].mxu0 }
 0x953   : > { %v14951_v27 = vpop.f32.mrb[17].mxu0 }
 0x954   : > { %v14952_v29 = vadd.f32 %v14951_v27, %v14950_v26  ;;  %v14953_v30 = vpop.f32.mrb[18].mxu0  ;;  %v13583_v32 = vpack.c.bf16 %v13571_v52, %v13570_v12 }
 0x955   : > { %v14954_v5 = vpop.f32.mrb[19].mxu0 }
 0x956   : > { %v13534_v9 = vadd.f32 %v14952_v29, %v20408_v44  ;;  %v14955_v33 = vadd.f32 %v14954_v5, %v14953_v30  ;;  %15011 = vmatmul.mubr.bf16.gmra.mrb[4].mxu1 %v13583_v32 }
 0x958   : > { %v13537_v31 = vadd.f32 %v14955_v33, %v20408_v44  ;;  %v13572_v35 = vmax.f32 %v13534_v9, 0.0 }
 0x95a   : > { %v13573_v36 = vmax.f32 %v13537_v31, 0.0  ;;  %v14956_v38 = vpop.f32.mrb[20].mxu0 }
 0x95b   : > { %v14957_v62 = vpop.f32.mrb[21].mxu0 }
 0x95c   : > { %v14958_v39 = vadd.f32 %v14957_v62, %v14956_v38  ;;  %v14959_v6 = vpop.f32.mrb[22].mxu0  ;;  %v13584_v13 = vpack.c.bf16 %v13573_v36, %v13572_v35 }
 0x95d   : > { %v14960_v34 = vpop.f32.mrb[23].mxu0 }
 0x95e   : > { %v13542_v59 = vadd.f32 %v14958_v39, %v20408_v44  ;;  %v14961_v55 = vadd.f32 %v14960_v34, %v14959_v6  ;;  %15014 = vmatprep.mubr.bf16.mxu1 %v13584_v13 }
 0x960   : > { %v13545_v28 = vadd.f32 %v14961_v55, %v20408_v44  ;;  %v13574_v41 = vmax.f32 %v13542_v59, 0.0 }
 0x962   : > { %v13575_v42 = vmax.f32 %v13545_v28, 0.0  ;;  %v14962_v7 = vpop.f32.mrb[24].mxu0 }
 0x963   : > { %v14963_v14 = vpop.f32.mrb[25].mxu0 }
 0x964   : > { %v14964_v58 = vadd.f32 %v14963_v14, %v14962_v7  ;;  %v14965_v37 = vpop.f32.mrb[26].mxu0  ;;  %v13585_v45 = vpack.c.bf16 %v13575_v42, %v13574_v41 }
 0x965   : > { %v14966_v47 = vpop.f32.mrb[27].mxu0 }
 0x966   : > { %v13550_v15 = vadd.f32 %v14964_v58, %v20408_v44  ;;  %v14967_v61 = vadd.f32 %v14966_v47, %v14965_v37  ;;  %15015 = vmatmul.mubr.bf16.gmra.mrb[8].mxu1 %v13585_v45 }
 0x968   : > { %v13553_v48 = vadd.f32 %v14967_v61, %v20408_v44  ;;  %v13576_v16 = vmax.f32 %v13550_v15, 0.0 }
 0x96a   : > { %v13577_v0 = vmax.f32 %v13553_v48, 0.0  ;;  %v14968_v8 = vpop.f32.mrb[28].mxu0 }
 0x96b   : > { %v14969_v40 = vpop.f32.mrb[29].mxu0 }
 0x96c   : > { %v14970_v1 = vadd.f32 %v14969_v40, %v14968_v8  ;;  %v14971_v19 = vpop.f32.mrb[30].mxu0  ;;  %v13586_v50 = vpack.c.bf16 %v13577_v0, %v13576_v16 }
 0x96d   : > { %v14972_v51 = vpop.f32.mrb[31].mxu0 }
 0x96e   : > { %v13558_v53 = vadd.f32 %v14970_v1, %v20408_v44  ;;  %v14973_v2 = vadd.f32 %v14972_v51, %v14971_v19  ;;  %15018 = vmatprep.mubr.bf16.mxu1 %v13586_v50 }
 0x970   : > { %v13561_v22 = vadd.f32 %v14973_v2, %v20408_v44  ;;  %v13578_v54 = vmax.f32 %v13558_v53, 0.0 }
 0x972   : > { %v13579_v56 = vmax.f32 %v13561_v22, 0.0 }
 0x974   : > { %v13587_v57 = vpack.c.bf16 %v13579_v56, %v13578_v54 }
 0x976   : > { %15019 = vmatmul.mubr.bf16.gmra.mrb[12].mxu1 %v13587_v57 }
 0xa19   : > { %v15008_v25 = vpop.f32.mrb[0].mxu1 }
 0xa1a   : > { %v13702_v60 = vadd.f32 %v15008_v25, %v14893_v3  ;;  %v13693_v43 = vpop.f32.mrb[1].mxu1 }
 0xa1b   : > { %v13694_v4 = vadd.f32 %v14893_v3, %v13693_v43  ;;  %v15009_v63 = vpop.f32.mrb[2].mxu1 }
 0xa1c   : > { %13760 = vmax.xlane.f32.xlu1 %v13702_v60  ;;  %v13696_v10 = vpop.f32.mrb[3].mxu1  ;;  %v13705_v46 = vadd.f32 %v15009_v63, %v14893_v3 }
 0xa1d   : > { %13756 = vmax.xlane.f32.xlu0 %v13694_v4  ;;  %v13697_v17 = vadd.f32 %v14893_v3, %v13696_v10 }
 0xa20   : > { %13762 = vmax.xlane.f32.xlu1 %v13705_v46 }
 0xa21   : > { %13758 = vmax.xlane.f32.xlu0 %v13697_v17 }
 0xa29   : > { %v15012_v18 = vpop.f32.mrb[4].mxu1 }
 0xa2a   : > { %v13718_v20 = vadd.f32 %v15012_v18, %v14893_v3  ;;  %v13709_v44 = vpop.f32.mrb[5].mxu1 }
 0xa2b   : > { %v15013_v11 = vpop.f32.mrb[6].mxu1  ;;  %v13710_v23 = vadd.f32 %v14893_v3, %v13709_v44 }
 0xa2c   : > { %v13721_v49 = vadd.f32 %v15013_v11, %v14893_v3  ;;  %v13712_v21 = vpop.f32.mrb[7].mxu1  ;;  %13768 = vmax.xlane.f32.xlu0 %v13718_v20 }
 0xa2d   : > { %v13713_v24 = vadd.f32 %v14893_v3, %v13712_v21 }
 0xa2e   : > { %13770 = vmax.xlane.f32.xlu1 %v13721_v49 }
 0xa30   : > { %13764 = vmax.xlane.f32.xlu0 %v13710_v23 }
 0xa32   : > { %13766 = vmax.xlane.f32.xlu1 %v13713_v24 }
 0xa39   : > { %v15016_v12 = vpop.f32.mrb[8].mxu1 }
 0xa3a   : > { %v20426_v52 = vadd.f32 %v15016_v12, %v14893_v3  ;;  %v13725_v26 = vpop.f32.mrb[9].mxu1 }
 0xa3b   : > { %v15017_v27 = vpop.f32.mrb[10].mxu1  ;;  %v20431_v32 = vadd.f32 %v14893_v3, %v13725_v26 }
 0xa3c   : > { %v20428_v29 = vadd.f32 %v15017_v27, %v14893_v3  ;;  %v13728_v30 = vpop.f32.mrb[11].mxu1  ;;  %13776 = vmax.xlane.f32.xlu0 %v20426_v52 }
 0xa3d   : > { %v20434_v5 = vadd.f32 %v14893_v3, %v13728_v30 }
 0xa3e   : > { %13778 = vmax.xlane.f32.xlu1 %v20428_v29 }
 0xa40   : > { %13772 = vmax.xlane.f32.xlu0 %v20431_v32 }
 0xa42   : > { %13774 = vmax.xlane.f32.xlu1 %v20434_v5 }
 0xa49   : > { %v15020_v9 = vpop.f32.mrb[12].mxu1 }
 0xa4a   : > { %v13741_v33 = vpop.f32.mrb[13].mxu1  ;;  %v20443_v62 = vadd.f32 %v15020_v9, %v14893_v3 }
 0xa4b   : > { %v20438_v31 = vadd.f32 %v14893_v3, %v13741_v33  ;;  %v15021_v35 = vpop.f32.mrb[14].mxu1 }
 0xa4c   : > { %v13744_v36 = vpop.f32.mrb[15].mxu1  ;;  %v20446_v39 = vadd.f32 %v15021_v35, %v14893_v3 }
 0xa4d   : > { %v20440_v38 = vadd.f32 %v14893_v3, %v13744_v36  ;;  %13780 = vmax.xlane.f32.xlu0 %v20438_v31 }
 0xa4f   : > { %13782 = vmax.xlane.f32.xlu1 %v20440_v38 }
 0xa51   : > { %13784 = vmax.xlane.f32.xlu0 %v20443_v62 }
 0xa53   : > { %13786 = vmax.xlane.f32.xlu1 %v20446_v39 }
 0xaa9   : > { %v13761_v6 = vpop.xlane.xlu1 %13760 }
 0xaaa   : > { %v20450_v13 = vsub.f32 %v13702_v60, %v13761_v6  ;;  %v13757_v34 = vpop.xlane.xlu0 %13756 }
 0xaab   : > { %v20452_v59 = vsub.f32 %v13694_v4, %v13757_v34 }
 0xaac   : > { %v13808_v55 = vmul.f32 1.442695, %v20450_v13 }
 0xaad   : > { %v13804_v28 = vmul.f32 1.442695, %v20452_v59  ;;  %v13763_v41 = vpop.xlane.xlu1 %13762 }
 0xaae   : > { %17915 = vpow2.f32 %v13808_v55  ;;  %v20456_v42 = vsub.f32 %v13705_v46, %v13763_v41  ;;  %v13759_v7 = vpop.xlane.xlu0 %13758 }
 0xaaf   : > { %v20458_v14 = vsub.f32 %v13697_v17, %v13759_v7  ;;  %17917 = vpow2.f32 %v13804_v28 }
 0xab0   : > { %v13810_v58 = vmul.f32 1.442695, %v20456_v42 }
 0xab1   : > { %v13806_v37 = vmul.f32 1.442695, %v20458_v14 }
 0xab2   : > { %17919 = vpow2.f32 %v13810_v58 }
 0xab3   : > { %17921 = vpow2.f32 %v13806_v37 }
 0xab8   : > { %v17916_v45 = vpop.eup %17915 }
 0xab9   : > { %13840 = vadd.xlane.f32.xlu0 %v17916_v45  ;;  %v13769_v47 = vpop.xlane.xlu0 %13768  ;;  %v17918_v61 = vpop.eup %17917 }
 0xaba   : > { %v20462_v15 = vsub.f32 %v13718_v20, %v13769_v47 }
 0xabb   : > { %v13771_v48 = vpop.xlane.xlu1 %13770 }
 0xabc   : > { %v17920_v16 = vpop.eup %17919  ;;  %v13816_v0 = vmul.f32 1.442695, %v20462_v15  ;;  %v20465_v8 = vsub.f32 %v13721_v49, %v13771_v48 }
 0xabd   : > { %13842 = vadd.xlane.f32.xlu1 %v17920_v16  ;;  %13836 = vadd.xlane.f32.xlu0 %v17918_v61  ;;  %v13765_v40 = vpop.xlane.xlu0 %13764  ;;  %v17922_v51 = vpop.eup %17921 }
 0xabe   : > { %17923 = vpow2.f32 %v13816_v0  ;;  %v13818_v1 = vmul.f32 1.442695, %v20465_v8  ;;  %v20468_v19 = vsub.f32 %v13710_v23, %v13765_v40 }
 0xabf   : > { %v13767_v50 = vpop.xlane.xlu1 %13766 }
 0xac0   : > { %17925 = vpow2.f32 %v13818_v1  ;;  %v13812_v53 = vmul.f32 1.442695, %v20468_v19  ;;  %v20471_v2 = vsub.f32 %v13713_v24, %v13767_v50 }
 0xac1   : > { %13838 = vadd.xlane.f32.xlu1 %v17922_v51 }
 0xac2   : > { %17927 = vpow2.f32 %v13812_v53  ;;  %v13814_v22 = vmul.f32 1.442695, %v20471_v2 }
 0xac4   : > { %17929 = vpow2.f32 %v13814_v22 }
 0xac8   : > { %v17924_v54 = vpop.eup %17923 }
 0xac9   : > { %13848 = vadd.xlane.f32.xlu0 %v17924_v54  ;;  %v13777_v56 = vpop.xlane.xlu0 %13776 }
 0xaca   : > { %v17926_v57 = vpop.eup %17925  ;;  %v20475_v3 = vsub.f32 %v20426_v52, %v13777_v56 }
 0xacb   : > { %v13779_v25 = vpop.xlane.xlu1 %13778  ;;  %13850 = vadd.xlane.f32.xlu1 %v17926_v57 }
 0xacc   : > { %v17928_v60 = vpop.eup %17927  ;;  %v13824_v43 = vmul.f32 1.442695, %v20475_v3  ;;  %v20479_v4 = vsub.f32 %v20428_v29, %v13779_v25 }
 0xacd   : > { %13844 = vadd.xlane.f32.xlu0 %v17928_v60  ;;  %v13773_v63 = vpop.xlane.xlu0 %13772 }
 0xace   : > { %v17930_v10 = vpop.eup %17929  ;;  %17931 = vpow2.f32 %v13824_v43  ;;  %v13826_v46 = vmul.f32 1.442695, %v20479_v4  ;;  %v20483_v17 = vsub.f32 %v20431_v32, %v13773_v63 }
 0xacf   : > { %v13775_v18 = vpop.xlane.xlu1 %13774  ;;  %13846 = vadd.xlane.f32.xlu1 %v17930_v10 }
 0xad0   : > { %17933 = vpow2.f32 %v13826_v46  ;;  %v13820_v20 = vmul.f32 1.442695, %v20483_v17  ;;  %v20487_v44 = vsub.f32 %v20434_v5, %v13775_v18 }
 0xad2   : > { %17935 = vpow2.f32 %v13820_v20  ;;  %v13822_v11 = vmul.f32 1.442695, %v20487_v44 }
 0xad4   : > { %17937 = vpow2.f32 %v13822_v11 }
 0xad8   : > { %v17932_v49 = vpop.eup %17931 }
 0xad9   : > { %13856 = vadd.xlane.f32.xlu0 %v17932_v49 }
 0xada   : > { %v17934_v21 = vpop.eup %17933  ;;  %v13781_v23 = vpop.xlane.xlu0 %13780 }
 0xadb   : > { %v20491_v24 = vsub.f32 %v20438_v31, %v13781_v23  ;;  %13858 = vadd.xlane.f32.xlu1 %v17934_v21 }
 0xadc   : > { %v17936_v12 = vpop.eup %17935  ;;  %v13783_v52 = vpop.xlane.xlu1 %13782 }
 0xadd   : > { %v13828_v26 = vmul.f32 1.442695, %v20491_v24  ;;  %v20495_v27 = vsub.f32 %v20440_v38, %v13783_v52  ;;  %13852 = vadd.xlane.f32.xlu0 %v17936_v12 }
 0xade   : > { %v17938_v29 = vpop.eup %17937  ;;  %v13785_v30 = vpop.xlane.xlu0 %13784 }
 0xadf   : > { %17939 = vpow2.f32 %v13828_v26  ;;  %v13830_v32 = vmul.f32 1.442695, %v20495_v27  ;;  %v20499_v5 = vsub.f32 %v20443_v62, %v13785_v30  ;;  %13854 = vadd.xlane.f32.xlu1 %v17938_v29 }
 0xae0   : > { %v13787_v9 = vpop.xlane.xlu1 %13786 }
 0xae1   : > { %17941 = vpow2.f32 %v13830_v32  ;;  %v13832_v33 = vmul.f32 1.442695, %v20499_v5  ;;  %v20503_v31 = vsub.f32 %v20446_v39, %v13787_v9 }
 0xae3   : > { %17943 = vpow2.f32 %v13832_v33  ;;  %v13834_v35 = vmul.f32 1.442695, %v20503_v31 }
 0xae5   : > { %17945 = vpow2.f32 %v13834_v35 }
 0xae9   : > { %v17940_v36 = vpop.eup %17939 }
 0xaea   : > { %13860 = vadd.xlane.f32.xlu0 %v17940_v36 }
 0xaeb   : > { %v17942_v38 = vpop.eup %17941 }
 0xaec   : > { %13862 = vadd.xlane.f32.xlu1 %v17942_v38 }
 0xaed   : > { %v17944_v6 = vpop.eup %17943 }
 0xaee   : > { %13864 = vadd.xlane.f32.xlu0 %v17944_v6 }
 0xaef   : > { %v17946_v62 = vpop.eup %17945 }
 0xaf0   : > { %13866 = vadd.xlane.f32.xlu1 %v17946_v62 }
 0xb46   : > { %v13841_v34 = vpop.xlane.xlu0 %13840 }
 0xb47   : > { %17947 = vlog2.f32 %v13841_v34 }
 0xb4a   : > { %v13843_v55 = vpop.xlane.xlu1 %13842  ;;  %v13837_v28 = vpop.xlane.xlu0 %13836 }
 0xb4b   : > { %17949 = vlog2.f32 %v13843_v55 }
 0xb4c   : > { %17951 = vlog2.f32 %v13837_v28 }
 0xb4e   : > { %v13839_v39 = vpop.xlane.xlu1 %13838 }
 0xb4f   : > { %17953 = vlog2.f32 %v13839_v39 }
 0xb51   : > { %v17948_v41 = vpop.eup %17947 }
 0xb52   : > { %v13873_v7 = vmul.f32 0.6931472, %v17948_v41 }
 0xb54   : > { %v13902_v58 = vsub.f32 %v20450_v13, %v13873_v7 }
 0xb55   : > { %v17950_v37 = vpop.eup %17949 }
 0xb56   : > { %v17952_v45 = vpop.eup %17951  ;;  %13918 = vst [vmem:[#allocation17 + $0x10] sm:$0xff] %v13902_v58  ;;  %v13875_v47 = vmul.f32 0.6931472, %v17950_v37  ;;  %v13849_v61 = vpop.xlane.xlu0 %13848 }
 0xb57   : > { %v13869_v48 = vmul.f32 0.6931472, %v17952_v45  ;;  %17955 = vlog2.f32 %v13849_v61 }
 0xb58   : > { %v13903_v16 = vsub.f32 %v20456_v42, %v13875_v47  ;;  %v13851_v0 = vpop.xlane.xlu1 %13850 }
 0xb59   : > { %v17954_v40 = vpop.eup %17953  ;;  %v13900_v1 = vsub.f32 %v20452_v59, %v13869_v48  ;;  %17957 = vlog2.f32 %v13851_v0 }
 0xb5a   : > { %13919 = vst [vmem:[#allocation17 + $0x18] sm:$0xff] %v13903_v16  ;;  %v13871_v50 = vmul.f32 0.6931472, %v17954_v40  ;;  %v13845_v51 = vpop.xlane.xlu0 %13844 }
 0xb5b   : > { %13916 = vst [vmem:[#allocation17] sm:$0xff] %v13900_v1  ;;  %17959 = vlog2.f32 %v13845_v51 }
 0xb5c   : > { %v13901_v13 = vsub.f32 %v20458_v14, %v13871_v50  ;;  %v13847_v53 = vpop.xlane.xlu1 %13846 }
 0xb5d   : > { %17961 = vlog2.f32 %v13847_v53 }
 0xb5e   : > { %13917 = vst [vmem:[#allocation17 + $0x8] sm:$0xff] %v13901_v13 }
 0xb61   : > { %v17956_v22 = vpop.eup %17955 }
 0xb62   : > { %v13881_v54 = vmul.f32 0.6931472, %v17956_v22 }
 0xb63   : > { %v17958_v56 = vpop.eup %17957 }
 0xb64   : > { %v13906_v42 = vsub.f32 %v20462_v15, %v13881_v54  ;;  %v13883_v57 = vmul.f32 0.6931472, %v17958_v56 }
 0xb65   : > { %v17960_v25 = vpop.eup %17959 }
 0xb66   : > { %13922 = vst [vmem:[#allocation17 + $0x30] sm:$0xff] %v13906_v42  ;;  %v13907_v59 = vsub.f32 %v20465_v8, %v13883_v57  ;;  %v13877_v60 = vmul.f32 0.6931472, %v17960_v25  ;;  %v13857_v43 = vpop.xlane.xlu0 %13856 }
 0xb67   : > { %v17962_v63 = vpop.eup %17961  ;;  %17963 = vlog2.f32 %v13857_v43 }
 0xb68   : > { %13923 = vst [vmem:[#allocation17 + $0x38] sm:$0xff] %v13907_v59  ;;  %v13904_v14 = vsub.f32 %v20468_v19, %v13877_v60  ;;  %v13879_v10 = vmul.f32 0.6931472, %v17962_v63  ;;  %v13859_v46 = vpop.xlane.xlu1 %13858 }
 0xb69   : > { %17965 = vlog2.f32 %v13859_v46 }
 0xb6a   : > { %13920 = vst [vmem:[#allocation17 + $0x20] sm:$0xff] %v13904_v14  ;;  %v13905_v18 = vsub.f32 %v20471_v2, %v13879_v10  ;;  %v13853_v20 = vpop.xlane.xlu0 %13852 }
 0xb6b   : > { %17967 = vlog2.f32 %v13853_v20 }
 0xb6c   : > { %13921 = vst [vmem:[#allocation17 + $0x28] sm:$0xff] %v13905_v18  ;;  %v13855_v15 = vpop.xlane.xlu1 %13854 }
 0xb6d   : > { %17969 = vlog2.f32 %v13855_v15 }
 0xb71   : > { %v17964_v11 = vpop.eup %17963 }
 0xb72   : > { %v13889_v8 = vmul.f32 0.6931472, %v17964_v11 }
 0xb73   : > { %v17966_v49 = vpop.eup %17965 }
 0xb74   : > { %v13910_v21 = vsub.f32 %v20475_v3, %v13889_v8  ;;  %v13891_v23 = vmul.f32 0.6931472, %v17966_v49 }
 0xb75   : > { %v17968_v12 = vpop.eup %17967 }
 0xb76   : > { %13926 = vst [vmem:[#allocation17 + $0x50] sm:$0xff] %v13910_v21  ;;  %v13911_v19 = vsub.f32 %v20479_v4, %v13891_v23  ;;  %v13885_v52 = vmul.f32 0.6931472, %v17968_v12 }
 0xb77   : > { %v17970_v26 = vpop.eup %17969  ;;  %v13861_v29 = vpop.xlane.xlu0 %13860 }
 0xb78   : > { %13927 = vst [vmem:[#allocation17 + $0x58] sm:$0xff] %v13911_v19  ;;  %v13908_v2 = vsub.f32 %v20483_v17, %v13885_v52  ;;  %v13887_v30 = vmul.f32 0.6931472, %v17970_v26  ;;  %17971 = vlog2.f32 %v13861_v29 }
 0xb79   : > { %v13863_v32 = vpop.xlane.xlu1 %13862 }
 0xb7a   : > { %13924 = vst [vmem:[#allocation17 + $0x40] sm:$0xff] %v13908_v2  ;;  %v13909_v9 = vsub.f32 %v20487_v44, %v13887_v30  ;;  %17973 = vlog2.f32 %v13863_v32 }
 0xb7b   : > { %v13865_v33 = vpop.xlane.xlu0 %13864 }
 0xb7c   : > { %13925 = vst [vmem:[#allocation17 + $0x48] sm:$0xff] %v13909_v9  ;;  %17975 = vlog2.f32 %v13865_v33 }
 0xb7d   : > { %v13867_v3 = vpop.xlane.xlu1 %13866 }
 0xb7e   : > { %17977 = vlog2.f32 %v13867_v3 }
 0xb82   : > { %v17972_v35 = vpop.eup %17971 }
 0xb83   : > { %v13893_v4 = vmul.f32 0.6931472, %v17972_v35 }
 0xb84   : > { %v17974_v36 = vpop.eup %17973 }
 0xb85   : > { %v13912_v38 = vsub.f32 %v20491_v24, %v13893_v4  ;;  %v13895_v6 = vmul.f32 0.6931472, %v17974_v36 }
 0xb86   : > { %v17976_v62 = vpop.eup %17975 }
 0xb87   : > { %13928 = vst [vmem:[#allocation17 + $0x60] sm:$0xff] %v13912_v38  ;;  %v13913_v17 = vsub.f32 %v20495_v27, %v13895_v6  ;;  %v13897_v34 = vmul.f32 0.6931472, %v17976_v62 }
 0xb88   : > { %v17978_v55 = vpop.eup %17977 }
 0xb89   : > { %13929 = vst [vmem:[#allocation17 + $0x68] sm:$0xff] %v13913_v17  ;;  %v13914_v44 = vsub.f32 %v20499_v5, %v13897_v34  ;;  %v13899_v28 = vmul.f32 0.6931472, %v17978_v55 }
 0xb8b   : > { %13930 = vst [vmem:[#allocation17 + $0x70] sm:$0xff] %v13914_v44  ;;  %v13915_v39 = vsub.f32 %v20503_v31, %v13899_v28 }
 0xb8d   : > { %13931 = vst [vmem:[#allocation17 + $0x78] sm:$0xff] %v13915_v39 }
 0xb8e PF: > { %p16664_p0 = scmp.eq.s32.totalorder %s18378_s11, 1  ;;  %s18309_s12 = smov [#allocation17]  }
 0xb8f   : > { %s13938_s21 = sshll.u32 %s18309_s12, 4  ;;  %s13939_s21 = int_to_ptr.vmem [resolvable:$true] %s13938_s21 }
 0xb90   : > { %s18207_s14 = scalar_lea.vmem %s13939_s21, 2048  ;;  %p18214_p6 = scmp.lt.s32.totalorder %s13939_s21, %s13939_s21 }
 0xb91   : > { %p18208_p2 = scmp.ne.s32.totalorder %s13939_s21, %s18207_s14  ;;  %p18215_p13 = scmp.lt.s32.totalorder %s18207_s14, %s18207_s14 }
 0xb93   : > { %p18209_p5 = pnand %p18208_p2, %p16664_p0  ;;  %p18216_p9 = por %p18215_p13, %p18214_p6 }
 0xb95   : > { %p18210_p10 = pneg %p18209_p5 }
 0xb97   : > { %p18217_p3 = pnand %p18216_p9, %p18210_p10 }
 0xb99   : > { %18220 = shalt.err (!%p18217_p3)
}
 0xb9a   : > { %s18221_s15 = scalar_lea.hbm %s20566_s8, 2048 }
 0xb9b   : > { %p18222_p12 = scmp.ne.s32.totalorder %s20566_s8, %s18221_s15  ;;  %p18227_p1 = scmp.lt.u32.totalorder %s18221_s15, %s20566_s8 }
 0xb9d   : > { %p18223_p8 = pnand %p18222_p12, %p16664_p0 }
 0xb9f   : > { %p18224_p7 = pneg %p18223_p8 }
 0xba1   : > { %p18229_p11 = pnand %p18227_p1, %p18224_p7 }
 0xba3   : > { %18232 = shalt.err (!%p18229_p11)
}
 0xba4   : > { %s18310_s24 = smov 128   ;;  %s18311_s3 = smov 8  }
 0xba5   : > { %16622 = dma.vmem_to_hbm [thread:$0]  (%p16664_p0), %s13939_s21, 2048, %s20566_s8, [#allocation5], %s18310_s24, %s18310_s24, %s18311_s3  }
 0xba6   : > { %18274 = dma.done.wait (%p16664_p0), [#allocation5], 2048  }
 0xba7   : > { %18276 = vsyncadd (%p16664_p0), [#allocation5], 4294965248 }
 0xba8 PF: > { %p25_p4 = scmp.ge.s32.totalorder %s18544_s25, 4   ;;  %s20592_s27 = smov %s18283_s28 }
 0xba9   : > { %s20593_s28 = smov %s18287_s29  ;;  %s20594_s29 = smov %s18556_s18 }
 0xbaa   : > { %s20595_s30 = smov %s18544_s25  ;;  %27 = sbr.rel (!%p25_p4) target bundleno = 13 (0xd), region = 134 }
 0xbb1   :  { %13954 = vsyncpa [#allocation4], 1 }
 0xbb2   :  { %13956 = vsyncpa [#allocation4 + $0x1], 1 }
 0xbb3   :  { %13957 = vsyncpa [#allocation7], 1 }
 0xbb4   :  { %13959 = vsyncpa [#allocation7 + $0x1], 1 }
 0xbb5   :  { %13960 = vsyncpa [#allocation10], 1 }
 0xbb6   :  { %13961 = vsyncpa [#allocation13], 1 }
 0xbb7   :  { %13962 = vsyncpa [#allocation16], 1 }
 0xbb8   :  { %13963 = vsyncpa [#allocation5], 1 }
 0xbb9   :  { %13965 = vsyncpa [#allocation5 + $0x1], 1 }

</bundles_post_ra>
